<compile_context>
chip_gen: v6e
topology: v6e:2x2x1
jax: 0.10.0
libtpu: 0.0.40
codegen_flags: <defaults>
</compile_context>

<pallas_src>
import jax
import jax.numpy as jnp
from jax.experimental import pallas as pl
from jax.experimental.pallas import tpu as pltpu


def _round_up(x, m):
    return ((x + m - 1) // m) * m


def _cdiv(a, b):
    return (a + b - 1) // b


_VMEM_LIMIT_CACHE = [None]


def _vmem_limit_bytes():
    """Generation-dependent scoped-VMEM limit (v5e/v6e: 128 MiB phys, v7x: 64 MiB/TC)."""
    if _VMEM_LIMIT_CACHE[0] is None:
        try:
            cap = int(pltpu.get_tpu_info().vmem_capacity_bytes)
        except Exception:                      # fall back to a v7x-safe value
            cap = 64 * 1024 * 1024
        _VMEM_LIMIT_CACHE[0] = max(32 * 1024 * 1024, int(cap * 0.8))
    return _VMEM_LIMIT_CACHE[0]


def _compiler_params():
    return pltpu.CompilerParams(
        dimension_semantics=("parallel",),
        vmem_limit_bytes=_vmem_limit_bytes())


# --------------------------- activation layout ------------------------------


def to_conv_layout(x):
    """(N, H, W, C) -> zero-bordered (N, H+3, W+2, C).

    1 top / 2 bottom zero rows, 1 left / 1 right zero col.  The extra bottom
    row guarantees the in-kernel shifted flat slices never run past the end of
    the buffer (the overhang only feeds masked wrap-around columns).
    """
    return jnp.pad(x, ((0, 0), (1, 2), (1, 1), (0, 0)))


# ----------------------- stride-1 3x3 conv (fused) ---------------------------


def _make_conv3x3_kernel(H, W, Cout, act, has_res):
    Wp = W + 2
    Lp = (H + 3) * Wp
    Mz = H * Wp
    offs = tuple(kh * Wp + kw for kh in range(3) for kw in range(3))

    def kernel(x_ref, w_ref, s_ref, b_ref, m_ref, *rest):
        if has_res:
            r_ref, o_ref = rest
        else:
            (o_ref,) = rest
        # In-kernel im2col: 9 statically shifted flat slices of the
        # zero-bordered input, each an MXU matmul accumulated in f32.
        acc = jnp.dot(x_ref[0, offs[0]:offs[0] + Mz, :], w_ref[0],
                      preferred_element_type=jnp.float32)
        for t in range(1, 9):
            a = x_ref[0, offs[t]:offs[t] + Mz, :]
            acc = acc + jnp.dot(a, w_ref[t], preferred_element_type=jnp.float32)
        y = acc * s_ref[...] + b_ref[...]
        if act == "relu":
            y = jnp.maximum(y, 0.0)
        else:  # tanh
            y = jnp.tanh(y)
        if has_res:
            y = y + r_ref[0, Wp + 1:Wp + 1 + Mz, :].astype(jnp.float32)
        # Zero the wrap-around garbage columns so the stored activation keeps a
        # clean zero border (the next conv reads it as its padding).
        y = y * m_ref[0]
        o_ref[0, 0:Wp + 1, :] = jnp.zeros((Wp + 1, Cout), o_ref.dtype)
        o_ref[0, Wp + 1:Wp + 1 + Mz, :] = y.astype(o_ref.dtype)
        o_ref[0, Wp + 1 + Mz:Lp, :] = jnp.zeros((2 * Wp - 1, Cout), o_ref.dtype)

    return kernel


def conv3x3_bn_act(xp, p, act="relu", residual=None, out_dtype=jnp.bfloat16):
    """3x3 stride-1 conv (pad=1) + folded BN + activation on a conv-layout activation.

    xp, residual and the returned activation are all in the zero-bordered
    (N, H+3, W+2, C) layout produced by `to_conv_layout` / this function.
    """
    N, Hp3, Wp, Cin = xp.shape
    H, W = Hp3 - 3, Wp - 2
    w = p["w"]                                           # (Cout, Cin, 3, 3)
    Cout = w.shape[0]
    Lp = Hp3 * Wp
    Mz = H * Wp

    w9 = jnp.transpose(w, (2, 3, 1, 0)).reshape(9, Cin, Cout).astype(jnp.bfloat16)
    s2 = p["scale"].reshape(1, Cout).astype(jnp.float32)
    b2 = p["shift"].reshape(1, Cout).astype(jnp.float32)
    col = jnp.arange(Mz, dtype=jnp.int32) % Wp
    mask = (col < W).astype(jnp.float32).reshape(1, Mz, 1)

    x_flat = xp.reshape(N, Lp, Cin).astype(jnp.bfloat16)
    args = [x_flat, w9, s2, b2, mask]
    in_specs = [
        pl.BlockSpec((1, Lp, Cin), lambda n: (n, 0, 0)),
        pl.BlockSpec((9, Cin, Cout), lambda n: (0, 0, 0)),
        pl.BlockSpec((1, Cout), lambda n: (0, 0)),
        pl.BlockSpec((1, Cout), lambda n: (0, 0)),
        pl.BlockSpec((1, Mz, 1), lambda n: (0, 0, 0)),
    ]
    has_res = residual is not None
    if has_res:
        args.append(residual.reshape(N, Lp, Cout).astype(jnp.bfloat16))
        in_specs.append(pl.BlockSpec((1, Lp, Cout), lambda n: (n, 0, 0)))

    out_bytes = jnp.dtype(out_dtype).itemsize
    cost = pl.CostEstimate(
        flops=2 * N * Mz * 9 * Cin * Cout,
        transcendentals=(N * Mz * Cout if act == "tanh" else 0),
        bytes_accessed=N * Lp * (2 * Cin + out_bytes * Cout
                                 + (2 * Cout if has_res else 0))
        + 9 * Cin * Cout * 2 + Mz * 4 + 8 * Cout,
    )
    out = pl.pallas_call(
        _make_conv3x3_kernel(H, W, Cout, act, has_res),
        out_shape=jax.ShapeDtypeStruct((N, Lp, Cout), out_dtype),
        grid=(N,),
        in_specs=in_specs,
        out_specs=pl.BlockSpec((1, Lp, Cout), lambda n: (n, 0, 0)),
        compiler_params=_compiler_params(),
        cost_estimate=cost,
    )(*args)
    return out.reshape(N, Hp3, Wp, Cout)


# ---------------- transposed conv (k=3, s=2, p=1, out_pad=1) -----------------

# Per output phase (row parity a, col parity b): list of (tap t = kh*3+kw, di, dj)
# with y[2i+a, 2j+b] += x[i+di, j+dj] @ wt[:, :, kh, kw].
_DECONV_PHASE_TAPS = (
    ((4, 0, 0),),                                         # (0, 0)
    ((3, 0, 1), (5, 0, 0)),                               # (0, 1)
    ((1, 1, 0), (7, 0, 0)),                               # (1, 0)
    ((0, 1, 1), (2, 1, 0), (6, 0, 1), (8, 0, 0)),         # (1, 1)
)


def _make_deconv_kernel(H, W):
    Wp = W + 2
    Mz = H * Wp

    def kernel(x_ref, w_ref, s_ref, b_ref, o_ref):
        for ph in range(4):
            acc = None
            for (t, di, dj) in _DECONV_PHASE_TAPS[ph]:
                off = (di + 1) * Wp + (dj + 1)
                a = x_ref[0, off:off + Mz, :]
                d = jnp.dot(a, w_ref[t], preferred_element_type=jnp.float32)
                acc = d if acc is None else acc + d
            y = jnp.maximum(acc * s_ref[...] + b_ref[...], 0.0)
            o_ref[0, ph, :, :] = y.astype(o_ref.dtype)

    return kernel


def deconv_bn_relu(xp, p):
    """ConvTranspose2d(k=3, s=2, p=1, output_padding=1) + BN + ReLU.

    Input is a conv-layout activation; the kernel computes the 4 sub-pixel
    output phases from shifted flat slices (only the real 1/2/2/4 taps per
    phase — no zero-dilated input, no zero blocks in the weight), and the
    phases are interleaved outside.  Returns plain NHWC (N, 2H, 2W, Cout).
    """
    N, Hp3, Wp, Cin = xp.shape
    H, W = Hp3 - 3, Wp - 2
    wt = p["w"]                                          # (Cin, Cout, 3, 3)
    Cout = wt.shape[1]
    Lp = Hp3 * Wp
    Mz = H * Wp

    w9 = jnp.transpose(wt, (2, 3, 0, 1)).reshape(9, Cin, Cout).astype(jnp.bfloat16)
    s2 = p["scale"].reshape(1, Cout).astype(jnp.float32)
    b2 = p["shift"].reshape(1, Cout).astype(jnp.float32)
    x_flat = xp.reshape(N, Lp, Cin).astype(jnp.bfloat16)

    cost = pl.CostEstimate(
        flops=2 * N * Mz * 9 * Cin * Cout,
        transcendentals=0,
        bytes_accessed=N * Lp * 2 * Cin + N * 4 * Mz * 2 * Cout
        + 9 * Cin * Cout * 2 + 8 * Cout,
    )
    out = pl.pallas_call(
        _make_deconv_kernel(H, W),
        out_shape=jax.ShapeDtypeStruct((N, 4, Mz, Cout), jnp.bfloat16),
        grid=(N,),
        in_specs=[
            pl.BlockSpec((1, Lp, Cin), lambda n: (n, 0, 0)),
            pl.BlockSpec((9, Cin, Cout), lambda n: (0, 0, 0)),
            pl.BlockSpec((1, Cout), lambda n: (0, 0)),
            pl.BlockSpec((1, Cout), lambda n: (0, 0)),
        ],
        out_specs=pl.BlockSpec((1, 4, Mz, Cout), lambda n: (n, 0, 0, 0)),
        compiler_params=_compiler_params(),
        cost_estimate=cost,
    )(x_flat, w9, s2, b2)

    # Interleave the 4 phases into (N, 2H, 2W, Cout); drop wrap-around columns.
    phases = out.reshape(N, 2, 2, H, Wp, Cout)[:, :, :, :, :W, :]
    y = jnp.transpose(phases, (0, 3, 1, 4, 2, 5)).reshape(N, 2 * H, 2 * W, Cout)
    return y


# ------------------- stride-2 3x3 conv (im2col + matmul) ---------------------


def _matmul_bn_relu_kernel(a_ref, w_ref, s_ref, b_ref, o_ref):
    acc = jnp.dot(a_ref[...], w_ref[...], preferred_element_type=jnp.float32)
    o_ref[...] = jnp.maximum(acc * s_ref[...] + b_ref[...], 0.0).astype(o_ref.dtype)


def _pick_m_tile(M, bytes_per_row, fixed_bytes):
    m8 = _round_up(M, 8)
    avail = max(int(_vmem_limit_bytes() * 0.6) - fixed_bytes, 1 << 20)
    tm = min(m8, 4096, max(8, (avail // max(bytes_per_row, 1)) // 8 * 8))
    steps = _cdiv(m8, tm)
    if steps > 1 and steps % 2 == 1:       # even step count for v7x's 2 TensorCores
        steps += 1
        tm = max(8, _round_up(_cdiv(m8, steps), 8))
        steps = _cdiv(m8, tm)
    return tm, tm * steps


def matmul_bn_relu(a, w_mat, scale, shift, out_dtype=jnp.bfloat16):
    """out = relu((a @ w) * scale + shift); bf16 MXU operands, f32 accumulate."""
    M, K = a.shape
    Cout = w_mat.shape[1]
    out_bytes = jnp.dtype(out_dtype).itemsize
    per_row = 2 * 2 * K + 2 * out_bytes * Cout + 4 * Cout    # 2-buf A / out + f32 temps
    fixed = 2 * 2 * K * Cout + 16 * Cout
    TM, Mp = _pick_m_tile(M, per_row, fixed)

    a_p = a.astype(jnp.bfloat16)
    if Mp != M:
        a_p = jnp.pad(a_p, ((0, Mp - M), (0, 0)))
    w_p = w_mat.astype(jnp.bfloat16)
    s2 = scale.reshape(1, Cout).astype(jnp.float32)
    b2 = shift.reshape(1, Cout).astype(jnp.float32)

    cost = pl.CostEstimate(
        flops=2 * Mp * K * Cout, transcendentals=0,
        bytes_accessed=Mp * K * 2 + K * Cout * 2 + Mp * Cout * out_bytes + 8 * Cout)
    out = pl.pallas_call(
        _matmul_bn_relu_kernel,
        out_shape=jax.ShapeDtypeStruct((Mp, Cout), out_dtype),
        grid=(Mp // TM,),
        in_specs=[
            pl.BlockSpec((TM, K), lambda i: (i, 0)),
            pl.BlockSpec((K, Cout), lambda i: (0, 0)),
            pl.BlockSpec((1, Cout), lambda i: (0, 0)),
            pl.BlockSpec((1, Cout), lambda i: (0, 0)),
        ],
        out_specs=pl.BlockSpec((TM, Cout), lambda i: (i, 0)),
        compiler_params=_compiler_params(),
        cost_estimate=cost,
    )(a_p, w_p, s2, b2)
    return out[:M]


def _extract_patches(xp, Ho, Wo, stride):
    """xp: zero-bordered conv-layout NHWC.  Returns (N, Ho, Wo, 9*C), (kh, kw, C) order."""
    cols = []
    for kh in range(3):
        for kw in range(3):
            cols.append(xp[:, kh:kh + stride * (Ho - 1) + 1:stride,
                           kw:kw + stride * (Wo - 1) + 1:stride, :])
    return jnp.concatenate(cols, axis=-1)


def downconv_bn_relu(xp, p):
    """3x3 stride-2 conv (pad=1) + BN + ReLU.  Conv-layout input, plain NHWC output."""
    # TODO(synk): the two stride-2 convs still use an XLA-materialized im2col
    #   (9x A inflation); they are a small fraction of total traffic vs the trunk.
    N, Hp3, Wp, Cin = xp.shape
    H, W = Hp3 - 3, Wp - 2
    Ho = (H - 1) // 2 + 1
    Wo = (W - 1) // 2 + 1
    patches = _extract_patches(xp, Ho, Wo, 2).reshape(N * Ho * Wo, 9 * Cin)
    w = p["w"]                                           # (Cout, Cin, 3, 3)
    Cout = w.shape[0]
    w_mat = jnp.transpose(w, (2, 3, 1, 0)).reshape(9 * Cin, Cout)
    y = matmul_bn_relu(patches, w_mat, p["scale"], p["shift"])
    return y.reshape(N, Ho, Wo, Cout)


# ------------------------------ parameters -----------------------------------


def init_conv_bn(key, cin, cout, transposed=False):
    k1, k2, k3, k4 = jax.random.split(key, 4)
    wshape = (cin, cout, 3, 3) if transposed else (cout, cin, 3, 3)
    w = jax.random.normal(k1, wshape, jnp.float32) * 0.05
    bias = jax.random.normal(k2, (cout,), jnp.float32) * 0.05
    gamma = 1.0 + 0.1 * jax.random.normal(k3, (cout,), jnp.float32)
    beta = 0.1 * jax.random.normal(k4, (cout,), jnp.float32)
    running_mean = jnp.zeros((cout,), jnp.float32)
    running_var = jnp.ones((cout,), jnp.float32)
    eps = 1e-5
    scale = gamma / jnp.sqrt(running_var + eps)
    shift = beta + scale * (bias - running_mean)
    return {"w": w, "scale": scale, "shift": shift}


def init_generator(key, img_channels=4, base_channels=64, out_channels=3):
    keys = iter(jax.random.split(key, 32))
    bc = base_channels
    params = {
        "first_conv": init_conv_bn(next(keys), img_channels, bc),
        "down_conv1": init_conv_bn(next(keys), bc, bc * 2),
        "down_conv2": init_conv_bn(next(keys), bc * 2, bc * 4),
    }
    for i in range(9):
        params[f"res_block{i + 1}"] = {
            "conv1": init_conv_bn(next(keys), bc * 4, bc * 4),
            "conv2": init_conv_bn(next(keys), bc * 4, bc * 4),
        }
    params["up_conv1"] = init_conv_bn(next(keys), bc * 4, bc * 2, transposed=True)
    params["up_conv2"] = init_conv_bn(next(keys), bc * 2, bc, transposed=True)
    params["last_conv"] = init_conv_bn(next(keys), bc, out_channels)
    return params


# -------------------------------- forward ------------------------------------


def generator_forward(params, x_nchw):
    x = jnp.transpose(x_nchw, (0, 2, 3, 1)).astype(jnp.bfloat16)   # NCHW -> NHWC
    N, H, W, _ = x.shape

    out = conv3x3_bn_act(to_conv_layout(x), params["first_conv"], "relu")
    d1 = downconv_bn_relu(out, params["down_conv1"])
    d2 = downconv_bn_relu(to_conv_layout(d1), params["down_conv2"])

    out = to_conv_layout(d2)                 # trunk stays in conv layout throughout
    for i in range(9):
        rb = params[f"res_block{i + 1}"]
        h = conv3x3_bn_act(out, rb["conv1"], "relu")
        # Reference: out = relu(bn(conv2(h))) + x   (activation before the add)
        out = conv3x3_bn_act(h, rb["conv2"], "relu", residual=out)

    u1 = deconv_bn_relu(out, params["up_conv1"])
    u2 = deconv_bn_relu(to_conv_layout(u1), params["up_conv2"])
    yp = conv3x3_bn_act(to_conv_layout(u2), params["last_conv"], "tanh",
                        out_dtype=jnp.float32)
    y = yp[:, 1:H + 1, 1:W + 1, :]                                 # strip border
    return jnp.transpose(y, (0, 3, 1, 2)).astype(jnp.float32)      # NHWC -> NCHW


# --------------------------------- main ---------------------------------------

if __name__ == "__main__":
    key = jax.random.PRNGKey(0)
    kp, kx = jax.random.split(key)

    # SMALL shapes consistent with the module: batch=2, img_channels=4,
    # base_channels=8, spatial=16x16, out_channels=3.
    params = init_generator(kp, img_channels=4, base_channels=8, out_channels=3)
    x = jax.random.normal(kx, (2, 4, 16, 16), jnp.float32)         # NCHW input

    fwd = jax.jit(generator_forward)
    y = jax.block_until_ready(fwd(params, x))

    assert y.shape == (2, 3, 16, 16), y.shape
    assert bool(jnp.all(jnp.isfinite(y)))
    assert bool(jnp.all(jnp.abs(y) <= 1.0 + 1e-6))                 # tanh output range
    print("KERNEL_OK")
</pallas_src>

<mosaic_0001>
module attributes {stable_mosaic.version = 11 : i64} {
  func.func @kernel(%arg0: i32, %arg1: memref<1x342x4xbf16, #tpu.memory_space<vmem>>, %arg2: memref<9x4x8xbf16, #tpu.memory_space<vmem>>, %arg3: memref<1x8xf32, #tpu.memory_space<vmem>>, %arg4: memref<1x8xf32, #tpu.memory_space<vmem>>, %arg5: memref<1x288x1xf32, #tpu.memory_space<vmem>>, %arg6: memref<1x342x8xbf16, #tpu.memory_space<vmem>>) attributes {dimension_semantics = [#tpu.dimension_semantics<parallel>], iteration_bounds = array<i64: 2>, scalar_prefetch = 0 : i64, scratch_operands = 0 : i64, tpu.core_type = #tpu.core_type<tc>, window_params = [{transform_indices = @transform_0, window_bounds = array<i64: 1, 342, 4>}, {pipeline_mode = #tpu.pipeline_mode<synchronous>, transform_indices = @transform_1, window_bounds = array<i64: 9, 4, 8>}, {pipeline_mode = #tpu.pipeline_mode<synchronous>, transform_indices = @transform_2, window_bounds = array<i64: 1, 8>}, {pipeline_mode = #tpu.pipeline_mode<synchronous>, transform_indices = @transform_3, window_bounds = array<i64: 1, 8>}, {pipeline_mode = #tpu.pipeline_mode<synchronous>, transform_indices = @transform_4, window_bounds = array<i64: 1, 288, 1>}, {transform_indices = @transform_5, window_bounds = array<i64: 1, 342, 8>}]} {
    %c0 = arith.constant 0 : index
    %c0_0 = arith.constant 0 : index
    %c0_1 = arith.constant 0 : index
    %0 = vector.load %arg1[%c0, %c0_0, %c0_1] : memref<1x342x4xbf16, #tpu.memory_space<vmem>>, vector<1x288x4xbf16>
    %1 = vector.shape_cast %0 : vector<1x288x4xbf16> to vector<288x4xbf16>
    %c0_2 = arith.constant 0 : index
    %c0_3 = arith.constant 0 : index
    %c0_4 = arith.constant 0 : index
    %2 = vector.load %arg2[%c0_2, %c0_3, %c0_4] : memref<9x4x8xbf16, #tpu.memory_space<vmem>>, vector<1x4x8xbf16>
    %3 = vector.shape_cast %2 : vector<1x4x8xbf16> to vector<4x8xbf16>
    %cst = arith.constant dense<0.000000e+00> : vector<288x8xf32>
    %4 = tpu.matmul %1, %3, %cst {dimension_numbers = #tpu.dot_dimension_numbers<[1], [0], [0], [1], [0, 0, 1, 1], [], []>} : vector<288x4xbf16>, vector<4x8xbf16>, vector<288x8xf32> -> vector<288x8xf32>
    %c0_5 = arith.constant 0 : index
    %c1 = arith.constant 1 : index
    %c0_6 = arith.constant 0 : index
    %5 = vector.load %arg1[%c0_5, %c1, %c0_6] : memref<1x342x4xbf16, #tpu.memory_space<vmem>>, vector<1x288x4xbf16>
    %6 = vector.shape_cast %5 : vector<1x288x4xbf16> to vector<288x4xbf16>
    %c1_7 = arith.constant 1 : index
    %c0_8 = arith.constant 0 : index
    %c0_9 = arith.constant 0 : index
    %7 = vector.load %arg2[%c1_7, %c0_8, %c0_9] : memref<9x4x8xbf16, #tpu.memory_space<vmem>>, vector<1x4x8xbf16>
    %8 = vector.shape_cast %7 : vector<1x4x8xbf16> to vector<4x8xbf16>
    %cst_10 = arith.constant dense<0.000000e+00> : vector<288x8xf32>
    %9 = tpu.matmul %6, %8, %cst_10 {dimension_numbers = #tpu.dot_dimension_numbers<[1], [0], [0], [1], [0, 0, 1, 1], [], []>} : vector<288x4xbf16>, vector<4x8xbf16>, vector<288x8xf32> -> vector<288x8xf32>
    %10 = arith.addf %4, %9 : vector<288x8xf32>
    %c0_11 = arith.constant 0 : index
    %c2 = arith.constant 2 : index
    %c0_12 = arith.constant 0 : index
    %11 = vector.load %arg1[%c0_11, %c2, %c0_12] : memref<1x342x4xbf16, #tpu.memory_space<vmem>>, vector<1x288x4xbf16>
    %12 = vector.shape_cast %11 : vector<1x288x4xbf16> to vector<288x4xbf16>
    %c2_13 = arith.constant 2 : index
    %c0_14 = arith.constant 0 : index
    %c0_15 = arith.constant 0 : index
    %13 = vector.load %arg2[%c2_13, %c0_14, %c0_15] : memref<9x4x8xbf16, #tpu.memory_space<vmem>>, vector<1x4x8xbf16>
    %14 = vector.shape_cast %13 : vector<1x4x8xbf16> to vector<4x8xbf16>
    %cst_16 = arith.constant dense<0.000000e+00> : vector<288x8xf32>
    %15 = tpu.matmul %12, %14, %cst_16 {dimension_numbers = #tpu.dot_dimension_numbers<[1], [0], [0], [1], [0, 0, 1, 1], [], []>} : vector<288x4xbf16>, vector<4x8xbf16>, vector<288x8xf32> -> vector<288x8xf32>
    %16 = arith.addf %10, %15 : vector<288x8xf32>
    %c0_17 = arith.constant 0 : index
    %c18 = arith.constant 18 : index
    %c0_18 = arith.constant 0 : index
    %17 = vector.load %arg1[%c0_17, %c18, %c0_18] : memref<1x342x4xbf16, #tpu.memory_space<vmem>>, vector<1x288x4xbf16>
    %18 = vector.shape_cast %17 : vector<1x288x4xbf16> to vector<288x4xbf16>
    %c3 = arith.constant 3 : index
    %c0_19 = arith.constant 0 : index
    %c0_20 = arith.constant 0 : index
    %19 = vector.load %arg2[%c3, %c0_19, %c0_20] : memref<9x4x8xbf16, #tpu.memory_space<vmem>>, vector<1x4x8xbf16>
    %20 = vector.shape_cast %19 : vector<1x4x8xbf16> to vector<4x8xbf16>
    %cst_21 = arith.constant dense<0.000000e+00> : vector<288x8xf32>
    %21 = tpu.matmul %18, %20, %cst_21 {dimension_numbers = #tpu.dot_dimension_numbers<[1], [0], [0], [1], [0, 0, 1, 1], [], []>} : vector<288x4xbf16>, vector<4x8xbf16>, vector<288x8xf32> -> vector<288x8xf32>
    %22 = arith.addf %16, %21 : vector<288x8xf32>
    %c0_22 = arith.constant 0 : index
    %c19 = arith.constant 19 : index
    %c0_23 = arith.constant 0 : index
    %23 = vector.load %arg1[%c0_22, %c19, %c0_23] : memref<1x342x4xbf16, #tpu.memory_space<vmem>>, vector<1x288x4xbf16>
    %24 = vector.shape_cast %23 : vector<1x288x4xbf16> to vector<288x4xbf16>
    %c4 = arith.constant 4 : index
    %c0_24 = arith.constant 0 : index
    %c0_25 = arith.constant 0 : index
    %25 = vector.load %arg2[%c4, %c0_24, %c0_25] : memref<9x4x8xbf16, #tpu.memory_space<vmem>>, vector<1x4x8xbf16>
    %26 = vector.shape_cast %25 : vector<1x4x8xbf16> to vector<4x8xbf16>
    %cst_26 = arith.constant dense<0.000000e+00> : vector<288x8xf32>
    %27 = tpu.matmul %24, %26, %cst_26 {dimension_numbers = #tpu.dot_dimension_numbers<[1], [0], [0], [1], [0, 0, 1, 1], [], []>} : vector<288x4xbf16>, vector<4x8xbf16>, vector<288x8xf32> -> vector<288x8xf32>
    %28 = arith.addf %22, %27 : vector<288x8xf32>
    %c0_27 = arith.constant 0 : index
    %c20 = arith.constant 20 : index
    %c0_28 = arith.constant 0 : index
    %29 = vector.load %arg1[%c0_27, %c20, %c0_28] : memref<1x342x4xbf16, #tpu.memory_space<vmem>>, vector<1x288x4xbf16>
    %30 = vector.shape_cast %29 : vector<1x288x4xbf16> to vector<288x4xbf16>
    %c5 = arith.constant 5 : index
    %c0_29 = arith.constant 0 : index
    %c0_30 = arith.constant 0 : index
    %31 = vector.load %arg2[%c5, %c0_29, %c0_30] : memref<9x4x8xbf16, #tpu.memory_space<vmem>>, vector<1x4x8xbf16>
    %32 = vector.shape_cast %31 : vector<1x4x8xbf16> to vector<4x8xbf16>
    %cst_31 = arith.constant dense<0.000000e+00> : vector<288x8xf32>
    %33 = tpu.matmul %30, %32, %cst_31 {dimension_numbers = #tpu.dot_dimension_numbers<[1], [0], [0], [1], [0, 0, 1, 1], [], []>} : vector<288x4xbf16>, vector<4x8xbf16>, vector<288x8xf32> -> vector<288x8xf32>
    %34 = arith.addf %28, %33 : vector<288x8xf32>
    %c0_32 = arith.constant 0 : index
    %c36 = arith.constant 36 : index
    %c0_33 = arith.constant 0 : index
    %35 = vector.load %arg1[%c0_32, %c36, %c0_33] : memref<1x342x4xbf16, #tpu.memory_space<vmem>>, vector<1x288x4xbf16>
    %36 = vector.shape_cast %35 : vector<1x288x4xbf16> to vector<288x4xbf16>
    %c6 = arith.constant 6 : index
    %c0_34 = arith.constant 0 : index
    %c0_35 = arith.constant 0 : index
    %37 = vector.load %arg2[%c6, %c0_34, %c0_35] : memref<9x4x8xbf16, #tpu.memory_space<vmem>>, vector<1x4x8xbf16>
    %38 = vector.shape_cast %37 : vector<1x4x8xbf16> to vector<4x8xbf16>
    %cst_36 = arith.constant dense<0.000000e+00> : vector<288x8xf32>
    %39 = tpu.matmul %36, %38, %cst_36 {dimension_numbers = #tpu.dot_dimension_numbers<[1], [0], [0], [1], [0, 0, 1, 1], [], []>} : vector<288x4xbf16>, vector<4x8xbf16>, vector<288x8xf32> -> vector<288x8xf32>
    %40 = arith.addf %34, %39 : vector<288x8xf32>
    %c0_37 = arith.constant 0 : index
    %c37 = arith.constant 37 : index
    %c0_38 = arith.constant 0 : index
    %41 = vector.load %arg1[%c0_37, %c37, %c0_38] : memref<1x342x4xbf16, #tpu.memory_space<vmem>>, vector<1x288x4xbf16>
    %42 = vector.shape_cast %41 : vector<1x288x4xbf16> to vector<288x4xbf16>
    %c7 = arith.constant 7 : index
    %c0_39 = arith.constant 0 : index
    %c0_40 = arith.constant 0 : index
    %43 = vector.load %arg2[%c7, %c0_39, %c0_40] : memref<9x4x8xbf16, #tpu.memory_space<vmem>>, vector<1x4x8xbf16>
    %44 = vector.shape_cast %43 : vector<1x4x8xbf16> to vector<4x8xbf16>
    %cst_41 = arith.constant dense<0.000000e+00> : vector<288x8xf32>
    %45 = tpu.matmul %42, %44, %cst_41 {dimension_numbers = #tpu.dot_dimension_numbers<[1], [0], [0], [1], [0, 0, 1, 1], [], []>} : vector<288x4xbf16>, vector<4x8xbf16>, vector<288x8xf32> -> vector<288x8xf32>
    %46 = arith.addf %40, %45 : vector<288x8xf32>
    %c0_42 = arith.constant 0 : index
    %c38 = arith.constant 38 : index
    %c0_43 = arith.constant 0 : index
    %47 = vector.load %arg1[%c0_42, %c38, %c0_43] : memref<1x342x4xbf16, #tpu.memory_space<vmem>>, vector<1x288x4xbf16>
    %48 = vector.shape_cast %47 : vector<1x288x4xbf16> to vector<288x4xbf16>
    %c8 = arith.constant 8 : index
    %c0_44 = arith.constant 0 : index
    %c0_45 = arith.constant 0 : index
    %49 = vector.load %arg2[%c8, %c0_44, %c0_45] : memref<9x4x8xbf16, #tpu.memory_space<vmem>>, vector<1x4x8xbf16>
    %50 = vector.shape_cast %49 : vector<1x4x8xbf16> to vector<4x8xbf16>
    %cst_46 = arith.constant dense<0.000000e+00> : vector<288x8xf32>
    %51 = tpu.matmul %48, %50, %cst_46 {dimension_numbers = #tpu.dot_dimension_numbers<[1], [0], [0], [1], [0, 0, 1, 1], [], []>} : vector<288x4xbf16>, vector<4x8xbf16>, vector<288x8xf32> -> vector<288x8xf32>
    %52 = arith.addf %46, %51 : vector<288x8xf32>
    %c0_47 = arith.constant 0 : index
    %c0_48 = arith.constant 0 : index
    %53 = vector.load %arg3[%c0_47, %c0_48] : memref<1x8xf32, #tpu.memory_space<vmem>>, vector<1x8xf32>
    %54 = vector.broadcast %53 : vector<1x8xf32> to vector<288x8xf32>
    %55 = arith.mulf %52, %54 : vector<288x8xf32>
    %c0_49 = arith.constant 0 : index
    %c0_50 = arith.constant 0 : index
    %56 = vector.load %arg4[%c0_49, %c0_50] : memref<1x8xf32, #tpu.memory_space<vmem>>, vector<1x8xf32>
    %57 = vector.broadcast %56 : vector<1x8xf32> to vector<288x8xf32>
    %58 = arith.addf %55, %57 : vector<288x8xf32>
    %cst_51 = arith.constant 0.000000e+00 : f32
    %59 = vector.broadcast %cst_51 : f32 to vector<288x8xf32>
    %60 = arith.maximumf %58, %59 : vector<288x8xf32>
    %c0_52 = arith.constant 0 : index
    %c0_53 = arith.constant 0 : index
    %c0_54 = arith.constant 0 : index
    %61 = vector.load %arg5[%c0_52, %c0_53, %c0_54] : memref<1x288x1xf32, #tpu.memory_space<vmem>>, vector<1x288x1xf32>
    %62 = vector.shape_cast %61 : vector<1x288x1xf32> to vector<288x1xf32>
    %63 = vector.broadcast %62 : vector<288x1xf32> to vector<288x8xf32>
    %64 = arith.mulf %60, %63 : vector<288x8xf32>
    %cst_55 = arith.constant 0.000000e+00 : bf16
    %65 = vector.broadcast %cst_55 : bf16 to vector<19x8xbf16>
    %c0_56 = arith.constant 0 : index
    %c0_57 = arith.constant 0 : index
    %c0_58 = arith.constant 0 : index
    %66 = vector.load %arg6[%c0_56, %c0_57, %c0_58] : memref<1x342x8xbf16, #tpu.memory_space<vmem>>, vector<1x19x8xbf16>
    %67 = vector.shape_cast %66 : vector<1x19x8xbf16> to vector<19x8xbf16>
    %68 = vector.shape_cast %65 : vector<19x8xbf16> to vector<1x19x8xbf16>
    tpu.vector_store %arg6[%c0_56, %c0_57, %c0_58], %68 {strides = array<i32>} : memref<1x342x8xbf16, #tpu.memory_space<vmem>>, vector<1x19x8xbf16>,
    %69 = arith.truncf %64 : vector<288x8xf32> to vector<288x8xbf16>
    %c0_59 = arith.constant 0 : index
    %c19_60 = arith.constant 19 : index
    %c0_61 = arith.constant 0 : index
    %70 = vector.load %arg6[%c0_59, %c19_60, %c0_61] : memref<1x342x8xbf16, #tpu.memory_space<vmem>>, vector<1x288x8xbf16>
    %71 = vector.shape_cast %70 : vector<1x288x8xbf16> to vector<288x8xbf16>
    %72 = vector.shape_cast %69 : vector<288x8xbf16> to vector<1x288x8xbf16>
    tpu.vector_store %arg6[%c0_59, %c19_60, %c0_61], %72 {strides = array<i32>} : memref<1x342x8xbf16, #tpu.memory_space<vmem>>, vector<1x288x8xbf16>,
    %cst_62 = arith.constant 0.000000e+00 : bf16
    %73 = vector.broadcast %cst_62 : bf16 to vector<35x8xbf16>
    %c0_63 = arith.constant 0 : index
    %c307 = arith.constant 307 : index
    %c0_64 = arith.constant 0 : index
    %74 = vector.load %arg6[%c0_63, %c307, %c0_64] : memref<1x342x8xbf16, #tpu.memory_space<vmem>>, vector<1x35x8xbf16>
    %75 = vector.shape_cast %74 : vector<1x35x8xbf16> to vector<35x8xbf16>
    %76 = vector.shape_cast %73 : vector<35x8xbf16> to vector<1x35x8xbf16>
    tpu.vector_store %arg6[%c0_63, %c307, %c0_64], %76 {strides = array<i32>} : memref<1x342x8xbf16, #tpu.memory_space<vmem>>, vector<1x35x8xbf16>,
    return
  }
  func.func @transform_0(%arg0: i32) -> (i32, i32, i32) {
    %c0_i32 = arith.constant 0 : i32
    %c0_i32_0 = arith.constant 0 : i32
    %c0_i32_1 = arith.constant 0 : i32
    return %arg0, %c0_i32, %c0_i32_0 : i32, i32, i32
  }
  func.func @transform_1(%arg0: i32) -> (i32, i32, i32) {
    %c0_i32 = arith.constant 0 : i32
    %c0_i32_0 = arith.constant 0 : i32
    %c0_i32_1 = arith.constant 0 : i32
    %c0_i32_2 = arith.constant 0 : i32
    return %c0_i32, %c0_i32_0, %c0_i32_1 : i32, i32, i32
  }
  func.func @transform_2(%arg0: i32) -> (i32, i32) {
    %c0_i32 = arith.constant 0 : i32
    %c0_i32_0 = arith.constant 0 : i32
    %c0_i32_1 = arith.constant 0 : i32
    return %c0_i32, %c0_i32_0 : i32, i32
  }
  func.func @transform_3(%arg0: i32) -> (i32, i32) {
    %c0_i32 = arith.constant 0 : i32
    %c0_i32_0 = arith.constant 0 : i32
    %c0_i32_1 = arith.constant 0 : i32
    return %c0_i32, %c0_i32_0 : i32, i32
  }
  func.func @transform_4(%arg0: i32) -> (i32, i32, i32) {
    %c0_i32 = arith.constant 0 : i32
    %c0_i32_0 = arith.constant 0 : i32
    %c0_i32_1 = arith.constant 0 : i32
    %c0_i32_2 = arith.constant 0 : i32
    return %c0_i32, %c0_i32_0, %c0_i32_1 : i32, i32, i32
  }
  func.func @transform_5(%arg0: i32) -> (i32, i32, i32) {
    %c0_i32 = arith.constant 0 : i32
    %c0_i32_0 = arith.constant 0 : i32
    %c0_i32_1 = arith.constant 0 : i32
    return %arg0, %c0_i32, %c0_i32_0 : i32, i32, i32
  }
}

module attributes {stable_mosaic.version = 11 : i64} {
  func.func @_matmul_bn_relu_kernel(%arg0: i32, %arg1: memref<128x72xbf16, #tpu.memory_space<vmem>>, %arg2: memref<72x16xbf16, #tpu.memory_space<vmem>>, %arg3: memref<1x16xf32, #tpu.memory_space<vmem>>, %arg4: memref<1x16xf32, #tpu.memory_space<vmem>>, %arg5: memref<128x16xbf16, #tpu.memory_space<vmem>>) attributes {dimension_semantics = [#tpu.dimension_semantics<parallel>], iteration_bounds = array<i64: 1>, scalar_prefetch = 0 : i64, scratch_operands = 0 : i64, tpu.core_type = #tpu.core_type<tc>, window_params = [{transform_indices = @transform_0, window_bounds = array<i64: 128, 72>}, {pipeline_mode = #tpu.pipeline_mode<synchronous>, transform_indices = @transform_1, window_bounds = array<i64: 72, 16>}, {pipeline_mode = #tpu.pipeline_mode<synchronous>, transform_indices = @transform_2, window_bounds = array<i64: 1, 16>}, {pipeline_mode = #tpu.pipeline_mode<synchronous>, transform_indices = @transform_3, window_bounds = array<i64: 1, 16>}, {transform_indices = @transform_4, window_bounds = array<i64: 128, 16>}]} {
    %c0 = arith.constant 0 : index
    %c0_0 = arith.constant 0 : index
    %0 = vector.load %arg1[%c0, %c0_0] : memref<128x72xbf16, #tpu.memory_space<vmem>>, vector<128x72xbf16>
    %c0_1 = arith.constant 0 : index
    %c0_2 = arith.constant 0 : index
    %1 = vector.load %arg2[%c0_1, %c0_2] : memref<72x16xbf16, #tpu.memory_space<vmem>>, vector<72x16xbf16>
    %cst = arith.constant dense<0.000000e+00> : vector<128x16xf32>
    %2 = tpu.matmul %0, %1, %cst {dimension_numbers = #tpu.dot_dimension_numbers<[1], [0], [0], [1], [0, 0, 1, 1], [], []>} : vector<128x72xbf16>, vector<72x16xbf16>, vector<128x16xf32> -> vector<128x16xf32>
    %c0_3 = arith.constant 0 : index
    %c0_4 = arith.constant 0 : index
    %3 = vector.load %arg3[%c0_3, %c0_4] : memref<1x16xf32, #tpu.memory_space<vmem>>, vector<1x16xf32>
    %4 = vector.broadcast %3 : vector<1x16xf32> to vector<128x16xf32>
    %5 = arith.mulf %2, %4 : vector<128x16xf32>
    %c0_5 = arith.constant 0 : index
    %c0_6 = arith.constant 0 : index
    %6 = vector.load %arg4[%c0_5, %c0_6] : memref<1x16xf32, #tpu.memory_space<vmem>>, vector<1x16xf32>
    %7 = vector.broadcast %6 : vector<1x16xf32> to vector<128x16xf32>
    %8 = arith.addf %5, %7 : vector<128x16xf32>
    %cst_7 = arith.constant 0.000000e+00 : f32
    %9 = vector.broadcast %cst_7 : f32 to vector<128x16xf32>
    %10 = arith.maximumf %8, %9 : vector<128x16xf32>
    %11 = arith.truncf %10 : vector<128x16xf32> to vector<128x16xbf16>
    %c0_8 = arith.constant 0 : index
    %c0_9 = arith.constant 0 : index
    %12 = vector.load %arg5[%c0_8, %c0_9] : memref<128x16xbf16, #tpu.memory_space<vmem>>, vector<128x16xbf16>
    tpu.vector_store %arg5[%c0_8, %c0_9], %11 {strides = array<i32>} : memref<128x16xbf16, #tpu.memory_space<vmem>>, vector<128x16xbf16>,
    return
  }
  func.func @transform_0(%arg0: i32) -> (i32, i32) {
    %c0_i32 = arith.constant 0 : i32
    %c0_i32_0 = arith.constant 0 : i32
    return %arg0, %c0_i32 : i32, i32
  }
  func.func @transform_1(%arg0: i32) -> (i32, i32) {
    %c0_i32 = arith.constant 0 : i32
    %c0_i32_0 = arith.constant 0 : i32
    %c0_i32_1 = arith.constant 0 : i32
    return %c0_i32, %c0_i32_0 : i32, i32
  }
  func.func @transform_2(%arg0: i32) -> (i32, i32) {
    %c0_i32 = arith.constant 0 : i32
    %c0_i32_0 = arith.constant 0 : i32
    %c0_i32_1 = arith.constant 0 : i32
    return %c0_i32, %c0_i32_0 : i32, i32
  }
  func.func @transform_3(%arg0: i32) -> (i32, i32) {
    %c0_i32 = arith.constant 0 : i32
    %c0_i32_0 = arith.constant 0 : i32
    %c0_i32_1 = arith.constant 0 : i32
    return %c0_i32, %c0_i32_0 : i32, i32
  }
  func.func @transform_4(%arg0: i32) -> (i32, i32) {
    %c0_i32 = arith.constant 0 : i32
    %c0_i32_0 = arith.constant 0 : i32
    return %arg0, %c0_i32 : i32, i32
  }
}

module attributes {stable_mosaic.version = 11 : i64} {
  func.func @_matmul_bn_relu_kernel(%arg0: i32, %arg1: memref<32x144xbf16, #tpu.memory_space<vmem>>, %arg2: memref<144x32xbf16, #tpu.memory_space<vmem>>, %arg3: memref<1x32xf32, #tpu.memory_space<vmem>>, %arg4: memref<1x32xf32, #tpu.memory_space<vmem>>, %arg5: memref<32x32xbf16, #tpu.memory_space<vmem>>) attributes {dimension_semantics = [#tpu.dimension_semantics<parallel>], iteration_bounds = array<i64: 1>, scalar_prefetch = 0 : i64, scratch_operands = 0 : i64, tpu.core_type = #tpu.core_type<tc>, window_params = [{transform_indices = @transform_0, window_bounds = array<i64: 32, 144>}, {pipeline_mode = #tpu.pipeline_mode<synchronous>, transform_indices = @transform_1, window_bounds = array<i64: 144, 32>}, {pipeline_mode = #tpu.pipeline_mode<synchronous>, transform_indices = @transform_2, window_bounds = array<i64: 1, 32>}, {pipeline_mode = #tpu.pipeline_mode<synchronous>, transform_indices = @transform_3, window_bounds = array<i64: 1, 32>}, {transform_indices = @transform_4, window_bounds = array<i64: 32, 32>}]} {
    %c0 = arith.constant 0 : index
    %c0_0 = arith.constant 0 : index
    %0 = vector.load %arg1[%c0, %c0_0] : memref<32x144xbf16, #tpu.memory_space<vmem>>, vector<32x144xbf16>
    %c0_1 = arith.constant 0 : index
    %c0_2 = arith.constant 0 : index
    %1 = vector.load %arg2[%c0_1, %c0_2] : memref<144x32xbf16, #tpu.memory_space<vmem>>, vector<144x32xbf16>
    %cst = arith.constant dense<0.000000e+00> : vector<32x32xf32>
    %2 = tpu.matmul %0, %1, %cst {dimension_numbers = #tpu.dot_dimension_numbers<[1], [0], [0], [1], [0, 0, 1, 1], [], []>} : vector<32x144xbf16>, vector<144x32xbf16>, vector<32x32xf32> -> vector<32x32xf32>
    %c0_3 = arith.constant 0 : index
    %c0_4 = arith.constant 0 : index
    %3 = vector.load %arg3[%c0_3, %c0_4] : memref<1x32xf32, #tpu.memory_space<vmem>>, vector<1x32xf32>
    %4 = vector.broadcast %3 : vector<1x32xf32> to vector<32x32xf32>
    %5 = arith.mulf %2, %4 : vector<32x32xf32>
    %c0_5 = arith.constant 0 : index
    %c0_6 = arith.constant 0 : index
    %6 = vector.load %arg4[%c0_5, %c0_6] : memref<1x32xf32, #tpu.memory_space<vmem>>, vector<1x32xf32>
    %7 = vector.broadcast %6 : vector<1x32xf32> to vector<32x32xf32>
    %8 = arith.addf %5, %7 : vector<32x32xf32>
    %cst_7 = arith.constant 0.000000e+00 : f32
    %9 = vector.broadcast %cst_7 : f32 to vector<32x32xf32>
    %10 = arith.maximumf %8, %9 : vector<32x32xf32>
    %11 = arith.truncf %10 : vector<32x32xf32> to vector<32x32xbf16>
    %c0_8 = arith.constant 0 : index
    %c0_9 = arith.constant 0 : index
    %12 = vector.load %arg5[%c0_8, %c0_9] : memref<32x32xbf16, #tpu.memory_space<vmem>>, vector<32x32xbf16>
    tpu.vector_store %arg5[%c0_8, %c0_9], %11 {strides = array<i32>} : memref<32x32xbf16, #tpu.memory_space<vmem>>, vector<32x32xbf16>,
    return
  }
  func.func @transform_0(%arg0: i32) -> (i32, i32) {
    %c0_i32 = arith.constant 0 : i32
    %c0_i32_0 = arith.constant 0 : i32
    return %arg0, %c0_i32 : i32, i32
  }
  func.func @transform_1(%arg0: i32) -> (i32, i32) {
    %c0_i32 = arith.constant 0 : i32
    %c0_i32_0 = arith.constant 0 : i32
    %c0_i32_1 = arith.constant 0 : i32
    return %c0_i32, %c0_i32_0 : i32, i32
  }
  func.func @transform_2(%arg0: i32) -> (i32, i32) {
    %c0_i32 = arith.constant 0 : i32
    %c0_i32_0 = arith.constant 0 : i32
    %c0_i32_1 = arith.constant 0 : i32
    return %c0_i32, %c0_i32_0 : i32, i32
  }
  func.func @transform_3(%arg0: i32) -> (i32, i32) {
    %c0_i32 = arith.constant 0 : i32
    %c0_i32_0 = arith.constant 0 : i32
    %c0_i32_1 = arith.constant 0 : i32
    return %c0_i32, %c0_i32_0 : i32, i32
  }
  func.func @transform_4(%arg0: i32) -> (i32, i32) {
    %c0_i32 = arith.constant 0 : i32
    %c0_i32_0 = arith.constant 0 : i32
    return %arg0, %c0_i32 : i32, i32
  }
}

module attributes {stable_mosaic.version = 11 : i64} {
  func.func @kernel(%arg0: i32, %arg1: memref<1x42x32xbf16, #tpu.memory_space<vmem>>, %arg2: memref<9x32x32xbf16, #tpu.memory_space<vmem>>, %arg3: memref<1x32xf32, #tpu.memory_space<vmem>>, %arg4: memref<1x32xf32, #tpu.memory_space<vmem>>, %arg5: memref<1x24x1xf32, #tpu.memory_space<vmem>>, %arg6: memref<1x42x32xbf16, #tpu.memory_space<vmem>>) attributes {dimension_semantics = [#tpu.dimension_semantics<parallel>], iteration_bounds = array<i64: 2>, scalar_prefetch = 0 : i64, scratch_operands = 0 : i64, tpu.core_type = #tpu.core_type<tc>, window_params = [{transform_indices = @transform_0, window_bounds = array<i64: 1, 42, 32>}, {pipeline_mode = #tpu.pipeline_mode<synchronous>, transform_indices = @transform_1, window_bounds = array<i64: 9, 32, 32>}, {pipeline_mode = #tpu.pipeline_mode<synchronous>, transform_indices = @transform_2, window_bounds = array<i64: 1, 32>}, {pipeline_mode = #tpu.pipeline_mode<synchronous>, transform_indices = @transform_3, window_bounds = array<i64: 1, 32>}, {pipeline_mode = #tpu.pipeline_mode<synchronous>, transform_indices = @transform_4, window_bounds = array<i64: 1, 24, 1>}, {transform_indices = @transform_5, window_bounds = array<i64: 1, 42, 32>}]} {
    %c0 = arith.constant 0 : index
    %c0_0 = arith.constant 0 : index
    %c0_1 = arith.constant 0 : index
    %0 = vector.load %arg1[%c0, %c0_0, %c0_1] : memref<1x42x32xbf16, #tpu.memory_space<vmem>>, vector<1x24x32xbf16>
    %1 = vector.shape_cast %0 : vector<1x24x32xbf16> to vector<24x32xbf16>
    %c0_2 = arith.constant 0 : index
    %c0_3 = arith.constant 0 : index
    %c0_4 = arith.constant 0 : index
    %2 = vector.load %arg2[%c0_2, %c0_3, %c0_4] : memref<9x32x32xbf16, #tpu.memory_space<vmem>>, vector<1x32x32xbf16>
    %3 = vector.shape_cast %2 : vector<1x32x32xbf16> to vector<32x32xbf16>
    %cst = arith.constant dense<0.000000e+00> : vector<24x32xf32>
    %4 = tpu.matmul %1, %3, %cst {dimension_numbers = #tpu.dot_dimension_numbers<[1], [0], [0], [1], [0, 0, 1, 1], [], []>} : vector<24x32xbf16>, vector<32x32xbf16>, vector<24x32xf32> -> vector<24x32xf32>
    %c0_5 = arith.constant 0 : index
    %c1 = arith.constant 1 : index
    %c0_6 = arith.constant 0 : index
    %5 = vector.load %arg1[%c0_5, %c1, %c0_6] : memref<1x42x32xbf16, #tpu.memory_space<vmem>>, vector<1x24x32xbf16>
    %6 = vector.shape_cast %5 : vector<1x24x32xbf16> to vector<24x32xbf16>
    %c1_7 = arith.constant 1 : index
    %c0_8 = arith.constant 0 : index
    %c0_9 = arith.constant 0 : index
    %7 = vector.load %arg2[%c1_7, %c0_8, %c0_9] : memref<9x32x32xbf16, #tpu.memory_space<vmem>>, vector<1x32x32xbf16>
    %8 = vector.shape_cast %7 : vector<1x32x32xbf16> to vector<32x32xbf16>
    %cst_10 = arith.constant dense<0.000000e+00> : vector<24x32xf32>
    %9 = tpu.matmul %6, %8, %cst_10 {dimension_numbers = #tpu.dot_dimension_numbers<[1], [0], [0], [1], [0, 0, 1, 1], [], []>} : vector<24x32xbf16>, vector<32x32xbf16>, vector<24x32xf32> -> vector<24x32xf32>
    %10 = arith.addf %4, %9 : vector<24x32xf32>
    %c0_11 = arith.constant 0 : index
    %c2 = arith.constant 2 : index
    %c0_12 = arith.constant 0 : index
    %11 = vector.load %arg1[%c0_11, %c2, %c0_12] : memref<1x42x32xbf16, #tpu.memory_space<vmem>>, vector<1x24x32xbf16>
    %12 = vector.shape_cast %11 : vector<1x24x32xbf16> to vector<24x32xbf16>
    %c2_13 = arith.constant 2 : index
    %c0_14 = arith.constant 0 : index
    %c0_15 = arith.constant 0 : index
    %13 = vector.load %arg2[%c2_13, %c0_14, %c0_15] : memref<9x32x32xbf16, #tpu.memory_space<vmem>>, vector<1x32x32xbf16>
    %14 = vector.shape_cast %13 : vector<1x32x32xbf16> to vector<32x32xbf16>
    %cst_16 = arith.constant dense<0.000000e+00> : vector<24x32xf32>
    %15 = tpu.matmul %12, %14, %cst_16 {dimension_numbers = #tpu.dot_dimension_numbers<[1], [0], [0], [1], [0, 0, 1, 1], [], []>} : vector<24x32xbf16>, vector<32x32xbf16>, vector<24x32xf32> -> vector<24x32xf32>
    %16 = arith.addf %10, %15 : vector<24x32xf32>
    %c0_17 = arith.constant 0 : index
    %c6 = arith.constant 6 : index
    %c0_18 = arith.constant 0 : index
    %17 = vector.load %arg1[%c0_17, %c6, %c0_18] : memref<1x42x32xbf16, #tpu.memory_space<vmem>>, vector<1x24x32xbf16>
    %18 = vector.shape_cast %17 : vector<1x24x32xbf16> to vector<24x32xbf16>
    %c3 = arith.constant 3 : index
    %c0_19 = arith.constant 0 : index
    %c0_20 = arith.constant 0 : index
    %19 = vector.load %arg2[%c3, %c0_19, %c0_20] : memref<9x32x32xbf16, #tpu.memory_space<vmem>>, vector<1x32x32xbf16>
    %20 = vector.shape_cast %19 : vector<1x32x32xbf16> to vector<32x32xbf16>
    %cst_21 = arith.constant dense<0.000000e+00> : vector<24x32xf32>
    %21 = tpu.matmul %18, %20, %cst_21 {dimension_numbers = #tpu.dot_dimension_numbers<[1], [0], [0], [1], [0, 0, 1, 1], [], []>} : vector<24x32xbf16>, vector<32x32xbf16>, vector<24x32xf32> -> vector<24x32xf32>
    %22 = arith.addf %16, %21 : vector<24x32xf32>
    %c0_22 = arith.constant 0 : index
    %c7 = arith.constant 7 : index
    %c0_23 = arith.constant 0 : index
    %23 = vector.load %arg1[%c0_22, %c7, %c0_23] : memref<1x42x32xbf16, #tpu.memory_space<vmem>>, vector<1x24x32xbf16>
    %24 = vector.shape_cast %23 : vector<1x24x32xbf16> to vector<24x32xbf16>
    %c4 = arith.constant 4 : index
    %c0_24 = arith.constant 0 : index
    %c0_25 = arith.constant 0 : index
    %25 = vector.load %arg2[%c4, %c0_24, %c0_25] : memref<9x32x32xbf16, #tpu.memory_space<vmem>>, vector<1x32x32xbf16>
    %26 = vector.shape_cast %25 : vector<1x32x32xbf16> to vector<32x32xbf16>
    %cst_26 = arith.constant dense<0.000000e+00> : vector<24x32xf32>
    %27 = tpu.matmul %24, %26, %cst_26 {dimension_numbers = #tpu.dot_dimension_numbers<[1], [0], [0], [1], [0, 0, 1, 1], [], []>} : vector<24x32xbf16>, vector<32x32xbf16>, vector<24x32xf32> -> vector<24x32xf32>
    %28 = arith.addf %22, %27 : vector<24x32xf32>
    %c0_27 = arith.constant 0 : index
    %c8 = arith.constant 8 : index
    %c0_28 = arith.constant 0 : index
    %29 = vector.load %arg1[%c0_27, %c8, %c0_28] : memref<1x42x32xbf16, #tpu.memory_space<vmem>>, vector<1x24x32xbf16>
    %30 = vector.shape_cast %29 : vector<1x24x32xbf16> to vector<24x32xbf16>
    %c5 = arith.constant 5 : index
    %c0_29 = arith.constant 0 : index
    %c0_30 = arith.constant 0 : index
    %31 = vector.load %arg2[%c5, %c0_29, %c0_30] : memref<9x32x32xbf16, #tpu.memory_space<vmem>>, vector<1x32x32xbf16>
    %32 = vector.shape_cast %31 : vector<1x32x32xbf16> to vector<32x32xbf16>
    %cst_31 = arith.constant dense<0.000000e+00> : vector<24x32xf32>
    %33 = tpu.matmul %30, %32, %cst_31 {dimension_numbers = #tpu.dot_dimension_numbers<[1], [0], [0], [1], [0, 0, 1, 1], [], []>} : vector<24x32xbf16>, vector<32x32xbf16>, vector<24x32xf32> -> vector<24x32xf32>
    %34 = arith.addf %28, %33 : vector<24x32xf32>
    %c0_32 = arith.constant 0 : index
    %c12 = arith.constant 12 : index
    %c0_33 = arith.constant 0 : index
    %35 = vector.load %arg1[%c0_32, %c12, %c0_33] : memref<1x42x32xbf16, #tpu.memory_space<vmem>>, vector<1x24x32xbf16>
    %36 = vector.shape_cast %35 : vector<1x24x32xbf16> to vector<24x32xbf16>
    %c6_34 = arith.constant 6 : index
    %c0_35 = arith.constant 0 : index
    %c0_36 = arith.constant 0 : index
    %37 = vector.load %arg2[%c6_34, %c0_35, %c0_36] : memref<9x32x32xbf16, #tpu.memory_space<vmem>>, vector<1x32x32xbf16>
    %38 = vector.shape_cast %37 : vector<1x32x32xbf16> to vector<32x32xbf16>
    %cst_37 = arith.constant dense<0.000000e+00> : vector<24x32xf32>
    %39 = tpu.matmul %36, %38, %cst_37 {dimension_numbers = #tpu.dot_dimension_numbers<[1], [0], [0], [1], [0, 0, 1, 1], [], []>} : vector<24x32xbf16>, vector<32x32xbf16>, vector<24x32xf32> -> vector<24x32xf32>
    %40 = arith.addf %34, %39 : vector<24x32xf32>
    %c0_38 = arith.constant 0 : index
    %c13 = arith.constant 13 : index
    %c0_39 = arith.constant 0 : index
    %41 = vector.load %arg1[%c0_38, %c13, %c0_39] : memref<1x42x32xbf16, #tpu.memory_space<vmem>>, vector<1x24x32xbf16>
    %42 = vector.shape_cast %41 : vector<1x24x32xbf16> to vector<24x32xbf16>
    %c7_40 = arith.constant 7 : index
    %c0_41 = arith.constant 0 : index
    %c0_42 = arith.constant 0 : index
    %43 = vector.load %arg2[%c7_40, %c0_41, %c0_42] : memref<9x32x32xbf16, #tpu.memory_space<vmem>>, vector<1x32x32xbf16>
    %44 = vector.shape_cast %43 : vector<1x32x32xbf16> to vector<32x32xbf16>
    %cst_43 = arith.constant dense<0.000000e+00> : vector<24x32xf32>
    %45 = tpu.matmul %42, %44, %cst_43 {dimension_numbers = #tpu.dot_dimension_numbers<[1], [0], [0], [1], [0, 0, 1, 1], [], []>} : vector<24x32xbf16>, vector<32x32xbf16>, vector<24x32xf32> -> vector<24x32xf32>
    %46 = arith.addf %40, %45 : vector<24x32xf32>
    %c0_44 = arith.constant 0 : index
    %c14 = arith.constant 14 : index
    %c0_45 = arith.constant 0 : index
    %47 = vector.load %arg1[%c0_44, %c14, %c0_45] : memref<1x42x32xbf16, #tpu.memory_space<vmem>>, vector<1x24x32xbf16>
    %48 = vector.shape_cast %47 : vector<1x24x32xbf16> to vector<24x32xbf16>
    %c8_46 = arith.constant 8 : index
    %c0_47 = arith.constant 0 : index
    %c0_48 = arith.constant 0 : index
    %49 = vector.load %arg2[%c8_46, %c0_47, %c0_48] : memref<9x32x32xbf16, #tpu.memory_space<vmem>>, vector<1x32x32xbf16>
    %50 = vector.shape_cast %49 : vector<1x32x32xbf16> to vector<32x32xbf16>
    %cst_49 = arith.constant dense<0.000000e+00> : vector<24x32xf32>
    %51 = tpu.matmul %48, %50, %cst_49 {dimension_numbers = #tpu.dot_dimension_numbers<[1], [0], [0], [1], [0, 0, 1, 1], [], []>} : vector<24x32xbf16>, vector<32x32xbf16>, vector<24x32xf32> -> vector<24x32xf32>
    %52 = arith.addf %46, %51 : vector<24x32xf32>
    %c0_50 = arith.constant 0 : index
    %c0_51 = arith.constant 0 : index
    %53 = vector.load %arg3[%c0_50, %c0_51] : memref<1x32xf32, #tpu.memory_space<vmem>>, vector<1x32xf32>
    %54 = vector.broadcast %53 : vector<1x32xf32> to vector<24x32xf32>
    %55 = arith.mulf %52, %54 : vector<24x32xf32>
    %c0_52 = arith.constant 0 : index
    %c0_53 = arith.constant 0 : index
    %56 = vector.load %arg4[%c0_52, %c0_53] : memref<1x32xf32, #tpu.memory_space<vmem>>, vector<1x32xf32>
    %57 = vector.broadcast %56 : vector<1x32xf32> to vector<24x32xf32>
    %58 = arith.addf %55, %57 : vector<24x32xf32>
    %cst_54 = arith.constant 0.000000e+00 : f32
    %59 = vector.broadcast %cst_54 : f32 to vector<24x32xf32>
    %60 = arith.maximumf %58, %59 : vector<24x32xf32>
    %c0_55 = arith.constant 0 : index
    %c0_56 = arith.constant 0 : index
    %c0_57 = arith.constant 0 : index
    %61 = vector.load %arg5[%c0_55, %c0_56, %c0_57] : memref<1x24x1xf32, #tpu.memory_space<vmem>>, vector<1x24x1xf32>
    %62 = vector.shape_cast %61 : vector<1x24x1xf32> to vector<24x1xf32>
    %63 = vector.broadcast %62 : vector<24x1xf32> to vector<24x32xf32>
    %64 = arith.mulf %60, %63 : vector<24x32xf32>
    %cst_58 = arith.constant 0.000000e+00 : bf16
    %65 = vector.broadcast %cst_58 : bf16 to vector<7x32xbf16>
    %c0_59 = arith.constant 0 : index
    %c0_60 = arith.constant 0 : index
    %c0_61 = arith.constant 0 : index
    %66 = vector.load %arg6[%c0_59, %c0_60, %c0_61] : memref<1x42x32xbf16, #tpu.memory_space<vmem>>, vector<1x7x32xbf16>
    %67 = vector.shape_cast %66 : vector<1x7x32xbf16> to vector<7x32xbf16>
    %68 = vector.shape_cast %65 : vector<7x32xbf16> to vector<1x7x32xbf16>
    tpu.vector_store %arg6[%c0_59, %c0_60, %c0_61], %68 {strides = array<i32>} : memref<1x42x32xbf16, #tpu.memory_space<vmem>>, vector<1x7x32xbf16>,
    %69 = arith.truncf %64 : vector<24x32xf32> to vector<24x32xbf16>
    %c0_62 = arith.constant 0 : index
    %c7_63 = arith.constant 7 : index
    %c0_64 = arith.constant 0 : index
    %70 = vector.load %arg6[%c0_62, %c7_63, %c0_64] : memref<1x42x32xbf16, #tpu.memory_space<vmem>>, vector<1x24x32xbf16>
    %71 = vector.shape_cast %70 : vector<1x24x32xbf16> to vector<24x32xbf16>
    %72 = vector.shape_cast %69 : vector<24x32xbf16> to vector<1x24x32xbf16>
    tpu.vector_store %arg6[%c0_62, %c7_63, %c0_64], %72 {strides = array<i32>} : memref<1x42x32xbf16, #tpu.memory_space<vmem>>, vector<1x24x32xbf16>,
    %cst_65 = arith.constant 0.000000e+00 : bf16
    %73 = vector.broadcast %cst_65 : bf16 to vector<11x32xbf16>
    %c0_66 = arith.constant 0 : index
    %c31 = arith.constant 31 : index
    %c0_67 = arith.constant 0 : index
    %74 = vector.load %arg6[%c0_66, %c31, %c0_67] : memref<1x42x32xbf16, #tpu.memory_space<vmem>>, vector<1x11x32xbf16>
    %75 = vector.shape_cast %74 : vector<1x11x32xbf16> to vector<11x32xbf16>
    %76 = vector.shape_cast %73 : vector<11x32xbf16> to vector<1x11x32xbf16>
    tpu.vector_store %arg6[%c0_66, %c31, %c0_67], %76 {strides = array<i32>} : memref<1x42x32xbf16, #tpu.memory_space<vmem>>, vector<1x11x32xbf16>,
    return
  }
  func.func @transform_0(%arg0: i32) -> (i32, i32, i32) {
    %c0_i32 = arith.constant 0 : i32
    %c0_i32_0 = arith.constant 0 : i32
    %c0_i32_1 = arith.constant 0 : i32
    return %arg0, %c0_i32, %c0_i32_0 : i32, i32, i32
  }
  func.func @transform_1(%arg0: i32) -> (i32, i32, i32) {
    %c0_i32 = arith.constant 0 : i32
    %c0_i32_0 = arith.constant 0 : i32
    %c0_i32_1 = arith.constant 0 : i32
    %c0_i32_2 = arith.constant 0 : i32
    return %c0_i32, %c0_i32_0, %c0_i32_1 : i32, i32, i32
  }
  func.func @transform_2(%arg0: i32) -> (i32, i32) {
    %c0_i32 = arith.constant 0 : i32
    %c0_i32_0 = arith.constant 0 : i32
    %c0_i32_1 = arith.constant 0 : i32
    return %c0_i32, %c0_i32_0 : i32, i32
  }
  func.func @transform_3(%arg0: i32) -> (i32, i32) {
    %c0_i32 = arith.constant 0 : i32
    %c0_i32_0 = arith.constant 0 : i32
    %c0_i32_1 = arith.constant 0 : i32
    return %c0_i32, %c0_i32_0 : i32, i32
  }
  func.func @transform_4(%arg0: i32) -> (i32, i32, i32) {
    %c0_i32 = arith.constant 0 : i32
    %c0_i32_0 = arith.constant 0 : i32
    %c0_i32_1 = arith.constant 0 : i32
    %c0_i32_2 = arith.constant 0 : i32
    return %c0_i32, %c0_i32_0, %c0_i32_1 : i32, i32, i32
  }
  func.func @transform_5(%arg0: i32) -> (i32, i32, i32) {
    %c0_i32 = arith.constant 0 : i32
    %c0_i32_0 = arith.constant 0 : i32
    %c0_i32_1 = arith.constant 0 : i32
    return %arg0, %c0_i32, %c0_i32_0 : i32, i32, i32
  }
}

module attributes {stable_mosaic.version = 11 : i64} {
  func.func @kernel(%arg0: i32, %arg1: memref<1x42x32xbf16, #tpu.memory_space<vmem>>, %arg2: memref<9x32x32xbf16, #tpu.memory_space<vmem>>, %arg3: memref<1x32xf32, #tpu.memory_space<vmem>>, %arg4: memref<1x32xf32, #tpu.memory_space<vmem>>, %arg5: memref<1x24x1xf32, #tpu.memory_space<vmem>>, %arg6: memref<1x42x32xbf16, #tpu.memory_space<vmem>>, %arg7: memref<1x42x32xbf16, #tpu.memory_space<vmem>>) attributes {dimension_semantics = [#tpu.dimension_semantics<parallel>], iteration_bounds = array<i64: 2>, scalar_prefetch = 0 : i64, scratch_operands = 0 : i64, tpu.core_type = #tpu.core_type<tc>, window_params = [{transform_indices = @transform_0, window_bounds = array<i64: 1, 42, 32>}, {pipeline_mode = #tpu.pipeline_mode<synchronous>, transform_indices = @transform_1, window_bounds = array<i64: 9, 32, 32>}, {pipeline_mode = #tpu.pipeline_mode<synchronous>, transform_indices = @transform_2, window_bounds = array<i64: 1, 32>}, {pipeline_mode = #tpu.pipeline_mode<synchronous>, transform_indices = @transform_3, window_bounds = array<i64: 1, 32>}, {pipeline_mode = #tpu.pipeline_mode<synchronous>, transform_indices = @transform_4, window_bounds = array<i64: 1, 24, 1>}, {transform_indices = @transform_5, window_bounds = array<i64: 1, 42, 32>}, {transform_indices = @transform_6, window_bounds = array<i64: 1, 42, 32>}]} {
    %c0 = arith.constant 0 : index
    %c0_0 = arith.constant 0 : index
    %c0_1 = arith.constant 0 : index
    %0 = vector.load %arg1[%c0, %c0_0, %c0_1] : memref<1x42x32xbf16, #tpu.memory_space<vmem>>, vector<1x24x32xbf16>
    %1 = vector.shape_cast %0 : vector<1x24x32xbf16> to vector<24x32xbf16>
    %c0_2 = arith.constant 0 : index
    %c0_3 = arith.constant 0 : index
    %c0_4 = arith.constant 0 : index
    %2 = vector.load %arg2[%c0_2, %c0_3, %c0_4] : memref<9x32x32xbf16, #tpu.memory_space<vmem>>, vector<1x32x32xbf16>
    %3 = vector.shape_cast %2 : vector<1x32x32xbf16> to vector<32x32xbf16>
    %cst = arith.constant dense<0.000000e+00> : vector<24x32xf32>
    %4 = tpu.matmul %1, %3, %cst {dimension_numbers = #tpu.dot_dimension_numbers<[1], [0], [0], [1], [0, 0, 1, 1], [], []>} : vector<24x32xbf16>, vector<32x32xbf16>, vector<24x32xf32> -> vector<24x32xf32>
    %c0_5 = arith.constant 0 : index
    %c1 = arith.constant 1 : index
    %c0_6 = arith.constant 0 : index
    %5 = vector.load %arg1[%c0_5, %c1, %c0_6] : memref<1x42x32xbf16, #tpu.memory_space<vmem>>, vector<1x24x32xbf16>
    %6 = vector.shape_cast %5 : vector<1x24x32xbf16> to vector<24x32xbf16>
    %c1_7 = arith.constant 1 : index
    %c0_8 = arith.constant 0 : index
    %c0_9 = arith.constant 0 : index
    %7 = vector.load %arg2[%c1_7, %c0_8, %c0_9] : memref<9x32x32xbf16, #tpu.memory_space<vmem>>, vector<1x32x32xbf16>
    %8 = vector.shape_cast %7 : vector<1x32x32xbf16> to vector<32x32xbf16>
    %cst_10 = arith.constant dense<0.000000e+00> : vector<24x32xf32>
    %9 = tpu.matmul %6, %8, %cst_10 {dimension_numbers = #tpu.dot_dimension_numbers<[1], [0], [0], [1], [0, 0, 1, 1], [], []>} : vector<24x32xbf16>, vector<32x32xbf16>, vector<24x32xf32> -> vector<24x32xf32>
    %10 = arith.addf %4, %9 : vector<24x32xf32>
    %c0_11 = arith.constant 0 : index
    %c2 = arith.constant 2 : index
    %c0_12 = arith.constant 0 : index
    %11 = vector.load %arg1[%c0_11, %c2, %c0_12] : memref<1x42x32xbf16, #tpu.memory_space<vmem>>, vector<1x24x32xbf16>
    %12 = vector.shape_cast %11 : vector<1x24x32xbf16> to vector<24x32xbf16>
    %c2_13 = arith.constant 2 : index
    %c0_14 = arith.constant 0 : index
    %c0_15 = arith.constant 0 : index
    %13 = vector.load %arg2[%c2_13, %c0_14, %c0_15] : memref<9x32x32xbf16, #tpu.memory_space<vmem>>, vector<1x32x32xbf16>
    %14 = vector.shape_cast %13 : vector<1x32x32xbf16> to vector<32x32xbf16>
    %cst_16 = arith.constant dense<0.000000e+00> : vector<24x32xf32>
    %15 = tpu.matmul %12, %14, %cst_16 {dimension_numbers = #tpu.dot_dimension_numbers<[1], [0], [0], [1], [0, 0, 1, 1], [], []>} : vector<24x32xbf16>, vector<32x32xbf16>, vector<24x32xf32> -> vector<24x32xf32>
    %16 = arith.addf %10, %15 : vector<24x32xf32>
    %c0_17 = arith.constant 0 : index
    %c6 = arith.constant 6 : index
    %c0_18 = arith.constant 0 : index
    %17 = vector.load %arg1[%c0_17, %c6, %c0_18] : memref<1x42x32xbf16, #tpu.memory_space<vmem>>, vector<1x24x32xbf16>
    %18 = vector.shape_cast %17 : vector<1x24x32xbf16> to vector<24x32xbf16>
    %c3 = arith.constant 3 : index
    %c0_19 = arith.constant 0 : index
    %c0_20 = arith.constant 0 : index
    %19 = vector.load %arg2[%c3, %c0_19, %c0_20] : memref<9x32x32xbf16, #tpu.memory_space<vmem>>, vector<1x32x32xbf16>
    %20 = vector.shape_cast %19 : vector<1x32x32xbf16> to vector<32x32xbf16>
    %cst_21 = arith.constant dense<0.000000e+00> : vector<24x32xf32>
    %21 = tpu.matmul %18, %20, %cst_21 {dimension_numbers = #tpu.dot_dimension_numbers<[1], [0], [0], [1], [0, 0, 1, 1], [], []>} : vector<24x32xbf16>, vector<32x32xbf16>, vector<24x32xf32> -> vector<24x32xf32>
    %22 = arith.addf %16, %21 : vector<24x32xf32>
    %c0_22 = arith.constant 0 : index
    %c7 = arith.constant 7 : index
    %c0_23 = arith.constant 0 : index
    %23 = vector.load %arg1[%c0_22, %c7, %c0_23] : memref<1x42x32xbf16, #tpu.memory_space<vmem>>, vector<1x24x32xbf16>
    %24 = vector.shape_cast %23 : vector<1x24x32xbf16> to vector<24x32xbf16>
    %c4 = arith.constant 4 : index
    %c0_24 = arith.constant 0 : index
    %c0_25 = arith.constant 0 : index
    %25 = vector.load %arg2[%c4, %c0_24, %c0_25] : memref<9x32x32xbf16, #tpu.memory_space<vmem>>, vector<1x32x32xbf16>
    %26 = vector.shape_cast %25 : vector<1x32x32xbf16> to vector<32x32xbf16>
    %cst_26 = arith.constant dense<0.000000e+00> : vector<24x32xf32>
    %27 = tpu.matmul %24, %26, %cst_26 {dimension_numbers = #tpu.dot_dimension_numbers<[1], [0], [0], [1], [0, 0, 1, 1], [], []>} : vector<24x32xbf16>, vector<32x32xbf16>, vector<24x32xf32> -> vector<24x32xf32>
    %28 = arith.addf %22, %27 : vector<24x32xf32>
    %c0_27 = arith.constant 0 : index
    %c8 = arith.constant 8 : index
    %c0_28 = arith.constant 0 : index
    %29 = vector.load %arg1[%c0_27, %c8, %c0_28] : memref<1x42x32xbf16, #tpu.memory_space<vmem>>, vector<1x24x32xbf16>
    %30 = vector.shape_cast %29 : vector<1x24x32xbf16> to vector<24x32xbf16>
    %c5 = arith.constant 5 : index
    %c0_29 = arith.constant 0 : index
    %c0_30 = arith.constant 0 : index
    %31 = vector.load %arg2[%c5, %c0_29, %c0_30] : memref<9x32x32xbf16, #tpu.memory_space<vmem>>, vector<1x32x32xbf16>
    %32 = vector.shape_cast %31 : vector<1x32x32xbf16> to vector<32x32xbf16>
    %cst_31 = arith.constant dense<0.000000e+00> : vector<24x32xf32>
    %33 = tpu.matmul %30, %32, %cst_31 {dimension_numbers = #tpu.dot_dimension_numbers<[1], [0], [0], [1], [0, 0, 1, 1], [], []>} : vector<24x32xbf16>, vector<32x32xbf16>, vector<24x32xf32> -> vector<24x32xf32>
    %34 = arith.addf %28, %33 : vector<24x32xf32>
    %c0_32 = arith.constant 0 : index
    %c12 = arith.constant 12 : index
    %c0_33 = arith.constant 0 : index
    %35 = vector.load %arg1[%c0_32, %c12, %c0_33] : memref<1x42x32xbf16, #tpu.memory_space<vmem>>, vector<1x24x32xbf16>
    %36 = vector.shape_cast %35 : vector<1x24x32xbf16> to vector<24x32xbf16>
    %c6_34 = arith.constant 6 : index
    %c0_35 = arith.constant 0 : index
    %c0_36 = arith.constant 0 : index
    %37 = vector.load %arg2[%c6_34, %c0_35, %c0_36] : memref<9x32x32xbf16, #tpu.memory_space<vmem>>, vector<1x32x32xbf16>
    %38 = vector.shape_cast %37 : vector<1x32x32xbf16> to vector<32x32xbf16>
    %cst_37 = arith.constant dense<0.000000e+00> : vector<24x32xf32>
    %39 = tpu.matmul %36, %38, %cst_37 {dimension_numbers = #tpu.dot_dimension_numbers<[1], [0], [0], [1], [0, 0, 1, 1], [], []>} : vector<24x32xbf16>, vector<32x32xbf16>, vector<24x32xf32> -> vector<24x32xf32>
    %40 = arith.addf %34, %39 : vector<24x32xf32>
    %c0_38 = arith.constant 0 : index
    %c13 = arith.constant 13 : index
    %c0_39 = arith.constant 0 : index
    %41 = vector.load %arg1[%c0_38, %c13, %c0_39] : memref<1x42x32xbf16, #tpu.memory_space<vmem>>, vector<1x24x32xbf16>
    %42 = vector.shape_cast %41 : vector<1x24x32xbf16> to vector<24x32xbf16>
    %c7_40 = arith.constant 7 : index
    %c0_41 = arith.constant 0 : index
    %c0_42 = arith.constant 0 : index
    %43 = vector.load %arg2[%c7_40, %c0_41, %c0_42] : memref<9x32x32xbf16, #tpu.memory_space<vmem>>, vector<1x32x32xbf16>
    %44 = vector.shape_cast %43 : vector<1x32x32xbf16> to vector<32x32xbf16>
    %cst_43 = arith.constant dense<0.000000e+00> : vector<24x32xf32>
    %45 = tpu.matmul %42, %44, %cst_43 {dimension_numbers = #tpu.dot_dimension_numbers<[1], [0], [0], [1], [0, 0, 1, 1], [], []>} : vector<24x32xbf16>, vector<32x32xbf16>, vector<24x32xf32> -> vector<24x32xf32>
    %46 = arith.addf %40, %45 : vector<24x32xf32>
    %c0_44 = arith.constant 0 : index
    %c14 = arith.constant 14 : index
    %c0_45 = arith.constant 0 : index
    %47 = vector.load %arg1[%c0_44, %c14, %c0_45] : memref<1x42x32xbf16, #tpu.memory_space<vmem>>, vector<1x24x32xbf16>
    %48 = vector.shape_cast %47 : vector<1x24x32xbf16> to vector<24x32xbf16>
    %c8_46 = arith.constant 8 : index
    %c0_47 = arith.constant 0 : index
    %c0_48 = arith.constant 0 : index
    %49 = vector.load %arg2[%c8_46, %c0_47, %c0_48] : memref<9x32x32xbf16, #tpu.memory_space<vmem>>, vector<1x32x32xbf16>
    %50 = vector.shape_cast %49 : vector<1x32x32xbf16> to vector<32x32xbf16>
    %cst_49 = arith.constant dense<0.000000e+00> : vector<24x32xf32>
    %51 = tpu.matmul %48, %50, %cst_49 {dimension_numbers = #tpu.dot_dimension_numbers<[1], [0], [0], [1], [0, 0, 1, 1], [], []>} : vector<24x32xbf16>, vector<32x32xbf16>, vector<24x32xf32> -> vector<24x32xf32>
    %52 = arith.addf %46, %51 : vector<24x32xf32>
    %c0_50 = arith.constant 0 : index
    %c0_51 = arith.constant 0 : index
    %53 = vector.load %arg3[%c0_50, %c0_51] : memref<1x32xf32, #tpu.memory_space<vmem>>, vector<1x32xf32>
    %54 = vector.broadcast %53 : vector<1x32xf32> to vector<24x32xf32>
    %55 = arith.mulf %52, %54 : vector<24x32xf32>
    %c0_52 = arith.constant 0 : index
    %c0_53 = arith.constant 0 : index
    %56 = vector.load %arg4[%c0_52, %c0_53] : memref<1x32xf32, #tpu.memory_space<vmem>>, vector<1x32xf32>
    %57 = vector.broadcast %56 : vector<1x32xf32> to vector<24x32xf32>
    %58 = arith.addf %55, %57 : vector<24x32xf32>
    %cst_54 = arith.constant 0.000000e+00 : f32
    %59 = vector.broadcast %cst_54 : f32 to vector<24x32xf32>
    %60 = arith.maximumf %58, %59 : vector<24x32xf32>
    %c0_55 = arith.constant 0 : index
    %c7_56 = arith.constant 7 : index
    %c0_57 = arith.constant 0 : index
    %61 = vector.load %arg6[%c0_55, %c7_56, %c0_57] : memref<1x42x32xbf16, #tpu.memory_space<vmem>>, vector<1x24x32xbf16>
    %62 = vector.shape_cast %61 : vector<1x24x32xbf16> to vector<24x32xbf16>
    %63 = arith.extf %62 : vector<24x32xbf16> to vector<24x32xf32>
    %64 = arith.addf %60, %63 : vector<24x32xf32>
    %c0_58 = arith.constant 0 : index
    %c0_59 = arith.constant 0 : index
    %c0_60 = arith.constant 0 : index
    %65 = vector.load %arg5[%c0_58, %c0_59, %c0_60] : memref<1x24x1xf32, #tpu.memory_space<vmem>>, vector<1x24x1xf32>
    %66 = vector.shape_cast %65 : vector<1x24x1xf32> to vector<24x1xf32>
    %67 = vector.broadcast %66 : vector<24x1xf32> to vector<24x32xf32>
    %68 = arith.mulf %64, %67 : vector<24x32xf32>
    %cst_61 = arith.constant 0.000000e+00 : bf16
    %69 = vector.broadcast %cst_61 : bf16 to vector<7x32xbf16>
    %c0_62 = arith.constant 0 : index
    %c0_63 = arith.constant 0 : index
    %c0_64 = arith.constant 0 : index
    %70 = vector.load %arg7[%c0_62, %c0_63, %c0_64] : memref<1x42x32xbf16, #tpu.memory_space<vmem>>, vector<1x7x32xbf16>
    %71 = vector.shape_cast %70 : vector<1x7x32xbf16> to vector<7x32xbf16>
    %72 = vector.shape_cast %69 : vector<7x32xbf16> to vector<1x7x32xbf16>
    tpu.vector_store %arg7[%c0_62, %c0_63, %c0_64], %72 {strides = array<i32>} : memref<1x42x32xbf16, #tpu.memory_space<vmem>>, vector<1x7x32xbf16>,
    %73 = arith.truncf %68 : vector<24x32xf32> to vector<24x32xbf16>
    %c0_65 = arith.constant 0 : index
    %c7_66 = arith.constant 7 : index
    %c0_67 = arith.constant 0 : index
    %74 = vector.load %arg7[%c0_65, %c7_66, %c0_67] : memref<1x42x32xbf16, #tpu.memory_space<vmem>>, vector<1x24x32xbf16>
    %75 = vector.shape_cast %74 : vector<1x24x32xbf16> to vector<24x32xbf16>
    %76 = vector.shape_cast %73 : vector<24x32xbf16> to vector<1x24x32xbf16>
    tpu.vector_store %arg7[%c0_65, %c7_66, %c0_67], %76 {strides = array<i32>} : memref<1x42x32xbf16, #tpu.memory_space<vmem>>, vector<1x24x32xbf16>,
    %cst_68 = arith.constant 0.000000e+00 : bf16
    %77 = vector.broadcast %cst_68 : bf16 to vector<11x32xbf16>
    %c0_69 = arith.constant 0 : index
    %c31 = arith.constant 31 : index
    %c0_70 = arith.constant 0 : index
    %78 = vector.load %arg7[%c0_69, %c31, %c0_70] : memref<1x42x32xbf16, #tpu.memory_space<vmem>>, vector<1x11x32xbf16>
    %79 = vector.shape_cast %78 : vector<1x11x32xbf16> to vector<11x32xbf16>
    %80 = vector.shape_cast %77 : vector<11x32xbf16> to vector<1x11x32xbf16>
    tpu.vector_store %arg7[%c0_69, %c31, %c0_70], %80 {strides = array<i32>} : memref<1x42x32xbf16, #tpu.memory_space<vmem>>, vector<1x11x32xbf16>,
    return
  }
  func.func @transform_0(%arg0: i32) -> (i32, i32, i32) {
    %c0_i32 = arith.constant 0 : i32
    %c0_i32_0 = arith.constant 0 : i32
    %c0_i32_1 = arith.constant 0 : i32
    return %arg0, %c0_i32, %c0_i32_0 : i32, i32, i32
  }
  func.func @transform_1(%arg0: i32) -> (i32, i32, i32) {
    %c0_i32 = arith.constant 0 : i32
    %c0_i32_0 = arith.constant 0 : i32
    %c0_i32_1 = arith.constant 0 : i32
    %c0_i32_2 = arith.constant 0 : i32
    return %c0_i32, %c0_i32_0, %c0_i32_1 : i32, i32, i32
  }
  func.func @transform_2(%arg0: i32) -> (i32, i32) {
    %c0_i32 = arith.constant 0 : i32
    %c0_i32_0 = arith.constant 0 : i32
    %c0_i32_1 = arith.constant 0 : i32
    return %c0_i32, %c0_i32_0 : i32, i32
  }
  func.func @transform_3(%arg0: i32) -> (i32, i32) {
    %c0_i32 = arith.constant 0 : i32
    %c0_i32_0 = arith.constant 0 : i32
    %c0_i32_1 = arith.constant 0 : i32
    return %c0_i32, %c0_i32_0 : i32, i32
  }
  func.func @transform_4(%arg0: i32) -> (i32, i32, i32) {
    %c0_i32 = arith.constant 0 : i32
    %c0_i32_0 = arith.constant 0 : i32
    %c0_i32_1 = arith.constant 0 : i32
    %c0_i32_2 = arith.constant 0 : i32
    return %c0_i32, %c0_i32_0, %c0_i32_1 : i32, i32, i32
  }
  func.func @transform_5(%arg0: i32) -> (i32, i32, i32) {
    %c0_i32 = arith.constant 0 : i32
    %c0_i32_0 = arith.constant 0 : i32
    %c0_i32_1 = arith.constant 0 : i32
    return %arg0, %c0_i32, %c0_i32_0 : i32, i32, i32
  }
  func.func @transform_6(%arg0: i32) -> (i32, i32, i32) {
    %c0_i32 = arith.constant 0 : i32
    %c0_i32_0 = arith.constant 0 : i32
    %c0_i32_1 = arith.constant 0 : i32
    return %arg0, %c0_i32, %c0_i32_0 : i32, i32, i32
  }
}

module attributes {stable_mosaic.version = 11 : i64} {
  func.func @kernel(%arg0: i32, %arg1: memref<1x42x32xbf16, #tpu.memory_space<vmem>>, %arg2: memref<9x32x16xbf16, #tpu.memory_space<vmem>>, %arg3: memref<1x16xf32, #tpu.memory_space<vmem>>, %arg4: memref<1x16xf32, #tpu.memory_space<vmem>>, %arg5: memref<1x4x24x16xbf16, #tpu.memory_space<vmem>>) attributes {dimension_semantics = [#tpu.dimension_semantics<parallel>], iteration_bounds = array<i64: 2>, scalar_prefetch = 0 : i64, scratch_operands = 0 : i64, tpu.core_type = #tpu.core_type<tc>, window_params = [{transform_indices = @transform_0, window_bounds = array<i64: 1, 42, 32>}, {pipeline_mode = #tpu.pipeline_mode<synchronous>, transform_indices = @transform_1, window_bounds = array<i64: 9, 32, 16>}, {pipeline_mode = #tpu.pipeline_mode<synchronous>, transform_indices = @transform_2, window_bounds = array<i64: 1, 16>}, {pipeline_mode = #tpu.pipeline_mode<synchronous>, transform_indices = @transform_3, window_bounds = array<i64: 1, 16>}, {transform_indices = @transform_4, window_bounds = array<i64: 1, 4, 24, 16>}]} {
    %c0 = arith.constant 0 : index
    %c7 = arith.constant 7 : index
    %c0_0 = arith.constant 0 : index
    %0 = vector.load %arg1[%c0, %c7, %c0_0] : memref<1x42x32xbf16, #tpu.memory_space<vmem>>, vector<1x24x32xbf16>
    %1 = vector.shape_cast %0 : vector<1x24x32xbf16> to vector<24x32xbf16>
    %c4 = arith.constant 4 : index
    %c0_1 = arith.constant 0 : index
    %c0_2 = arith.constant 0 : index
    %2 = vector.load %arg2[%c4, %c0_1, %c0_2] : memref<9x32x16xbf16, #tpu.memory_space<vmem>>, vector<1x32x16xbf16>
    %3 = vector.shape_cast %2 : vector<1x32x16xbf16> to vector<32x16xbf16>
    %cst = arith.constant dense<0.000000e+00> : vector<24x16xf32>
    %4 = tpu.matmul %1, %3, %cst {dimension_numbers = #tpu.dot_dimension_numbers<[1], [0], [0], [1], [0, 0, 1, 1], [], []>} : vector<24x32xbf16>, vector<32x16xbf16>, vector<24x16xf32> -> vector<24x16xf32>
    %c0_3 = arith.constant 0 : index
    %c0_4 = arith.constant 0 : index
    %5 = vector.load %arg3[%c0_3, %c0_4] : memref<1x16xf32, #tpu.memory_space<vmem>>, vector<1x16xf32>
    %6 = vector.broadcast %5 : vector<1x16xf32> to vector<24x16xf32>
    %7 = arith.mulf %4, %6 : vector<24x16xf32>
    %c0_5 = arith.constant 0 : index
    %c0_6 = arith.constant 0 : index
    %8 = vector.load %arg4[%c0_5, %c0_6] : memref<1x16xf32, #tpu.memory_space<vmem>>, vector<1x16xf32>
    %9 = vector.broadcast %8 : vector<1x16xf32> to vector<24x16xf32>
    %10 = arith.addf %7, %9 : vector<24x16xf32>
    %cst_7 = arith.constant 0.000000e+00 : f32
    %11 = vector.broadcast %cst_7 : f32 to vector<24x16xf32>
    %12 = arith.maximumf %10, %11 : vector<24x16xf32>
    %13 = arith.truncf %12 : vector<24x16xf32> to vector<24x16xbf16>
    %c0_8 = arith.constant 0 : index
    %c0_9 = arith.constant 0 : index
    %c0_10 = arith.constant 0 : index
    %c0_11 = arith.constant 0 : index
    %14 = vector.load %arg5[%c0_8, %c0_9, %c0_10, %c0_11] : memref<1x4x24x16xbf16, #tpu.memory_space<vmem>>, vector<1x1x24x16xbf16>
    %15 = vector.shape_cast %14 : vector<1x1x24x16xbf16> to vector<24x16xbf16>
    %16 = vector.shape_cast %13 : vector<24x16xbf16> to vector<1x1x24x16xbf16>
    tpu.vector_store %arg5[%c0_8, %c0_9, %c0_10, %c0_11], %16 {strides = array<i32>} : memref<1x4x24x16xbf16, #tpu.memory_space<vmem>>, vector<1x1x24x16xbf16>,
    %c0_12 = arith.constant 0 : index
    %c8 = arith.constant 8 : index
    %c0_13 = arith.constant 0 : index
    %17 = vector.load %arg1[%c0_12, %c8, %c0_13] : memref<1x42x32xbf16, #tpu.memory_space<vmem>>, vector<1x24x32xbf16>
    %18 = vector.shape_cast %17 : vector<1x24x32xbf16> to vector<24x32xbf16>
    %c3 = arith.constant 3 : index
    %c0_14 = arith.constant 0 : index
    %c0_15 = arith.constant 0 : index
    %19 = vector.load %arg2[%c3, %c0_14, %c0_15] : memref<9x32x16xbf16, #tpu.memory_space<vmem>>, vector<1x32x16xbf16>
    %20 = vector.shape_cast %19 : vector<1x32x16xbf16> to vector<32x16xbf16>
    %cst_16 = arith.constant dense<0.000000e+00> : vector<24x16xf32>
    %21 = tpu.matmul %18, %20, %cst_16 {dimension_numbers = #tpu.dot_dimension_numbers<[1], [0], [0], [1], [0, 0, 1, 1], [], []>} : vector<24x32xbf16>, vector<32x16xbf16>, vector<24x16xf32> -> vector<24x16xf32>
    %c0_17 = arith.constant 0 : index
    %c7_18 = arith.constant 7 : index
    %c0_19 = arith.constant 0 : index
    %22 = vector.load %arg1[%c0_17, %c7_18, %c0_19] : memref<1x42x32xbf16, #tpu.memory_space<vmem>>, vector<1x24x32xbf16>
    %23 = vector.shape_cast %22 : vector<1x24x32xbf16> to vector<24x32xbf16>
    %c5 = arith.constant 5 : index
    %c0_20 = arith.constant 0 : index
    %c0_21 = arith.constant 0 : index
    %24 = vector.load %arg2[%c5, %c0_20, %c0_21] : memref<9x32x16xbf16, #tpu.memory_space<vmem>>, vector<1x32x16xbf16>
    %25 = vector.shape_cast %24 : vector<1x32x16xbf16> to vector<32x16xbf16>
    %cst_22 = arith.constant dense<0.000000e+00> : vector<24x16xf32>
    %26 = tpu.matmul %23, %25, %cst_22 {dimension_numbers = #tpu.dot_dimension_numbers<[1], [0], [0], [1], [0, 0, 1, 1], [], []>} : vector<24x32xbf16>, vector<32x16xbf16>, vector<24x16xf32> -> vector<24x16xf32>
    %27 = arith.addf %21, %26 : vector<24x16xf32>
    %c0_23 = arith.constant 0 : index
    %c0_24 = arith.constant 0 : index
    %28 = vector.load %arg3[%c0_23, %c0_24] : memref<1x16xf32, #tpu.memory_space<vmem>>, vector<1x16xf32>
    %29 = vector.broadcast %28 : vector<1x16xf32> to vector<24x16xf32>
    %30 = arith.mulf %27, %29 : vector<24x16xf32>
    %c0_25 = arith.constant 0 : index
    %c0_26 = arith.constant 0 : index
    %31 = vector.load %arg4[%c0_25, %c0_26] : memref<1x16xf32, #tpu.memory_space<vmem>>, vector<1x16xf32>
    %32 = vector.broadcast %31 : vector<1x16xf32> to vector<24x16xf32>
    %33 = arith.addf %30, %32 : vector<24x16xf32>
    %cst_27 = arith.constant 0.000000e+00 : f32
    %34 = vector.broadcast %cst_27 : f32 to vector<24x16xf32>
    %35 = arith.maximumf %33, %34 : vector<24x16xf32>
    %36 = arith.truncf %35 : vector<24x16xf32> to vector<24x16xbf16>
    %c0_28 = arith.constant 0 : index
    %c1 = arith.constant 1 : index
    %c0_29 = arith.constant 0 : index
    %c0_30 = arith.constant 0 : index
    %37 = vector.load %arg5[%c0_28, %c1, %c0_29, %c0_30] : memref<1x4x24x16xbf16, #tpu.memory_space<vmem>>, vector<1x1x24x16xbf16>
    %38 = vector.shape_cast %37 : vector<1x1x24x16xbf16> to vector<24x16xbf16>
    %39 = vector.shape_cast %36 : vector<24x16xbf16> to vector<1x1x24x16xbf16>
    tpu.vector_store %arg5[%c0_28, %c1, %c0_29, %c0_30], %39 {strides = array<i32>} : memref<1x4x24x16xbf16, #tpu.memory_space<vmem>>, vector<1x1x24x16xbf16>,
    %c0_31 = arith.constant 0 : index
    %c13 = arith.constant 13 : index
    %c0_32 = arith.constant 0 : index
    %40 = vector.load %arg1[%c0_31, %c13, %c0_32] : memref<1x42x32xbf16, #tpu.memory_space<vmem>>, vector<1x24x32xbf16>
    %41 = vector.shape_cast %40 : vector<1x24x32xbf16> to vector<24x32xbf16>
    %c1_33 = arith.constant 1 : index
    %c0_34 = arith.constant 0 : index
    %c0_35 = arith.constant 0 : index
    %42 = vector.load %arg2[%c1_33, %c0_34, %c0_35] : memref<9x32x16xbf16, #tpu.memory_space<vmem>>, vector<1x32x16xbf16>
    %43 = vector.shape_cast %42 : vector<1x32x16xbf16> to vector<32x16xbf16>
    %cst_36 = arith.constant dense<0.000000e+00> : vector<24x16xf32>
    %44 = tpu.matmul %41, %43, %cst_36 {dimension_numbers = #tpu.dot_dimension_numbers<[1], [0], [0], [1], [0, 0, 1, 1], [], []>} : vector<24x32xbf16>, vector<32x16xbf16>, vector<24x16xf32> -> vector<24x16xf32>
    %c0_37 = arith.constant 0 : index
    %c7_38 = arith.constant 7 : index
    %c0_39 = arith.constant 0 : index
    %45 = vector.load %arg1[%c0_37, %c7_38, %c0_39] : memref<1x42x32xbf16, #tpu.memory_space<vmem>>, vector<1x24x32xbf16>
    %46 = vector.shape_cast %45 : vector<1x24x32xbf16> to vector<24x32xbf16>
    %c7_40 = arith.constant 7 : index
    %c0_41 = arith.constant 0 : index
    %c0_42 = arith.constant 0 : index
    %47 = vector.load %arg2[%c7_40, %c0_41, %c0_42] : memref<9x32x16xbf16, #tpu.memory_space<vmem>>, vector<1x32x16xbf16>
    %48 = vector.shape_cast %47 : vector<1x32x16xbf16> to vector<32x16xbf16>
    %cst_43 = arith.constant dense<0.000000e+00> : vector<24x16xf32>
    %49 = tpu.matmul %46, %48, %cst_43 {dimension_numbers = #tpu.dot_dimension_numbers<[1], [0], [0], [1], [0, 0, 1, 1], [], []>} : vector<24x32xbf16>, vector<32x16xbf16>, vector<24x16xf32> -> vector<24x16xf32>
    %50 = arith.addf %44, %49 : vector<24x16xf32>
    %c0_44 = arith.constant 0 : index
    %c0_45 = arith.constant 0 : index
    %51 = vector.load %arg3[%c0_44, %c0_45] : memref<1x16xf32, #tpu.memory_space<vmem>>, vector<1x16xf32>
    %52 = vector.broadcast %51 : vector<1x16xf32> to vector<24x16xf32>
    %53 = arith.mulf %50, %52 : vector<24x16xf32>
    %c0_46 = arith.constant 0 : index
    %c0_47 = arith.constant 0 : index
    %54 = vector.load %arg4[%c0_46, %c0_47] : memref<1x16xf32, #tpu.memory_space<vmem>>, vector<1x16xf32>
    %55 = vector.broadcast %54 : vector<1x16xf32> to vector<24x16xf32>
    %56 = arith.addf %53, %55 : vector<24x16xf32>
    %cst_48 = arith.constant 0.000000e+00 : f32
    %57 = vector.broadcast %cst_48 : f32 to vector<24x16xf32>
    %58 = arith.maximumf %56, %57 : vector<24x16xf32>
    %59 = arith.truncf %58 : vector<24x16xf32> to vector<24x16xbf16>
    %c0_49 = arith.constant 0 : index
    %c2 = arith.constant 2 : index
    %c0_50 = arith.constant 0 : index
    %c0_51 = arith.constant 0 : index
    %60 = vector.load %arg5[%c0_49, %c2, %c0_50, %c0_51] : memref<1x4x24x16xbf16, #tpu.memory_space<vmem>>, vector<1x1x24x16xbf16>
    %61 = vector.shape_cast %60 : vector<1x1x24x16xbf16> to vector<24x16xbf16>
    %62 = vector.shape_cast %59 : vector<24x16xbf16> to vector<1x1x24x16xbf16>
    tpu.vector_store %arg5[%c0_49, %c2, %c0_50, %c0_51], %62 {strides = array<i32>} : memref<1x4x24x16xbf16, #tpu.memory_space<vmem>>, vector<1x1x24x16xbf16>,
    %c0_52 = arith.constant 0 : index
    %c14 = arith.constant 14 : index
    %c0_53 = arith.constant 0 : index
    %63 = vector.load %arg1[%c0_52, %c14, %c0_53] : memref<1x42x32xbf16, #tpu.memory_space<vmem>>, vector<1x24x32xbf16>
    %64 = vector.shape_cast %63 : vector<1x24x32xbf16> to vector<24x32xbf16>
    %c0_54 = arith.constant 0 : index
    %c0_55 = arith.constant 0 : index
    %c0_56 = arith.constant 0 : index
    %65 = vector.load %arg2[%c0_54, %c0_55, %c0_56] : memref<9x32x16xbf16, #tpu.memory_space<vmem>>, vector<1x32x16xbf16>
    %66 = vector.shape_cast %65 : vector<1x32x16xbf16> to vector<32x16xbf16>
    %cst_57 = arith.constant dense<0.000000e+00> : vector<24x16xf32>
    %67 = tpu.matmul %64, %66, %cst_57 {dimension_numbers = #tpu.dot_dimension_numbers<[1], [0], [0], [1], [0, 0, 1, 1], [], []>} : vector<24x32xbf16>, vector<32x16xbf16>, vector<24x16xf32> -> vector<24x16xf32>
    %c0_58 = arith.constant 0 : index
    %c13_59 = arith.constant 13 : index
    %c0_60 = arith.constant 0 : index
    %68 = vector.load %arg1[%c0_58, %c13_59, %c0_60] : memref<1x42x32xbf16, #tpu.memory_space<vmem>>, vector<1x24x32xbf16>
    %69 = vector.shape_cast %68 : vector<1x24x32xbf16> to vector<24x32xbf16>
    %c2_61 = arith.constant 2 : index
    %c0_62 = arith.constant 0 : index
    %c0_63 = arith.constant 0 : index
    %70 = vector.load %arg2[%c2_61, %c0_62, %c0_63] : memref<9x32x16xbf16, #tpu.memory_space<vmem>>, vector<1x32x16xbf16>
    %71 = vector.shape_cast %70 : vector<1x32x16xbf16> to vector<32x16xbf16>
    %cst_64 = arith.constant dense<0.000000e+00> : vector<24x16xf32>
    %72 = tpu.matmul %69, %71, %cst_64 {dimension_numbers = #tpu.dot_dimension_numbers<[1], [0], [0], [1], [0, 0, 1, 1], [], []>} : vector<24x32xbf16>, vector<32x16xbf16>, vector<24x16xf32> -> vector<24x16xf32>
    %73 = arith.addf %67, %72 : vector<24x16xf32>
    %c0_65 = arith.constant 0 : index
    %c8_66 = arith.constant 8 : index
    %c0_67 = arith.constant 0 : index
    %74 = vector.load %arg1[%c0_65, %c8_66, %c0_67] : memref<1x42x32xbf16, #tpu.memory_space<vmem>>, vector<1x24x32xbf16>
    %75 = vector.shape_cast %74 : vector<1x24x32xbf16> to vector<24x32xbf16>
    %c6 = arith.constant 6 : index
    %c0_68 = arith.constant 0 : index
    %c0_69 = arith.constant 0 : index
    %76 = vector.load %arg2[%c6, %c0_68, %c0_69] : memref<9x32x16xbf16, #tpu.memory_space<vmem>>, vector<1x32x16xbf16>
    %77 = vector.shape_cast %76 : vector<1x32x16xbf16> to vector<32x16xbf16>
    %cst_70 = arith.constant dense<0.000000e+00> : vector<24x16xf32>
    %78 = tpu.matmul %75, %77, %cst_70 {dimension_numbers = #tpu.dot_dimension_numbers<[1], [0], [0], [1], [0, 0, 1, 1], [], []>} : vector<24x32xbf16>, vector<32x16xbf16>, vector<24x16xf32> -> vector<24x16xf32>
    %79 = arith.addf %73, %78 : vector<24x16xf32>
    %c0_71 = arith.constant 0 : index
    %c7_72 = arith.constant 7 : index
    %c0_73 = arith.constant 0 : index
    %80 = vector.load %arg1[%c0_71, %c7_72, %c0_73] : memref<1x42x32xbf16, #tpu.memory_space<vmem>>, vector<1x24x32xbf16>
    %81 = vector.shape_cast %80 : vector<1x24x32xbf16> to vector<24x32xbf16>
    %c8_74 = arith.constant 8 : index
    %c0_75 = arith.constant 0 : index
    %c0_76 = arith.constant 0 : index
    %82 = vector.load %arg2[%c8_74, %c0_75, %c0_76] : memref<9x32x16xbf16, #tpu.memory_space<vmem>>, vector<1x32x16xbf16>
    %83 = vector.shape_cast %82 : vector<1x32x16xbf16> to vector<32x16xbf16>
    %cst_77 = arith.constant dense<0.000000e+00> : vector<24x16xf32>
    %84 = tpu.matmul %81, %83, %cst_77 {dimension_numbers = #tpu.dot_dimension_numbers<[1], [0], [0], [1], [0, 0, 1, 1], [], []>} : vector<24x32xbf16>, vector<32x16xbf16>, vector<24x16xf32> -> vector<24x16xf32>
    %85 = arith.addf %79, %84 : vector<24x16xf32>
    %c0_78 = arith.constant 0 : index
    %c0_79 = arith.constant 0 : index
    %86 = vector.load %arg3[%c0_78, %c0_79] : memref<1x16xf32, #tpu.memory_space<vmem>>, vector<1x16xf32>
    %87 = vector.broadcast %86 : vector<1x16xf32> to vector<24x16xf32>
    %88 = arith.mulf %85, %87 : vector<24x16xf32>
    %c0_80 = arith.constant 0 : index
    %c0_81 = arith.constant 0 : index
    %89 = vector.load %arg4[%c0_80, %c0_81] : memref<1x16xf32, #tpu.memory_space<vmem>>, vector<1x16xf32>
    %90 = vector.broadcast %89 : vector<1x16xf32> to vector<24x16xf32>
    %91 = arith.addf %88, %90 : vector<24x16xf32>
    %cst_82 = arith.constant 0.000000e+00 : f32
    %92 = vector.broadcast %cst_82 : f32 to vector<24x16xf32>
    %93 = arith.maximumf %91, %92 : vector<24x16xf32>
    %94 = arith.truncf %93 : vector<24x16xf32> to vector<24x16xbf16>
    %c0_83 = arith.constant 0 : index
    %c3_84 = arith.constant 3 : index
    %c0_85 = arith.constant 0 : index
    %c0_86 = arith.constant 0 : index
    %95 = vector.load %arg5[%c0_83, %c3_84, %c0_85, %c0_86] : memref<1x4x24x16xbf16, #tpu.memory_space<vmem>>, vector<1x1x24x16xbf16>
    %96 = vector.shape_cast %95 : vector<1x1x24x16xbf16> to vector<24x16xbf16>
    %97 = vector.shape_cast %94 : vector<24x16xbf16> to vector<1x1x24x16xbf16>
    tpu.vector_store %arg5[%c0_83, %c3_84, %c0_85, %c0_86], %97 {strides = array<i32>} : memref<1x4x24x16xbf16, #tpu.memory_space<vmem>>, vector<1x1x24x16xbf16>,
    return
  }
  func.func @transform_0(%arg0: i32) -> (i32, i32, i32) {
    %c0_i32 = arith.constant 0 : i32
    %c0_i32_0 = arith.constant 0 : i32
    %c0_i32_1 = arith.constant 0 : i32
    return %arg0, %c0_i32, %c0_i32_0 : i32, i32, i32
  }
  func.func @transform_1(%arg0: i32) -> (i32, i32, i32) {
    %c0_i32 = arith.constant 0 : i32
    %c0_i32_0 = arith.constant 0 : i32
    %c0_i32_1 = arith.constant 0 : i32
    %c0_i32_2 = arith.constant 0 : i32
    return %c0_i32, %c0_i32_0, %c0_i32_1 : i32, i32, i32
  }
  func.func @transform_2(%arg0: i32) -> (i32, i32) {
    %c0_i32 = arith.constant 0 : i32
    %c0_i32_0 = arith.constant 0 : i32
    %c0_i32_1 = arith.constant 0 : i32
    return %c0_i32, %c0_i32_0 : i32, i32
  }
  func.func @transform_3(%arg0: i32) -> (i32, i32) {
    %c0_i32 = arith.constant 0 : i32
    %c0_i32_0 = arith.constant 0 : i32
    %c0_i32_1 = arith.constant 0 : i32
    return %c0_i32, %c0_i32_0 : i32, i32
  }
  func.func @transform_4(%arg0: i32) -> (i32, i32, i32, i32) {
    %c0_i32 = arith.constant 0 : i32
    %c0_i32_0 = arith.constant 0 : i32
    %c0_i32_1 = arith.constant 0 : i32
    %c0_i32_2 = arith.constant 0 : i32
    return %arg0, %c0_i32, %c0_i32_0, %c0_i32_1 : i32, i32, i32, i32
  }
}

module attributes {stable_mosaic.version = 11 : i64} {
  func.func @kernel(%arg0: i32, %arg1: memref<1x110x16xbf16, #tpu.memory_space<vmem>>, %arg2: memref<9x16x8xbf16, #tpu.memory_space<vmem>>, %arg3: memref<1x8xf32, #tpu.memory_space<vmem>>, %arg4: memref<1x8xf32, #tpu.memory_space<vmem>>, %arg5: memref<1x4x80x8xbf16, #tpu.memory_space<vmem>>) attributes {dimension_semantics = [#tpu.dimension_semantics<parallel>], iteration_bounds = array<i64: 2>, scalar_prefetch = 0 : i64, scratch_operands = 0 : i64, tpu.core_type = #tpu.core_type<tc>, window_params = [{transform_indices = @transform_0, window_bounds = array<i64: 1, 110, 16>}, {pipeline_mode = #tpu.pipeline_mode<synchronous>, transform_indices = @transform_1, window_bounds = array<i64: 9, 16, 8>}, {pipeline_mode = #tpu.pipeline_mode<synchronous>, transform_indices = @transform_2, window_bounds = array<i64: 1, 8>}, {pipeline_mode = #tpu.pipeline_mode<synchronous>, transform_indices = @transform_3, window_bounds = array<i64: 1, 8>}, {transform_indices = @transform_4, window_bounds = array<i64: 1, 4, 80, 8>}]} {
    %c0 = arith.constant 0 : index
    %c11 = arith.constant 11 : index
    %c0_0 = arith.constant 0 : index
    %0 = vector.load %arg1[%c0, %c11, %c0_0] : memref<1x110x16xbf16, #tpu.memory_space<vmem>>, vector<1x80x16xbf16>
    %1 = vector.shape_cast %0 : vector<1x80x16xbf16> to vector<80x16xbf16>
    %c4 = arith.constant 4 : index
    %c0_1 = arith.constant 0 : index
    %c0_2 = arith.constant 0 : index
    %2 = vector.load %arg2[%c4, %c0_1, %c0_2] : memref<9x16x8xbf16, #tpu.memory_space<vmem>>, vector<1x16x8xbf16>
    %3 = vector.shape_cast %2 : vector<1x16x8xbf16> to vector<16x8xbf16>
    %cst = arith.constant dense<0.000000e+00> : vector<80x8xf32>
    %4 = tpu.matmul %1, %3, %cst {dimension_numbers = #tpu.dot_dimension_numbers<[1], [0], [0], [1], [0, 0, 1, 1], [], []>} : vector<80x16xbf16>, vector<16x8xbf16>, vector<80x8xf32> -> vector<80x8xf32>
    %c0_3 = arith.constant 0 : index
    %c0_4 = arith.constant 0 : index
    %5 = vector.load %arg3[%c0_3, %c0_4] : memref<1x8xf32, #tpu.memory_space<vmem>>, vector<1x8xf32>
    %6 = vector.broadcast %5 : vector<1x8xf32> to vector<80x8xf32>
    %7 = arith.mulf %4, %6 : vector<80x8xf32>
    %c0_5 = arith.constant 0 : index
    %c0_6 = arith.constant 0 : index
    %8 = vector.load %arg4[%c0_5, %c0_6] : memref<1x8xf32, #tpu.memory_space<vmem>>, vector<1x8xf32>
    %9 = vector.broadcast %8 : vector<1x8xf32> to vector<80x8xf32>
    %10 = arith.addf %7, %9 : vector<80x8xf32>
    %cst_7 = arith.constant 0.000000e+00 : f32
    %11 = vector.broadcast %cst_7 : f32 to vector<80x8xf32>
    %12 = arith.maximumf %10, %11 : vector<80x8xf32>
    %13 = arith.truncf %12 : vector<80x8xf32> to vector<80x8xbf16>
    %c0_8 = arith.constant 0 : index
    %c0_9 = arith.constant 0 : index
    %c0_10 = arith.constant 0 : index
    %c0_11 = arith.constant 0 : index
    %14 = vector.load %arg5[%c0_8, %c0_9, %c0_10, %c0_11] : memref<1x4x80x8xbf16, #tpu.memory_space<vmem>>, vector<1x1x80x8xbf16>
    %15 = vector.shape_cast %14 : vector<1x1x80x8xbf16> to vector<80x8xbf16>
    %16 = vector.shape_cast %13 : vector<80x8xbf16> to vector<1x1x80x8xbf16>
    tpu.vector_store %arg5[%c0_8, %c0_9, %c0_10, %c0_11], %16 {strides = array<i32>} : memref<1x4x80x8xbf16, #tpu.memory_space<vmem>>, vector<1x1x80x8xbf16>,
    %c0_12 = arith.constant 0 : index
    %c12 = arith.constant 12 : index
    %c0_13 = arith.constant 0 : index
    %17 = vector.load %arg1[%c0_12, %c12, %c0_13] : memref<1x110x16xbf16, #tpu.memory_space<vmem>>, vector<1x80x16xbf16>
    %18 = vector.shape_cast %17 : vector<1x80x16xbf16> to vector<80x16xbf16>
    %c3 = arith.constant 3 : index
    %c0_14 = arith.constant 0 : index
    %c0_15 = arith.constant 0 : index
    %19 = vector.load %arg2[%c3, %c0_14, %c0_15] : memref<9x16x8xbf16, #tpu.memory_space<vmem>>, vector<1x16x8xbf16>
    %20 = vector.shape_cast %19 : vector<1x16x8xbf16> to vector<16x8xbf16>
    %cst_16 = arith.constant dense<0.000000e+00> : vector<80x8xf32>
    %21 = tpu.matmul %18, %20, %cst_16 {dimension_numbers = #tpu.dot_dimension_numbers<[1], [0], [0], [1], [0, 0, 1, 1], [], []>} : vector<80x16xbf16>, vector<16x8xbf16>, vector<80x8xf32> -> vector<80x8xf32>
    %c0_17 = arith.constant 0 : index
    %c11_18 = arith.constant 11 : index
    %c0_19 = arith.constant 0 : index
    %22 = vector.load %arg1[%c0_17, %c11_18, %c0_19] : memref<1x110x16xbf16, #tpu.memory_space<vmem>>, vector<1x80x16xbf16>
    %23 = vector.shape_cast %22 : vector<1x80x16xbf16> to vector<80x16xbf16>
    %c5 = arith.constant 5 : index
    %c0_20 = arith.constant 0 : index
    %c0_21 = arith.constant 0 : index
    %24 = vector.load %arg2[%c5, %c0_20, %c0_21] : memref<9x16x8xbf16, #tpu.memory_space<vmem>>, vector<1x16x8xbf16>
    %25 = vector.shape_cast %24 : vector<1x16x8xbf16> to vector<16x8xbf16>
    %cst_22 = arith.constant dense<0.000000e+00> : vector<80x8xf32>
    %26 = tpu.matmul %23, %25, %cst_22 {dimension_numbers = #tpu.dot_dimension_numbers<[1], [0], [0], [1], [0, 0, 1, 1], [], []>} : vector<80x16xbf16>, vector<16x8xbf16>, vector<80x8xf32> -> vector<80x8xf32>
    %27 = arith.addf %21, %26 : vector<80x8xf32>
    %c0_23 = arith.constant 0 : index
    %c0_24 = arith.constant 0 : index
    %28 = vector.load %arg3[%c0_23, %c0_24] : memref<1x8xf32, #tpu.memory_space<vmem>>, vector<1x8xf32>
    %29 = vector.broadcast %28 : vector<1x8xf32> to vector<80x8xf32>
    %30 = arith.mulf %27, %29 : vector<80x8xf32>
    %c0_25 = arith.constant 0 : index
    %c0_26 = arith.constant 0 : index
    %31 = vector.load %arg4[%c0_25, %c0_26] : memref<1x8xf32, #tpu.memory_space<vmem>>, vector<1x8xf32>
    %32 = vector.broadcast %31 : vector<1x8xf32> to vector<80x8xf32>
    %33 = arith.addf %30, %32 : vector<80x8xf32>
    %cst_27 = arith.constant 0.000000e+00 : f32
    %34 = vector.broadcast %cst_27 : f32 to vector<80x8xf32>
    %35 = arith.maximumf %33, %34 : vector<80x8xf32>
    %36 = arith.truncf %35 : vector<80x8xf32> to vector<80x8xbf16>
    %c0_28 = arith.constant 0 : index
    %c1 = arith.constant 1 : index
    %c0_29 = arith.constant 0 : index
    %c0_30 = arith.constant 0 : index
    %37 = vector.load %arg5[%c0_28, %c1, %c0_29, %c0_30] : memref<1x4x80x8xbf16, #tpu.memory_space<vmem>>, vector<1x1x80x8xbf16>
    %38 = vector.shape_cast %37 : vector<1x1x80x8xbf16> to vector<80x8xbf16>
    %39 = vector.shape_cast %36 : vector<80x8xbf16> to vector<1x1x80x8xbf16>
    tpu.vector_store %arg5[%c0_28, %c1, %c0_29, %c0_30], %39 {strides = array<i32>} : memref<1x4x80x8xbf16, #tpu.memory_space<vmem>>, vector<1x1x80x8xbf16>,
    %c0_31 = arith.constant 0 : index
    %c21 = arith.constant 21 : index
    %c0_32 = arith.constant 0 : index
    %40 = vector.load %arg1[%c0_31, %c21, %c0_32] : memref<1x110x16xbf16, #tpu.memory_space<vmem>>, vector<1x80x16xbf16>
    %41 = vector.shape_cast %40 : vector<1x80x16xbf16> to vector<80x16xbf16>
    %c1_33 = arith.constant 1 : index
    %c0_34 = arith.constant 0 : index
    %c0_35 = arith.constant 0 : index
    %42 = vector.load %arg2[%c1_33, %c0_34, %c0_35] : memref<9x16x8xbf16, #tpu.memory_space<vmem>>, vector<1x16x8xbf16>
    %43 = vector.shape_cast %42 : vector<1x16x8xbf16> to vector<16x8xbf16>
    %cst_36 = arith.constant dense<0.000000e+00> : vector<80x8xf32>
    %44 = tpu.matmul %41, %43, %cst_36 {dimension_numbers = #tpu.dot_dimension_numbers<[1], [0], [0], [1], [0, 0, 1, 1], [], []>} : vector<80x16xbf16>, vector<16x8xbf16>, vector<80x8xf32> -> vector<80x8xf32>
    %c0_37 = arith.constant 0 : index
    %c11_38 = arith.constant 11 : index
    %c0_39 = arith.constant 0 : index
    %45 = vector.load %arg1[%c0_37, %c11_38, %c0_39] : memref<1x110x16xbf16, #tpu.memory_space<vmem>>, vector<1x80x16xbf16>
    %46 = vector.shape_cast %45 : vector<1x80x16xbf16> to vector<80x16xbf16>
    %c7 = arith.constant 7 : index
    %c0_40 = arith.constant 0 : index
    %c0_41 = arith.constant 0 : index
    %47 = vector.load %arg2[%c7, %c0_40, %c0_41] : memref<9x16x8xbf16, #tpu.memory_space<vmem>>, vector<1x16x8xbf16>
    %48 = vector.shape_cast %47 : vector<1x16x8xbf16> to vector<16x8xbf16>
    %cst_42 = arith.constant dense<0.000000e+00> : vector<80x8xf32>
    %49 = tpu.matmul %46, %48, %cst_42 {dimension_numbers = #tpu.dot_dimension_numbers<[1], [0], [0], [1], [0, 0, 1, 1], [], []>} : vector<80x16xbf16>, vector<16x8xbf16>, vector<80x8xf32> -> vector<80x8xf32>
    %50 = arith.addf %44, %49 : vector<80x8xf32>
    %c0_43 = arith.constant 0 : index
    %c0_44 = arith.constant 0 : index
    %51 = vector.load %arg3[%c0_43, %c0_44] : memref<1x8xf32, #tpu.memory_space<vmem>>, vector<1x8xf32>
    %52 = vector.broadcast %51 : vector<1x8xf32> to vector<80x8xf32>
    %53 = arith.mulf %50, %52 : vector<80x8xf32>
    %c0_45 = arith.constant 0 : index
    %c0_46 = arith.constant 0 : index
    %54 = vector.load %arg4[%c0_45, %c0_46] : memref<1x8xf32, #tpu.memory_space<vmem>>, vector<1x8xf32>
    %55 = vector.broadcast %54 : vector<1x8xf32> to vector<80x8xf32>
    %56 = arith.addf %53, %55 : vector<80x8xf32>
    %cst_47 = arith.constant 0.000000e+00 : f32
    %57 = vector.broadcast %cst_47 : f32 to vector<80x8xf32>
    %58 = arith.maximumf %56, %57 : vector<80x8xf32>
    %59 = arith.truncf %58 : vector<80x8xf32> to vector<80x8xbf16>
    %c0_48 = arith.constant 0 : index
    %c2 = arith.constant 2 : index
    %c0_49 = arith.constant 0 : index
    %c0_50 = arith.constant 0 : index
    %60 = vector.load %arg5[%c0_48, %c2, %c0_49, %c0_50] : memref<1x4x80x8xbf16, #tpu.memory_space<vmem>>, vector<1x1x80x8xbf16>
    %61 = vector.shape_cast %60 : vector<1x1x80x8xbf16> to vector<80x8xbf16>
    %62 = vector.shape_cast %59 : vector<80x8xbf16> to vector<1x1x80x8xbf16>
    tpu.vector_store %arg5[%c0_48, %c2, %c0_49, %c0_50], %62 {strides = array<i32>} : memref<1x4x80x8xbf16, #tpu.memory_space<vmem>>, vector<1x1x80x8xbf16>,
    %c0_51 = arith.constant 0 : index
    %c22 = arith.constant 22 : index
    %c0_52 = arith.constant 0 : index
    %63 = vector.load %arg1[%c0_51, %c22, %c0_52] : memref<1x110x16xbf16, #tpu.memory_space<vmem>>, vector<1x80x16xbf16>
    %64 = vector.shape_cast %63 : vector<1x80x16xbf16> to vector<80x16xbf16>
    %c0_53 = arith.constant 0 : index
    %c0_54 = arith.constant 0 : index
    %c0_55 = arith.constant 0 : index
    %65 = vector.load %arg2[%c0_53, %c0_54, %c0_55] : memref<9x16x8xbf16, #tpu.memory_space<vmem>>, vector<1x16x8xbf16>
    %66 = vector.shape_cast %65 : vector<1x16x8xbf16> to vector<16x8xbf16>
    %cst_56 = arith.constant dense<0.000000e+00> : vector<80x8xf32>
    %67 = tpu.matmul %64, %66, %cst_56 {dimension_numbers = #tpu.dot_dimension_numbers<[1], [0], [0], [1], [0, 0, 1, 1], [], []>} : vector<80x16xbf16>, vector<16x8xbf16>, vector<80x8xf32> -> vector<80x8xf32>
    %c0_57 = arith.constant 0 : index
    %c21_58 = arith.constant 21 : index
    %c0_59 = arith.constant 0 : index
    %68 = vector.load %arg1[%c0_57, %c21_58, %c0_59] : memref<1x110x16xbf16, #tpu.memory_space<vmem>>, vector<1x80x16xbf16>
    %69 = vector.shape_cast %68 : vector<1x80x16xbf16> to vector<80x16xbf16>
    %c2_60 = arith.constant 2 : index
    %c0_61 = arith.constant 0 : index
    %c0_62 = arith.constant 0 : index
    %70 = vector.load %arg2[%c2_60, %c0_61, %c0_62] : memref<9x16x8xbf16, #tpu.memory_space<vmem>>, vector<1x16x8xbf16>
    %71 = vector.shape_cast %70 : vector<1x16x8xbf16> to vector<16x8xbf16>
    %cst_63 = arith.constant dense<0.000000e+00> : vector<80x8xf32>
    %72 = tpu.matmul %69, %71, %cst_63 {dimension_numbers = #tpu.dot_dimension_numbers<[1], [0], [0], [1], [0, 0, 1, 1], [], []>} : vector<80x16xbf16>, vector<16x8xbf16>, vector<80x8xf32> -> vector<80x8xf32>
    %73 = arith.addf %67, %72 : vector<80x8xf32>
    %c0_64 = arith.constant 0 : index
    %c12_65 = arith.constant 12 : index
    %c0_66 = arith.constant 0 : index
    %74 = vector.load %arg1[%c0_64, %c12_65, %c0_66] : memref<1x110x16xbf16, #tpu.memory_space<vmem>>, vector<1x80x16xbf16>
    %75 = vector.shape_cast %74 : vector<1x80x16xbf16> to vector<80x16xbf16>
    %c6 = arith.constant 6 : index
    %c0_67 = arith.constant 0 : index
    %c0_68 = arith.constant 0 : index
    %76 = vector.load %arg2[%c6, %c0_67, %c0_68] : memref<9x16x8xbf16, #tpu.memory_space<vmem>>, vector<1x16x8xbf16>
    %77 = vector.shape_cast %76 : vector<1x16x8xbf16> to vector<16x8xbf16>
    %cst_69 = arith.constant dense<0.000000e+00> : vector<80x8xf32>
    %78 = tpu.matmul %75, %77, %cst_69 {dimension_numbers = #tpu.dot_dimension_numbers<[1], [0], [0], [1], [0, 0, 1, 1], [], []>} : vector<80x16xbf16>, vector<16x8xbf16>, vector<80x8xf32> -> vector<80x8xf32>
    %79 = arith.addf %73, %78 : vector<80x8xf32>
    %c0_70 = arith.constant 0 : index
    %c11_71 = arith.constant 11 : index
    %c0_72 = arith.constant 0 : index
    %80 = vector.load %arg1[%c0_70, %c11_71, %c0_72] : memref<1x110x16xbf16, #tpu.memory_space<vmem>>, vector<1x80x16xbf16>
    %81 = vector.shape_cast %80 : vector<1x80x16xbf16> to vector<80x16xbf16>
    %c8 = arith.constant 8 : index
    %c0_73 = arith.constant 0 : index
    %c0_74 = arith.constant 0 : index
    %82 = vector.load %arg2[%c8, %c0_73, %c0_74] : memref<9x16x8xbf16, #tpu.memory_space<vmem>>, vector<1x16x8xbf16>
    %83 = vector.shape_cast %82 : vector<1x16x8xbf16> to vector<16x8xbf16>
    %cst_75 = arith.constant dense<0.000000e+00> : vector<80x8xf32>
    %84 = tpu.matmul %81, %83, %cst_75 {dimension_numbers = #tpu.dot_dimension_numbers<[1], [0], [0], [1], [0, 0, 1, 1], [], []>} : vector<80x16xbf16>, vector<16x8xbf16>, vector<80x8xf32> -> vector<80x8xf32>
    %85 = arith.addf %79, %84 : vector<80x8xf32>
    %c0_76 = arith.constant 0 : index
    %c0_77 = arith.constant 0 : index
    %86 = vector.load %arg3[%c0_76, %c0_77] : memref<1x8xf32, #tpu.memory_space<vmem>>, vector<1x8xf32>
    %87 = vector.broadcast %86 : vector<1x8xf32> to vector<80x8xf32>
    %88 = arith.mulf %85, %87 : vector<80x8xf32>
    %c0_78 = arith.constant 0 : index
    %c0_79 = arith.constant 0 : index
    %89 = vector.load %arg4[%c0_78, %c0_79] : memref<1x8xf32, #tpu.memory_space<vmem>>, vector<1x8xf32>
    %90 = vector.broadcast %89 : vector<1x8xf32> to vector<80x8xf32>
    %91 = arith.addf %88, %90 : vector<80x8xf32>
    %cst_80 = arith.constant 0.000000e+00 : f32
    %92 = vector.broadcast %cst_80 : f32 to vector<80x8xf32>
    %93 = arith.maximumf %91, %92 : vector<80x8xf32>
    %94 = arith.truncf %93 : vector<80x8xf32> to vector<80x8xbf16>
    %c0_81 = arith.constant 0 : index
    %c3_82 = arith.constant 3 : index
    %c0_83 = arith.constant 0 : index
    %c0_84 = arith.constant 0 : index
    %95 = vector.load %arg5[%c0_81, %c3_82, %c0_83, %c0_84] : memref<1x4x80x8xbf16, #tpu.memory_space<vmem>>, vector<1x1x80x8xbf16>
    %96 = vector.shape_cast %95 : vector<1x1x80x8xbf16> to vector<80x8xbf16>
    %97 = vector.shape_cast %94 : vector<80x8xbf16> to vector<1x1x80x8xbf16>
    tpu.vector_store %arg5[%c0_81, %c3_82, %c0_83, %c0_84], %97 {strides = array<i32>} : memref<1x4x80x8xbf16, #tpu.memory_space<vmem>>, vector<1x1x80x8xbf16>,
    return
  }
  func.func @transform_0(%arg0: i32) -> (i32, i32, i32) {
    %c0_i32 = arith.constant 0 : i32
    %c0_i32_0 = arith.constant 0 : i32
    %c0_i32_1 = arith.constant 0 : i32
    return %arg0, %c0_i32, %c0_i32_0 : i32, i32, i32
  }
  func.func @transform_1(%arg0: i32) -> (i32, i32, i32) {
    %c0_i32 = arith.constant 0 : i32
    %c0_i32_0 = arith.constant 0 : i32
    %c0_i32_1 = arith.constant 0 : i32
    %c0_i32_2 = arith.constant 0 : i32
    return %c0_i32, %c0_i32_0, %c0_i32_1 : i32, i32, i32
  }
  func.func @transform_2(%arg0: i32) -> (i32, i32) {
    %c0_i32 = arith.constant 0 : i32
    %c0_i32_0 = arith.constant 0 : i32
    %c0_i32_1 = arith.constant 0 : i32
    return %c0_i32, %c0_i32_0 : i32, i32
  }
  func.func @transform_3(%arg0: i32) -> (i32, i32) {
    %c0_i32 = arith.constant 0 : i32
    %c0_i32_0 = arith.constant 0 : i32
    %c0_i32_1 = arith.constant 0 : i32
    return %c0_i32, %c0_i32_0 : i32, i32
  }
  func.func @transform_4(%arg0: i32) -> (i32, i32, i32, i32) {
    %c0_i32 = arith.constant 0 : i32
    %c0_i32_0 = arith.constant 0 : i32
    %c0_i32_1 = arith.constant 0 : i32
    %c0_i32_2 = arith.constant 0 : i32
    return %arg0, %c0_i32, %c0_i32_0, %c0_i32_1 : i32, i32, i32, i32
  }
}

module attributes {stable_mosaic.version = 11 : i64} {
  func.func @kernel(%arg0: i32, %arg1: memref<1x342x8xbf16, #tpu.memory_space<vmem>>, %arg2: memref<9x8x3xbf16, #tpu.memory_space<vmem>>, %arg3: memref<1x3xf32, #tpu.memory_space<vmem>>, %arg4: memref<1x3xf32, #tpu.memory_space<vmem>>, %arg5: memref<1x288x1xf32, #tpu.memory_space<vmem>>, %arg6: memref<1x342x3xf32, #tpu.memory_space<vmem>>) attributes {dimension_semantics = [#tpu.dimension_semantics<parallel>], iteration_bounds = array<i64: 2>, scalar_prefetch = 0 : i64, scratch_operands = 0 : i64, tpu.core_type = #tpu.core_type<tc>, window_params = [{transform_indices = @transform_0, window_bounds = array<i64: 1, 342, 8>}, {pipeline_mode = #tpu.pipeline_mode<synchronous>, transform_indices = @transform_1, window_bounds = array<i64: 9, 8, 3>}, {pipeline_mode = #tpu.pipeline_mode<synchronous>, transform_indices = @transform_2, window_bounds = array<i64: 1, 3>}, {pipeline_mode = #tpu.pipeline_mode<synchronous>, transform_indices = @transform_3, window_bounds = array<i64: 1, 3>}, {pipeline_mode = #tpu.pipeline_mode<synchronous>, transform_indices = @transform_4, window_bounds = array<i64: 1, 288, 1>}, {transform_indices = @transform_5, window_bounds = array<i64: 1, 342, 3>}]} {
    %c0 = arith.constant 0 : index
    %c0_0 = arith.constant 0 : index
    %c0_1 = arith.constant 0 : index
    %0 = vector.load %arg1[%c0, %c0_0, %c0_1] : memref<1x342x8xbf16, #tpu.memory_space<vmem>>, vector<1x288x8xbf16>
    %1 = vector.shape_cast %0 : vector<1x288x8xbf16> to vector<288x8xbf16>
    %c0_2 = arith.constant 0 : index
    %c0_3 = arith.constant 0 : index
    %c0_4 = arith.constant 0 : index
    %2 = vector.load %arg2[%c0_2, %c0_3, %c0_4] : memref<9x8x3xbf16, #tpu.memory_space<vmem>>, vector<1x8x3xbf16>
    %3 = vector.shape_cast %2 : vector<1x8x3xbf16> to vector<8x3xbf16>
    %cst = arith.constant dense<0.000000e+00> : vector<288x3xf32>
    %4 = tpu.matmul %1, %3, %cst {dimension_numbers = #tpu.dot_dimension_numbers<[1], [0], [0], [1], [0, 0, 1, 1], [], []>} : vector<288x8xbf16>, vector<8x3xbf16>, vector<288x3xf32> -> vector<288x3xf32>
    %c0_5 = arith.constant 0 : index
    %c1 = arith.constant 1 : index
    %c0_6 = arith.constant 0 : index
    %5 = vector.load %arg1[%c0_5, %c1, %c0_6] : memref<1x342x8xbf16, #tpu.memory_space<vmem>>, vector<1x288x8xbf16>
    %6 = vector.shape_cast %5 : vector<1x288x8xbf16> to vector<288x8xbf16>
    %c1_7 = arith.constant 1 : index
    %c0_8 = arith.constant 0 : index
    %c0_9 = arith.constant 0 : index
    %7 = vector.load %arg2[%c1_7, %c0_8, %c0_9] : memref<9x8x3xbf16, #tpu.memory_space<vmem>>, vector<1x8x3xbf16>
    %8 = vector.shape_cast %7 : vector<1x8x3xbf16> to vector<8x3xbf16>
    %cst_10 = arith.constant dense<0.000000e+00> : vector<288x3xf32>
    %9 = tpu.matmul %6, %8, %cst_10 {dimension_numbers = #tpu.dot_dimension_numbers<[1], [0], [0], [1], [0, 0, 1, 1], [], []>} : vector<288x8xbf16>, vector<8x3xbf16>, vector<288x3xf32> -> vector<288x3xf32>
    %10 = arith.addf %4, %9 : vector<288x3xf32>
    %c0_11 = arith.constant 0 : index
    %c2 = arith.constant 2 : index
    %c0_12 = arith.constant 0 : index
    %11 = vector.load %arg1[%c0_11, %c2, %c0_12] : memref<1x342x8xbf16, #tpu.memory_space<vmem>>, vector<1x288x8xbf16>
    %12 = vector.shape_cast %11 : vector<1x288x8xbf16> to vector<288x8xbf16>
    %c2_13 = arith.constant 2 : index
    %c0_14 = arith.constant 0 : index
    %c0_15 = arith.constant 0 : index
    %13 = vector.load %arg2[%c2_13, %c0_14, %c0_15] : memref<9x8x3xbf16, #tpu.memory_space<vmem>>, vector<1x8x3xbf16>
    %14 = vector.shape_cast %13 : vector<1x8x3xbf16> to vector<8x3xbf16>
    %cst_16 = arith.constant dense<0.000000e+00> : vector<288x3xf32>
    %15 = tpu.matmul %12, %14, %cst_16 {dimension_numbers = #tpu.dot_dimension_numbers<[1], [0], [0], [1], [0, 0, 1, 1], [], []>} : vector<288x8xbf16>, vector<8x3xbf16>, vector<288x3xf32> -> vector<288x3xf32>
    %16 = arith.addf %10, %15 : vector<288x3xf32>
    %c0_17 = arith.constant 0 : index
    %c18 = arith.constant 18 : index
    %c0_18 = arith.constant 0 : index
    %17 = vector.load %arg1[%c0_17, %c18, %c0_18] : memref<1x342x8xbf16, #tpu.memory_space<vmem>>, vector<1x288x8xbf16>
    %18 = vector.shape_cast %17 : vector<1x288x8xbf16> to vector<288x8xbf16>
    %c3 = arith.constant 3 : index
    %c0_19 = arith.constant 0 : index
    %c0_20 = arith.constant 0 : index
    %19 = vector.load %arg2[%c3, %c0_19, %c0_20] : memref<9x8x3xbf16, #tpu.memory_space<vmem>>, vector<1x8x3xbf16>
    %20 = vector.shape_cast %19 : vector<1x8x3xbf16> to vector<8x3xbf16>
    %cst_21 = arith.constant dense<0.000000e+00> : vector<288x3xf32>
    %21 = tpu.matmul %18, %20, %cst_21 {dimension_numbers = #tpu.dot_dimension_numbers<[1], [0], [0], [1], [0, 0, 1, 1], [], []>} : vector<288x8xbf16>, vector<8x3xbf16>, vector<288x3xf32> -> vector<288x3xf32>
    %22 = arith.addf %16, %21 : vector<288x3xf32>
    %c0_22 = arith.constant 0 : index
    %c19 = arith.constant 19 : index
    %c0_23 = arith.constant 0 : index
    %23 = vector.load %arg1[%c0_22, %c19, %c0_23] : memref<1x342x8xbf16, #tpu.memory_space<vmem>>, vector<1x288x8xbf16>
    %24 = vector.shape_cast %23 : vector<1x288x8xbf16> to vector<288x8xbf16>
    %c4 = arith.constant 4 : index
    %c0_24 = arith.constant 0 : index
    %c0_25 = arith.constant 0 : index
    %25 = vector.load %arg2[%c4, %c0_24, %c0_25] : memref<9x8x3xbf16, #tpu.memory_space<vmem>>, vector<1x8x3xbf16>
    %26 = vector.shape_cast %25 : vector<1x8x3xbf16> to vector<8x3xbf16>
    %cst_26 = arith.constant dense<0.000000e+00> : vector<288x3xf32>
    %27 = tpu.matmul %24, %26, %cst_26 {dimension_numbers = #tpu.dot_dimension_numbers<[1], [0], [0], [1], [0, 0, 1, 1], [], []>} : vector<288x8xbf16>, vector<8x3xbf16>, vector<288x3xf32> -> vector<288x3xf32>
    %28 = arith.addf %22, %27 : vector<288x3xf32>
    %c0_27 = arith.constant 0 : index
    %c20 = arith.constant 20 : index
    %c0_28 = arith.constant 0 : index
    %29 = vector.load %arg1[%c0_27, %c20, %c0_28] : memref<1x342x8xbf16, #tpu.memory_space<vmem>>, vector<1x288x8xbf16>
    %30 = vector.shape_cast %29 : vector<1x288x8xbf16> to vector<288x8xbf16>
    %c5 = arith.constant 5 : index
    %c0_29 = arith.constant 0 : index
    %c0_30 = arith.constant 0 : index
    %31 = vector.load %arg2[%c5, %c0_29, %c0_30] : memref<9x8x3xbf16, #tpu.memory_space<vmem>>, vector<1x8x3xbf16>
    %32 = vector.shape_cast %31 : vector<1x8x3xbf16> to vector<8x3xbf16>
    %cst_31 = arith.constant dense<0.000000e+00> : vector<288x3xf32>
    %33 = tpu.matmul %30, %32, %cst_31 {dimension_numbers = #tpu.dot_dimension_numbers<[1], [0], [0], [1], [0, 0, 1, 1], [], []>} : vector<288x8xbf16>, vector<8x3xbf16>, vector<288x3xf32> -> vector<288x3xf32>
    %34 = arith.addf %28, %33 : vector<288x3xf32>
    %c0_32 = arith.constant 0 : index
    %c36 = arith.constant 36 : index
    %c0_33 = arith.constant 0 : index
    %35 = vector.load %arg1[%c0_32, %c36, %c0_33] : memref<1x342x8xbf16, #tpu.memory_space<vmem>>, vector<1x288x8xbf16>
    %36 = vector.shape_cast %35 : vector<1x288x8xbf16> to vector<288x8xbf16>
    %c6 = arith.constant 6 : index
    %c0_34 = arith.constant 0 : index
    %c0_35 = arith.constant 0 : index
    %37 = vector.load %arg2[%c6, %c0_34, %c0_35] : memref<9x8x3xbf16, #tpu.memory_space<vmem>>, vector<1x8x3xbf16>
    %38 = vector.shape_cast %37 : vector<1x8x3xbf16> to vector<8x3xbf16>
    %cst_36 = arith.constant dense<0.000000e+00> : vector<288x3xf32>
    %39 = tpu.matmul %36, %38, %cst_36 {dimension_numbers = #tpu.dot_dimension_numbers<[1], [0], [0], [1], [0, 0, 1, 1], [], []>} : vector<288x8xbf16>, vector<8x3xbf16>, vector<288x3xf32> -> vector<288x3xf32>
    %40 = arith.addf %34, %39 : vector<288x3xf32>
    %c0_37 = arith.constant 0 : index
    %c37 = arith.constant 37 : index
    %c0_38 = arith.constant 0 : index
    %41 = vector.load %arg1[%c0_37, %c37, %c0_38] : memref<1x342x8xbf16, #tpu.memory_space<vmem>>, vector<1x288x8xbf16>
    %42 = vector.shape_cast %41 : vector<1x288x8xbf16> to vector<288x8xbf16>
    %c7 = arith.constant 7 : index
    %c0_39 = arith.constant 0 : index
    %c0_40 = arith.constant 0 : index
    %43 = vector.load %arg2[%c7, %c0_39, %c0_40] : memref<9x8x3xbf16, #tpu.memory_space<vmem>>, vector<1x8x3xbf16>
    %44 = vector.shape_cast %43 : vector<1x8x3xbf16> to vector<8x3xbf16>
    %cst_41 = arith.constant dense<0.000000e+00> : vector<288x3xf32>
    %45 = tpu.matmul %42, %44, %cst_41 {dimension_numbers = #tpu.dot_dimension_numbers<[1], [0], [0], [1], [0, 0, 1, 1], [], []>} : vector<288x8xbf16>, vector<8x3xbf16>, vector<288x3xf32> -> vector<288x3xf32>
    %46 = arith.addf %40, %45 : vector<288x3xf32>
    %c0_42 = arith.constant 0 : index
    %c38 = arith.constant 38 : index
    %c0_43 = arith.constant 0 : index
    %47 = vector.load %arg1[%c0_42, %c38, %c0_43] : memref<1x342x8xbf16, #tpu.memory_space<vmem>>, vector<1x288x8xbf16>
    %48 = vector.shape_cast %47 : vector<1x288x8xbf16> to vector<288x8xbf16>
    %c8 = arith.constant 8 : index
    %c0_44 = arith.constant 0 : index
    %c0_45 = arith.constant 0 : index
    %49 = vector.load %arg2[%c8, %c0_44, %c0_45] : memref<9x8x3xbf16, #tpu.memory_space<vmem>>, vector<1x8x3xbf16>
    %50 = vector.shape_cast %49 : vector<1x8x3xbf16> to vector<8x3xbf16>
    %cst_46 = arith.constant dense<0.000000e+00> : vector<288x3xf32>
    %51 = tpu.matmul %48, %50, %cst_46 {dimension_numbers = #tpu.dot_dimension_numbers<[1], [0], [0], [1], [0, 0, 1, 1], [], []>} : vector<288x8xbf16>, vector<8x3xbf16>, vector<288x3xf32> -> vector<288x3xf32>
    %52 = arith.addf %46, %51 : vector<288x3xf32>
    %c0_47 = arith.constant 0 : index
    %c0_48 = arith.constant 0 : index
    %53 = vector.load %arg3[%c0_47, %c0_48] : memref<1x3xf32, #tpu.memory_space<vmem>>, vector<1x3xf32>
    %54 = vector.broadcast %53 : vector<1x3xf32> to vector<288x3xf32>
    %55 = arith.mulf %52, %54 : vector<288x3xf32>
    %c0_49 = arith.constant 0 : index
    %c0_50 = arith.constant 0 : index
    %56 = vector.load %arg4[%c0_49, %c0_50] : memref<1x3xf32, #tpu.memory_space<vmem>>, vector<1x3xf32>
    %57 = vector.broadcast %56 : vector<1x3xf32> to vector<288x3xf32>
    %58 = arith.addf %55, %57 : vector<288x3xf32>
    %59 = math.tanh %58 : vector<288x3xf32>
    %c0_51 = arith.constant 0 : index
    %c0_52 = arith.constant 0 : index
    %c0_53 = arith.constant 0 : index
    %60 = vector.load %arg5[%c0_51, %c0_52, %c0_53] : memref<1x288x1xf32, #tpu.memory_space<vmem>>, vector<1x288x1xf32>
    %61 = vector.shape_cast %60 : vector<1x288x1xf32> to vector<288x1xf32>
    %62 = vector.broadcast %61 : vector<288x1xf32> to vector<288x3xf32>
    %63 = arith.mulf %59, %62 : vector<288x3xf32>
    %cst_54 = arith.constant 0.000000e+00 : f32
    %64 = vector.broadcast %cst_54 : f32 to vector<19x3xf32>
    %c0_55 = arith.constant 0 : index
    %c0_56 = arith.constant 0 : index
    %c0_57 = arith.constant 0 : index
    %65 = vector.load %arg6[%c0_55, %c0_56, %c0_57] : memref<1x342x3xf32, #tpu.memory_space<vmem>>, vector<1x19x3xf32>
    %66 = vector.shape_cast %65 : vector<1x19x3xf32> to vector<19x3xf32>
    %67 = vector.shape_cast %64 : vector<19x3xf32> to vector<1x19x3xf32>
    tpu.vector_store %arg6[%c0_55, %c0_56, %c0_57], %67 {strides = array<i32>} : memref<1x342x3xf32, #tpu.memory_space<vmem>>, vector<1x19x3xf32>,
    %c0_58 = arith.constant 0 : index
    %c19_59 = arith.constant 19 : index
    %c0_60 = arith.constant 0 : index
    %68 = vector.load %arg6[%c0_58, %c19_59, %c0_60] : memref<1x342x3xf32, #tpu.memory_space<vmem>>, vector<1x288x3xf32>
    %69 = vector.shape_cast %68 : vector<1x288x3xf32> to vector<288x3xf32>
    %70 = vector.shape_cast %63 : vector<288x3xf32> to vector<1x288x3xf32>
    tpu.vector_store %arg6[%c0_58, %c19_59, %c0_60], %70 {strides = array<i32>} : memref<1x342x3xf32, #tpu.memory_space<vmem>>, vector<1x288x3xf32>,
    %cst_61 = arith.constant 0.000000e+00 : f32
    %71 = vector.broadcast %cst_61 : f32 to vector<35x3xf32>
    %c0_62 = arith.constant 0 : index
    %c307 = arith.constant 307 : index
    %c0_63 = arith.constant 0 : index
    %72 = vector.load %arg6[%c0_62, %c307, %c0_63] : memref<1x342x3xf32, #tpu.memory_space<vmem>>, vector<1x35x3xf32>
    %73 = vector.shape_cast %72 : vector<1x35x3xf32> to vector<35x3xf32>
    %74 = vector.shape_cast %71 : vector<35x3xf32> to vector<1x35x3xf32>
    tpu.vector_store %arg6[%c0_62, %c307, %c0_63], %74 {strides = array<i32>} : memref<1x342x3xf32, #tpu.memory_space<vmem>>, vector<1x35x3xf32>,
    return
  }
  func.func @transform_0(%arg0: i32) -> (i32, i32, i32) {
    %c0_i32 = arith.constant 0 : i32
    %c0_i32_0 = arith.constant 0 : i32
    %c0_i32_1 = arith.constant 0 : i32
    return %arg0, %c0_i32, %c0_i32_0 : i32, i32, i32
  }
  func.func @transform_1(%arg0: i32) -> (i32, i32, i32) {
    %c0_i32 = arith.constant 0 : i32
    %c0_i32_0 = arith.constant 0 : i32
    %c0_i32_1 = arith.constant 0 : i32
    %c0_i32_2 = arith.constant 0 : i32
    return %c0_i32, %c0_i32_0, %c0_i32_1 : i32, i32, i32
  }
  func.func @transform_2(%arg0: i32) -> (i32, i32) {
    %c0_i32 = arith.constant 0 : i32
    %c0_i32_0 = arith.constant 0 : i32
    %c0_i32_1 = arith.constant 0 : i32
    return %c0_i32, %c0_i32_0 : i32, i32
  }
  func.func @transform_3(%arg0: i32) -> (i32, i32) {
    %c0_i32 = arith.constant 0 : i32
    %c0_i32_0 = arith.constant 0 : i32
    %c0_i32_1 = arith.constant 0 : i32
    return %c0_i32, %c0_i32_0 : i32, i32
  }
  func.func @transform_4(%arg0: i32) -> (i32, i32, i32) {
    %c0_i32 = arith.constant 0 : i32
    %c0_i32_0 = arith.constant 0 : i32
    %c0_i32_1 = arith.constant 0 : i32
    %c0_i32_2 = arith.constant 0 : i32
    return %c0_i32, %c0_i32_0, %c0_i32_1 : i32, i32, i32
  }
  func.func @transform_5(%arg0: i32) -> (i32, i32, i32) {
    %c0_i32 = arith.constant 0 : i32
    %c0_i32_0 = arith.constant 0 : i32
    %c0_i32_1 = arith.constant 0 : i32
    return %arg0, %c0_i32, %c0_i32_0 : i32, i32, i32
  }
}

</mosaic_0001>

<bundles_post_ra>
// kernel: generator_forward.25
= control target key start
LH: loop header
LB: loop body
LE: loop exit
PB: predicated region body
PF: predicated region fallthrough
CT: control target
= control target key end

     0   :  { %vm135_vm0 = vcmask 1043456   ;;  %vm110_vm1 = vcmask 588800   ;;  %vm362_vm2 = vcmask 125952   ;;  %s680_s1 = inlined_call_operand.vmem [shape: bf16[72,16], index: 1, kind: input, shape index: {}]   ;;  %s681_s0 = inlined_call_operand.vmem [shape: bf16[128,72], index: 0, kind: input, shape index: {}]   ;;  %s682_s2 = inlined_call_operand.vmem [shape: f32[1,16], index: 2, kind: input, shape index: {}]   ;;  %s683_s3 = inlined_call_operand.vmem [shape: f32[1,16], index: 3, kind: input, shape index: {}]   ;;  %s684_s4 = inlined_call_operand.vmem [shape: bf16[128,16], index: 4, kind: output, shape index: {}]  }
   0x1   :  { %v489_v0 = vld [vmem:[%s680_s1 + $0x20] ss:$0 sps:$4 sm:$0xff]   ;;  %v490_v1 = vld [vmem:[%s680_s1 + $0x18] sm:$0xff]   ;;  %v491_v3 = vld [vmem:[%s680_s1 + $0x10] sm:$0xff]  }
   0x2   :  { %487 = vmatprep.subr.msk.bf16.mxu0 %vm135_vm0, %v489_v0  ;;  %488 = vmatprep.subr.msk.bf16.mxu1 %vm135_vm0, %v489_v0  ;;  %v137_v2 = vsel %vm135_vm0, %v489_v0, 0  ;;  %v494_v4 = vld [vmem:[%s681_s0] sm:$0xff]   ;;  %v492_v6 = vld [vmem:[%s680_s1 + $0x8] sm:$0xff]   ;;  %v498_v10 = vld [vmem:[%s681_s0 + $0x10] sm:$0xff]  }
   0x3   :  { %452 = vmatpush3.bf16.msra.mxu0 %v137_v2  ;;  %482 = vmatpush3.bf16.msra.mxu1 %v137_v2  ;;  %v495_v5 = vld [vmem:[%s681_s0 + $0x20] sm:$0xff]   ;;  %v496_v8 = vld [vmem:[%s681_s0 + $0x8] sm:$0xff]   ;;  %v499_v11 = vld [vmem:[%s681_s0 + $0x30] sm:$0xff]  }
   0x4   :  { %453 = vmatprep.subr.bf16.mxu0 %v490_v1  ;;  %478 = vmatprep.subr.bf16.mxu1 %v490_v1  ;;  %v493_v7 = vld [vmem:[%s680_s1] sm:$0xff]   ;;  %v497_v9 = vld [vmem:[%s681_s0 + $0x28] sm:$0xff]   ;;  %v500_v12 = vld [vmem:[%s681_s0 + $0x18] sm:$0xff]  }
   0x5   :  { %461 = vmatprep.mubr.msk.bf16.mxu0 %vm110_vm1, %v494_v4  ;;  %469 = vmatprep.mubr.msk.bf16.mxu1 %vm110_vm1, %v495_v5  ;;  %v501_v13 = vld [vmem:[%s681_s0 + $0x38] sm:$0xff]   ;;  %v577_v14 = vld [vmem:[%s682_s2] ss:$0 sm:$0xff] }
   0x6   :  { %v582_v16 = vld [vmem:[%s683_s3] ss:$0 sm:$0xff] }
   0x7   :  { %454 = vmatpush3.bf16.msra.mxu0 %v490_v1  ;;  %483 = vmatpush3.bf16.msra.mxu1 %v490_v1 }
   0x8   :  { %455 = vmatprep.subr.bf16.mxu0 %v491_v3  ;;  %479 = vmatprep.subr.bf16.mxu1 %v491_v3 }
   0xb   :  { %456 = vmatpush3.bf16.msra.mxu0 %v491_v3  ;;  %484 = vmatpush3.bf16.msra.mxu1 %v491_v3 }
   0xc   :  { %457 = vmatprep.subr.bf16.mxu0 %v492_v6  ;;  %480 = vmatprep.subr.bf16.mxu1 %v492_v6 }
   0xf   :  { %458 = vmatpush3.bf16.msra.mxu0 %v492_v6  ;;  %485 = vmatpush3.bf16.msra.mxu1 %v492_v6 }
  0x10   :  { %459 = vmatprep.subr.bf16.mxu0 %v493_v7  ;;  %481 = vmatprep.subr.bf16.mxu1 %v493_v7 }
  0x13   :  { %460 = vmatpush3.bf16.msra.mxu0 %v493_v7  ;;  %486 = vmatpush3.bf16.msra.mxu1 %v493_v7 }
  0x16   :  { %462 = vmatmul.mubr.msk.bf16.vlgmr.msra.gmra.mxu0 %vm110_vm1, %v496_v8  ;;  %470 = vmatmul.mubr.msk.bf16.vlgmr.msra.gmra.mxu1 %vm110_vm1, %v497_v9 }
  0x17   :  { %465 = vmatprep.mubr.msk.bf16.mxu0 %vm110_vm1, %v498_v10  ;;  %473 = vmatprep.mubr.msk.bf16.mxu1 %vm110_vm1, %v499_v11 }
  0x1e   :  { %466 = vmatmul.mubr.msk.bf16.gmra.mxu0 %vm110_vm1, %v500_v12  ;;  %474 = vmatmul.mubr.msk.bf16.gmra.mxu1 %vm110_vm1, %v501_v13 }
  0xd6   :  { %v463_v15 = vpop.f32.mrf.mxu0  ;;  %v471_v17 = vpop.f32.mrf.mxu1 }
  0xd7   :  { %v245_v18 = vmul.f32 %v463_v15, %v577_v14  ;;  %v253_v19 = vmul.f32 %v471_v17, %v577_v14 }
  0xd8   :  { %v173_v20 = vpop.f32.mrf.mxu0  ;;  %v205_v21 = vpop.f32.mrf.mxu1 }
  0xd9   :  { %v268_v22 = vadd.f32 %v582_v16, %v245_v18  ;;  %v276_v23 = vadd.f32 %v582_v16, %v253_v19  ;;  %v243_v24 = vmul.f32 %v577_v14, %v173_v20  ;;  %v251_v25 = vmul.f32 %v577_v14, %v205_v21 }
  0xda   :  { %v464_v26 = vpop.f32.mrf.mxu0  ;;  %v472_v27 = vpop.f32.mrf.mxu1 }
  0xdb   :  { %v284_v28 = vmax.f32 %v268_v22, 0.0  ;;  %v292_v29 = vmax.f32 %v276_v23, 0.0  ;;  %v266_v30 = vadd.f32 %v582_v16, %v243_v24  ;;  %v274_v31 = vadd.f32 %v582_v16, %v251_v25 }
  0xdc   :  { %v246_v32 = vmul.f32 %v464_v26, %v577_v14  ;;  %v254_v33 = vmul.f32 %v472_v27, %v577_v14  ;;  %v176_v34 = vpop.f32.mrf.mxu0  ;;  %v208_v35 = vpop.f32.mrf.mxu1 }
  0xdd   :  { %v424_v36 = vpack.c.bf16 %v284_v28, %v284_v28  ;;  %v432_v37 = vpack.c.bf16 %v292_v29, %v292_v29  ;;  %v282_v38 = vmax.f32 %v266_v30, 0.0  ;;  %v290_v39 = vmax.f32 %v274_v31, 0.0 }
  0xde   :  { %v269_v40 = vadd.f32 %v582_v16, %v246_v32  ;;  %v277_v41 = vadd.f32 %v582_v16, %v254_v33  ;;  %v244_v42 = vmul.f32 %v577_v14, %v176_v34  ;;  %v252_v43 = vmul.f32 %v577_v14, %v208_v35  ;;  %v467_v44 = vpop.f32.mrf.mxu0  ;;  %v475_v45 = vpop.f32.mrf.mxu1 }
  0xdf   :  { %365 = vst.msk [vmem:[%s684_s4 + $0x8] sm:$0xf] %vm362_vm2, %v424_v36  ;;  %373 = vst.msk [vmem:[%s684_s4 + $0x28] sm:$0xf] %vm362_vm2, %v432_v37  ;;  %v422_v46 = vpack.c.bf16 %v282_v38, %v282_v38  ;;  %v430_v47 = vpack.c.bf16 %v290_v39, %v290_v39  ;;  %v249_v48 = vmul.f32 %v467_v44, %v577_v14 }
  0xe0   :  { %v257_v49 = vmul.f32 %v475_v45, %v577_v14  ;;  %v285_v50 = vmax.f32 %v269_v40, 0.0  ;;  %v293_v51 = vmax.f32 %v277_v41, 0.0  ;;  %v267_v52 = vadd.f32 %v582_v16, %v244_v42  ;;  %v189_v54 = vpop.f32.mrf.mxu0  ;;  %v221_v55 = vpop.f32.mrf.mxu1 }
  0xe1   :  { %v275_v53 = vadd.f32 %v582_v16, %v252_v43  ;;  %363 = vst.msk [vmem:[%s684_s4] sm:$0xf] %vm362_vm2, %v422_v46  ;;  %371 = vst.msk [vmem:[%s684_s4 + $0x20] sm:$0xf] %vm362_vm2, %v430_v47  ;;  %v272_v56 = vadd.f32 %v582_v16, %v249_v48  ;;  %v247_v58 = vmul.f32 %v577_v14, %v189_v54 }
  0xe2   :  { %v280_v57 = vadd.f32 %v582_v16, %v257_v49  ;;  %v255_v59 = vmul.f32 %v577_v14, %v221_v55  ;;  %v425_v60 = vpack.c.bf16 %v285_v50, %v285_v50  ;;  %v433_v61 = vpack.c.bf16 %v293_v51, %v293_v51  ;;  %v468_v0 = vpop.f32.mrf.mxu0  ;;  %v476_v1 = vpop.f32.mrf.mxu1 }
  0xe3   :  { %v283_v62 = vmax.f32 %v267_v52, 0.0  ;;  %v291_v63 = vmax.f32 %v275_v53, 0.0  ;;  %v288_v2 = vmax.f32 %v272_v56, 0.0  ;;  %v270_v4 = vadd.f32 %v582_v16, %v247_v58 }
  0xe4   :  { %v296_v3 = vmax.f32 %v280_v57, 0.0  ;;  %v278_v5 = vadd.f32 %v582_v16, %v255_v59  ;;  %366 = vst.msk [vmem:[%s684_s4 + $0xc] sm:$0xf] %vm362_vm2, %v425_v60  ;;  %374 = vst.msk [vmem:[%s684_s4 + $0x2c] sm:$0xf] %vm362_vm2, %v433_v61  ;;  %v250_v8 = vmul.f32 %v468_v0, %v577_v14  ;;  %v258_v9 = vmul.f32 %v476_v1, %v577_v14  ;;  %v192_v10 = vpop.f32.mrf.mxu0  ;;  %v224_v11 = vpop.f32.mrf.mxu1 }
  0xe5   :  { %v423_v6 = vpack.c.bf16 %v283_v62, %v283_v62  ;;  %v431_v7 = vpack.c.bf16 %v291_v63, %v291_v63  ;;  %v428_v12 = vpack.c.bf16 %v288_v2, %v288_v2  ;;  %v286_v15 = vmax.f32 %v270_v4, 0.0 }
  0xe6   :  { %v436_v13 = vpack.c.bf16 %v296_v3, %v296_v3  ;;  %v294_v17 = vmax.f32 %v278_v5, 0.0  ;;  %v273_v18 = vadd.f32 %v582_v16, %v250_v8  ;;  %v281_v19 = vadd.f32 %v582_v16, %v258_v9 }
  0xe7   :  { %364 = vst.msk [vmem:[%s684_s4 + $0x4] sm:$0xf] %vm362_vm2, %v423_v6  ;;  %372 = vst.msk [vmem:[%s684_s4 + $0x24] sm:$0xf] %vm362_vm2, %v431_v7  ;;  %v248_v20 = vmul.f32 %v577_v14, %v192_v10  ;;  %v256_v21 = vmul.f32 %v577_v14, %v224_v11  ;;  %v426_v22 = vpack.c.bf16 %v286_v15, %v286_v15 }
  0xe8   :  { %369 = vst.msk [vmem:[%s684_s4 + $0x18] sm:$0xf] %vm362_vm2, %v428_v12  ;;  %377 = vst.msk [vmem:[%s684_s4 + $0x38] sm:$0xf] %vm362_vm2, %v436_v13  ;;  %v434_v23 = vpack.c.bf16 %v294_v17, %v294_v17  ;;  %v289_v24 = vmax.f32 %v273_v18, 0.0  ;;  %v297_v25 = vmax.f32 %v281_v19, 0.0 }
  0xe9   :  { %v271_v26 = vadd.f32 %v582_v16, %v248_v20  ;;  %v279_v27 = vadd.f32 %v582_v16, %v256_v21  ;;  %367 = vst.msk [vmem:[%s684_s4 + $0x10] sm:$0xf] %vm362_vm2, %v426_v22 }
  0xea   :  { %375 = vst.msk [vmem:[%s684_s4 + $0x30] sm:$0xf] %vm362_vm2, %v434_v23  ;;  %v429_v14 = vpack.c.bf16 %v289_v24, %v289_v24  ;;  %v437_v28 = vpack.c.bf16 %v297_v25, %v297_v25 }
  0xeb   :  { %v287_v29 = vmax.f32 %v271_v26, 0.0  ;;  %v295_v30 = vmax.f32 %v279_v27, 0.0 }
  0xec   :  { %370 = vst.msk [vmem:[%s684_s4 + $0x1c] sm:$0xf] %vm362_vm2, %v429_v14  ;;  %378 = vst.msk [vmem:[%s684_s4 + $0x3c] sm:$0xf] %vm362_vm2, %v437_v28 }
  0xed   :  { %v427_v16 = vpack.c.bf16 %v287_v29, %v287_v29  ;;  %v435_v31 = vpack.c.bf16 %v295_v30, %v295_v30 }
  0xef   :  { %368 = vst.msk [vmem:[%s684_s4 + $0x14] sm:$0xf] %vm362_vm2, %v427_v16  ;;  %376 = vst.msk [vmem:[%s684_s4 + $0x34] sm:$0xf] %vm362_vm2, %v435_v31 }

// kernel: generator_forward.24
= control target key start
LH: loop header
LB: loop body
LE: loop exit
PB: predicated region body
PF: predicated region fallthrough
CT: control target
= control target key end

     0   :  { %s5625_s18 = smov 0   ;;  %s7498_s0 = inlined_call_operand.vmem [shape: bf16[2,342,4], index: 0, kind: input, shape index: {}]   ;;  %s7499_s1 = inlined_call_operand.vmem [shape: bf16[9,4,8], index: 1, kind: input, shape index: {}]   ;;  %s7500_s2 = inlined_call_operand.vmem [shape: f32[1,8], index: 2, kind: input, shape index: {}]   ;;  %s7501_s3 = inlined_call_operand.vmem [shape: f32[1,8], index: 3, kind: input, shape index: {}]   ;;  %s7502_s4 = inlined_call_operand.vmem [shape: f32[1,288,1], index: 4, kind: input, shape index: {}]   ;;  %s7503_s5 = inlined_call_operand.vmem [shape: bf16[2,342,8], index: 5, kind: output, shape index: {}]  }
   0x1 LB: > { %s4670_s19 = sadd.s32 4294967295, %s5592_s18   ;;  %p4674_p0 = scmp.ge.s32.totalorder %s5592_s18, 1  ;;  %s5592_s18 = sphi %s5625_s18, %s15_s18  }
   0x2   : > { %p187_p1 = scmp.lt.s32.totalorder %s5592_s18, 3 }
   0x4   : > { %p188_p2 = pnand %p4674_p0, %p187_p1 }
   0x6   : > { %191 = sbr.rel (%p188_p2) target bundleno = 624 (0x270), region = 40 }
   0xb   : > { %v4677_v0 = vld [vmem:[%s7499_s1 + $0x2] sm:$0x3]  ;;  %vm563_vm0 = vcmask 1041408   ;;  %p215_p3 = scmp.lt.s32.totalorder %s4670_s19, 1  ;;  %v4733_v2 = vld [vmem:[%s7499_s1 + $0x4] sm:$0x3] }
   0xc   : > { %5500 = vmatprep.subr.msk.bf16.mxu0 %vm563_vm0, %v4677_v0  ;;  %5501 = vmatprep.subr.msk.bf16.mxu1 %vm563_vm0, %v4677_v0  ;;  %v565_v1 = vsel %vm563_vm0, %v4677_v0, 0  ;;  %v262_v3 = vld [vmem:[%s7499_s1] sm:$0x3]  ;;  %vm359_vm1 = vsmask.f32 7424  ;;  %vm508_vm2 = vcmask 31744  }
   0xd   : > { %5157 = vmatpush3.bf16.msra.mxu0 %v565_v1  ;;  %5499 = vmatpush3.bf16.msra.mxu1 %v565_v1  ;;  %s7561_s19 = smov (!%p215_p3, %s4670_s19), 1  ;;  %v1059_v8 = vsel %vm563_vm0, %v4733_v2, 0  ;;  %v781_v16 = vsel %vm563_vm0, %v262_v3, 0  ;;  %v5700_v33 = vld [vmem:[%s7499_s1 + $0x8] sm:$0x3]  ;;  %vm966_vm3 = vcmask 1046528  }
   0xe   : > { %5503 = vmatprep.subr.msk.bf16.mxu0 %vm563_vm0, %v4733_v2  ;;  %5502 = vmatprep.subr.msk.bf16.mxu1 %vm563_vm0, %v262_v3  ;;  %s5510_s26 = smul.u32 172, %s7561_s19  ;;  %v5720_v45 = vld [vmem:[%s7499_s1 + $0x6] sm:$0x3]  ;;  %vm2166_vm4 = vcmask 1045504   ;;  %vm1719_vm5 = vsmask.f32 6400 }
   0xf   : > { %vm3366_vm6 = vcmask 1044480   ;;  %vm4048_vm7 = vcmask 60416   ;;  %vm4613_vm8 = vcmask 59392   ;;  %vm2919_vm9 = vsmask.f32 5376 }
  0x10   : > { %s5655_s29 = scalar_lea.vmem %s7498_s0, %s5510_s26  ;;  %s6193_s21 = scalar_lea.vmem %s7503_s5, %s5510_s26  ;;  %vm4051_vm10 = vcmask 58368   ;;  %vm4052_vm11 = vsmask.f32 1280  ;;  %vm4563_vm13 = vcmask 60417   ;;  %vm4564_vm14 = vsmask.f32 7942 }
  0x11   : > { %v226_v4 = vld [vmem:[%s5655_s29] sm:$0xf]  ;;  %v5659_v5 = vld [vmem:[%s5655_s29 + $0x4] sm:$0xf]  ;;  %v5665_v7 = vld [vmem:[%s5655_s29 + $0x8] sm:$0xff]  }
  0x12   : > { %v5662_v6 = vcombine.low %v226_v4, %v5659_v5  ;;  %v368_v11 = vshll.u32 %v5665_v7, 16  ;;  %v372_v12 = vshrl.u32 %v5665_v7, 16  ;;  %v5673_v13 = vld [vmem:[%s5655_s29 + $0x50] sm:$0xff]   ;;  %v5676_v14 = vld [vmem:[%s5655_s29 + $0x58] sm:$0xff]   ;;  %v5688_v24 = vld [vmem:[%s5655_s29 + $0x60] sm:$0xff]  }
  0x13   : > { %v5679_v15 = vld [vmem:[%s5655_s29 + $0x10] sm:$0xff]   ;;  %v440_v19 = vshll.u32 %v5673_v13, 16  ;;  %v444_v20 = vshrl.u32 %v5673_v13, 16  ;;  %v448_v21 = vshll.u32 %v5676_v14, 16  ;;  %v452_v22 = vshrl.u32 %v5676_v14, 16  ;;  %v5693_v28 = vld [vmem:[%s5655_s29 + $0x18] sm:$0xff]   ;;  %vm6852_vm12 = vmand %vm4051_vm10, %vm4052_vm11 }
  0x14   : > { %v361_v9 = vshrl.u32 %v5662_v6, 16  ;;  %v363_v10 = vshll.u32 %v5662_v6, 16  ;;  %v370_v18 = vrot.slane %v368_v11, 1  ;;  %v376_v23 = vshll.u32 %v5679_v15, 16  ;;  %v5706_v37 = vld [vmem:[%s5655_s29 + $0x68] sm:$0xff]   ;;  %v5710_v39 = vld [vmem:[%s5655_s29 + $0x20] sm:$0xff]  }
  0x15   : > { %v5690_v27 = vrot.slane %v440_v19, 1  ;;  %v450_v29 = vrot.slane %v448_v21, 1  ;;  %v456_v31 = vshll.u32 %v5688_v24, 16  ;;  %v380_v32 = vshrl.u32 %v5679_v15, 16  ;;  %v5715_v44 = vld [vmem:[%s5655_s29 + $0x70] sm:$0xff]   ;;  %v5727_v50 = vld [vmem:[%s5655_s29 + $0x28] sm:$0xff]  }
  0x16   : > { %v365_v17 = vrot.slane %v363_v10, 1  ;;  %v374_v26 = vor.u32 %v372_v12, %v370_v18  ;;  %v378_v30 = vrot.slane %v376_v23, 1  ;;  %v384_v36 = vshll.u32 %v5693_v28, 16  ;;  %v5742_v62 = vld [vmem:[%s5655_s29 + $0x78] sm:$0xff]   ;;  %v5752_v10 = vld [vmem:[%s5655_s29 + $0x30] sm:$0xff]   ;;  %v5755_v11 = vld [vmem:[%s5655_s29 + $0x80] sm:$0xff]  }
  0x17   : > { %v446_v35 = vor.u32 %v444_v20, %v5690_v27  ;;  %v460_v38 = vshrl.u32 %v5688_v24, 16  ;;  %v454_v40 = vor.u32 %v452_v22, %v450_v29  ;;  %v458_v42 = vrot.slane %v456_v31, 1  ;;  %v5764_v23 = vld [vmem:[%s5655_s29 + $0x38] sm:$0xff]  }
  0x18   : > { %v366_v25 = vor.u32 %v365_v17, %v361_v9  ;;  %v379_v41 = vsel %vm359_vm1, %v374_v26, %v378_v30  ;;  %v382_v43 = vor.u32 %v380_v32, %v378_v30  ;;  %v386_v47 = vrot.slane %v384_v36, 1  ;;  %v5769_v26 = vld [vmem:[%s5655_s29 + $0x88] sm:$0xff]  }
  0x19   : > { %v451_v46 = vsel %vm359_vm1, %v446_v35, %v450_v29  ;;  %v464_v48 = vshll.u32 %v5706_v37, 16  ;;  %v388_v49 = vshrl.u32 %v5693_v28, 16  ;;  %v459_v51 = vsel %vm359_vm1, %v454_v40, %v458_v42  ;;  %v5781_v40 = vld [vmem:[%s5655_s29 + $0x48] sm:$0xff]  }
  0x1a   : > { %v371_v34 = vsel %vm359_vm1, %v366_v25, %v370_v18  ;;  %5178 = vmatprep.mubr.msk.bf16.mxu1 %vm508_vm2, %v451_v46  ;;  %v462_v52 = vor.u32 %v460_v38, %v458_v42  ;;  %v392_v53 = vshll.u32 %v5710_v39, 16  ;;  %v468_v54 = vshrl.u32 %v5706_v37, 16  ;;  %v5778_v38 = vld [vmem:[%s5655_s29 + $0x40] sm:$0xff]  }
  0x1b   : > { %5158 = vmatprep.mubr.msk.bf16.mxu0 %vm508_vm2, %v371_v34  ;;  %5179 = vmatmul.mubr.msk.bf16.vlgmr.msra.gmra.mxu1 %vm508_vm2, %v459_v51  ;;  %v387_v55 = vsel %vm359_vm1, %v382_v43, %v386_v47  ;;  %v466_v56 = vrot.slane %v464_v48, 1  ;;  %v390_v57 = vor.u32 %v388_v49, %v386_v47  ;;  %v472_v58 = vshll.u32 %v5715_v44, 16  ;;  %v5539_v43 = vld [vmem:[%s5655_s29 + $0x90] ss:$0 sps:$4 sm:$0x11]  }
  0x1c   : > { %5159 = vmatmul.mubr.msk.bf16.vlgmr.msra.gmra.mxu0 %vm508_vm2, %v379_v41  ;;  %5195 = vmatpush3.bf16.msra.mxu1 %v781_v16  ;;  %v394_v59 = vrot.slane %v392_v53, 1  ;;  %v396_v60 = vshrl.u32 %v5710_v39, 16  ;;  %v400_v61 = vshll.u32 %v5727_v50, 16  ;;  %v476_v2 = vshrl.u32 %v5715_v44, 16 }
  0x1d   : > { %5233 = vmatpush3.bf16.msra.mxu0 %v1059_v8  ;;  %5162 = vmatprep.mubr.msk.bf16.mxu0 %vm508_vm2, %v387_v55  ;;  %v467_v63 = vsel %vm359_vm1, %v462_v52, %v466_v56  ;;  %v470_v0 = vor.u32 %v468_v54, %v466_v56  ;;  %v474_v1 = vrot.slane %v472_v58, 1  ;;  %v480_v9 = vshll.u32 %v5742_v62, 16 }
  0x1e   : > { %5505 = vmatprep.subr.msk.bf16.mxu0 %vm563_vm0, %v5700_v33  ;;  %5504 = vmatprep.subr.msk.bf16.mxu1 %vm563_vm0, %v5720_v45  ;;  %v395_v3 = vsel %vm359_vm1, %v390_v57, %v394_v59  ;;  %v398_v4 = vor.u32 %v396_v60, %v394_v59  ;;  %v402_v8 = vrot.slane %v400_v61, 1  ;;  %v404_v17 = vshrl.u32 %v5727_v50, 16 }
  0x1f   : > { %5182 = vmatprep.mubr.msk.bf16.mxu1 %vm508_vm2, %v467_v63  ;;  %v475_v12 = vsel %vm359_vm1, %v470_v0, %v474_v1  ;;  %v478_v16 = vor.u32 %v476_v2, %v474_v1  ;;  %v484_v18 = vshrl.u32 %v5742_v62, 16  ;;  %v482_v20 = vrot.slane %v480_v9, 1  ;;  %v960_v63 = vld [vmem:[%s5655_s29] sm:$0xe] }
  0x20   : > { %v403_v19 = vsel %vm359_vm1, %v398_v4, %v402_v8  ;;  %v408_v21 = vshll.u32 %v5752_v10, 16  ;;  %v488_v22 = vshll.u32 %v5755_v11, 16  ;;  %v412_v25 = vshrl.u32 %v5752_v10, 16 }
  0x21   : > { %v483_v29 = vsel %vm359_vm1, %v478_v16, %v482_v20  ;;  %v406_v30 = vor.u32 %v404_v17, %v402_v8  ;;  %v416_v34 = vshll.u32 %v5764_v23, 16  ;;  %v492_v35 = vshrl.u32 %v5755_v11, 16 }
  0x22   : > { %v410_v31 = vrot.slane %v408_v21, 1  ;;  %v490_v32 = vrot.slane %v488_v22, 1  ;;  %v496_v36 = vshll.u32 %v5769_v26, 16  ;;  %v486_v41 = vor.u32 %v484_v18, %v482_v20 }
  0x23   : > { %5183 = vmatmul.mubr.msk.bf16.gmra.mxu1 %vm508_vm2, %v475_v12  ;;  %v418_v46 = vrot.slane %v416_v34, 1  ;;  %v424_v49 = vshll.u32 %v5778_v38, 16  ;;  %v420_v52 = vshrl.u32 %v5764_v23, 16  ;;  %v428_v54 = vshrl.u32 %v5778_v38, 16 }
  0x24   : > { %5163 = vmatmul.mubr.msk.bf16.gmra.mxu0 %vm508_vm2, %v395_v3  ;;  %5186 = vmatprep.mubr.msk.bf16.mxu1 %vm508_vm2, %v483_v29  ;;  %v414_v42 = vor.u32 %v412_v25, %v410_v31  ;;  %v494_v47 = vor.u32 %v492_v35, %v490_v32  ;;  %v498_v48 = vrot.slane %v496_v36, 1  ;;  %v411_v51 = vsel %vm359_vm1, %v406_v30, %v410_v31 }
  0x25   : > { %5166 = vmatprep.mubr.msk.bf16.mxu0 %vm508_vm2, %v403_v19  ;;  %v432_v55 = vshll.u32 %v5781_v40, 16  ;;  %v491_v56 = vsel %vm359_vm1, %v486_v41, %v490_v32  ;;  %v500_v57 = vshrl.u32 %v5769_v26, 16  ;;  %v504_v58 = vshll.u32 %v5539_v43, 16 }
  0x26   : > { %v419_v53 = vsel %vm359_vm1, %v414_v42, %v418_v46  ;;  %v499_v59 = vsel %vm359_vm1, %v494_v47, %v498_v48  ;;  %v426_v60 = vrot.slane %v424_v49, 1  ;;  %v422_v61 = vor.u32 %v420_v52, %v418_v46  ;;  %v5880_v46 = vld [vmem:[%s5655_s29 + $0x10] sm:$0xff]   ;;  %v5885_v49 = vld [vmem:[%s5655_s29 + $0x18] sm:$0xff]  }
  0x27   : > { %v434_v1 = vrot.slane %v432_v55, 1  ;;  %v502_v2 = vor.u32 %v500_v57, %v498_v48  ;;  %v506_v3 = vrot.slane %v504_v58, 1  ;;  %v436_v8 = vshrl.u32 %v5781_v40, 16  ;;  %v5898_v55 = vld [vmem:[%s5655_s29 + $0x30] sm:$0xff]  }
  0x28   : > { %v430_v0 = vor.u32 %v428_v54, %v426_v60  ;;  %v427_v4 = vsel %vm359_vm1, %v422_v61, %v426_v60  ;;  %v4734_v12 = vcombine.low %v960_v63, %v5659_v5  ;;  %v1000_v17 = vrot.slane %v5769_v26, 1  ;;  %v5913_v61 = vld [vmem:[%s5655_s29 + $0x38] sm:$0xff]  }
  0x29   : > { %v507_v16 = vsel %vm359_vm1, %v502_v2, %v506_v3  ;;  %v438_v18 = vor.u32 %v436_v8, %v434_v1  ;;  %v1002_v19 = vrot.slane %v5539_v43, 1  ;;  %v968_v21 = vrot.slane %v5665_v7, 1  ;;  %v2160_v43 = vld [vmem:[%s5655_s29 + $0x8] sm:$0xc]  ;;  %v5923_v2 = vld [vmem:[%s5655_s29 + $0x40] sm:$0xff]  }
  0x2a   : > { %v435_v9 = vsel %vm359_vm1, %v430_v0, %v434_v1  ;;  %v967_v20 = vrot.slane %v4734_v12, 1  ;;  %v1498_v29 = vsel %vm563_vm0, %v5720_v45, 0  ;;  %v970_v30 = vrot.slane %v5679_v15, 1  ;;  %v5931_v8 = vld [vmem:[%s5655_s29 + $0x48] sm:$0xff]  }
  0x2b   : > { %5187 = vmatmul.mubr.msk.bf16.gmra.mxu1 %vm508_vm2, %v491_v56  ;;  %v5814_v5 = vsel %vm966_vm3, %v1000_v17, %v1002_v19  ;;  %v443_v22 = vsel %vm359_vm1, %v438_v18, %v5690_v27  ;;  %v972_v27 = vrot.slane %v5693_v28, 1  ;;  %v1945_v31 = vsel %vm563_vm0, %v5700_v33, 0 }
  0x2c   : > { %5167 = vmatmul.mubr.msk.bf16.gmra.mxu0 %vm508_vm2, %v411_v51  ;;  %5190 = vmatprep.mubr.msk.bf16.mxu1 %vm508_vm2, %v499_v59  ;;  %v969_v25 = vsel %vm966_vm3, %v967_v20, %v968_v21  ;;  %v971_v45 = vsel %vm966_vm3, %v968_v21, %v970_v30  ;;  %v976_v34 = vrot.slane %v5727_v50, 1  ;;  %v980_v36 = vrot.slane %v5764_v23, 1  ;;  %v5889_v51 = vld [vmem:[%s5655_s29 + $0x20] sm:$0xff]  }
  0x2d   : > { %5170 = vmatprep.mubr.msk.bf16.mxu0 %vm508_vm2, %v419_v53  ;;  %v973_v32 = vsel %vm966_vm3, %v970_v30, %v972_v27  ;;  %v982_v42 = vrot.slane %v5778_v38, 1  ;;  %v2168_v53 = vrot.slane %v5880_v46, 2  ;;  %v2170_v54 = vrot.slane %v5885_v49, 2  ;;  %v5961_v30 = vld [vmem:[%s5655_s29 + $0x58] sm:$0xff]  }
  0x2e   : > { %v2172_v57 = vrot.slane %v5889_v51, 2  ;;  %v986_v58 = vrot.slane %v5673_v13, 1  ;;  %v988_v59 = vrot.slane %v5676_v14, 1  ;;  %v2176_v1 = vrot.slane %v5898_v55, 2 }
  0x2f   : > { %v983_v48 = vsel %vm966_vm3, %v980_v36, %v982_v42  ;;  %v5908_v60 = vsel %vm2166_vm4, %v2168_v53, %v2170_v54  ;;  %v2182_v18 = vrot.slane %v5931_v8, 2  ;;  %v990_v20 = vrot.slane %v5688_v24, 1 }
  0x30   : > { %v5916_v63 = vsel %vm2166_vm4, %v2170_v54, %v2172_v57  ;;  %vm4165_vm15 = vsmask.f32 5392 }
  0x31   : > { %vm7087_vm1 = vmor %vm4052_vm11, %vm4165_vm15 }
  0x33   : > { %5191 = vmatmul.mubr.msk.bf16.gmra.mxu1 %vm508_vm2, %v507_v16  ;;  %v2180_v16 = vrot.slane %v5923_v2, 2 }
  0x34   : > { %5171 = vmatmul.mubr.msk.bf16.gmra.mxu0 %vm508_vm2, %v427_v4  ;;  %5196 = vmatprep.mubr.msk.bf16.mxu1 %vm508_vm2, %v5662_v6  ;;  %v5827_v6 = vld [vmem:[%s7499_s1 + $0xa] sm:$0x3]  ;;  %v2178_v4 = vrot.slane %v5913_v61, 2 }
  0x35   : > { %5174 = vmatprep.mubr.msk.bf16.mxu0 %vm508_vm2, %v435_v9  ;;  %v5949_v21 = vsel %vm2166_vm4, %v2180_v16, %v2182_v18 }
  0x36   : > { %v5938_v12 = vsel %vm2166_vm4, %v2176_v1, %v2178_v4  ;;  %v5944_v19 = vsel %vm2166_vm4, %v2178_v4, %v2180_v16 }
  0x3b   : > { %5197 = vmatmul.mubr.msk.bf16.vlgmr.msra.gmra.mxu1 %vm508_vm2, %v5665_v7  ;;  %v5843_v7 = vld [vmem:[%s7499_s1 + $0xc] sm:$0x3] }
  0x3c   : > { %5175 = vmatmul.mubr.msk.bf16.gmra.mxu0 %vm508_vm2, %v443_v22  ;;  %5271 = vmatpush3.bf16.msra.mxu1 %v1498_v29  ;;  %v992_v22 = vrot.slane %v5706_v37, 1  ;;  %v991_v29 = vsel %vm966_vm3, %v988_v59, %v990_v20 }
  0x3d   : > { %5234 = vmatprep.mubr.msk.bf16.mxu0 %vm508_vm2, %v969_v25  ;;  %5200 = vmatprep.mubr.msk.bf16.mxu1 %vm508_vm2, %v5679_v15  ;;  %v974_v15 = vrot.slane %v5710_v39, 1  ;;  %v5957_v25 = vld [vmem:[%s5655_s29 + $0x50] sm:$0xff]  }
  0x3e   : > { %5506 = vmatprep.subr.msk.bf16.mxu1 %vm563_vm0, %v5827_v6 }
  0x3f   : > { %v975_v33 = vsel %vm966_vm3, %v972_v27, %v974_v15  ;;  %v977_v35 = vsel %vm966_vm3, %v974_v15, %v976_v34  ;;  %v993_v27 = vsel %vm966_vm3, %v990_v20, %v992_v22  ;;  %v996_v15 = vrot.slane %v5742_v62, 1 }
  0x43   : > { %5201 = vmatmul.mubr.msk.bf16.gmra.mxu1 %vm508_vm2, %v5693_v28  ;;  %v978_v28 = vrot.slane %v5752_v10, 1 }
  0x44   : > { %5235 = vmatmul.mubr.msk.bf16.vlgmr.msra.gmra.mxu0 %vm508_vm2, %v971_v45  ;;  %5204 = vmatprep.mubr.msk.bf16.mxu1 %vm508_vm2, %v5710_v39  ;;  %v2184_v45 = vrot.slane %v5957_v25, 2 }
  0x45   : > { %5309 = vmatpush3.bf16.msra.mxu0 %v1945_v31  ;;  %5238 = vmatprep.mubr.msk.bf16.mxu0 %vm508_vm2, %v973_v32  ;;  %v979_v39 = vsel %vm966_vm3, %v976_v34, %v978_v28  ;;  %v981_v41 = vsel %vm966_vm3, %v978_v28, %v980_v36  ;;  %v1274_v34 = vld [vmem:[%s5655_s29 + $0x8] sm:$0xe] }
  0x46   : > { %5507 = vmatprep.subr.msk.bf16.mxu0 %vm563_vm0, %v5843_v7  ;;  %v5968_v31 = vsel %vm2166_vm4, %v2182_v18, %v2184_v45  ;;  %v5986_v28 = vld [vmem:[%s5655_s29 + $0x68] sm:$0xff]  }
  0x4b   : > { %5205 = vmatmul.mubr.msk.bf16.gmra.mxu1 %vm508_vm2, %v5727_v50  ;;  %v984_v50 = vrot.slane %v5781_v40, 1 }
  0x4c   : > { %5239 = vmatmul.mubr.msk.bf16.gmra.mxu0 %vm508_vm2, %v975_v33  ;;  %5208 = vmatprep.mubr.msk.bf16.mxu1 %vm508_vm2, %v5752_v10  ;;  %v5877_v10 = vld [vmem:[%s5655_s29 + $0xc] sm:$0xf]  ;;  %v5982_v33 = vld [vmem:[%s5655_s29 + $0x60] sm:$0xff]  }
  0x4d   : > { %5242 = vmatprep.mubr.msk.bf16.mxu0 %vm508_vm2, %v977_v35  ;;  %v4812_v47 = vcombine.low %v2160_v43, %v5877_v10 }
  0x4f   : > { %v2167_v52 = vrot.slane %v4812_v47, 2  ;;  %v1729_v47 = vshrl.u32 %v5880_v46, 16 }
  0x51   : > { %v5901_v56 = vsel %vm2166_vm4, %v2167_v52, %v2168_v53  ;;  %v1407_v52 = vrot.slane %v5880_v46, 1  ;;  %v6009_v53 = vld [vmem:[%s5655_s29 + $0x70] sm:$0xff]  }
  0x52   : > { %v2192_v4 = vrot.slane %v6009_v53, 2 }
  0x53   : > { %5209 = vmatmul.mubr.msk.bf16.gmra.mxu1 %vm508_vm2, %v5764_v23  ;;  %v985_v23 = vsel %vm966_vm3, %v982_v42, %v984_v50  ;;  %v998_v42 = vrot.slane %v5755_v11, 1 }
  0x54   : > { %5243 = vmatmul.mubr.msk.bf16.gmra.mxu0 %vm508_vm2, %v979_v39  ;;  %5212 = vmatprep.mubr.msk.bf16.mxu1 %vm508_vm2, %v5778_v38  ;;  %v5893_v38 = vld [vmem:[%s5655_s29 + $0x28] sm:$0xff]   ;;  %v2188_v39 = vrot.slane %v5982_v33, 2 }
  0x55   : > { %5246 = vmatprep.mubr.msk.bf16.mxu0 %vm508_vm2, %v981_v41  ;;  %v2174_v0 = vrot.slane %v5893_v38, 2  ;;  %v4754_v41 = vcombine.low %v1274_v34, %v5877_v10  ;;  %v999_v54 = vsel %vm966_vm3, %v996_v15, %v998_v42  ;;  %v6042_v34 = vld [vmem:[%s5655_s29 + $0x88] sm:$0xff]  }
  0x57   : > { %v5926_v3 = vsel %vm2166_vm4, %v2172_v57, %v2174_v0  ;;  %v5934_v9 = vsel %vm2166_vm4, %v2174_v0, %v2176_v1  ;;  %v1721_v43 = vshrl.u32 %v4754_v41, 16  ;;  %v1724_v10 = vshll.u32 %v4754_v41, 16 }
  0x58   : > { %v1001_v57 = vsel %vm966_vm3, %v998_v42, %v1000_v17  ;;  %v1731_v0 = vrot.slane %v1729_v47, 1  ;;  %v1738_v17 = vshrl.u32 %v5885_v49, 16  ;;  %v1759_v47 = vshll.u32 %v5893_v38, 16 }
  0x5b   : > { %5213 = vmatmul.mubr.msk.bf16.gmra.mxu1 %vm508_vm2, %v5781_v40  ;;  %v987_v40 = vsel %vm966_vm3, %v984_v50, %v986_v58 }
  0x5c   : > { %5247 = vmatmul.mubr.msk.bf16.gmra.mxu0 %vm508_vm2, %v983_v48  ;;  %5216 = vmatprep.mubr.msk.bf16.mxu1 %vm508_vm2, %v5673_v13  ;;  %v989_v13 = vsel %vm966_vm3, %v986_v58, %v988_v59  ;;  %v1732_v48 = vshll.u32 %v5880_v46, 16  ;;  %v6016_v58 = vld [vmem:[%s5655_s29 + $0x78] sm:$0xff]   ;;  %v1726_v59 = vrot.slane %v1724_v10, 2  ;;  %v1756_v10 = vshrl.u32 %v5893_v38, 16 }
  0x5d   : > { %5250 = vmatprep.mubr.msk.bf16.mxu0 %vm508_vm2, %v985_v23  ;;  %v1406_v23 = vrot.slane %v4754_v41, 1 }
  0x5e   : > { %v1734_v1 = vrot.slane %v1732_v48, 2 }
  0x5f   : > { %v1408_v46 = vsel %vm966_vm3, %v1406_v23, %v1407_v52  ;;  %v1765_v23 = vshrl.u32 %v5898_v55, 16 }
  0x60   : > { %v1735_v20 = vor.u32 %v1734_v1, %v1731_v0  ;;  %v2698_v0 = vsel %vm563_vm0, %v5843_v7, 0  ;;  %v1758_v1 = vrot.slane %v1756_v10, 1 }
  0x63   : > { %5217 = vmatmul.mubr.msk.bf16.gmra.mxu1 %vm508_vm2, %v5676_v14  ;;  %v2186_v14 = vrot.slane %v5961_v30, 2 }
  0x64   : > { %5251 = vmatmul.mubr.msk.bf16.gmra.mxu0 %vm508_vm2, %v987_v40  ;;  %5220 = vmatprep.mubr.msk.bf16.mxu1 %vm508_vm2, %v5688_v24  ;;  %v994_v24 = vrot.slane %v5715_v44, 1 }
  0x65   : > { %5254 = vmatprep.mubr.msk.bf16.mxu0 %vm508_vm2, %v989_v13  ;;  %v5973_v32 = vsel %vm2166_vm4, %v2184_v45, %v2186_v14  ;;  %v1741_v13 = vshll.u32 %v5885_v49, 16  ;;  %v1411_v45 = vrot.slane %v5889_v51, 1 }
  0x66   : > { %v995_v35 = vsel %vm966_vm3, %v992_v22, %v994_v24  ;;  %v997_v36 = vsel %vm966_vm3, %v994_v24, %v996_v15  ;;  %v1747_v22 = vshrl.u32 %v5889_v51, 16  ;;  %v1740_v24 = vrot.slane %v1738_v17, 1 }
  0x67   : > { %v1743_v15 = vrot.slane %v1741_v13, 2  ;;  %v1767_v17 = vrot.slane %v1765_v23, 1 }
  0x6b   : > { %5221 = vmatmul.mubr.msk.bf16.gmra.mxu1 %vm508_vm2, %v5706_v37  ;;  %v2190_v37 = vrot.slane %v5986_v28, 2 }
  0x6c   : > { %5255 = vmatmul.mubr.msk.bf16.gmra.mxu0 %vm508_vm2, %v991_v29  ;;  %5224 = vmatprep.mubr.msk.bf16.mxu1 %vm508_vm2, %v5715_v44  ;;  %v5994_v44 = vsel %vm2166_vm4, %v2186_v14, %v2188_v39  ;;  %v1750_v29 = vshll.u32 %v5889_v51, 16  ;;  %v6039_v14 = vld [vmem:[%s5655_s29 + $0x80] sm:$0xff]  }
  0x6d   : > { %5258 = vmatprep.mubr.msk.bf16.mxu0 %vm508_vm2, %v993_v27  ;;  %v5999_v50 = vsel %vm2166_vm4, %v2188_v39, %v2190_v37  ;;  %v6023_v40 = vsel %vm2166_vm4, %v2190_v37, %v2192_v4  ;;  %v1409_v27 = vrot.slane %v5885_v49, 1  ;;  %v2196_v39 = vrot.slane %v6039_v14, 2 }
  0x6e   : > { %v2198_v37 = vrot.slane %v6042_v34, 2  ;;  %v2259_v49 = vsel %vm563_vm0, %v5827_v6, 0 }
  0x6f   : > { %v1410_v41 = vsel %vm966_vm3, %v1407_v52, %v1409_v27  ;;  %v1412_v51 = vsel %vm966_vm3, %v1409_v27, %v1411_v45  ;;  %v1768_v52 = vshll.u32 %v5898_v55, 16  ;;  %v1774_v27 = vshrl.u32 %v5913_v61, 16 }
  0x70   : > { %v6065_v6 = vsel %vm2166_vm4, %v2196_v39, %v2198_v37 }
  0x73   : > { %5225 = vmatmul.mubr.msk.bf16.gmra.mxu1 %vm508_vm2, %v5742_v62  ;;  %v1723_v62 = vrot.slane %v1721_v43, 1  ;;  %v1744_v43 = vor.u32 %v1743_v15, %v1740_v24 }
  0x74   : > { %5259 = vmatmul.mubr.msk.bf16.gmra.mxu0 %vm508_vm2, %v995_v35  ;;  %5228 = vmatprep.mubr.msk.bf16.mxu1 %vm508_vm2, %v5755_v11  ;;  %v2194_v11 = vrot.slane %v6016_v58, 2  ;;  %v1749_v35 = vrot.slane %v1747_v22, 1 }
  0x75   : > { %5262 = vmatprep.mubr.msk.bf16.mxu0 %vm508_vm2, %v997_v36  ;;  %v1727_v18 = vor.u32 %v1726_v59, %v1723_v62  ;;  %v1752_v36 = vrot.slane %v1750_v29, 2  ;;  %v6074_v62 = vld [vmem:[%s5655_s29 + $0x90] sm:$0xff]   ;;  %v1745_v59 = vsel %vm1719_vm5, %v1735_v20, %v1744_v43 }
  0x76   : > { %v6029_v16 = vsel %vm2166_vm4, %v2192_v4, %v2194_v11  ;;  %v6054_v42 = vsel %vm2166_vm4, %v2194_v11, %v2196_v39  ;;  %v1761_v4 = vrot.slane %v1759_v47, 2  ;;  %v6082_v11 = vld [vmem:[%s5655_s29 + $0x98] ss:$0 sps:$4 sm:$0x33]   ;;  %v1419_v39 = vrot.slane %v5923_v2, 1 }
  0x77   : > { %v1753_v48 = vor.u32 %v1752_v36, %v1749_v35  ;;  %v1786_v35 = vshll.u32 %v5923_v2, 16  ;;  %v1417_v36 = vrot.slane %v5913_v61, 1 }
  0x78   : > { %v1762_v29 = vor.u32 %v1761_v4, %v1758_v1  ;;  %v6127_v1 = vld [vmem:[%s5655_s29 + $0x14] sm:$0xf]  ;;  %v3360_v4 = vld [vmem:[%s5655_s29 + $0x10] sm:$0x8] }
  0x79   : > { %v1788_v10 = vrot.slane %v1786_v35, 2  ;;  %v1420_v23 = vsel %vm966_vm3, %v1417_v36, %v1419_v39 }
  0x7b   : > { %5229 = vmatmul.mubr.msk.bf16.gmra.mxu1 %vm508_vm2, %v5769_v26  ;;  %v1736_v26 = vsel %vm1719_vm5, %v1727_v18, %v1735_v20  ;;  %v6090_v18 = vld [vmem:[%s7499_s1 + $0x10] sm:$0x3]  ;;  %v2202_v20 = vrot.slane %v6082_v11, 2 }
  0x7c   : > { %5263 = vmatmul.mubr.msk.bf16.gmra.mxu0 %vm508_vm2, %v999_v54  ;;  %5272 = vmatprep.mubr.msk.bf16.mxu1 %vm508_vm2, %v1408_v46  ;;  %v1413_v54 = vrot.slane %v5893_v38, 1  ;;  %v1754_v46 = vsel %vm1719_vm5, %v1744_v43, %v1753_v48  ;;  %v1770_v38 = vrot.slane %v1768_v52, 2 }
  0x7d   : > { %5266 = vmatprep.mubr.msk.bf16.mxu0 %vm508_vm2, %v1001_v57  ;;  %v1415_v57 = vrot.slane %v5898_v55, 1  ;;  %v2200_v55 = vrot.slane %v6074_v62, 2 }
  0x7e   : > { %v1414_v13 = vsel %vm966_vm3, %v1411_v45, %v1413_v54  ;;  %v1777_v45 = vshll.u32 %v5913_v61, 16  ;;  %v1771_v15 = vor.u32 %v1770_v38, %v1767_v17 }
  0x7f   : > { %v1416_v7 = vsel %vm966_vm3, %v1413_v54, %v1415_v57  ;;  %v6096_v22 = vsel %vm2166_vm4, %v2198_v37, %v2200_v55  ;;  %v6102_v24 = vsel %vm2166_vm4, %v2200_v55, %v2202_v20  ;;  %v1776_v37 = vrot.slane %v1774_v27, 1  ;;  %v6132_v55 = vld [vmem:[%s5655_s29 + $0x18] sm:$0xff]   ;;  %v6137_v27 = vld [vmem:[%s5655_s29 + $0x20] sm:$0xff]  }
  0x80   : > { %v1418_v47 = vsel %vm966_vm3, %v1415_v57, %v1417_v36  ;;  %v1801_v54 = vshrl.u32 %v5957_v25, 16  ;;  %v1804_v57 = vshll.u32 %v5957_v25, 16  ;;  %v1810_v36 = vshrl.u32 %v5961_v30, 16 }
  0x83   : > { %5273 = vmatmul.mubr.msk.bf16.vlgmr.msra.gmra.mxu1 %vm508_vm2, %v1410_v41  ;;  %v1763_v41 = vsel %vm1719_vm5, %v1753_v48, %v1762_v29  ;;  %v1795_v48 = vshll.u32 %v5931_v8, 16 }
  0x84   : > { %5267 = vmatmul.mubr.msk.bf16.gmra.mxu0 %vm508_vm2, %v5814_v5  ;;  %v6062_v5 = vld [vmem:[%s7499_s1 + $0xe] sm:$0x3]  ;;  %5347 = vmatpush3.bf16.msra.mxu1 %v2259_v49  ;;  %v1779_v49 = vrot.slane %v1777_v45, 2  ;;  %v3368_v45 = vrot.slane %v6132_v55, 3 }
  0x85   : > { %5310 = vmatprep.mubr.msk.bf16.mxu0 %vm508_vm2, %v1736_v26  ;;  %5276 = vmatprep.mubr.msk.bf16.mxu1 %vm508_vm2, %v1412_v51  ;;  %v1783_v26 = vshrl.u32 %v5923_v2, 16  ;;  %v1772_v51 = vsel %vm1719_vm5, %v1762_v29, %v1771_v15  ;;  %v1792_v2 = vshrl.u32 %v5931_v8, 16  ;;  %v1797_v38 = vrot.slane %v1795_v48, 2 }
  0x86   : > { %5508 = vmatprep.subr.msk.bf16.mxu1 %vm563_vm0, %v6062_v5  ;;  %v1780_v61 = vor.u32 %v1779_v49, %v1776_v37  ;;  %v1806_v29 = vrot.slane %v1804_v57, 2  ;;  %v1819_v49 = vshrl.u32 %v5982_v33, 16 }
  0x87   : > { %v1785_v43 = vrot.slane %v1783_v26, 1  ;;  %v1794_v17 = vrot.slane %v1792_v2, 1  ;;  %v7504_v26 = vrot.slane %v6137_v27, 3 }
  0x89   : > { %v1789_v52 = vor.u32 %v1788_v10, %v1785_v43  ;;  %v1798_v35 = vor.u32 %v1797_v38, %v1794_v17  ;;  %v6156_v43 = vsel %vm3366_vm6, %v3368_v45, %v7504_v26  ;;  %v1425_v10 = vrot.slane %v5961_v30, 1 }
  0x8a   : > { %v1837_v17 = vshrl.u32 %v6009_v53, 16  ;;  %v1840_v38 = vshll.u32 %v6009_v53, 16 }
  0x8b   : > { %5277 = vmatmul.mubr.msk.bf16.gmra.mxu1 %vm508_vm2, %v1414_v13  ;;  %v4890_v13 = vcombine.low %v3360_v4, %v6127_v1  ;;  %v1790_v20 = vsel %vm1719_vm5, %v1780_v61, %v1789_v52 }
  0x8c   : > { %5311 = vmatmul.mubr.msk.bf16.vlgmr.msra.gmra.mxu0 %vm508_vm2, %v1745_v59  ;;  %5280 = vmatprep.mubr.msk.bf16.mxu1 %vm508_vm2, %v1416_v7  ;;  %v1421_v59 = vrot.slane %v5931_v8, 1  ;;  %v1803_v7 = vrot.slane %v1801_v54, 1  ;;  %v1821_v54 = vrot.slane %v1819_v49, 1  ;;  %v1858_v49 = vshll.u32 %v6039_v14, 16 }
  0x8d   : > { %5385 = vmatpush3.bf16.msra.mxu0 %v2698_v0  ;;  %5314 = vmatprep.mubr.msk.bf16.mxu0 %vm508_vm2, %v1754_v46  ;;  %v1423_v0 = vrot.slane %v5957_v25, 1  ;;  %v1781_v46 = vsel %vm1719_vm5, %v1771_v15, %v1780_v61  ;;  %v3367_v25 = vrot.slane %v4890_v13, 3  ;;  %v1812_v61 = vrot.slane %v1810_v36, 1 }
  0x8e   : > { %5509 = vmatprep.subr.msk.bf16.mxu0 %vm563_vm0, %v6090_v18  ;;  %v1422_v8 = vsel %vm966_vm3, %v1419_v39, %v1421_v59  ;;  %v1807_v39 = vor.u32 %v1806_v29, %v1803_v7  ;;  %v1431_v13 = vrot.slane %v6009_v53, 1  ;;  %v1846_v53 = vshrl.u32 %v6016_v58, 16 }
  0x8f   : > { %v1424_v15 = vsel %vm966_vm3, %v1421_v59, %v1423_v0  ;;  %v6148_v37 = vsel %vm3366_vm6, %v3367_v25, %v3368_v45  ;;  %v1426_v59 = vsel %vm966_vm3, %v1423_v0, %v1425_v10  ;;  %v1429_v0 = vrot.slane %v5986_v28, 1 }
  0x90   : > { %v1808_v48 = vsel %vm1719_vm5, %v1798_v35, %v1807_v39  ;;  %v1839_v25 = vrot.slane %v1837_v17, 1  ;;  %v1842_v45 = vrot.slane %v1840_v38, 2  ;;  %v1849_v36 = vshll.u32 %v6016_v58, 16 }
  0x91   : > { %v1867_v17 = vshll.u32 %v6042_v34, 16 }
  0x93   : > { %5281 = vmatmul.mubr.msk.bf16.gmra.mxu1 %vm508_vm2, %v1418_v47  ;;  %v1427_v47 = vrot.slane %v5982_v33, 1 }
  0x94   : > { %5315 = vmatmul.mubr.msk.bf16.gmra.mxu0 %vm508_vm2, %v1763_v41  ;;  %5284 = vmatprep.mubr.msk.bf16.mxu1 %vm508_vm2, %v1420_v23  ;;  %v1813_v41 = vshll.u32 %v5961_v30, 16  ;;  %v1799_v23 = vsel %vm1719_vm5, %v1789_v52, %v1798_v35  ;;  %v1828_v30 = vshrl.u32 %v5986_v28, 16  ;;  %v1432_v35 = vsel %vm966_vm3, %v1429_v0, %v1431_v13 }
  0x95   : > { %5318 = vmatprep.mubr.msk.bf16.mxu0 %vm508_vm2, %v1772_v51  ;;  %v1822_v51 = vshll.u32 %v5982_v33, 16  ;;  %v1428_v4 = vsel %vm966_vm3, %v1425_v10, %v1427_v47  ;;  %v1831_v33 = vshll.u32 %v5986_v28, 16  ;;  %v3798_v10 = vld [vmem:[%s7502_s4 + $0x10] sm:$0xff] }
  0x96   : > { %v1815_v2 = vrot.slane %v1813_v41, 2  ;;  %v1830_v7 = vrot.slane %v1828_v30, 1  ;;  %v1843_v41 = vor.u32 %v1842_v45, %v1839_v25 }
  0x97   : > { %v1824_v57 = vrot.slane %v1822_v51, 2  ;;  %v1833_v29 = vrot.slane %v1831_v33, 2  ;;  %v1433_v51 = vrot.slane %v6016_v58, 1  ;;  %v3796_v58 = vld [vmem:[%s7502_s4] sm:$0xff] }
  0x99   : > { %v1825_v52 = vor.u32 %v1824_v57, %v1821_v54  ;;  %v1834_v28 = vor.u32 %v1833_v29, %v1830_v7  ;;  %v1860_v57 = vrot.slane %v1858_v49, 2  ;;  %v3801_v7 = vld [vmem:[%s7502_s4 + $0x28] sm:$0xff]  ;;  %v3800_v29 = vld [vmem:[%s7502_s4 + $0x20] sm:$0xff] }
  0x9b   : > { %5285 = vmatmul.mubr.msk.bf16.gmra.mxu1 %vm508_vm2, %v1422_v8 }
  0x9c   : > { %5319 = vmatmul.mubr.msk.bf16.gmra.mxu0 %vm508_vm2, %v1781_v46  ;;  %5288 = vmatprep.mubr.msk.bf16.mxu1 %vm508_vm2, %v1424_v15  ;;  %v1816_v46 = vor.u32 %v1815_v2, %v1812_v61  ;;  %v1430_v15 = vsel %vm966_vm3, %v1427_v47, %v1429_v0  ;;  %v1435_v47 = vrot.slane %v6039_v14, 1  ;;  %v1835_v61 = vsel %vm1719_vm5, %v1825_v52, %v1834_v28 }
  0x9d   : > { %5322 = vmatprep.mubr.msk.bf16.mxu0 %vm508_vm2, %v1790_v20  ;;  %v1848_v2 = vrot.slane %v1846_v53, 1  ;;  %v1873_v0 = vshrl.u32 %v6074_v62, 16 }
  0x9e   : > { %v1817_v20 = vsel %vm1719_vm5, %v1807_v39, %v1816_v46  ;;  %v1826_v8 = vsel %vm1719_vm5, %v1816_v46, %v1825_v52  ;;  %v1855_v39 = vshrl.u32 %v6039_v14, 16  ;;  %v1844_v14 = vsel %vm1719_vm5, %v1834_v28, %v1843_v41  ;;  %v3797_v46 = vld [vmem:[%s7502_s4 + $0x8] sm:$0xff] }
  0x9f   : > { %v1436_v30 = vsel %vm966_vm3, %v1433_v51, %v1435_v47  ;;  %v1864_v52 = vshrl.u32 %v6042_v34, 16  ;;  %v1875_v28 = vrot.slane %v1873_v0, 1 }
  0xa0   : > { %v1857_v54 = vrot.slane %v1855_v39, 1  ;;  %v3803_v39 = vld [vmem:[%s7502_s4 + $0x38] sm:$0xff] }
  0xa1   : > { %v1866_v45 = vrot.slane %v1864_v52, 1  ;;  %v3809_v52 = vld [vmem:[%s7502_s4 + $0x68] sm:$0xff] }
  0xa2   : > { %v1861_v38 = vor.u32 %v1860_v57, %v1857_v54 }
  0xa3   : > { %5289 = vmatmul.mubr.msk.bf16.gmra.mxu1 %vm508_vm2, %v1426_v59  ;;  %v1434_v59 = vsel %vm966_vm3, %v1431_v13, %v1433_v51  ;;  %v1876_v13 = vshll.u32 %v6074_v62, 16  ;;  %v1882_v51 = vshrl.u32 %v6082_v11, 16 }
  0xa4   : > { %5323 = vmatmul.mubr.msk.bf16.gmra.mxu0 %vm508_vm2, %v1799_v23  ;;  %5292 = vmatprep.mubr.msk.bf16.mxu1 %vm508_vm2, %v1428_v4  ;;  %v5594_v23 = vmov 0   ;;  %v3799_v4 = vld [vmem:[%s7502_s4 + $0x18] sm:$0xff] }
  0xa5   : > { %5326 = vmatprep.mubr.msk.bf16.mxu0 %vm508_vm2, %v1808_v48  ;;  %5521 = vset.pattern.permute.xlu1 %v5594_v23  ;;  %4049 = vst.msk [vmem:[%s6193_s21] sm:$0xf] %vm4048_vm7, %v5594_v23  ;;  %4050 = vst.msk [vmem:[%s6193_s21 + $0x4] sm:$0xf] %vm4048_vm7, %v5594_v23  ;;  %v1851_v48 = vrot.slane %v1849_v36, 2  ;;  %v1878_v53 = vrot.slane %v1876_v13, 2 }
  0xa6   : > { %4610 = vst.msk [vmem:[%s6193_s21 + $0x9c] sm:$0xf] %vm4048_vm7, %v5594_v23  ;;  %4611 = vst.msk [vmem:[%s6193_s21 + $0xa0] sm:$0xf] %vm4048_vm7, %v5594_v23  ;;  %5520 = vset.pattern.permute.xlu0 %v5594_v23  ;;  %3844 = vperm.xlu1 %5521, %v3798_v10   ;;  %v1885_v10 = vshll.u32 %v6082_v11, 16  ;;  %v1884_v11 = vrot.slane %v1882_v51, 1 }
  0xa7   : > { %4612 = vst.msk [vmem:[%s6193_s21 + $0xa4] sm:$0xf] %vm4048_vm7, %v5594_v23  ;;  %3834 = vperm.xlu0 %5520, %v3796_v58   ;;  %v1852_v33 = vor.u32 %v1851_v48, %v1848_v2  ;;  %v5560_v36 = vld [vmem:[%s5655_s29 + $0x98] ss:$0 sps:$4 sm:$0x11]   ;;  %v1879_v58 = vor.u32 %v1878_v53, %v1875_v28  ;;  %v3804_v2 = vld [vmem:[%s7502_s4 + $0x40] sm:$0xff] }
  0xa8   : > { %4614 = vst.msk [vmem:[%s6193_s21 + $0xa8] sm:$0x7] %vm4613_vm8, %v5594_v23  ;;  %v2474_v23 = vld [vmem:[%s5655_s29 + $0x10] sm:$0xc]  ;;  %v6291_v13 = vld [vmem:[%s5655_s29 + $0x28] sm:$0xff]   ;;  %v6323_v28 = vld [vmem:[%s5655_s29 + $0x38] sm:$0xff]  }
  0xa9   : > { %v1853_v25 = vsel %vm1719_vm5, %v1843_v41, %v1852_v33  ;;  %v6266_v57 = vcombine.low %v2474_v23, %v6127_v1  ;;  %v3813_v53 = vld [vmem:[%s7502_s4 + $0x88] sm:$0xff] }
  0xaa   : > { %3849 = vperm.xlu1 %5521, %v3799_v4   ;;  %v3807_v4 = vld [vmem:[%s7502_s4 + $0x58] sm:$0xff] }
  0xab   : > { %5293 = vmatmul.mubr.msk.bf16.gmra.mxu1 %vm508_vm2, %v1430_v15  ;;  %3839 = vperm.xlu0 %5520, %v3797_v46   ;;  %v1869_v15 = vrot.slane %v1867_v17, 2  ;;  %v3806_v46 = vld [vmem:[%s7502_s4 + $0x50] sm:$0xff]  ;;  %v2606_v1 = vrot.slane %v6266_v57, 2  ;;  %v3808_v17 = vld [vmem:[%s7502_s4 + $0x60] sm:$0xff] }
  0xac   : > { %5327 = vmatmul.mubr.msk.bf16.gmra.mxu0 %vm508_vm2, %v1817_v20  ;;  %5296 = vmatprep.mubr.msk.bf16.mxu1 %vm508_vm2, %v1432_v35  ;;  %v1437_v20 = vrot.slane %v6042_v34, 1  ;;  %v1862_v35 = vsel %vm1719_vm5, %v1852_v33, %v1861_v38  ;;  %v2607_v33 = vrot.slane %v6132_v55, 2 }
  0xad   : > { %5330 = vmatprep.mubr.msk.bf16.mxu0 %vm508_vm2, %v1826_v8  ;;  %v1439_v8 = vrot.slane %v6074_v62, 1  ;;  %v3802_v62 = vld [vmem:[%s7502_s4 + $0x30] sm:$0xff]  ;;  %v1870_v49 = vor.u32 %v1869_v15, %v1866_v45 }
  0xae   : > { %3859 = vperm.xlu1 %5521, %v3801_v7   ;;  %v1438_v34 = vsel %vm966_vm3, %v1435_v47, %v1437_v20  ;;  %v1441_v47 = vrot.slane %v5560_v36, 1  ;;  %v2608_v0 = vsel %vm2166_vm4, %v2606_v1, %v2607_v33  ;;  %v3145_v7 = vsel %vm563_vm0, %v6062_v5, 0  ;;  %v3812_v5 = vld [vmem:[%s7502_s4 + $0x80] sm:$0xff]  ;;  %v6317_v15 = vld [vmem:[%s5655_s29 + $0x30] sm:$0xff]  }
  0xaf   : > { %3854 = vperm.xlu0 %5520, %v3800_v29   ;;  %v1440_v41 = vsel %vm966_vm3, %v1437_v20, %v1439_v8  ;;  %v1871_v48 = vsel %vm1719_vm5, %v1861_v38, %v1870_v49  ;;  %v1880_v54 = vsel %vm1719_vm5, %v1870_v49, %v1879_v58  ;;  %v3810_v20 = vld [vmem:[%s7502_s4 + $0x70] sm:$0xff]  ;;  %v2609_v29 = vrot.slane %v6137_v27, 2  ;;  %v3816_v36 = vld [vmem:[%s7502_s4 + $0xa0] sm:$0xff]  ;;  %v6351_v49 = vld [vmem:[%s5655_s29 + $0x48] sm:$0xff]  }
  0xb1   : > { %v2610_v45 = vsel %vm2166_vm4, %v2607_v33, %v2609_v29 }
  0xb2   : > { %3869 = vperm.xlu1 %5521, %v3803_v39   ;;  %v3815_v39 = vld [vmem:[%s7502_s4 + $0x98] sm:$0xff] }
  0xb3   : > { %5297 = vmatmul.mubr.msk.bf16.gmra.mxu1 %vm508_vm2, %v1434_v59  ;;  %3864 = vperm.xlu0 %5520, %v3802_v62   ;;  %v1442_v59 = vsel %vm966_vm3, %v1439_v8, %v1441_v47  ;;  %v2611_v8 = vrot.slane %v6291_v13, 2 }
  0xb4   : > { %5331 = vmatmul.mubr.msk.bf16.gmra.mxu0 %vm508_vm2, %v1835_v61  ;;  %5300 = vmatprep.mubr.msk.bf16.mxu1 %vm508_vm2, %v1436_v30  ;;  %v3805_v61 = vld [vmem:[%s7502_s4 + $0x48] sm:$0xff] }
  0xb5   : > { %5334 = vmatprep.mubr.msk.bf16.mxu0 %vm508_vm2, %v1844_v14  ;;  %v1887_v14 = vrot.slane %v1885_v10, 2  ;;  %v3817_v10 = vld [vmem:[%s7502_s4 + $0xa8] sm:$0xff] }
  0xb6   : > { %3879 = vperm.xlu1 %5521, %v3805_v61   ;;  %v2619_v61 = vrot.slane %v6351_v49, 2 }
  0xb7   : > { %3874 = vperm.xlu0 %5520, %v3804_v2   ;;  %v1888_v30 = vor.u32 %v1887_v14, %v1884_v11  ;;  %v3820_v2 = vld [vmem:[%s7502_s4 + $0xc0] sm:$0xff] }
  0xb9   : > { %v1889_v38 = vsel %vm1719_vm5, %v1879_v58, %v1888_v30  ;;  %v3822_v30 = vld [vmem:[%s7502_s4 + $0xd0] sm:$0xff] }
  0xba   : > { %3889 = vperm.xlu1 %5521, %v3807_v4  }
  0xbb   : > { %5301 = vmatmul.mubr.msk.bf16.gmra.mxu1 %vm508_vm2, %v1438_v34  ;;  %3884 = vperm.xlu0 %5520, %v3806_v46   ;;  %v2615_v34 = vrot.slane %v6323_v28, 2  ;;  %v6393_v46 = vld [vmem:[%s5655_s29 + $0x58] sm:$0xff]  }
  0xbc   : > { %5335 = vmatmul.mubr.msk.bf16.gmra.mxu0 %vm508_vm2, %v1853_v25  ;;  %5304 = vmatprep.mubr.msk.bf16.mxu1 %vm508_vm2, %v1440_v41  ;;  %v3811_v25 = vld [vmem:[%s7502_s4 + $0x78] sm:$0xff]  ;;  %v6347_v41 = vld [vmem:[%s5655_s29 + $0x40] sm:$0xff]  }
  0xbd   : > { %5338 = vmatprep.mubr.msk.bf16.mxu0 %vm508_vm2, %v1862_v35  ;;  %v2612_v35 = vsel %vm2166_vm4, %v2609_v29, %v2611_v8  ;;  %v2617_v58 = vrot.slane %v6347_v41, 2 }
  0xbe   : > { %3899 = vperm.xlu1 %5521, %v3809_v52   ;;  %v3821_v52 = vld [vmem:[%s7502_s4 + $0xc8] sm:$0xff] }
  0xbf   : > { %3894 = vperm.xlu0 %5520, %v3808_v17   ;;  %v2618_v14 = vsel %vm2166_vm4, %v2615_v34, %v2617_v58  ;;  %v2620_v4 = vsel %vm2166_vm4, %v2617_v58, %v2619_v61 }
  0xc3   : > { %5305 = vmatmul.mubr.msk.bf16.gmra.mxu1 %vm508_vm2, %v1442_v59  ;;  %3904 = vperm.xlu0 %5520, %v3810_v20   ;;  %v3824_v20 = vld [vmem:[%s7502_s4 + $0xe0] sm:$0xff] }
  0xc4   : > { %5339 = vmatmul.mubr.msk.bf16.gmra.mxu0 %vm508_vm2, %v1871_v48  ;;  %5348 = vmatprep.mubr.msk.bf16.mxu1 %vm508_vm2, %v5901_v56  ;;  %v3831_v56 = vld [vmem:[%s7502_s4 + $0x118] sm:$0xff] }
  0xc5   : > { %5342 = vmatprep.mubr.msk.bf16.mxu0 %vm508_vm2, %v1880_v54  ;;  %4009 = vperm.xlu1 %5521, %v3831_v56   ;;  %v6385_v54 = vld [vmem:[%s5655_s29 + $0x50] sm:$0xff]   ;;  %v2623_v56 = vrot.slane %v6393_v46, 2 }
  0xc6   : > { %v2621_v17 = vrot.slane %v6385_v54, 2 }
  0xc7   : > { %3909 = vperm.xlu0 %5520, %v3811_v25  }
  0xc9   : > { %3914 = vperm.xlu1 %5521, %v3812_v5   ;;  %v6429_v5 = vld [vmem:[%s5655_s29 + $0x60] sm:$0xff]  }
  0xcb   : > { %5349 = vmatmul.mubr.msk.bf16.vlgmr.msra.gmra.mxu1 %vm508_vm2, %v5908_v60  ;;  %v3459_v60 = vsel %vm563_vm0, %v6090_v18, 0  ;;  %v2613_v18 = vrot.slane %v6317_v15, 2  ;;  %3919 = vperm.xlu0 %5520, %v3813_v53   ;;  %vm7077_vm0 = vmand %vm4563_vm13, %vm4564_vm14 }
  0xcc   : > { %5343 = vmatmul.mubr.msk.bf16.gmra.mxu0 %vm508_vm2, %v1889_v38  ;;  %5423 = vmatpush3.bf16.msra.mxu1 %v3145_v7 }
  0xcd   : > { %5386 = vmatprep.mubr.msk.bf16.mxu0 %vm508_vm2, %v2608_v0  ;;  %5352 = vmatprep.mubr.msk.bf16.mxu1 %vm508_vm2, %v5916_v63  ;;  %v3814_v63 = vld [vmem:[%s7502_s4 + $0x90] sm:$0xff]  ;;  %v2614_v62 = vsel %vm2166_vm4, %v2611_v8, %v2613_v18  ;;  %v2622_v8 = vsel %vm2166_vm4, %v2619_v61, %v2621_v17 }
  0xce   : > { %3924 = vperm.xlu1 %5521, %v3814_v63   ;;  %v6473_v61 = vld [vmem:[%s5655_s29 + $0x70] sm:$0xff]  }
  0xcf   : > { %3929 = vperm.xlu0 %5520, %v3815_v39  }
  0xd2   : > { %3934 = vperm.xlu1 %5521, %v3816_v36  }
  0xd3   : > { %5353 = vmatmul.mubr.msk.bf16.gmra.mxu1 %vm508_vm2, %v5926_v3  ;;  %v2616_v3 = vsel %vm2166_vm4, %v2613_v18, %v2615_v34  ;;  %3939 = vperm.xlu0 %5520, %v3817_v10   ;;  %v3825_v18 = vld [vmem:[%s7502_s4 + $0xe8] sm:$0xff]  ;;  %v2625_v34 = vrot.slane %v6429_v5, 2 }
  0xd4   : > { %5387 = vmatmul.mubr.msk.bf16.vlgmr.msra.gmra.mxu0 %vm508_vm2, %v2610_v45  ;;  %5356 = vmatprep.mubr.msk.bf16.mxu1 %vm508_vm2, %v5934_v9  ;;  %v3818_v9 = vld [vmem:[%s7502_s4 + $0xb0] sm:$0xff]  ;;  %v2624_v45 = vsel %vm2166_vm4, %v2621_v17, %v2623_v56  ;;  %v3829_v17 = vld [vmem:[%s7502_s4 + $0x108] sm:$0xff] }
  0xd5   : > { %5461 = vmatpush3.bf16.msra.mxu0 %v3459_v60  ;;  %5390 = vmatprep.mubr.msk.bf16.mxu0 %vm508_vm2, %v2612_v35  ;;  %v6437_v60 = vld [vmem:[%s5655_s29 + $0x68] sm:$0xff]   ;;  %v3826_v35 = vld [vmem:[%s7502_s4 + $0xf0] sm:$0xff]  ;;  %v2626_v58 = vsel %vm2166_vm4, %v2623_v56, %v2625_v34  ;;  %v2629_v56 = vrot.slane %v6473_v61, 2 }
  0xd6   : > { %3944 = vperm.xlu1 %5521, %v3818_v9  }
  0xda   : > { %3954 = vperm.xlu1 %5521, %v3820_v2  }
  0xdb   : > { %v6364_v47 = vpop.f32.mrf.mxu1  ;;  %5357 = vmatmul.mubr.msk.bf16.gmra.mxu1 %vm508_vm2, %v5938_v12  ;;  %v3819_v12 = vld [vmem:[%s7502_s4 + $0xb8] sm:$0xff] }
  0xdc   : > { %v6356_v51 = vpop.f32.mrf.mxu0  ;;  %5391 = vmatmul.mubr.msk.bf16.gmra.mxu0 %vm508_vm2, %v2614_v62  ;;  %5360 = vmatprep.mubr.msk.bf16.mxu1 %vm508_vm2, %v5944_v19  ;;  %v2627_v62 = vrot.slane %v6437_v60, 2 }
  0xdd   : > { %5394 = vmatprep.mubr.msk.bf16.mxu0 %vm508_vm2, %v2616_v3  ;;  %v6376_v48 = vpop.f32.mrf.mxu1  ;;  %3949 = vperm.xlu0 %5520, %v3819_v12   ;;  %v3828_v3 = vld [vmem:[%s7502_s4 + $0x100] sm:$0xff] }
  0xde   : > { %v6368_v23 = vpop.f32.mrf.mxu0  ;;  %3964 = vperm.xlu1 %5521, %v3822_v30   ;;  %v2628_v12 = vsel %vm2166_vm4, %v2625_v34, %v2627_v62  ;;  %v6511_v34 = vld [vmem:[%s5655_s29 + $0x80] sm:$0xff]  }
  0xdf   : > { %v6387_v59 = vpop.f32.mrf.mxu1  ;;  %7521 = vst [vmem:[#allocation10_spill] sm:$0xff] %v6511_v34 }
  0xe0   : > { %v6378_v11 = vpop.f32.mrf.mxu0 }
  0xe1   : > { %v6398_v1 = vpop.f32.mrf.mxu1  ;;  %3959 = vperm.xlu0 %5520, %v3821_v52  }
  0xe2   : > { %v6389_v19 = vpop.f32.mrf.mxu0  ;;  %3974 = vperm.xlu1 %5521, %v3824_v20  }
  0xe3   : > { %v6408_v38 = vpop.f32.mrf.mxu1  ;;  %5361 = vmatmul.mubr.msk.bf16.gmra.mxu1 %vm508_vm2, %v5949_v21  ;;  %v3823_v21 = vld [vmem:[%s7502_s4 + $0xd8] sm:$0xff] }
  0xe4   : > { %v6400_v33 = vpop.f32.mrf.mxu0  ;;  %5395 = vmatmul.mubr.msk.bf16.gmra.mxu0 %vm508_vm2, %v2618_v14  ;;  %5364 = vmatprep.mubr.msk.bf16.mxu1 %vm508_vm2, %v5968_v31  ;;  %v6481_v14 = vld [vmem:[%s5655_s29 + $0x78] sm:$0xff]  }
  0xe5   : > { %5398 = vmatprep.mubr.msk.bf16.mxu0 %vm508_vm2, %v2620_v4  ;;  %v6420_v7 = vpop.f32.mrf.mxu1  ;;  %3969 = vperm.xlu0 %5520, %v3823_v21   ;;  %v3830_v4 = vld [vmem:[%s7502_s4 + $0x110] sm:$0xff] }
  0xe6   : > { %v6412_v0 = vpop.f32.mrf.mxu0  ;;  %3984 = vperm.xlu1 %5521, %v3826_v35  }
  0xe7   : > { %v6431_v25 = vpop.f32.mrf.mxu1 }
  0xe8   : > { %v6422_v29 = vpop.f32.mrf.mxu0  ;;  %7513 = vst [vmem:[#allocation2_spill] sm:$0xff] %v6431_v25 }
  0xe9   : > { %v6442_v63 = vpop.f32.mrf.mxu1  ;;  %3979 = vperm.xlu0 %5520, %v3825_v18   ;;  %v2630_v18 = vsel %vm2166_vm4, %v2627_v62, %v2629_v56  ;;  %v2633_v62 = vrot.slane %v6511_v34, 2 }
  0xea   : > { %v6433_v31 = vpop.f32.mrf.mxu0  ;;  %7514 = vst [vmem:[#allocation3_spill] sm:$0xff] %v6442_v63  ;;  %3994 = vperm.xlu1 %5521, %v3828_v3  }
  0xeb   : > { %v6452_v36 = vpop.f32.mrf.mxu1  ;;  %5365 = vmatmul.mubr.msk.bf16.gmra.mxu1 %vm508_vm2, %v5973_v32  ;;  %v3827_v32 = vld [vmem:[%s7502_s4 + $0xf8] sm:$0xff] }
  0xec   : > { %v6444_v53 = vpop.f32.mrf.mxu0  ;;  %5399 = vmatmul.mubr.msk.bf16.gmra.mxu0 %vm508_vm2, %v2622_v8  ;;  %7515 = vst [vmem:[#allocation4_spill] sm:$0xff] %v6452_v36  ;;  %5368 = vmatprep.mubr.msk.bf16.mxu1 %vm508_vm2, %v5994_v44  ;;  %v2631_v8 = vrot.slane %v6481_v14, 2 }
  0xed   : > { %5402 = vmatprep.mubr.msk.bf16.mxu0 %vm508_vm2, %v2624_v45  ;;  %v6464_v9 = vpop.f32.mrf.mxu1  ;;  %3989 = vperm.xlu0 %5520, %v3827_v32  }
  0xee   : > { %v6456_v39 = vpop.f32.mrf.mxu0  ;;  %7516 = vst [vmem:[#allocation5_spill] sm:$0xff] %v6464_v9  ;;  %4004 = vperm.xlu1 %5521, %v3830_v4   ;;  %v2632_v32 = vsel %vm2166_vm4, %v2629_v56, %v2631_v8  ;;  %v6551_v9 = vld [vmem:[%s5655_s29 + $0x98] sm:$0xff]  }
  0xef   : > { %v6475_v2 = vpop.f32.mrf.mxu1  ;;  %7525 = vst [vmem:[#allocation14_spill] sm:$0xff] %v6551_v9 }
  0xf0   : > { %v6466_v10 = vpop.f32.mrf.mxu0  ;;  %7517 = vst [vmem:[#allocation6_spill] sm:$0xff] %v6475_v2  ;;  %v6545_v2 = vld [vmem:[%s5655_s29 + $0x90] sm:$0xff]  }
  0xf1   : > { %v6486_v30 = vpop.f32.mrf.mxu1  ;;  %3999 = vperm.xlu0 %5520, %v3829_v17  }
  0xf2   : > { %v6477_v44 = vpop.f32.mrf.mxu0  ;;  %7518 = vst [vmem:[#allocation7_spill] sm:$0xff] %v6486_v30  ;;  %v2634_v30 = vsel %vm2166_vm4, %v2631_v8, %v2633_v62 }
  0xf3   : > { %v6496_v20 = vpop.f32.mrf.mxu1  ;;  %5369 = vmatmul.mubr.msk.bf16.gmra.mxu1 %vm508_vm2, %v5999_v50 }
  0xf4   : > { %v6488_v52 = vpop.f32.mrf.mxu0  ;;  %5403 = vmatmul.mubr.msk.bf16.gmra.mxu0 %vm508_vm2, %v2626_v58  ;;  %7519 = vst [vmem:[#allocation8_spill] sm:$0xff] %v6496_v20  ;;  %5372 = vmatprep.mubr.msk.bf16.mxu1 %vm508_vm2, %v6023_v40  ;;  %v6519_v58 = vld [vmem:[%s5655_s29 + $0x88] sm:$0xff]  }
  0xf5   : > { %5406 = vmatprep.mubr.msk.bf16.mxu0 %vm508_vm2, %v2628_v12  ;;  %v6505_v45 = vpop.f32.mrf.mxu1  ;;  %7523 = vst [vmem:[#allocation12_spill] sm:$0xff] %v6519_v58  ;;  %v2635_v56 = vrot.slane %v6519_v58, 2 }
  0xf6   : > { %v6500_v21 = vpop.f32.mrf.mxu0  ;;  %7520 = vst [vmem:[#allocation9_spill] sm:$0xff] %v6505_v45  ;;  %v2929_v45 = vshrl.u32 %v6132_v55, 16 }
  0xf7   : > { %v6513_v3 = vpop.f32.mrf.mxu1 }
  0xf8   : > { %v6507_v35 = vpop.f32.mrf.mxu0  ;;  %7522 = vst [vmem:[#allocation11_spill] sm:$0xff] %v6513_v3  ;;  %v2924_v3 = vshll.u32 %v6266_v57, 16 }
  0xf9   : > { %v6521_v12 = vpop.f32.mrf.mxu1 }
  0xfa   : > { %v6515_v50 = vpop.f32.mrf.mxu0  ;;  %7524 = vst [vmem:[#allocation13_spill] sm:$0xff] %v6521_v12  ;;  %v2926_v58 = vrot.slane %v2924_v3, 3 }
  0xfb   : > { %v5198_v4 = vpop.f32.mrf.mxu1  ;;  %5373 = vmatmul.mubr.msk.bf16.gmra.mxu1 %vm508_vm2, %v6029_v16  ;;  %v2932_v16 = vshll.u32 %v6132_v55, 16 }
  0xfc   : > { %v6523_v40 = vpop.f32.mrf.mxu0  ;;  %5407 = vmatmul.mubr.msk.bf16.gmra.mxu0 %vm508_vm2, %v2630_v18  ;;  %v826_v26 = vadd.f32 %v5198_v4, %v6356_v51  ;;  %5376 = vmatprep.mubr.msk.bf16.mxu1 %vm508_vm2, %v6054_v42  ;;  %v2636_v42 = vsel %vm2166_vm4, %v2633_v62, %v2635_v56  ;;  %v2637_v62 = vrot.slane %v6545_v2, 2 }
  0xfd   : > { %5410 = vmatprep.mubr.msk.bf16.mxu0 %vm508_vm2, %v2632_v32  ;;  %v817_v18 = vpop.f32.mrf.mxu1  ;;  %v2921_v32 = vshrl.u32 %v6266_v57, 16 }
  0xfe   : > { %v6530_v17 = vpop.f32.mrf.mxu0  ;;  %v818_v20 = vadd.f32 %v817_v18, %v6368_v23  ;;  %v2931_v23 = vrot.slane %v2929_v45, 2  ;;  %v2934_v18 = vrot.slane %v2932_v16, 3 }
  0xff   : > { %v5199_v51 = vpop.f32.mrf.mxu1  ;;  %v2923_v55 = vrot.slane %v2921_v32, 2 }
 0x100   : > { %v6536_v12 = vpop.f32.mrf.mxu0  ;;  %v829_v36 = vadd.f32 %v5199_v51, %v6378_v11  ;;  %v2639_v51 = vrot.slane %v6551_v9, 2  ;;  %v2935_v16 = vor.u32 %v2934_v18, %v2931_v23 }
 0x101   : > { %v820_v57 = vpop.f32.mrf.mxu1  ;;  %v2927_v32 = vor.u32 %v2926_v58, %v2923_v55 }
 0x102   : > { %v6547_v4 = vpop.f32.mrf.mxu0  ;;  %v821_v8 = vadd.f32 %v820_v57, %v6389_v19  ;;  %v2941_v19 = vshll.u32 %v6137_v27, 16 }
 0x103   : > { %v5202_v25 = vpop.f32.mrf.mxu1  ;;  %5377 = vmatmul.mubr.msk.bf16.gmra.mxu1 %vm508_vm2, %v6065_v6  ;;  %v2947_v6 = vshrl.u32 %v6291_v13, 16 }
 0x104   : > { %v5236_v63 = vpop.f32.mrf.mxu0  ;;  %5411 = vmatmul.mubr.msk.bf16.gmra.mxu0 %vm508_vm2, %v2634_v30  ;;  %v842_v30 = vadd.f32 %v5202_v25, %v6400_v33  ;;  %5380 = vmatprep.mubr.msk.bf16.mxu1 %vm508_vm2, %v6096_v22  ;;  %v2638_v25 = vsel %vm2166_vm4, %v2635_v56, %v2637_v62  ;;  %v5581_v22 = vld [vmem:[%s5655_s29 + $0xa0] ss:$0 sps:$4 sm:$0x33]   ;;  %v2943_v23 = vrot.slane %v2941_v19, 3  ;;  %v2959_v19 = vshll.u32 %v6317_v15, 16 }
 0x105   : > { %v6556_v34 = vadd.f32 %v5236_v63, %v826_v26  ;;  %5414 = vmatprep.mubr.msk.bf16.mxu0 %vm508_vm2, %v2636_v42  ;;  %v2938_v26 = vshrl.u32 %v6137_v27, 16  ;;  %v833_v63 = vpop.f32.mrf.mxu1  ;;  %v2950_v42 = vshll.u32 %v6291_v13, 16 }
 0x106   : > { %v1095_v11 = vpop.f32.mrf.mxu0  ;;  %v834_v57 = vadd.f32 %v833_v63, %v6412_v0  ;;  %v2936_v0 = vsel %vm2919_vm9, %v2927_v32, %v2935_v16 }
 0x107   : > { %7526 = vst [vmem:[#allocation15_spill] sm:$0xff] %v6556_v34  ;;  %v6564_v45 = vadd.f32 %v1095_v11, %v818_v20  ;;  %v5203_v20 = vpop.f32.mrf.mxu1  ;;  %v2940_v55 = vrot.slane %v2938_v26, 2  ;;  %v2952_v56 = vrot.slane %v2950_v42, 3  ;;  %v2956_v26 = vshrl.u32 %v6317_v15, 16 }
 0x108   : > { %v5237_v3 = vpop.f32.mrf.mxu0  ;;  %v845_v34 = vadd.f32 %v5203_v20, %v6422_v29  ;;  %v2965_v42 = vshrl.u32 %v6323_v28, 16 }
 0x109   : > { %7527 = vst [vmem:[#allocation16_spill] sm:$0xff] %v6564_v45  ;;  %v6573_v33 = vadd.f32 %v5237_v3, %v829_v36  ;;  %v2640_v45 = vsel %vm2166_vm4, %v2637_v62, %v2639_v51  ;;  %v836_v18 = vpop.f32.mrf.mxu1  ;;  %v2949_v36 = vrot.slane %v2947_v6, 2  ;;  %v2641_v62 = vrot.slane %v5581_v22, 2 }
 0x10a   : > { %v1098_v11 = vpop.f32.mrf.mxu0  ;;  %v837_v63 = vadd.f32 %v836_v18, %v6433_v31  ;;  %v2944_v31 = vor.u32 %v2943_v23, %v2940_v55  ;;  %v2961_v18 = vrot.slane %v2959_v19, 3 }
 0x10b   : > { %v6579_v58 = vadd.f32 %v1098_v11, %v821_v8  ;;  %v5206_v29 = vpop.f32.mrf.mxu1  ;;  %5381 = vmatmul.mubr.msk.bf16.gmra.mxu1 %vm508_vm2, %v6102_v24  ;;  %v2642_v20 = vsel %vm2166_vm4, %v2639_v51, %v2641_v62 }
 0x10c   : > { %v5240_v9 = vpop.f32.mrf.mxu0  ;;  %5415 = vmatmul.mubr.msk.bf16.gmra.mxu0 %vm508_vm2, %v2638_v25  ;;  %v858_v32 = vadd.f32 %v5206_v29, %v6444_v53  ;;  %5424 = vmatprep.mubr.msk.bf16.mxu1 %vm508_vm2, %v2936_v0  ;;  %v2968_v25 = vshll.u32 %v6323_v28, 16  ;;  %v2945_v23 = vsel %vm2919_vm9, %v2935_v16, %v2944_v31 }
 0x10d   : > { %v6584_v3 = vadd.f32 %v5240_v9, %v842_v30  ;;  %5418 = vmatprep.mubr.msk.bf16.mxu0 %vm508_vm2, %v2640_v45  ;;  %v849_v9 = vpop.f32.mrf.mxu1  ;;  %v2953_v45 = vor.u32 %v2952_v56, %v2949_v36 }
 0x10e   : > { %v1111_v8 = vpop.f32.mrf.mxu0  ;;  %v850_v24 = vadd.f32 %v849_v9, %v6456_v39  ;;  %v2970_v29 = vrot.slane %v2968_v25, 3 }
 0x10f   : > { %v6592_v6 = vadd.f32 %v1111_v8, %v834_v57  ;;  %v5207_v11 = vpop.f32.mrf.mxu1  ;;  %v2958_v57 = vrot.slane %v2956_v26, 2  ;;  %v2954_v39 = vsel %vm2919_vm9, %v2944_v31, %v2953_v45  ;;  %v3372_v8 = vrot.slane %v6291_v13, 3 }
 0x110   : > { %v5241_v30 = vpop.f32.mrf.mxu0  ;;  %v861_v0 = vadd.f32 %v5207_v11, %v6466_v10  ;;  %v7528_v11 = vrot.slane %v6137_v27, 3 }
 0x111   : > { %v6598_v22 = vadd.f32 %v5241_v30, %v845_v34  ;;  %v852_v36 = vpop.f32.mrf.mxu1  ;;  %v2967_v34 = vrot.slane %v2965_v42, 2  ;;  %v2962_v16 = vor.u32 %v2961_v18, %v2958_v57  ;;  %v2983_v30 = vshrl.u32 %v6351_v49, 16 }
 0x112   : > { %v1114_v53 = vpop.f32.mrf.mxu0  ;;  %v853_v51 = vadd.f32 %v852_v36, %v6477_v44  ;;  %v2974_v44 = vshrl.u32 %v6347_v41, 16  ;;  %v2986_v42 = vshll.u32 %v6351_v49, 16 }
 0x113   : > { %v6602_v55 = vadd.f32 %v1114_v53, %v837_v63  ;;  %v5210_v10 = vpop.f32.mrf.mxu1  ;;  %5425 = vmatmul.mubr.msk.bf16.vlgmr.msra.gmra.mxu1 %vm508_vm2, %v2945_v23  ;;  %v3373_v53 = vsel %vm3366_vm6, %v7528_v11, %v3372_v8 }
 0x114   : > { %v5244_v56 = vpop.f32.mrf.mxu0  ;;  %5419 = vmatmul.mubr.msk.bf16.gmra.mxu0 %vm508_vm2, %v2642_v20  ;;  %v874_v26 = vadd.f32 %v5210_v10, %v6488_v52  ;;  %5428 = vmatprep.mubr.msk.bf16.mxu1 %vm508_vm2, %v2954_v39  ;;  %v2963_v20 = vsel %vm2919_vm9, %v2953_v45, %v2962_v16  ;;  %v2976_v23 = vrot.slane %v2974_v44, 2  ;;  %v3376_v10 = vrot.slane %v6323_v28, 3 }
 0x115   : > { %v6608_v62 = vadd.f32 %v5244_v56, %v858_v32  ;;  %5462 = vmatprep.mubr.msk.bf16.mxu0 %vm508_vm2, %v6148_v37  ;;  %v2977_v32 = vshll.u32 %v6347_v41, 16  ;;  %v865_v31 = vpop.f32.mrf.mxu1  ;;  %v2971_v37 = vor.u32 %v2970_v29, %v2967_v34  ;;  %v2988_v34 = vrot.slane %v2986_v42, 3 }
 0x116   : > { %v1127_v63 = vpop.f32.mrf.mxu0  ;;  %v866_v25 = vadd.f32 %v865_v31, %v6500_v21  ;;  %v3001_v31 = vshrl.u32 %v6393_v46, 16 }
 0x117   : > { %v6615_v19 = vadd.f32 %v1127_v63, %v850_v24  ;;  %v5211_v52 = vpop.f32.mrf.mxu1  ;;  %v2979_v36 = vrot.slane %v2977_v32, 3  ;;  %v2972_v21 = vsel %vm2919_vm9, %v2962_v16, %v2971_v37  ;;  %v2995_v63 = vshll.u32 %v6385_v54, 16 }
 0x118   : > { %v5245_v9 = vpop.f32.mrf.mxu0  ;;  %v877_v57 = vadd.f32 %v5211_v52, %v6507_v35  ;;  %v3374_v35 = vrot.slane %v6317_v15, 3 }
 0x119   : > { %v6623_v13 = vadd.f32 %v5245_v9, %v861_v0  ;;  %v868_v56 = vpop.f32.mrf.mxu1  ;;  %v2985_v0 = vrot.slane %v2983_v30, 2  ;;  %v3004_v9 = vshll.u32 %v6393_v46, 16 }
 0x11a   : > { %v1130_v24 = vpop.f32.mrf.mxu0  ;;  %v869_v45 = vadd.f32 %v868_v56, %v6515_v50  ;;  %v2980_v50 = vor.u32 %v2979_v36, %v2976_v23  ;;  %v3375_v42 = vsel %vm3366_vm6, %v3372_v8, %v3374_v35 }
 0x11b   : > { %v6630_v18 = vadd.f32 %v1130_v24, %v853_v51  ;;  %v5214_v29 = vpop.f32.mrf.mxu1  ;;  %5429 = vmatmul.mubr.msk.bf16.gmra.mxu1 %vm508_vm2, %v2963_v20  ;;  %v2989_v15 = vor.u32 %v2988_v34, %v2985_v0  ;;  %v2997_v20 = vrot.slane %v2995_v63, 3  ;;  %v3006_v8 = vrot.slane %v3004_v9, 3 }
 0x11c   : > { %v5248_v39 = vpop.f32.mrf.mxu0  ;;  %5463 = vmatmul.mubr.msk.bf16.vlgmr.msra.gmra.mxu0 %vm508_vm2, %v6156_v43  ;;  %v2992_v43 = vshrl.u32 %v6385_v54, 16  ;;  %v890_v16 = vadd.f32 %v5214_v29, %v6523_v40  ;;  %5432 = vmatprep.mubr.msk.bf16.mxu1 %vm508_vm2, %v2972_v21  ;;  %v2981_v23 = vsel %vm2919_vm9, %v2971_v37, %v2980_v50  ;;  %v3010_v29 = vshrl.u32 %v6429_v5, 16 }
 0x11d   : > { %v6636_v27 = vadd.f32 %v5248_v39, %v874_v26  ;;  %5466 = vmatprep.mubr.msk.bf16.mxu0 %vm508_vm2, %v3373_v53  ;;  %v881_v26 = vpop.f32.mrf.mxu1 }
 0x11e   : > { %v1143_v51 = vpop.f32.mrf.mxu0  ;;  %v882_v28 = vadd.f32 %v881_v26, %v6530_v17  ;;  %v2994_v24 = vrot.slane %v2992_v43, 2  ;;  %v2990_v17 = vsel %vm2919_vm9, %v2980_v50, %v2989_v15 }
 0x11f   : > { %v6645_v44 = vadd.f32 %v1143_v51, %v866_v25  ;;  %v5215_v52 = vpop.f32.mrf.mxu1  ;;  %v3377_v25 = vsel %vm3366_vm6, %v3374_v35, %v3376_v10 }
 0x120   : > { %v5249_v32 = vpop.f32.mrf.mxu0  ;;  %v893_v11 = vadd.f32 %v5215_v52, %v6536_v12  ;;  %v3378_v12 = vrot.slane %v6347_v41, 3  ;;  %v2998_v34 = vor.u32 %v2997_v20, %v2994_v24  ;;  %v3019_v41 = vshrl.u32 %v6437_v60, 16 }
 0x121   : > { %v6651_v30 = vadd.f32 %v5249_v32, %v877_v57  ;;  %v884_v36 = vpop.f32.mrf.mxu1  ;;  %v3003_v57 = vrot.slane %v3001_v31, 2  ;;  %v3012_v52 = vrot.slane %v3010_v29, 2  ;;  %v3040_v29 = vshll.u32 %v6481_v14, 16 }
 0x122   : > { %v1146_v40 = vpop.f32.mrf.mxu0  ;;  %v885_v39 = vadd.f32 %v884_v36, %v6547_v4  ;;  %v3013_v4 = vshll.u32 %v6429_v5, 16  ;;  %v3379_v26 = vsel %vm3366_vm6, %v3376_v10, %v3378_v12  ;;  %v2999_v31 = vsel %vm2919_vm9, %v2989_v15, %v2998_v34 }
 0x123   : > { %v6656_v53 = vadd.f32 %v1146_v40, %v869_v45  ;;  %v5218_v0 = vpop.f32.mrf.mxu1  ;;  %5433 = vmatmul.mubr.msk.bf16.gmra.mxu1 %vm508_vm2, %v2981_v23  ;;  %v3380_v45 = vrot.slane %v6351_v49, 3  ;;  %v3007_v63 = vor.u32 %v3006_v8, %v3003_v57  ;;  %v3028_v57 = vshrl.u32 %v6473_v61, 16 }
 0x124   : > { %v5252_v56 = vpop.f32.mrf.mxu0  ;;  %5467 = vmatmul.mubr.msk.bf16.gmra.mxu0 %vm508_vm2, %v3375_v42  ;;  %5436 = vmatprep.mubr.msk.bf16.mxu1 %vm508_vm2, %v2990_v17  ;;  %v3015_v40 = vrot.slane %v3013_v4, 3  ;;  %v3384_v17 = vrot.slane %v6393_v46, 3  ;;  %v3031_v8 = vshll.u32 %v6473_v61, 16 }
 0x125   : > { %v6662_v21 = vadd.f32 %v5252_v56, %v890_v16  ;;  %5470 = vmatprep.mubr.msk.bf16.mxu0 %vm508_vm2, %v3377_v25  ;;  %v897_v51 = vpop.f32.mrf.mxu1  ;;  %v3022_v16 = vshll.u32 %v6437_v60, 16  ;;  %v3381_v9 = vsel %vm3366_vm6, %v3378_v12, %v3380_v45  ;;  %v3008_v20 = vsel %vm2919_vm9, %v2998_v34, %v3007_v63 }
 0x126   : > { %v1159_v37 = vpop.f32.mrf.mxu0  ;;  %v898_v23 = vadd.f32 %v897_v51, %v6376_v48  ;;  %v3016_v48 = vor.u32 %v3015_v40, %v3012_v52  ;;  %v3037_v34 = vshrl.u32 %v6481_v14, 16 }
 0x127   : > { %v6668_v35 = vadd.f32 %v1159_v37, %v882_v28  ;;  %v5219_v49 = vpop.f32.mrf.mxu1  ;;  %v906_v28 = vadd.f32 %v5218_v0, %v6364_v47  ;;  %v3024_v10 = vrot.slane %v3022_v16, 3  ;;  %v3382_v47 = vrot.slane %v6385_v54, 3 }
 0x128   : > { %v5253_v43 = vpop.f32.mrf.mxu0  ;;  %v3030_v16 = vrot.slane %v3028_v57, 2  ;;  %v3039_v52 = vrot.slane %v3037_v34, 2 }
 0x129   : > { %v6675_v50 = vadd.f32 %v5253_v43, %v893_v11  ;;  %v900_v25 = vpop.f32.mrf.mxu1  ;;  %v3021_v11 = vrot.slane %v3019_v41, 2  ;;  %v3383_v51 = vsel %vm3366_vm6, %v3380_v45, %v3382_v47  ;;  %v3385_v41 = vsel %vm3366_vm6, %v3382_v47, %v3384_v17 }
 0x12a   : > { %v1162_v32 = vpop.f32.mrf.mxu0  ;;  %v901_v46 = vadd.f32 %v900_v25, %v6398_v1  ;;  %v3042_v45 = vrot.slane %v3040_v29, 3 }
 0x12b   : > { %v6681_v42 = vadd.f32 %v1162_v32, %v885_v39  ;;  %v5222_v15 = vpop.f32.mrf.mxu1  ;;  %5437 = vmatmul.mubr.msk.bf16.gmra.mxu1 %vm508_vm2, %v2999_v31  ;;  %v909_v39 = vadd.f32 %v5219_v49, %v6387_v59  ;;  %v3025_v54 = vor.u32 %v3024_v10, %v3021_v11  ;;  %v3017_v31 = vsel %vm2919_vm9, %v3007_v63, %v3016_v48  ;;  %v7529_v10 = vld [vmem:[#allocation2_spill] sm:$0xff] }
 0x12c   : > { %v5256_v24 = vpop.f32.mrf.mxu0  ;;  %5471 = vmatmul.mubr.msk.bf16.gmra.mxu0 %vm508_vm2, %v3379_v26  ;;  %5440 = vmatprep.mubr.msk.bf16.mxu1 %vm508_vm2, %v3008_v20  ;;  %v3033_v26 = vrot.slane %v3031_v8, 3  ;;  %v922_v49 = vadd.f32 %v5222_v15, %v6408_v38  ;;  %v3386_v38 = vrot.slane %v6429_v5, 3  ;;  %v3388_v11 = vrot.slane %v6437_v60, 3 }
 0x12d   : > { %v6686_v36 = vadd.f32 %v5256_v24, %v906_v28  ;;  %5474 = vmatprep.mubr.msk.bf16.mxu0 %vm508_vm2, %v3381_v9  ;;  %v913_v0 = vpop.f32.mrf.mxu1  ;;  %v3026_v1 = vsel %vm2919_vm9, %v3016_v48, %v3025_v54  ;;  %v3043_v5 = vor.u32 %v3042_v45, %v3039_v52  ;;  %v7534_v45 = vld [vmem:[#allocation5_spill] sm:$0xff] }
 0x12e   : > { %v1175_v56 = vpop.f32.mrf.mxu0  ;;  %v914_v40 = vadd.f32 %v913_v0, %v6420_v7  ;;  %v3034_v20 = vor.u32 %v3033_v26, %v3030_v16  ;;  %v7530_v7 = vld [vmem:[#allocation10_spill] sm:$0xff]  ;;  %v3387_v29 = vsel %vm3366_vm6, %v3384_v17, %v3386_v38 }
 0x12f   : > { %v6695_v12 = vadd.f32 %v1175_v56, %v898_v23  ;;  %v5223_v43 = vpop.f32.mrf.mxu1  ;;  %v3046_v15 = vshrl.u32 %v7530_v7, 16  ;;  %v3049_v56 = vshll.u32 %v7530_v7, 16 }
 0x130   : > { %v5257_v37 = vpop.f32.mrf.mxu0  ;;  %v925_v23 = vadd.f32 %v5223_v43, %v7529_v10  ;;  %v3035_v43 = vsel %vm2919_vm9, %v3025_v54, %v3034_v20  ;;  %v3390_v54 = vrot.slane %v6473_v61, 3  ;;  %v3392_v10 = vrot.slane %v6481_v14, 3  ;;  %v7537_v14 = vld [vmem:[#allocation7_spill] sm:$0xff] }
 0x131   : > { %v6701_v4 = vadd.f32 %v5257_v37, %v909_v39  ;;  %v916_v9 = vpop.f32.mrf.mxu1  ;;  %v7531_v39 = vld [vmem:[#allocation12_spill] sm:$0xff]  ;;  %v7532_v37 = vld [vmem:[#allocation3_spill] sm:$0xff] }
 0x132   : > { %v1178_v59 = vpop.f32.mrf.mxu0  ;;  %v3055_v48 = vshrl.u32 %v7531_v39, 16  ;;  %v3058_v0 = vshll.u32 %v7531_v39, 16  ;;  %v917_v34 = vadd.f32 %v916_v9, %v7532_v37  ;;  %v3044_v9 = vsel %vm2919_vm9, %v3034_v20, %v3043_v5  ;;  %v7536_v37 = vld [vmem:[#allocation14_spill] sm:$0xff] }
 0x133   : > { %v6706_v32 = vadd.f32 %v1178_v59, %v901_v46  ;;  %v5226_v24 = vpop.f32.mrf.mxu1  ;;  %5441 = vmatmul.mubr.msk.bf16.gmra.mxu1 %vm508_vm2, %v3017_v31  ;;  %v3389_v59 = vsel %vm3366_vm6, %v3386_v38, %v3388_v11  ;;  %v3051_v31 = vrot.slane %v3049_v56, 3  ;;  %v3067_v20 = vshll.u32 %v6545_v2, 16 }
 0x134   : > { %v5260_v28 = vpop.f32.mrf.mxu0  ;;  %5475 = vmatmul.mubr.msk.bf16.gmra.mxu0 %vm508_vm2, %v3383_v51  ;;  %5444 = vmatprep.mubr.msk.bf16.mxu1 %vm508_vm2, %v3026_v1  ;;  %v3057_v52 = vrot.slane %v3055_v48, 2  ;;  %v3060_v17 = vrot.slane %v3058_v0, 3 }
 0x135   : > { %v6712_v25 = vadd.f32 %v5260_v28, %v922_v49  ;;  %5478 = vmatprep.mubr.msk.bf16.mxu0 %vm508_vm2, %v3385_v41  ;;  %v929_v57 = vpop.f32.mrf.mxu1  ;;  %v7533_v41 = vld [vmem:[#allocation4_spill] sm:$0xff]  ;;  %v3048_v49 = vrot.slane %v3046_v15, 2  ;;  %v7535_v15 = vld [vmem:[#allocation6_spill] sm:$0xff] }
 0x136   : > { %v1191_v63 = vpop.f32.mrf.mxu0  ;;  %v938_v16 = vadd.f32 %v5226_v24, %v7533_v41  ;;  %v3061_v0 = vor.u32 %v3060_v17, %v3057_v52 }
 0x137   : > { %v6719_v47 = vadd.f32 %v1191_v63, %v914_v40  ;;  %v5227_v46 = vpop.f32.mrf.mxu1  ;;  %v930_v40 = vadd.f32 %v929_v57, %v7534_v45  ;;  %v3052_v57 = vor.u32 %v3051_v31, %v3048_v49  ;;  %v6758_v49 = vld [vmem:[%s5655_s29 + $0xa0] ss:$0 sps:$4 sm:$0x77]   ;;  %v7538_v31 = vld [vmem:[#allocation8_spill] sm:$0xff] }
 0x138   : > { %v5261_v8 = vpop.f32.mrf.mxu0  ;;  %v941_v56 = vadd.f32 %v5227_v46, %v7535_v15 }
 0x139   : > { %v6727_v60 = vadd.f32 %v5261_v8, %v925_v23  ;;  %v932_v28 = vpop.f32.mrf.mxu1  ;;  %v3064_v23 = vshrl.u32 %v6545_v2, 16  ;;  %v3053_v45 = vsel %vm2919_vm9, %v3043_v5, %v3052_v57 }
 0x13a   : > { %v1194_v51 = vpop.f32.mrf.mxu0 }
 0x13b   : > { %v6733_v26 = vadd.f32 %v1194_v51, %v917_v34  ;;  %v5230_v38 = vpop.f32.mrf.mxu1  ;;  %5445 = vmatmul.mubr.msk.bf16.gmra.mxu1 %vm508_vm2, %v3035_v43  ;;  %v3073_v34 = vshrl.u32 %v7536_v37, 16  ;;  %v933_v51 = vadd.f32 %v932_v28, %v7537_v14  ;;  %v3396_v14 = vrot.slane %v7531_v39, 3 }
 0x13c   : > { %v5264_v1 = vpop.f32.mrf.mxu0  ;;  %5479 = vmatmul.mubr.msk.bf16.gmra.mxu0 %vm508_vm2, %v3387_v29  ;;  %5448 = vmatprep.mubr.msk.bf16.mxu1 %vm508_vm2, %v3044_v9  ;;  %v3076_v29 = vshll.u32 %v7536_v37, 16  ;;  %v3069_v9 = vrot.slane %v3067_v20, 3  ;;  %v954_v52 = vadd.f32 %v5230_v38, %v7538_v31  ;;  %v3394_v38 = vrot.slane %v7530_v7, 3 }
 0x13d   : > { %v6738_v63 = vadd.f32 %v5264_v1, %v938_v16  ;;  %5482 = vmatprep.mubr.msk.bf16.mxu0 %vm508_vm2, %v3389_v59  ;;  %v945_v48 = vpop.f32.mrf.mxu1  ;;  %v3391_v59 = vsel %vm3366_vm6, %v3388_v11, %v3390_v54  ;;  %v3393_v16 = vsel %vm3366_vm6, %v3390_v54, %v3392_v10  ;;  %v3066_v1 = vrot.slane %v3064_v23, 2 }
 0x13e   : > { %v1207_v24 = vpop.f32.mrf.mxu0  ;;  %v3062_v11 = vsel %vm2919_vm9, %v3052_v57, %v3061_v0  ;;  %v3078_v15 = vrot.slane %v3076_v29, 3  ;;  %v7540_v57 = vld [vmem:[#allocation11_spill] sm:$0xff] }
 0x13f   : > { %v6747_v8 = vadd.f32 %v1207_v24, %v930_v40  ;;  %v5231_v46 = vpop.f32.mrf.mxu1  ;;  %v3075_v24 = vrot.slane %v3073_v34, 2  ;;  %v7541_v29 = vld [vmem:[#allocation15_spill] sm:$0xff] }
 0x140   : > { %v5265_v61 = vpop.f32.mrf.mxu0  ;;  %v957_v34 = vadd.f32 %v5231_v46, %v7540_v57 }
 0x141   : > { %v6753_v43 = vadd.f32 %v5265_v61, %v941_v56  ;;  %v948_v40 = vpop.f32.mrf.mxu1  ;;  %v7539_v56 = vld [vmem:[#allocation9_spill] sm:$0xff]  ;;  %v3070_v61 = vor.u32 %v3069_v9, %v3066_v1  ;;  %v3079_v31 = vor.u32 %v3078_v15, %v3075_v24  ;;  %v7543_v1 = vld [vmem:[#allocation16_spill] sm:$0xff] }
 0x142   : > { %v1210_v41 = vpop.f32.mrf.mxu0  ;;  %v946_v54 = vadd.f32 %v945_v48, %v7539_v56 }
 0x143   : > { %v6761_v17 = vadd.f32 %v1210_v41, %v933_v51  ;;  %v5274_v20 = vpop.f32.mrf.mxu1  ;;  %5449 = vmatmul.mubr.msk.bf16.gmra.mxu1 %vm508_vm2, %v3053_v45  ;;  %v3082_v51 = vshrl.u32 %v6758_v49, 16  ;;  %v3085_v41 = vshll.u32 %v6758_v49, 16 }
 0x144   : > { %v5268_v28 = vpop.f32.mrf.mxu0  ;;  %5483 = vmatmul.mubr.msk.bf16.gmra.mxu0 %vm508_vm2, %v3391_v59  ;;  %v1679_v59 = vadd.f32 %v5274_v20, %v7541_v29  ;;  %5452 = vmatprep.mubr.msk.bf16.mxu1 %vm508_vm2, %v3062_v11  ;;  %v3397_v20 = vsel %vm3366_vm6, %v3394_v38, %v3396_v14 }
 0x145   : > { %v6767_v23 = vadd.f32 %v5268_v28, %v954_v52  ;;  %5486 = vmatprep.mubr.msk.bf16.mxu0 %vm508_vm2, %v3393_v16  ;;  %v1534_v7 = vpop.f32.mrf.mxu1  ;;  %v7542_v52 = vld [vmem:[#allocation13_spill] sm:$0xff]  ;;  %v3395_v28 = vsel %vm3366_vm6, %v3392_v10, %v3394_v38  ;;  %v3084_v57 = vrot.slane %v3082_v51, 2  ;;  %v3087_v24 = vrot.slane %v3085_v41, 3 }
 0x146   : > { %v1223_v5 = vpop.f32.mrf.mxu0  ;;  %v949_v45 = vadd.f32 %v948_v40, %v7542_v52  ;;  %v1677_v9 = vadd.f32 %v1534_v7, %v7543_v1  ;;  %v3400_v51 = vrot.slane %v7536_v37, 3 }
 0x147   : > { %v6776_v48 = vadd.f32 %v1223_v5, %v946_v54  ;;  %v5275_v46 = vpop.f32.mrf.mxu1  ;;  %v3071_v54 = vsel %vm2919_vm9, %v3061_v0, %v3070_v61  ;;  %v3398_v0 = vrot.slane %v6545_v2, 3 }
 0x148   : > { %v5269_v16 = vpop.f32.mrf.mxu0  ;;  %v1680_v11 = vadd.f32 %v5275_v46, %v6573_v33 }
 0x149   : > { %v6782_v39 = vadd.f32 %v5269_v16, %v957_v34  ;;  %v1537_v15 = vpop.f32.mrf.mxu1  ;;  %v3080_v34 = vsel %vm2919_vm9, %v3070_v61, %v3079_v31  ;;  %v3088_v61 = vor.u32 %v3087_v24, %v3084_v57  ;;  %v3399_v2 = vsel %vm3366_vm6, %v3396_v14, %v3398_v0 }
 0x14a   : > { %v1226_v56 = vpop.f32.mrf.mxu0  ;;  %v1678_v10 = vadd.f32 %v1537_v15, %v6579_v58  ;;  %v3402_v14 = vrot.slane %v6758_v49, 3 }
 0x14b   : > { %v6788_v5 = vadd.f32 %v1226_v56, %v949_v45  ;;  %v5278_v38 = vpop.f32.mrf.mxu1  ;;  %5453 = vmatmul.mubr.msk.bf16.gmra.mxu1 %vm508_vm2, %v3071_v54 }
 0x14c   : > { %v5312_v40 = vpop.f32.mrf.mxu0  ;;  %5487 = vmatmul.mubr.msk.bf16.gmra.mxu0 %vm508_vm2, %v3395_v28  ;;  %v1683_v41 = vadd.f32 %v5278_v38, %v6584_v3  ;;  %5456 = vmatprep.mubr.msk.bf16.mxu1 %vm508_vm2, %v3080_v34  ;;  %v3401_v28 = vsel %vm3366_vm6, %v3398_v0, %v3400_v51 }
 0x14d   : > { %v6793_v29 = vadd.f32 %v5312_v40, %v1679_v59  ;;  %5490 = vmatprep.mubr.msk.bf16.mxu0 %vm508_vm2, %v3397_v20  ;;  %v1550_v58 = vpop.f32.mrf.mxu1 }
 0x14e   : > { %v1981_v33 = vpop.f32.mrf.mxu0  ;;  %v1681_v16 = vadd.f32 %v1550_v58, %v6592_v6 }
 0x14f   : > { %v6800_v7 = vadd.f32 %v1981_v33, %v1677_v9  ;;  %v5279_v45 = vpop.f32.mrf.mxu1  ;;  %v3089_v9 = vsel %vm2919_vm9, %v3079_v31, %v3088_v61 }
 0x150   : > { %v5313_v59 = vpop.f32.mrf.mxu0  ;;  %v1684_v37 = vadd.f32 %v5279_v45, %v6598_v22 }
 0x151   : > { %v6804_v52 = vadd.f32 %v5313_v59, %v1680_v11  ;;  %v1553_v46 = vpop.f32.mrf.mxu1 }
 0x152   : > { %v1984_v1 = vpop.f32.mrf.mxu0  ;;  %v1682_v6 = vadd.f32 %v1553_v46, %v6602_v55  ;;  %v3403_v55 = vsel %vm3366_vm6, %v3400_v51, %v3402_v14 }
 0x153   : > { %v6809_v3 = vadd.f32 %v1984_v1, %v1678_v10  ;;  %v5282_v20 = vpop.f32.mrf.mxu1  ;;  %5457 = vmatmul.mubr.msk.bf16.gmra.mxu1 %vm508_vm2, %v3089_v9 }
 0x154   : > { %v5316_v56 = vpop.f32.mrf.mxu0  ;;  %5491 = vmatmul.mubr.msk.bf16.gmra.mxu0 %vm508_vm2, %v3399_v2  ;;  %v1687_v11 = vadd.f32 %v5282_v20, %v6608_v62 }
 0x155   : > { %v6814_v54 = vadd.f32 %v5316_v56, %v1683_v41  ;;  %5494 = vmatprep.mubr.msk.bf16.mxu0 %vm508_vm2, %v3401_v28  ;;  %v1566_v31 = vpop.f32.mrf.mxu1 }
 0x156   : > { %v1997_v22 = vpop.f32.mrf.mxu0  ;;  %v1685_v15 = vadd.f32 %v1566_v31, %v6615_v19 }
 0x157   : > { %v6820_v57 = vadd.f32 %v1997_v22, %v1681_v16  ;;  %v5283_v34 = vpop.f32.mrf.mxu1 }
 0x158   : > { %v5317_v24 = vpop.f32.mrf.mxu0  ;;  %v1688_v49 = vadd.f32 %v5283_v34, %v6623_v13 }
 0x159   : > { %v6823_v40 = vadd.f32 %v5317_v24, %v1684_v37  ;;  %v1569_v38 = vpop.f32.mrf.mxu1 }
 0x15a   : > { %v2000_v10 = vpop.f32.mrf.mxu0  ;;  %v1686_v62 = vadd.f32 %v1569_v38, %v6630_v18 }
 0x15b   : > { %v6827_v0 = vadd.f32 %v2000_v10, %v1682_v6  ;;  %v5286_v61 = vpop.f32.mrf.mxu1 }
 0x15c   : > { %v5320_v33 = vpop.f32.mrf.mxu0  ;;  %5495 = vmatmul.mubr.msk.bf16.gmra.mxu0 %vm508_vm2, %v3403_v55  ;;  %v1691_v58 = vadd.f32 %v5286_v61, %v6636_v27 }
 0x15d   : > { %v6831_v41 = vadd.f32 %v5320_v33, %v1687_v11  ;;  %v1582_v51 = vpop.f32.mrf.mxu1 }
 0x15e   : > { %v2013_v19 = vpop.f32.mrf.mxu0  ;;  %v1689_v13 = vadd.f32 %v1582_v51, %v6645_v44 }
 0x15f   : > { %v6834_v59 = vadd.f32 %v2013_v19, %v1685_v15  ;;  %v5287_v45 = vpop.f32.mrf.mxu1  ;;  %v4054_v15 = vld [vmem:[%s6193_s21 + $0x8] sm:$0x3] }
 0x160   : > { %v5321_v16 = vpop.f32.mrf.mxu0  ;;  %v1692_v28 = vadd.f32 %v5287_v45, %v6651_v30  ;;  %v4055_v34 = vsel %vm6852_vm12, 0, %v4054_v15 }
 0x161   : > { %v6837_v2 = vadd.f32 %v5321_v16, %v1688_v49  ;;  %v1585_v18 = vpop.f32.mrf.mxu1  ;;  %4056 = vst [vmem:[%s6193_s21 + $0x8] sm:$0x3] %v4055_v34 }
 0x162   : > { %v2016_v1 = vpop.f32.mrf.mxu0  ;;  %v1690_v46 = vadd.f32 %v1585_v18, %v6656_v53  ;;  %v7544_v53 = vmov 0 }
 0x163   : > { %v6840_v37 = vadd.f32 %v2016_v1, %v1686_v62  ;;  %v5290_v56 = vpop.f32.mrf.mxu1  ;;  %v7545_v53 = vsel %vm6852_vm12, 4294967295, %v7544_v53 }
 0x164   : > { %v5324_v9 = vpop.f32.mrf.mxu0  ;;  %v1695_v14 = vadd.f32 %v5290_v56, %v6662_v21  ;;  %7546 = vst [vmem:[#allocation2_spill] sm:$0xff] %v7545_v53 }
 0x165   : > { %v6843_v27 = vadd.f32 %v5324_v9, %v1691_v58  ;;  %v1598_v20 = vpop.f32.mrf.mxu1 }
 0x166   : > { %v2029_v6 = vpop.f32.mrf.mxu0  ;;  %v1693_v30 = vadd.f32 %v1598_v20, %v6668_v35 }
 0x167   : > { %v6846_v44 = vadd.f32 %v2029_v6, %v1689_v13  ;;  %v5291_v31 = vpop.f32.mrf.mxu1 }
 0x168   : > { %v5325_v22 = vpop.f32.mrf.mxu0  ;;  %v1696_v21 = vadd.f32 %v5291_v31, %v6675_v50 }
 0x169   : > { %v6849_v11 = vadd.f32 %v5325_v22, %v1692_v28  ;;  %v1601_v35 = vpop.f32.mrf.mxu1 }
 0x16a   : > { %v2032_v24 = vpop.f32.mrf.mxu0  ;;  %v1694_v49 = vadd.f32 %v1601_v35, %v6681_v42 }
 0x16b   : > { %v6858_v55 = vadd.f32 %v2032_v24, %v1690_v46  ;;  %v5294_v33 = vpop.f32.mrf.mxu1 }
 0x16c   : > { %v5328_v10 = vpop.f32.mrf.mxu0  ;;  %v1699_v61 = vadd.f32 %v5294_v33, %v6686_v36 }
 0x16d   : > { %v6864_v38 = vadd.f32 %v5328_v10, %v1695_v14  ;;  %v1614_v58 = vpop.f32.mrf.mxu1 }
 0x16e   : > { %v2045_v62 = vpop.f32.mrf.mxu0  ;;  %v1697_v51 = vadd.f32 %v1614_v58, %v6695_v12 }
 0x16f   : > { %v6867_v19 = vadd.f32 %v2045_v62, %v1693_v30  ;;  %v5295_v13 = vpop.f32.mrf.mxu1 }
 0x170   : > { %v5329_v50 = vpop.f32.mrf.mxu0  ;;  %v1700_v1 = vadd.f32 %v5295_v13, %v6701_v4 }
 0x171   : > { %v6870_v16 = vadd.f32 %v5329_v50, %v1696_v21  ;;  %v1617_v42 = vpop.f32.mrf.mxu1 }
 0x172   : > { %v2048_v45 = vpop.f32.mrf.mxu0  ;;  %v1698_v9 = vadd.f32 %v1617_v42, %v6706_v32 }
 0x173   : > { %v6873_v28 = vadd.f32 %v2048_v45, %v1694_v49  ;;  %v5298_v36 = vpop.f32.mrf.mxu1 }
 0x174   : > { %v5332_v18 = vpop.f32.mrf.mxu0  ;;  %v1703_v6 = vadd.f32 %v5298_v36, %v6712_v25 }
 0x175   : > { %v6876_v46 = vadd.f32 %v5332_v18, %v1699_v61  ;;  %v1630_v12 = vpop.f32.mrf.mxu1 }
 0x176   : > { %v2061_v56 = vpop.f32.mrf.mxu0  ;;  %v1701_v22 = vadd.f32 %v1630_v12, %v6719_v47 }
 0x177   : > { %v6879_v14 = vadd.f32 %v2061_v56, %v1697_v51  ;;  %v5299_v4 = vpop.f32.mrf.mxu1 }
 0x178   : > { %v5333_v20 = vpop.f32.mrf.mxu0  ;;  %v1704_v24 = vadd.f32 %v5299_v4, %v6727_v60 }
 0x179   : > { %v6882_v30 = vadd.f32 %v5333_v20, %v1700_v1  ;;  %v1633_v32 = vpop.f32.mrf.mxu1 }
 0x17a   : > { %v2064_v31 = vpop.f32.mrf.mxu0  ;;  %v1702_v34 = vadd.f32 %v1633_v32, %v6733_v26 }
 0x17b   : > { %v6885_v15 = vadd.f32 %v2064_v31, %v1698_v9  ;;  %v5302_v25 = vpop.f32.mrf.mxu1 }
 0x17c   : > { %v5336_v21 = vpop.f32.mrf.mxu0  ;;  %v1707_v49 = vadd.f32 %v5302_v25, %v6738_v63 }
 0x17d   : > { %v6888_v35 = vadd.f32 %v5336_v21, %v1703_v6  ;;  %v1646_v47 = vpop.f32.mrf.mxu1 }
 0x17e   : > { %v2077_v10 = vpop.f32.mrf.mxu0  ;;  %v1705_v61 = vadd.f32 %v1646_v47, %v6747_v8 }
 0x17f   : > { %v6891_v33 = vadd.f32 %v2077_v10, %v1701_v22  ;;  %v5303_v60 = vpop.f32.mrf.mxu1 }
 0x180   : > { %v5337_v62 = vpop.f32.mrf.mxu0  ;;  %v1708_v51 = vadd.f32 %v5303_v60, %v6753_v43 }
 0x181   : > { %v6894_v58 = vadd.f32 %v5337_v62, %v1704_v24  ;;  %v1649_v26 = vpop.f32.mrf.mxu1 }
 0x182   : > { %v2080_v50 = vpop.f32.mrf.mxu0  ;;  %v1706_v1 = vadd.f32 %v1649_v26, %v6761_v17 }
 0x183   : > { %v6897_v13 = vadd.f32 %v2080_v50, %v1702_v34  ;;  %v5306_v63 = vpop.f32.mrf.mxu1 }
 0x184   : > { %v5340_v45 = vpop.f32.mrf.mxu0  ;;  %v1711_v9 = vadd.f32 %v5306_v63, %v6767_v23 }
 0x185   : > { %v6900_v42 = vadd.f32 %v5340_v45, %v1707_v49  ;;  %v1662_v8 = vpop.f32.mrf.mxu1 }
 0x186   : > { %v2093_v18 = vpop.f32.mrf.mxu0  ;;  %v1709_v6 = vadd.f32 %v1662_v8, %v6776_v48 }
 0x187   : > { %v6903_v36 = vadd.f32 %v2093_v18, %v1705_v61  ;;  %v5307_v43 = vpop.f32.mrf.mxu1 }
 0x188   : > { %v5341_v56 = vpop.f32.mrf.mxu0  ;;  %v1712_v22 = vadd.f32 %v5307_v43, %v6782_v39 }
 0x189   : > { %v6906_v12 = vadd.f32 %v5341_v56, %v1708_v51  ;;  %v1665_v17 = vpop.f32.mrf.mxu1 }
 0x18a   : > { %v2096_v20 = vpop.f32.mrf.mxu0  ;;  %v1710_v24 = vadd.f32 %v1665_v17, %v6788_v5 }
 0x18b   : > { %v6909_v4 = vadd.f32 %v2096_v20, %v1706_v1  ;;  %v5350_v23 = vpop.f32.mrf.mxu1 }
 0x18c   : > { %v5344_v31 = vpop.f32.mrf.mxu0  ;;  %v2440_v34 = vadd.f32 %v5350_v23, %v6793_v29 }
 0x18d   : > { %v6912_v32 = vadd.f32 %v5344_v31, %v1711_v9  ;;  %v2295_v48 = vpop.f32.mrf.mxu1 }
 0x18e   : > { %v2109_v21 = vpop.f32.mrf.mxu0  ;;  %v2438_v49 = vadd.f32 %v2295_v48, %v6800_v7 }
 0x18f   : > { %v6915_v25 = vadd.f32 %v2109_v21, %v1709_v6  ;;  %v5351_v39 = vpop.f32.mrf.mxu1 }
 0x190   : > { %v5345_v10 = vpop.f32.mrf.mxu0  ;;  %v2441_v61 = vadd.f32 %v5351_v39, %v6804_v52 }
 0x191   : > { %v6918_v47 = vadd.f32 %v5345_v10, %v1712_v22  ;;  %v2298_v5 = vpop.f32.mrf.mxu1 }
 0x192   : > { %v2112_v62 = vpop.f32.mrf.mxu0  ;;  %v2439_v51 = vadd.f32 %v2298_v5, %v6809_v3 }
 0x193   : > { %v6921_v60 = vadd.f32 %v2112_v62, %v1710_v24  ;;  %v5354_v29 = vpop.f32.mrf.mxu1 }
 0x194   : > { %v5388_v50 = vpop.f32.mrf.mxu0  ;;  %v2444_v1 = vadd.f32 %v5354_v29, %v6814_v54 }
 0x195   : > { %v6924_v26 = vadd.f32 %v5388_v50, %v2440_v34  ;;  %v2311_v7 = vpop.f32.mrf.mxu1 }
 0x196   : > { %v2734_v45 = vpop.f32.mrf.mxu0  ;;  %v2442_v9 = vadd.f32 %v2311_v7, %v6820_v57 }
 0x197   : > { %v6927_v63 = vadd.f32 %v2734_v45, %v2438_v49  ;;  %v5355_v52 = vpop.f32.mrf.mxu1 }
 0x198   : > { %v5389_v18 = vpop.f32.mrf.mxu0  ;;  %v2445_v6 = vadd.f32 %v5355_v52, %v6823_v40 }
 0x199   : > { %v6930_v8 = vadd.f32 %v5389_v18, %v2441_v61  ;;  %v2314_v3 = vpop.f32.mrf.mxu1 }
 0x19a   : > { %v2737_v56 = vpop.f32.mrf.mxu0  ;;  %v2443_v22 = vadd.f32 %v2314_v3, %v6827_v0 }
 0x19b   : > { %v6933_v43 = vadd.f32 %v2737_v56, %v2439_v51  ;;  %v5358_v54 = vpop.f32.mrf.mxu1 }
 0x19c   : > { %v5392_v20 = vpop.f32.mrf.mxu0  ;;  %v2448_v24 = vadd.f32 %v5358_v54, %v6831_v41 }
 0x19d   : > { %v6936_v17 = vadd.f32 %v5392_v20, %v2444_v1  ;;  %v2327_v57 = vpop.f32.mrf.mxu1 }
 0x19e   : > { %v2750_v31 = vpop.f32.mrf.mxu0  ;;  %v2446_v34 = vadd.f32 %v2327_v57, %v6834_v59 }
 0x19f   : > { %v6939_v23 = vadd.f32 %v2750_v31, %v2442_v9  ;;  %v5359_v40 = vpop.f32.mrf.mxu1 }
 0x1a0   : > { %v5393_v21 = vpop.f32.mrf.mxu0  ;;  %v2449_v49 = vadd.f32 %v5359_v40, %v6837_v2 }
 0x1a1   : > { %v6942_v48 = vadd.f32 %v5393_v21, %v2445_v6  ;;  %v2330_v0 = vpop.f32.mrf.mxu1 }
 0x1a2   : > { %v2753_v10 = vpop.f32.mrf.mxu0  ;;  %v2447_v61 = vadd.f32 %v2330_v0, %v6840_v37 }
 0x1a3   : > { %v6945_v39 = vadd.f32 %v2753_v10, %v2443_v22  ;;  %v5362_v41 = vpop.f32.mrf.mxu1 }
 0x1a4   : > { %v5396_v62 = vpop.f32.mrf.mxu0  ;;  %v2452_v51 = vadd.f32 %v5362_v41, %v6843_v27 }
 0x1a5   : > { %v6948_v5 = vadd.f32 %v5396_v62, %v2448_v24  ;;  %v2343_v59 = vpop.f32.mrf.mxu1 }
 0x1a6   : > { %v2766_v50 = vpop.f32.mrf.mxu0  ;;  %v2450_v1 = vadd.f32 %v2343_v59, %v6846_v44 }
 0x1a7   : > { %v6951_v29 = vadd.f32 %v2766_v50, %v2446_v34  ;;  %v5363_v2 = vpop.f32.mrf.mxu1 }
 0x1a8   : > { %v5397_v45 = vpop.f32.mrf.mxu0  ;;  %v2453_v9 = vadd.f32 %v5363_v2, %v6849_v11 }
 0x1a9   : > { %v6954_v7 = vadd.f32 %v5397_v45, %v2449_v49  ;;  %v2346_v37 = vpop.f32.mrf.mxu1 }
 0x1aa   : > { %v2769_v18 = vpop.f32.mrf.mxu0  ;;  %v2451_v6 = vadd.f32 %v2346_v37, %v6858_v55 }
 0x1ab   : > { %v6957_v52 = vadd.f32 %v2769_v18, %v2447_v61  ;;  %v5366_v27 = vpop.f32.mrf.mxu1 }
 0x1ac   : > { %v5400_v56 = vpop.f32.mrf.mxu0  ;;  %v2456_v22 = vadd.f32 %v5366_v27, %v6864_v38 }
 0x1ad   : > { %v6960_v3 = vadd.f32 %v5400_v56, %v2452_v51  ;;  %v2359_v44 = vpop.f32.mrf.mxu1 }
 0x1ae   : > { %v2782_v20 = vpop.f32.mrf.mxu0  ;;  %v2454_v24 = vadd.f32 %v2359_v44, %v6867_v19 }
 0x1af   : > { %v6963_v54 = vadd.f32 %v2782_v20, %v2450_v1  ;;  %v5367_v11 = vpop.f32.mrf.mxu1 }
 0x1b0   : > { %v5401_v31 = vpop.f32.mrf.mxu0  ;;  %v2457_v34 = vadd.f32 %v5367_v11, %v6870_v16 }
 0x1b1   : > { %v6966_v57 = vadd.f32 %v5401_v31, %v2453_v9  ;;  %v2362_v55 = vpop.f32.mrf.mxu1 }
 0x1b2   : > { %v2785_v21 = vpop.f32.mrf.mxu0  ;;  %v2455_v49 = vadd.f32 %v2362_v55, %v6873_v28 }
 0x1b3   : > { %v6969_v40 = vadd.f32 %v2785_v21, %v2451_v6  ;;  %v5370_v38 = vpop.f32.mrf.mxu1 }
 0x1b4   : > { %v5404_v10 = vpop.f32.mrf.mxu0  ;;  %v2460_v61 = vadd.f32 %v5370_v38, %v6876_v46 }
 0x1b5   : > { %v6972_v0 = vadd.f32 %v5404_v10, %v2456_v22  ;;  %v2375_v19 = vpop.f32.mrf.mxu1 }
 0x1b6   : > { %v2798_v62 = vpop.f32.mrf.mxu0  ;;  %v2458_v51 = vadd.f32 %v2375_v19, %v6879_v14 }
 0x1b7   : > { %v6975_v41 = vadd.f32 %v2798_v62, %v2454_v24  ;;  %v5371_v16 = vpop.f32.mrf.mxu1 }
 0x1b8   : > { %v5405_v50 = vpop.f32.mrf.mxu0  ;;  %v2461_v1 = vadd.f32 %v5371_v16, %v6882_v30 }
 0x1b9   : > { %v6978_v59 = vadd.f32 %v5405_v50, %v2457_v34  ;;  %v2378_v28 = vpop.f32.mrf.mxu1 }
 0x1ba   : > { %v2801_v45 = vpop.f32.mrf.mxu0  ;;  %v2459_v9 = vadd.f32 %v2378_v28, %v6885_v15 }
 0x1bb   : > { %v6981_v2 = vadd.f32 %v2801_v45, %v2455_v49  ;;  %v5374_v46 = vpop.f32.mrf.mxu1 }
 0x1bc   : > { %v5408_v18 = vpop.f32.mrf.mxu0  ;;  %v2464_v6 = vadd.f32 %v5374_v46, %v6888_v35 }
 0x1bd   : > { %v6984_v37 = vadd.f32 %v5408_v18, %v2460_v61  ;;  %v2391_v14 = vpop.f32.mrf.mxu1 }
 0x1be   : > { %v2814_v56 = vpop.f32.mrf.mxu0  ;;  %v2462_v22 = vadd.f32 %v2391_v14, %v6891_v33 }
 0x1bf   : > { %v6987_v27 = vadd.f32 %v2814_v56, %v2458_v51  ;;  %v5375_v30 = vpop.f32.mrf.mxu1 }
 0x1c0   : > { %v5409_v20 = vpop.f32.mrf.mxu0  ;;  %v2465_v24 = vadd.f32 %v5375_v30, %v6894_v58 }
 0x1c1   : > { %v6990_v44 = vadd.f32 %v5409_v20, %v2461_v1  ;;  %v2394_v15 = vpop.f32.mrf.mxu1 }
 0x1c2   : > { %v2817_v31 = vpop.f32.mrf.mxu0  ;;  %v2463_v34 = vadd.f32 %v2394_v15, %v6897_v13 }
 0x1c3   : > { %v6993_v11 = vadd.f32 %v2817_v31, %v2459_v9  ;;  %v5378_v35 = vpop.f32.mrf.mxu1 }
 0x1c4   : > { %v5412_v21 = vpop.f32.mrf.mxu0  ;;  %v2468_v49 = vadd.f32 %v5378_v35, %v6900_v42 }
 0x1c5   : > { %v6996_v55 = vadd.f32 %v5412_v21, %v2464_v6  ;;  %v2407_v33 = vpop.f32.mrf.mxu1 }
 0x1c6   : > { %v2830_v10 = vpop.f32.mrf.mxu0  ;;  %v2466_v61 = vadd.f32 %v2407_v33, %v6903_v36 }
 0x1c7   : > { %v6999_v38 = vadd.f32 %v2830_v10, %v2462_v22  ;;  %v5379_v58 = vpop.f32.mrf.mxu1 }
 0x1c8   : > { %v5413_v62 = vpop.f32.mrf.mxu0  ;;  %v2469_v51 = vadd.f32 %v5379_v58, %v6906_v12 }
 0x1c9   : > { %v7002_v19 = vadd.f32 %v5413_v62, %v2465_v24  ;;  %v2410_v13 = vpop.f32.mrf.mxu1  ;;  %v3835_v62 = vpop.permute.xlu0 %3834 }
 0x1ca   : > { %v2833_v50 = vpop.f32.mrf.mxu0  ;;  %v2467_v1 = vadd.f32 %v2410_v13, %v6909_v4 }
 0x1cb   : > { %v7005_v16 = vadd.f32 %v2833_v50, %v2463_v34  ;;  %v5382_v42 = vpop.f32.mrf.mxu1 }
 0x1cc   : > { %v5416_v45 = vpop.f32.mrf.mxu0  ;;  %v2472_v9 = vadd.f32 %v5382_v42, %v6912_v32 }
 0x1cd   : > { %v7008_v28 = vadd.f32 %v5416_v45, %v2468_v49  ;;  %v2423_v36 = vpop.f32.mrf.mxu1 }
 0x1ce   : > { %v2846_v18 = vpop.f32.mrf.mxu0  ;;  %v2470_v6 = vadd.f32 %v2423_v36, %v6915_v25 }
 0x1cf   : > { %v7011_v46 = vadd.f32 %v2846_v18, %v2466_v61  ;;  %v5383_v12 = vpop.f32.mrf.mxu1 }
 0x1d0   : > { %v5417_v56 = vpop.f32.mrf.mxu0  ;;  %v2473_v22 = vadd.f32 %v5383_v12, %v6918_v47  ;;  %v3840_v12 = vpop.permute.xlu0 %3839 }
 0x1d1   : > { %v7014_v14 = vadd.f32 %v5417_v56, %v2469_v51  ;;  %v2426_v4 = vpop.f32.mrf.mxu1 }
 0x1d2   : > { %v2849_v20 = vpop.f32.mrf.mxu0  ;;  %v2471_v24 = vadd.f32 %v2426_v4, %v6921_v60  ;;  %v7032_v60 = vld [vmem:[%s7500_s2] ss:$0 sm:$0xff] }
 0x1d3   : > { %v7017_v30 = vadd.f32 %v2849_v20, %v2467_v1  ;;  %v5426_v32 = vpop.f32.mrf.mxu1  ;;  %v7038_v1 = vld [vmem:[%s7501_s3] ss:$0 sm:$0xff] }
 0x1d4   : > { %v5420_v31 = vpop.f32.mrf.mxu0  ;;  %v3326_v47 = vadd.f32 %v5426_v32, %v6924_v26 }
 0x1d5   : > { %v7020_v15 = vadd.f32 %v5420_v31, %v2472_v9  ;;  %v3181_v35 = vpop.f32.mrf.mxu1 }
 0x1d6   : > { %v2862_v21 = vpop.f32.mrf.mxu0  ;;  %v3324_v51 = vadd.f32 %v3181_v35, %v6927_v63 }
 0x1d7   : > { %v7022_v34 = vadd.f32 %v2862_v21, %v2470_v6  ;;  %v5427_v49 = vpop.f32.mrf.mxu1  ;;  %v3845_v6 = vpop.permute.xlu1 %3844 }
 0x1d8   : > { %v5421_v25 = vpop.f32.mrf.mxu0  ;;  %v3327_v26 = vadd.f32 %v5427_v49, %v6930_v8 }
 0x1d9   : > { %7547 = vst [vmem:[#allocation10_spill] sm:$0xff] %v7022_v34  ;;  %v7024_v10 = vadd.f32 %v5421_v25, %v2473_v22  ;;  %v3184_v58 = vpop.f32.mrf.mxu1 }
 0x1da   : > { %v2865_v33 = vpop.f32.mrf.mxu0  ;;  %v3325_v4 = vadd.f32 %v3184_v58, %v6933_v43 }
 0x1db   : > { %7548 = vst [vmem:[#allocation12_spill] sm:$0xff] %v7024_v10  ;;  %v7027_v61 = vadd.f32 %v2865_v33, %v2471_v24  ;;  %v5430_v45 = vpop.f32.mrf.mxu1 }
 0x1dc   : > { %v5464_v50 = vpop.f32.mrf.mxu0  ;;  %v3330_v35 = vadd.f32 %v5430_v45, %v6936_v17  ;;  %v3850_v17 = vpop.permute.xlu1 %3849 }
 0x1dd   : > { %7549 = vst [vmem:[#allocation3_spill] sm:$0xff] %v7027_v61  ;;  %v3640_v13 = vadd.f32 %v5464_v50, %v3326_v47  ;;  %v3197_v36 = vpop.f32.mrf.mxu1  ;;  %v3855_v45 = vpop.permute.xlu0 %3854 }
 0x1de   : > { %v3495_v42 = vpop.f32.mrf.mxu0  ;;  %v3328_v43 = vadd.f32 %v3197_v36, %v6939_v23 }
 0x1df   : > { %v3683_v18 = vmul.f32 %v7032_v60, %v3640_v13  ;;  %v3638_v9 = vadd.f32 %v3495_v42, %v3324_v51  ;;  %v5431_v31 = vpop.f32.mrf.mxu1 }
 0x1e0   : > { %v5465_v56 = vpop.f32.mrf.mxu0  ;;  %v3331_v58 = vadd.f32 %v5431_v31, %v6942_v48 }
 0x1e1   : > { %v3726_v20 = vadd.f32 %v7038_v1, %v3683_v18  ;;  %v3681_v63 = vmul.f32 %v7032_v60, %v3638_v9  ;;  %v3641_v22 = vadd.f32 %v5465_v56, %v3327_v26  ;;  %v3200_v25 = vpop.f32.mrf.mxu1 }
 0x1e2   : > { %v3498_v24 = vpop.f32.mrf.mxu0 }
 0x1e3   : > { %v3762_v32 = vmax.f32 %v3726_v20, 0.0  ;;  %v3724_v21 = vadd.f32 %v7038_v1, %v3681_v63  ;;  %v3684_v8 = vmul.f32 %v7032_v60, %v3641_v22  ;;  %v3639_v49 = vadd.f32 %v3498_v24, %v3325_v4  ;;  %v5434_v42 = vpop.f32.mrf.mxu1 }
 0x1e4   : > { %v5468_v33 = vpop.f32.mrf.mxu0  ;;  %v7057_v23 = vadd.f32 %v5434_v42, %v6948_v5 }
 0x1e5   : > { %v4014_v47 = vmul.f32 %v3845_v6, %v3762_v32  ;;  %v3760_v50 = vmax.f32 %v3724_v21, 0.0  ;;  %v3727_v51 = vadd.f32 %v7038_v1, %v3684_v8  ;;  %v3682_v13 = vmul.f32 %v7032_v60, %v3639_v49  ;;  %v3213_v36 = vpop.f32.mrf.mxu1 }
 0x1e6   : > { %v3644_v26 = vadd.f32 %v5468_v33, %v3330_v35  ;;  %v3511_v18 = vpop.f32.mrf.mxu0  ;;  %v7053_v6 = vadd.f32 %v3200_v25, %v6945_v39  ;;  %v7062_v39 = vadd.f32 %v3213_v36, %v6951_v29  ;;  %v3865_v29 = vpop.permute.xlu0 %3864 }
 0x1e7   : > { %v4951_v9 = vpack.c.bf16 %v4014_v47, %v4014_v47  ;;  %v4012_v56 = vmul.f32 %v3835_v62, %v3760_v50  ;;  %v3763_v20 = vmax.f32 %v3727_v51, 0.0  ;;  %v3725_v63 = vadd.f32 %v7038_v1, %v3682_v13  ;;  %v5435_v25 = vpop.f32.mrf.mxu1 }
 0x1e8   : > { %v3687_v48 = vmul.f32 %v7032_v60, %v3644_v26  ;;  %v3642_v22 = vadd.f32 %v3511_v18, %v3328_v43  ;;  %v5469_v4 = vpop.f32.mrf.mxu0 }
 0x1e9   : > { %v4187_v31 = vshrl.u32 %v4951_v9, 16  ;;  %v4190_v24 = vshll.u32 %v4951_v9, 16  ;;  %v4949_v32 = vpack.c.bf16 %v4012_v56, %v4012_v56  ;;  %v4015_v21 = vmul.f32 %v3850_v17, %v3763_v20  ;;  %v3216_v26 = vpop.f32.mrf.mxu1 }
 0x1ea   : > { %v3761_v8 = vmax.f32 %v3725_v63, 0.0  ;;  %v3730_v62 = vadd.f32 %v7038_v1, %v3687_v48  ;;  %v3685_v35 = vmul.f32 %v7032_v60, %v3642_v22  ;;  %v7065_v5 = vpop.f32.mrf.mxu0  ;;  %v7073_v20 = vadd.f32 %v5435_v25, %v6954_v7 }
 0x1eb   : > { %v4189_v49 = vrot.slane %v4187_v31, 6  ;;  %v4192_v33 = vrot.slane %v4190_v24, 7  ;;  %v4168_v47 = vshrl.u32 %v4949_v32, 16  ;;  %v4171_v50 = vshll.u32 %v4949_v32, 16  ;;  %v5438_v24 = vpop.f32.mrf.mxu1 }
 0x1ec   : > { %v4952_v51 = vpack.c.bf16 %v4015_v21, %v4015_v21  ;;  %v4013_v43 = vmul.f32 %v3840_v12, %v3761_v8  ;;  %v3766_v13 = vmax.f32 %v3730_v62, 0.0  ;;  %v3728_v42 = vadd.f32 %v7038_v1, %v3685_v35  ;;  %v7068_v18 = vpop.f32.mrf.mxu0  ;;  %v4566_v12 = vld [vmem:[%s6193_s21 + $0x8] sm:$0xe]  ;;  %v7082_v21 = vpop.permute.xlu1 %3859 }
 0x1ed   : > { %v7070_v17 = vor.u32 %v4192_v33, %v4189_v49  ;;  %v4170_v9 = vrot.slane %v4168_v47, 6  ;;  %v4173_v56 = vrot.slane %v4171_v50, 7  ;;  %v7550_v63 = vmov 0  ;;  %v3229_v50 = vpop.f32.mrf.mxu1 }
 0x1ee   : > { %v7551_v63 = vsel %vm7077_vm0, 4294967295, %v7550_v63  ;;  %v4197_v48 = vshrl.u32 %v4952_v51, 16  ;;  %v4200_v36 = vshll.u32 %v4952_v51, 16  ;;  %v4950_v22 = vpack.c.bf16 %v4013_v43, %v4013_v43  ;;  %v3527_v32 = vpop.f32.mrf.mxu0 }
 0x1ef   : > { %7552 = vst [vmem:[#allocation4_spill] sm:$0xff] %v7551_v63  ;;  %v4018_v31 = vmul.f32 %v3865_v29, %v3766_v13  ;;  %v4195_v8 = vrot.slane %v7070_v17, 4  ;;  %v4174_v7 = vor.u32 %v4173_v56, %v4170_v9  ;;  %v3764_v62 = vmax.f32 %v3728_v42, 0.0 }
 0x1f0   : > { %v3645_v35 = vadd.f32 %v5469_v4, %v3331_v58  ;;  %v4199_v25 = vrot.slane %v4197_v48, 6  ;;  %v4202_v49 = vrot.slane %v4200_v36, 7  ;;  %v4177_v33 = vshrl.u32 %v4950_v22, 16  ;;  %v5473_v53 = vpop.f32.mrf.mxu0  ;;  %v5439_v48 = vpop.f32.mrf.mxu1 }
 0x1f1   : > { %v4180_v47 = vshll.u32 %v4950_v22, 16  ;;  %v4175_v43 = vrot.slane %v4174_v7, 4  ;;  %v4567_v13 = vsel %vm7077_vm0, %v4174_v7, %v4566_v12  ;;  %v4955_v29 = vpack.c.bf16 %v4018_v31, %v4018_v31 }
 0x1f2   : > { %v4016_v9 = vmul.f32 %v3855_v45, %v3764_v62  ;;  %4568 = vst [vmem:[%s6193_s21 + $0x8] sm:$0xe] %v4567_v13  ;;  %v4203_v58 = vor.u32 %v4202_v49, %v4199_v25  ;;  %v4179_v4 = vrot.slane %v4177_v33, 6  ;;  %v3688_v56 = vmul.f32 %v7032_v60, %v3645_v35  ;;  %v3530_v36 = vpop.f32.mrf.mxu0  ;;  %v3232_v7 = vpop.f32.mrf.mxu1 }
 0x1f3   : > { %v4182_v42 = vrot.slane %v4180_v47, 7  ;;  %v4227_v22 = vshrl.u32 %v4955_v29, 16  ;;  %v4230_v61 = vshll.u32 %v4955_v29, 16  ;;  %v3333_v34 = vadd.f32 %v3216_v26, %v6957_v52  ;;  %v3870_v25 = vpop.permute.xlu1 %3869 }
 0x1f4   : > { %v4953_v10 = vpack.c.bf16 %v4016_v9, %v4016_v9  ;;  %v4204_v63 = vsel %vm7087_vm1, %v4195_v8, %v4203_v58  ;;  %v4205_v12 = vrot.slane %v4203_v58, 4  ;;  %v3731_v45 = vadd.f32 %v7038_v1, %v3688_v56  ;;  %v7099_v62 = vpop.f32.mrf.mxu0  ;;  %v5442_v29 = vpop.f32.mrf.mxu1 }
 0x1f5   : > { %v4183_v31 = vor.u32 %v4182_v42, %v4179_v4  ;;  %4571 = vst.msk [vmem:[%s6193_s21 + $0x14] sm:$0xf] %vm4048_vm7, %v4204_v63  ;;  %v4229_v35 = vrot.slane %v4227_v22, 6  ;;  %v4232_v49 = vrot.slane %v4230_v61, 7  ;;  %v3643_v13 = vadd.f32 %v7065_v5, %v7053_v6  ;;  %v3875_v56 = vpop.permute.xlu0 %3874 }
 0x1f6   : > { %v4207_v33 = vshrl.u32 %v4953_v10, 16  ;;  %v4210_v47 = vshll.u32 %v4953_v10, 16  ;;  %v3767_v8 = vmax.f32 %v3731_v45, 0.0  ;;  %v7107_v9 = vpop.f32.mrf.mxu0  ;;  %v3338_v10 = vadd.f32 %v5438_v24, %v6960_v3  ;;  %v3245_v5 = vpop.f32.mrf.mxu1 }
 0x1f7   : > { %v4184_v52 = vsel %vm7087_vm1, %v4175_v43, %v4183_v31  ;;  %v4185_v26 = vrot.slane %v4183_v31, 4  ;;  %v7111_v58 = vor.u32 %v4232_v49, %v4229_v35  ;;  %v3686_v42 = vmul.f32 %v7032_v60, %v3643_v13  ;;  %v3880_v35 = vpop.permute.xlu1 %3879 }
 0x1f8   : > { %4569 = vst.msk [vmem:[%s6193_s21 + $0xc] sm:$0xf] %vm4048_vm7, %v4184_v52  ;;  %v4209_v63 = vrot.slane %v4207_v33, 6  ;;  %v4212_v61 = vrot.slane %v4210_v47, 7  ;;  %v4019_v4 = vmul.f32 %v3870_v25, %v3767_v8  ;;  %v3648_v6 = vadd.f32 %v7068_v18, %v7057_v23  ;;  %v7132_v18 = vpop.f32.mrf.mxu0 }
 0x1f9   : > { %v4194_v43 = vsel %vm7087_vm1, %v4185_v26, %v7070_v17  ;;  %v4235_v22 = vrot.slane %v7111_v58, 4  ;;  %v3336_v3 = vadd.f32 %v3229_v50, %v6963_v54  ;;  %v3646_v24 = vadd.f32 %v3527_v32, %v7062_v39  ;;  %v7140_v32 = vpop.f32.mrf.mxu1 }
 0x1fa   : > { %4570 = vst.msk [vmem:[%s6193_s21 + $0x10] sm:$0xf] %vm4048_vm7, %v4194_v43  ;;  %v7123_v31 = vor.u32 %v4212_v61, %v4209_v63  ;;  %v4956_v17 = vpack.c.bf16 %v4019_v4, %v4019_v4  ;;  %v3729_v45 = vadd.f32 %v7038_v1, %v3686_v42  ;;  %v3691_v25 = vmul.f32 %v7032_v60, %v3648_v6  ;;  %v7151_v61 = vpop.f32.mrf.mxu0  ;;  %v3885_v43 = vpop.permute.xlu0 %3884 }
 0x1fb   : > { %v7130_v23 = vadd.f32 %v5439_v48, %v6966_v57  ;;  %v3689_v54 = vmul.f32 %v7032_v60, %v3646_v24  ;;  %v3649_v39 = vadd.f32 %v5473_v53, %v7073_v20  ;;  %v3647_v8 = vadd.f32 %v3530_v36, %v3333_v34 }
 0x1fc   : > { %v4214_v49 = vsel %vm7087_vm1, %v4205_v12, %v7123_v31  ;;  %v4215_v33 = vrot.slane %v7123_v31, 4  ;;  %v4237_v50 = vshrl.u32 %v4956_v17, 16  ;;  %v4240_v57 = vshll.u32 %v4956_v17, 16  ;;  %v3890_v17 = vpop.permute.xlu1 %3889 }
 0x1fd   : > { %4572 = vst.msk [vmem:[%s6193_s21 + $0x18] sm:$0xf] %vm4048_vm7, %v4214_v49  ;;  %v3765_v48 = vmax.f32 %v3729_v45, 0.0  ;;  %v3734_v47 = vadd.f32 %v7038_v1, %v3691_v25  ;;  %v3732_v52 = vadd.f32 %v7038_v1, %v3689_v54  ;;  %v3692_v26 = vmul.f32 %v7032_v60, %v3649_v39 }
 0x1fe   : > { %v7148_v12 = vadd.f32 %v3232_v7, %v6969_v40  ;;  %v4239_v13 = vrot.slane %v4237_v50, 6  ;;  %v4242_v63 = vrot.slane %v4240_v57, 7  ;;  %v3690_v6 = vmul.f32 %v7032_v60, %v3647_v8  ;;  %v7158_v40 = vpop.f32.mrf.mxu1  ;;  %v7167_v57 = vpop.f32.mrf.mxu0 }
 0x1ff   : > { %v4017_v53 = vmul.f32 %v7082_v21, %v3765_v48  ;;  %v3770_v20 = vmax.f32 %v3734_v47, 0.0  ;;  %v3768_v4 = vmax.f32 %v3732_v52, 0.0  ;;  %v3735_v42 = vadd.f32 %v7038_v1, %v3692_v26  ;;  %v3895_v8 = vpop.permute.xlu0 %3894 }
 0x200   : > { %v7156_v24 = vadd.f32 %v5442_v29, %v6972_v0  ;;  %v4243_v34 = vor.u32 %v4242_v63, %v4239_v13  ;;  %v3652_v21 = vadd.f32 %v7099_v62, %v3338_v10  ;;  %v3733_v49 = vadd.f32 %v7038_v1, %v3690_v6  ;;  %v5446_v47 = vpop.f32.mrf.mxu1  ;;  %v7174_v6 = vpop.f32.mrf.mxu0 }
 0x201   : > { %v4954_v36 = vpack.c.bf16 %v4017_v53, %v4017_v53  ;;  %v4022_v7 = vmul.f32 %v3885_v43, %v3770_v20  ;;  %v4020_v45 = vmul.f32 %v3875_v56, %v3768_v4  ;;  %v3771_v25 = vmax.f32 %v3735_v42, 0.0 }
 0x202   : > { %v7163_v54 = vadd.f32 %v3245_v5, %v6975_v41  ;;  %v4244_v0 = vsel %vm7087_vm1, %v4235_v22, %v4243_v34  ;;  %v4245_v29 = vrot.slane %v4243_v34, 4  ;;  %v3769_v56 = vmax.f32 %v3733_v49, 0.0  ;;  %v7176_v34 = vpop.permute.xlu1 %3899 }
 0x203   : > { %v4217_v39 = vshrl.u32 %v4954_v36, 16  ;;  %v4220_v50 = vshll.u32 %v4954_v36, 16  ;;  %4575 = vst.msk [vmem:[%s6193_s21 + $0x24] sm:$0xf] %vm4048_vm7, %v4244_v0  ;;  %v4959_v48 = vpack.c.bf16 %v4022_v7, %v4022_v7  ;;  %v4957_v62 = vpack.c.bf16 %v4020_v45, %v4020_v45 }
 0x204   : > { %v4023_v10 = vmul.f32 %v3890_v17, %v3771_v25  ;;  %v3695_v41 = vmul.f32 %v7032_v60, %v3652_v21  ;;  %v3650_v5 = vadd.f32 %v7107_v9, %v3336_v3  ;;  %v4021_v4 = vmul.f32 %v3880_v35, %v3769_v56  ;;  %v3261_v9 = vpop.f32.mrf.mxu1  ;;  %v5481_v56 = vpop.f32.mrf.mxu0 }
 0x205   : > { %v4219_v52 = vrot.slane %v4217_v39, 6  ;;  %v4222_v26 = vrot.slane %v4220_v50, 7  ;;  %v4267_v22 = vshrl.u32 %v4959_v48, 16  ;;  %v4270_v13 = vshll.u32 %v4959_v48, 16 }
 0x206   : > { %v4247_v63 = vshrl.u32 %v4957_v62, 16  ;;  %v4250_v53 = vshll.u32 %v4957_v62, 16  ;;  %v4960_v43 = vpack.c.bf16 %v4023_v10, %v4023_v10  ;;  %v3738_v42 = vadd.f32 %v7038_v1, %v3695_v41 }
 0x207   : > { %v4223_v20 = vor.u32 %v4222_v26, %v4219_v52  ;;  %v4269_v36 = vrot.slane %v4267_v22, 6  ;;  %v4272_v7 = vrot.slane %v4270_v13, 7  ;;  %v4958_v39 = vpack.c.bf16 %v4021_v4, %v4021_v4  ;;  %v5447_v13 = vpop.f32.mrf.mxu1 }
 0x208   : > { %v4249_v21 = vrot.slane %v4247_v63, 6  ;;  %v4252_v17 = vrot.slane %v4250_v53, 7  ;;  %v4277_v25 = vshrl.u32 %v4960_v43, 16  ;;  %v4280_v35 = vshll.u32 %v4960_v43, 16 }
 0x209   : > { %v4224_v3 = vsel %vm7087_vm1, %v4215_v33, %v4223_v20  ;;  %v4225_v45 = vrot.slane %v4223_v20, 4  ;;  %v4273_v49 = vor.u32 %v4272_v7, %v4269_v36  ;;  %v3774_v50 = vmax.f32 %v3738_v42, 0.0  ;;  %v3905_v33 = vpop.permute.xlu0 %3904  ;;  %v7197_v20 = vpop.permute.xlu1 %4009 }
 0x20a   : > { %4573 = vst.msk [vmem:[%s6193_s21 + $0x1c] sm:$0xf] %vm4048_vm7, %v4224_v3  ;;  %v4253_v0 = vor.u32 %v4252_v17, %v4249_v21  ;;  %v4279_v62 = vrot.slane %v4277_v25, 6  ;;  %v4282_v31 = vrot.slane %v4280_v35, 7  ;;  %v3693_v10 = vmul.f32 %v7032_v60, %v3650_v5  ;;  %v3562_v3 = vpop.f32.mrf.mxu0 }
 0x20b   : > { %v4234_v48 = vsel %vm7087_vm1, %v4225_v45, %v7111_v58  ;;  %v4275_v52 = vrot.slane %v4273_v49, 4  ;;  %v4257_v22 = vshrl.u32 %v4958_v39, 16  ;;  %v4260_v58 = vshll.u32 %v4958_v39, 16 }
 0x20c   : > { %4574 = vst.msk [vmem:[%s6193_s21 + $0x20] sm:$0xf] %vm4048_vm7, %v4234_v48  ;;  %v4254_v26 = vsel %vm7087_vm1, %v4245_v29, %v4253_v0  ;;  %v4255_v41 = vrot.slane %v4253_v0, 4  ;;  %v7194_v63 = vor.u32 %v4282_v31, %v4279_v62  ;;  %v4026_v53 = vmul.f32 %v3905_v33, %v3774_v50  ;;  %v7228_v31 = vpop.f32.mrf.mxu0 }
 0x20d   : > { %4576 = vst.msk [vmem:[%s6193_s21 + $0x28] sm:$0xf] %vm4048_vm7, %v4254_v26  ;;  %v3736_v5 = vadd.f32 %v7038_v1, %v3693_v10  ;;  %v4259_v43 = vrot.slane %v4257_v22, 6  ;;  %v3343_v4 = vadd.f32 %v7140_v32, %v6978_v59  ;;  %v3653_v29 = vadd.f32 %v7132_v18, %v7130_v23  ;;  %v3264_v18 = vpop.f32.mrf.mxu1  ;;  %v3915_v10 = vpop.permute.xlu1 %3914 }
 0x20e   : > { %v7205_v42 = vadd.f32 %v7158_v40, %v6981_v2  ;;  %v4284_v36 = vsel %vm7087_vm1, %v4275_v52, %v7194_v63  ;;  %v4285_v7 = vrot.slane %v7194_v63, 4  ;;  %v4262_v21 = vrot.slane %v4260_v58, 7 }
 0x20f   : > { %v4963_v17 = vpack.c.bf16 %v4026_v53, %v4026_v53  ;;  %4579 = vst.msk [vmem:[%s6193_s21 + $0x34] sm:$0xf] %vm4048_vm7, %v4284_v36  ;;  %v3772_v45 = vmax.f32 %v3736_v5, 0.0  ;;  %v3696_v59 = vmul.f32 %v7032_v60, %v3653_v29  ;;  %v3651_v23 = vadd.f32 %v7151_v61, %v7148_v12  ;;  %v3910_v12 = vpop.permute.xlu0 %3909 }
 0x210   : > { %v7217_v2 = vadd.f32 %v5446_v47, %v6984_v37  ;;  %v4263_v32 = vor.u32 %v4262_v21, %v4259_v43  ;;  %v3656_v35 = vadd.f32 %v7167_v57, %v7156_v24  ;;  %v7224_v48 = vadd.f32 %v3261_v9, %v6987_v27  ;;  %v5450_v9 = vpop.f32.mrf.mxu1  ;;  %v7248_v21 = vpop.f32.mrf.mxu0 }
 0x211   : > { %v4307_v40 = vshrl.u32 %v4963_v17, 16  ;;  %v4310_v25 = vshll.u32 %v4963_v17, 16  ;;  %v4024_v0 = vmul.f32 %v3895_v8, %v3772_v45  ;;  %v3739_v39 = vadd.f32 %v7038_v1, %v3696_v59 }
 0x212   : > { %v3694_v50 = vmul.f32 %v7032_v60, %v3651_v23  ;;  %v4264_v37 = vsel %vm7087_vm1, %v4255_v41, %v4263_v32  ;;  %v4265_v61 = vrot.slane %v4263_v32, 4  ;;  %v3699_v27 = vmul.f32 %v7032_v60, %v3656_v35 }
 0x213   : > { %v4309_v47 = vrot.slane %v4307_v40, 6  ;;  %v4312_v62 = vrot.slane %v4310_v25, 7  ;;  %4577 = vst.msk [vmem:[%s6193_s21 + $0x2c] sm:$0xf] %vm4048_vm7, %v4264_v37  ;;  %v4961_v24 = vpack.c.bf16 %v4024_v0, %v4024_v0  ;;  %v3775_v57 = vmax.f32 %v3739_v39, 0.0  ;;  %v7253_v45 = vpop.permute.xlu0 %3919  ;;  %v7262_v37 = vpop.f32.mrf.mxu0 }
 0x214   : > { %v3737_v8 = vadd.f32 %v7038_v1, %v3694_v50  ;;  %v4274_v33 = vsel %vm7087_vm1, %v4265_v61, %v4273_v49  ;;  %v3654_v26 = vadd.f32 %v7174_v6, %v7163_v54  ;;  %v7241_v41 = vadd.f32 %v5447_v13, %v6990_v44  ;;  %v7251_v13 = vpop.f32.mrf.mxu1 }
 0x215   : > { %v7236_v52 = vor.u32 %v4312_v62, %v4309_v47  ;;  %4578 = vst.msk [vmem:[%s6193_s21 + $0x30] sm:$0xf] %vm4048_vm7, %v4274_v33  ;;  %v4287_v22 = vshrl.u32 %v4961_v24, 16  ;;  %v4290_v58 = vshll.u32 %v4961_v24, 16  ;;  %v4027_v53 = vmul.f32 %v3910_v12, %v3775_v57 }
 0x216   : > { %v3773_v5 = vmax.f32 %v3737_v8, 0.0  ;;  %v3742_v29 = vadd.f32 %v7038_v1, %v3699_v27  ;;  %v3697_v49 = vmul.f32 %v7032_v60, %v3654_v26  ;;  %v3657_v36 = vadd.f32 %v5481_v56, %v3343_v4  ;;  %v3925_v56 = vpop.permute.xlu1 %3924  ;;  %v5451_v62 = vpop.f32.mrf.mxu1 }
 0x217   : > { %v4315_v43 = vrot.slane %v7236_v52, 4  ;;  %v4289_v17 = vrot.slane %v4287_v22, 6  ;;  %v4292_v54 = vrot.slane %v4290_v58, 7  ;;  %v4964_v6 = vpack.c.bf16 %v4027_v53, %v4027_v53  ;;  %v3930_v26 = vpop.permute.xlu0 %3929 }
 0x218   : > { %v4025_v44 = vmul.f32 %v7176_v34, %v3773_v5  ;;  %v3778_v59 = vmax.f32 %v3742_v29, 0.0  ;;  %v3740_v23 = vadd.f32 %v7038_v1, %v3697_v49  ;;  %v3700_v32 = vmul.f32 %v7032_v60, %v3657_v36  ;;  %v7274_v5 = vpop.f32.mrf.mxu0 }
 0x219   : > { %v7258_v40 = vadd.f32 %v3264_v18, %v6993_v11  ;;  %v4293_v4 = vor.u32 %v4292_v54, %v4289_v17  ;;  %v4317_v25 = vshrl.u32 %v4964_v6, 16  ;;  %v4320_v35 = vshll.u32 %v4964_v6, 16  ;;  %v3280_v17 = vpop.f32.mrf.mxu1 }
 0x21a   : > { %v4962_v0 = vpack.c.bf16 %v4025_v44, %v4025_v44  ;;  %v4030_v39 = vmul.f32 %v3925_v56, %v3778_v59  ;;  %v3776_v34 = vmax.f32 %v3740_v23, 0.0  ;;  %v3743_v50 = vadd.f32 %v7038_v1, %v3700_v32  ;;  %v7281_v44 = vpop.permute.xlu1 %3934 }
 0x21b   : > { %v3655_v12 = vadd.f32 %v3562_v3, %v7205_v42  ;;  %v4294_v11 = vsel %vm7087_vm1, %v4285_v7, %v4293_v4  ;;  %v4295_v18 = vrot.slane %v4293_v4, 4  ;;  %v4319_v61 = vrot.slane %v4317_v25, 6 }
 0x21c   : > { %v4322_v47 = vrot.slane %v4320_v35, 7  ;;  %4580 = vst.msk [vmem:[%s6193_s21 + $0x38] sm:$0xf] %vm4048_vm7, %v4294_v11  ;;  %v4297_v24 = vshrl.u32 %v4962_v0, 16  ;;  %v4300_v57 = vshll.u32 %v4962_v0, 16  ;;  %v4967_v8 = vpack.c.bf16 %v4030_v39, %v4030_v39  ;;  %v5488_v0 = vpop.f32.mrf.mxu0  ;;  %v5454_v11 = vpop.f32.mrf.mxu1 }
 0x21d   : > { %v4028_v27 = vmul.f32 %v3915_v10, %v3776_v34  ;;  %v3779_v42 = vmax.f32 %v3743_v50, 0.0  ;;  %v3698_v3 = vmul.f32 %v7032_v60, %v3655_v12  ;;  %v7272_v63 = vadd.f32 %v5450_v9, %v6996_v55 }
 0x21e   : > { %v4323_v33 = vor.u32 %v4322_v47, %v4319_v61  ;;  %v4299_v7 = vrot.slane %v4297_v24, 6  ;;  %v4302_v22 = vrot.slane %v4300_v57, 7  ;;  %v4347_v58 = vshrl.u32 %v4967_v8, 16 }
 0x21f   : > { %v4350_v53 = vshll.u32 %v4967_v8, 16  ;;  %v4965_v10 = vpack.c.bf16 %v4028_v27, %v4028_v27  ;;  %v4031_v36 = vmul.f32 %v3930_v26, %v3779_v42  ;;  %v3741_v6 = vadd.f32 %v7038_v1, %v3698_v3  ;;  %v3945_v3 = vpop.permute.xlu1 %3944 }
 0x220   : > { %v4324_v29 = vsel %vm7087_vm1, %v4315_v43, %v4323_v33  ;;  %v4325_v49 = vrot.slane %v4323_v33, 4  ;;  %v4303_v54 = vor.u32 %v4302_v22, %v4299_v7  ;;  %v4349_v55 = vrot.slane %v4347_v58, 6  ;;  %v7311_v58 = vpop.permute.xlu0 %3939 }
 0x221   : > { %4583 = vst.msk [vmem:[%s6193_s21 + $0x44] sm:$0xf] %vm4048_vm7, %v4324_v29  ;;  %v4352_v9 = vrot.slane %v4350_v53, 7  ;;  %v4327_v59 = vshrl.u32 %v4965_v10, 16  ;;  %v4330_v23 = vshll.u32 %v4965_v10, 16  ;;  %v4968_v32 = vpack.c.bf16 %v4031_v36, %v4031_v36 }
 0x222   : > { %v3660_v43 = vadd.f32 %v7228_v31, %v7217_v2  ;;  %v4304_v56 = vsel %vm7087_vm1, %v4295_v18, %v4303_v54  ;;  %v4305_v4 = vrot.slane %v4303_v54, 4  ;;  %v3777_v35 = vmax.f32 %v3741_v6, 0.0 }
 0x223   : > { %v7287_v25 = vor.u32 %v4352_v9, %v4349_v55  ;;  %4581 = vst.msk [vmem:[%s6193_s21 + $0x3c] sm:$0xf] %vm4048_vm7, %v4304_v56  ;;  %v4329_v39 = vrot.slane %v4327_v59, 6  ;;  %v4332_v34 = vrot.slane %v4330_v23, 7  ;;  %v4357_v50 = vshrl.u32 %v4968_v32, 16 }
 0x224   : > { %v4360_v12 = vshll.u32 %v4968_v32, 16  ;;  %v4314_v2 = vsel %vm7087_vm1, %v4305_v4, %v7236_v52  ;;  %v4029_v18 = vmul.f32 %v7253_v45, %v3777_v35  ;;  %v3703_v61 = vmul.f32 %v7032_v60, %v3660_v43  ;;  %v3591_v45 = vpop.f32.mrf.mxu0  ;;  %v3955_v4 = vpop.permute.xlu1 %3954 }
 0x225   : > { %v4355_v31 = vrot.slane %v7287_v25, 4  ;;  %4582 = vst.msk [vmem:[%s6193_s21 + $0x40] sm:$0xf] %vm4048_vm7, %v4314_v2  ;;  %v4333_v47 = vor.u32 %v4332_v34, %v4329_v39  ;;  %v4359_v24 = vrot.slane %v4357_v50, 6  ;;  %v3348_v8 = vadd.f32 %v7251_v13, %v6999_v38  ;;  %v3293_v13 = vpop.f32.mrf.mxu1 }
 0x226   : > { %v4362_v57 = vrot.slane %v4360_v12, 7  ;;  %v4966_v27 = vpack.c.bf16 %v4029_v18, %v4029_v18  ;;  %v3746_v33 = vadd.f32 %v7038_v1, %v3703_v61  ;;  %v3658_v52 = vadd.f32 %v7248_v21, %v7224_v48  ;;  %v5489_v55 = vpop.f32.mrf.mxu0 }
 0x227   : > { %v3351_v42 = vadd.f32 %v5451_v62, %v7002_v19  ;;  %v4334_v26 = vsel %vm7087_vm1, %v4325_v49, %v4333_v47  ;;  %v4335_v7 = vrot.slane %v4333_v47, 4  ;;  %v3661_v38 = vadd.f32 %v7262_v37, %v7241_v41 }
 0x228   : > { %v7307_v22 = vor.u32 %v4362_v57, %v4359_v24  ;;  %4584 = vst.msk [vmem:[%s6193_s21 + $0x48] sm:$0xf] %vm4048_vm7, %v4334_v26  ;;  %v4337_v48 = vshrl.u32 %v4966_v27, 16  ;;  %v4340_v21 = vshll.u32 %v4966_v27, 16  ;;  %v3782_v19 = vmax.f32 %v3746_v33, 0.0  ;;  %v3594_v12 = vpop.f32.mrf.mxu0 }
 0x229   : > { %v3701_v62 = vmul.f32 %v7032_v60, %v3658_v52  ;;  %v3704_v49 = vmul.f32 %v7032_v60, %v3661_v38  ;;  %v7322_v41 = vadd.f32 %v3280_v17, %v7005_v16  ;;  %v3659_v6 = vadd.f32 %v7274_v5, %v7258_v40  ;;  %v5455_v16 = vpop.f32.mrf.mxu1  ;;  %v3950_v5 = vpop.permute.xlu0 %3949 }
 0x22a   : > { %v4364_v53 = vsel %vm7087_vm1, %v4355_v31, %v7307_v22  ;;  %v4365_v29 = vrot.slane %v7307_v22, 4  ;;  %v4339_v37 = vrot.slane %v4337_v48, 6  ;;  %v4342_v10 = vrot.slane %v4340_v21, 7 }
 0x22b   : > { %4587 = vst.msk [vmem:[%s6193_s21 + $0x54] sm:$0xf] %vm4048_vm7, %v4364_v53  ;;  %v4034_v36 = vmul.f32 %v3945_v3, %v3782_v19  ;;  %v3744_v54 = vadd.f32 %v7038_v1, %v3701_v62  ;;  %v3747_v9 = vadd.f32 %v7038_v1, %v3704_v49  ;;  %v7331_v59 = vadd.f32 %v5454_v11, %v7008_v28  ;;  %v3296_v18 = vpop.f32.mrf.mxu1 }
 0x22c   : > { %v3664_v23 = vadd.f32 %v5488_v0, %v7272_v63  ;;  %v4343_v17 = vor.u32 %v4342_v10, %v4339_v37  ;;  %v7335_v56 = vadd.f32 %v3293_v13, %v7011_v46  ;;  %v3702_v39 = vmul.f32 %v7032_v60, %v3659_v6 }
 0x22d   : > { %v4971_v32 = vpack.c.bf16 %v4034_v36, %v4034_v36  ;;  %v3780_v43 = vmax.f32 %v3744_v54, 0.0  ;;  %v3783_v35 = vmax.f32 %v3747_v9, 0.0  ;;  %v3662_v40 = vadd.f32 %v3591_v45, %v3348_v8  ;;  %v5458_v19 = vpop.f32.mrf.mxu1 }
 0x22e   : > { %v3707_v34 = vmul.f32 %v7032_v60, %v3664_v23  ;;  %v4344_v28 = vsel %vm7087_vm1, %v4335_v7, %v4343_v17  ;;  %v4345_v63 = vrot.slane %v4343_v17, 4  ;;  %v3745_v2 = vadd.f32 %v7038_v1, %v3702_v39  ;;  %v5492_v7 = vpop.f32.mrf.mxu0 }
 0x22f   : > { %v4387_v0 = vshrl.u32 %v4971_v32, 16  ;;  %v4390_v50 = vshll.u32 %v4971_v32, 16  ;;  %4585 = vst.msk [vmem:[%s6193_s21 + $0x4c] sm:$0xf] %vm4048_vm7, %v4344_v28  ;;  %v4032_v46 = vmul.f32 %v7281_v44, %v3780_v43  ;;  %v4035_v11 = vmul.f32 %v3950_v5, %v3783_v35  ;;  %v3309_v43 = vpop.f32.mrf.mxu1  ;;  %v3960_v35 = vpop.permute.xlu0 %3959 }
 0x230   : > { %v3750_v31 = vadd.f32 %v7038_v1, %v3707_v34  ;;  %v4354_v61 = vsel %vm7087_vm1, %v4345_v63, %v7287_v25  ;;  %v3705_v57 = vmul.f32 %v7032_v60, %v3662_v40  ;;  %v3781_v33 = vmax.f32 %v3745_v2, 0.0  ;;  %v3965_v25 = vpop.permute.xlu1 %3964  ;;  %v3607_v23 = vpop.f32.mrf.mxu0 }
 0x231   : > { %v4389_v47 = vrot.slane %v4387_v0, 6  ;;  %v4392_v24 = vrot.slane %v4390_v50, 7  ;;  %4586 = vst.msk [vmem:[%s6193_s21 + $0x50] sm:$0xf] %vm4048_vm7, %v4354_v61  ;;  %v4969_v8 = vpack.c.bf16 %v4032_v46, %v4032_v46  ;;  %v4972_v27 = vpack.c.bf16 %v4035_v11, %v4035_v11 }
 0x232   : > { %v3786_v44 = vmax.f32 %v3750_v31, 0.0  ;;  %v3748_v45 = vadd.f32 %v7038_v1, %v3705_v57  ;;  %v7356_v3 = vadd.f32 %v5455_v16, %v7014_v14  ;;  %v3665_v26 = vadd.f32 %v5489_v55, %v3351_v42  ;;  %v5493_v46 = vpop.f32.mrf.mxu0  ;;  %v5459_v31 = vpop.f32.mrf.mxu1 }
 0x233   : > { %v7352_v52 = vor.u32 %v4392_v24, %v4389_v47  ;;  %v4367_v38 = vshrl.u32 %v4969_v8, 16  ;;  %v4370_v13 = vshll.u32 %v4969_v8, 16  ;;  %v4397_v48 = vshrl.u32 %v4972_v27, 16  ;;  %v7555_v24 = vld [vmem:[#allocation10_spill] sm:$0xff] }
 0x234   : > { %v4400_v21 = vshll.u32 %v4972_v27, 16  ;;  %v4033_v53 = vmul.f32 %v7311_v58, %v3781_v33  ;;  %v4038_v49 = vmul.f32 %v3965_v25, %v3786_v44  ;;  %v3784_v37 = vmax.f32 %v3748_v45, 0.0  ;;  %v7386_v8 = vpop.permute.xlu1 %3974 }
 0x235   : > { %v4395_v62 = vrot.slane %v7352_v52, 4  ;;  %v4369_v10 = vrot.slane %v4367_v38, 6  ;;  %v4372_v36 = vrot.slane %v4370_v13, 7  ;;  %v4399_v54 = vrot.slane %v4397_v48, 6 }
 0x236   : > { %v4402_v9 = vrot.slane %v4400_v21, 7  ;;  %v4970_v14 = vpack.c.bf16 %v4033_v53, %v4033_v53  ;;  %v4975_v6 = vpack.c.bf16 %v4038_v49, %v4038_v49  ;;  %v4036_v42 = vmul.f32 %v3955_v4, %v3784_v37 }
 0x237   : > { %v3708_v55 = vmul.f32 %v7032_v60, %v3665_v26  ;;  %v4373_v16 = vor.u32 %v4372_v36, %v4369_v10  ;;  %v3353_v32 = vadd.f32 %v3296_v18, %v7017_v30  ;;  %v3663_v58 = vadd.f32 %v3594_v12, %v7322_v41  ;;  %v3970_v26 = vpop.permute.xlu0 %3969  ;;  %v7556_v10 = vld [vmem:[#allocation12_spill] sm:$0xff] }
 0x238   : > { %v7361_v17 = vor.u32 %v4402_v9, %v4399_v54  ;;  %v4377_v39 = vshrl.u32 %v4970_v14, 16  ;;  %v4380_v34 = vshll.u32 %v4970_v14, 16  ;;  %v4427_v40 = vshrl.u32 %v4975_v6, 16 }
 0x239   : > { %v4430_v5 = vshll.u32 %v4975_v6, 16  ;;  %v4374_v4 = vsel %vm7087_vm1, %v4365_v29, %v4373_v16  ;;  %v4375_v28 = vrot.slane %v4373_v16, 4  ;;  %v4973_v22 = vpack.c.bf16 %v4036_v42, %v4036_v42  ;;  %v7557_v16 = vld [vmem:[#allocation3_spill] sm:$0xff] }
 0x23a   : > { %v4404_v63 = vsel %vm7087_vm1, %v4395_v62, %v7361_v17  ;;  %v4405_v30 = vrot.slane %v7361_v17, 4  ;;  %4588 = vst.msk [vmem:[%s6193_s21 + $0x58] sm:$0xf] %vm4048_vm7, %v4374_v4  ;;  %v4379_v41 = vrot.slane %v4377_v39, 6  ;;  %v4382_v0 = vrot.slane %v4380_v34, 7  ;;  %v3312_v62 = vpop.f32.mrf.mxu1 }
 0x23b   : > { %4591 = vst.msk [vmem:[%s6193_s21 + $0x64] sm:$0xf] %vm4048_vm7, %v4404_v63  ;;  %v4429_v50 = vrot.slane %v4427_v40, 6  ;;  %v4432_v12 = vrot.slane %v4430_v5, 7  ;;  %v3751_v11 = vadd.f32 %v7038_v1, %v3708_v55  ;;  %v3706_v29 = vmul.f32 %v7032_v60, %v3663_v58  ;;  %v3980_v34 = vpop.permute.xlu0 %3979  ;;  %v7423_v40 = vld [vmem:[%s7500_s2] ss:$0 sm:$0xff] }
 0x23c   : > { %v3358_v2 = vadd.f32 %v5458_v19, %v7020_v15  ;;  %v4383_v18 = vor.u32 %v4382_v0, %v4379_v41  ;;  %v3668_v47 = vadd.f32 %v5492_v7, %v7331_v59  ;;  %v7384_v57 = vadd.f32 %v3309_v43, %v7555_v24  ;;  %v3610_v7 = vpop.f32.mrf.mxu0 }
 0x23d   : > { %v7380_v61 = vor.u32 %v4432_v12, %v4429_v50  ;;  %v4407_v27 = vshrl.u32 %v4973_v22, 16  ;;  %v4410_v33 = vshll.u32 %v4973_v22, 16  ;;  %v3787_v44 = vmax.f32 %v3751_v11, 0.0 }
 0x23e   : > { %v3749_v45 = vadd.f32 %v7038_v1, %v3706_v29  ;;  %v4384_v15 = vsel %vm7087_vm1, %v4375_v28, %v4383_v18  ;;  %v4385_v25 = vrot.slane %v4383_v18, 4  ;;  %v3711_v59 = vmul.f32 %v7032_v60, %v3668_v47  ;;  %v5496_v17 = vpop.f32.mrf.mxu0 }
 0x23f   : > { %v4435_v38 = vrot.slane %v7380_v61, 4  ;;  %4589 = vst.msk [vmem:[%s6193_s21 + $0x5c] sm:$0xf] %vm4048_vm7, %v4384_v15  ;;  %v4409_v13 = vrot.slane %v4407_v27, 6  ;;  %v4412_v48 = vrot.slane %v4410_v33, 7  ;;  %v4039_v21 = vmul.f32 %v3970_v26, %v3787_v44  ;;  %v3990_v15 = vpop.permute.xlu0 %3989 }
 0x240   : > { %v3785_v19 = vmax.f32 %v3749_v45, 0.0  ;;  %v4394_v53 = vsel %vm7087_vm1, %v4385_v25, %v7352_v52  ;;  %v3754_v49 = vadd.f32 %v7038_v1, %v3711_v59  ;;  %v3666_v37 = vadd.f32 %v3607_v23, %v7335_v56  ;;  %v3985_v56 = vpop.permute.xlu1 %3984  ;;  %v3623_v27 = vpop.f32.mrf.mxu0 }
 0x241   : > { %v7401_v36 = vadd.f32 %v5459_v31, %v7556_v10  ;;  %4590 = vst.msk [vmem:[%s6193_s21 + $0x60] sm:$0xf] %vm4048_vm7, %v4394_v53  ;;  %v4413_v54 = vor.u32 %v4412_v48, %v4409_v13  ;;  %v4976_v9 = vpack.c.bf16 %v4039_v21, %v4039_v21  ;;  %v3669_v6 = vadd.f32 %v5493_v46, %v7356_v3 }
 0x242   : > { %v4037_v14 = vmul.f32 %v3960_v35, %v3785_v19  ;;  %v3790_v42 = vmax.f32 %v3754_v49, 0.0  ;;  %v3709_v55 = vmul.f32 %v7032_v60, %v3666_v37  ;;  %v7408_v52 = vadd.f32 %v3312_v62, %v7557_v16  ;;  %v7417_v60 = vld [vmem:[%s7501_s3] ss:$0 sm:$0xff] }
 0x243   : > { %v3667_v1 = vadd.f32 %v3610_v7, %v3353_v32  ;;  %v4414_v23 = vsel %vm7087_vm1, %v4405_v30, %v4413_v54  ;;  %v4415_v58 = vrot.slane %v4413_v54, 4  ;;  %v4437_v43 = vshrl.u32 %v4976_v9, 16 }
 0x244   : > { %v4440_v39 = vshll.u32 %v4976_v9, 16  ;;  %4592 = vst.msk [vmem:[%s6193_s21 + $0x68] sm:$0xf] %vm4048_vm7, %v4414_v23  ;;  %v4974_v35 = vpack.c.bf16 %v4037_v14, %v4037_v14  ;;  %v4042_v3 = vmul.f32 %v3985_v56, %v3790_v42  ;;  %v3752_v32 = vadd.f32 %v7417_v60, %v3709_v55  ;;  %v3995_v33 = vpop.permute.xlu1 %3994  ;;  %v5497_v55 = vpop.f32.mrf.mxu0 }
 0x245   : > { %v3712_v5 = vmul.f32 %v7423_v40, %v3669_v6  ;;  %v4439_v4 = vrot.slane %v4437_v43, 6  ;;  %v3710_v63 = vmul.f32 %v7423_v40, %v3667_v1  ;;  %v3672_v30 = vadd.f32 %v5496_v17, %v3358_v2 }
 0x246   : > { %v4442_v28 = vrot.slane %v4440_v39, 7  ;;  %v4417_v41 = vshrl.u32 %v4974_v35, 16  ;;  %v4420_v0 = vshll.u32 %v4974_v35, 16  ;;  %v4979_v50 = vpack.c.bf16 %v4042_v3, %v4042_v3 }
 0x247   : > { %v3788_v12 = vmax.f32 %v3752_v32, 0.0  ;;  %v3755_v22 = vadd.f32 %v7417_v60, %v3712_v5  ;;  %v3753_v11 = vadd.f32 %v7417_v60, %v3710_v63  ;;  %v3715_v29 = vmul.f32 %v7423_v40, %v3672_v30  ;;  %v3626_v30 = vpop.f32.mrf.mxu0 }
 0x248   : > { %v4443_v46 = vor.u32 %v4442_v28, %v4439_v4  ;;  %v4419_v31 = vrot.slane %v4417_v41, 6  ;;  %v4422_v18 = vrot.slane %v4420_v0, 7  ;;  %v4467_v47 = vshrl.u32 %v4979_v50, 16  ;;  %v4005_v16 = vpop.permute.xlu1 %4004 }
 0x249   : > { %v4470_v24 = vshll.u32 %v4979_v50, 16  ;;  %v4040_v45 = vmul.f32 %v7386_v8, %v3788_v12  ;;  %v3791_v26 = vmax.f32 %v3755_v22, 0.0  ;;  %v3789_v13 = vmax.f32 %v3753_v11, 0.0 }
 0x24a   : > { %v4444_v2 = vsel %vm7087_vm1, %v4435_v38, %v4443_v46  ;;  %v4445_v44 = vrot.slane %v4443_v46, 4  ;;  %v4423_v25 = vor.u32 %v4422_v18, %v4419_v31  ;;  %v4469_v59 = vrot.slane %v4467_v47, 6 }
 0x24b   : > { %4595 = vst.msk [vmem:[%s6193_s21 + $0x74] sm:$0xf] %vm4048_vm7, %v4444_v2  ;;  %v4472_v7 = vrot.slane %v4470_v24, 7  ;;  %v4977_v48 = vpack.c.bf16 %v4040_v45, %v4040_v45  ;;  %v4043_v21 = vmul.f32 %v3990_v15, %v3791_v26  ;;  %v3758_v19 = vadd.f32 %v7417_v60, %v3715_v29 }
 0x24c   : > { %v3670_v62 = vadd.f32 %v3623_v27, %v7384_v57  ;;  %v4424_v38 = vsel %vm7087_vm1, %v4415_v58, %v4423_v25  ;;  %v4425_v8 = vrot.slane %v4423_v25, 4  ;;  %v4041_v49 = vmul.f32 %v3980_v34, %v3789_v13 }
 0x24d   : > { %v4473_v53 = vor.u32 %v4472_v7, %v4469_v59  ;;  %4593 = vst.msk [vmem:[%s6193_s21 + $0x6c] sm:$0xf] %vm4048_vm7, %v4424_v38  ;;  %v4447_v37 = vshrl.u32 %v4977_v48, 16  ;;  %v4450_v10 = vshll.u32 %v4977_v48, 16  ;;  %v4980_v54 = vpack.c.bf16 %v4043_v21, %v4043_v21 }
 0x24e   : > { %v3794_v9 = vmax.f32 %v3758_v19, 0.0  ;;  %v4434_v14 = vsel %vm7087_vm1, %v4425_v8, %v7380_v61  ;;  %v4978_v42 = vpack.c.bf16 %v4041_v49, %v4041_v49  ;;  %v3713_v57 = vmul.f32 %v7423_v40, %v3670_v62 }
 0x24f   : > { %v4475_v6 = vrot.slane %v4473_v53, 4  ;;  %4594 = vst.msk [vmem:[%s6193_s21 + $0x70] sm:$0xf] %vm4048_vm7, %v4434_v14  ;;  %v4449_v1 = vrot.slane %v4447_v37, 6  ;;  %v4452_v17 = vrot.slane %v4450_v10, 7  ;;  %v4477_v56 = vshrl.u32 %v4980_v54, 16 }
 0x250   : > { %v4480_v23 = vshll.u32 %v4980_v54, 16  ;;  %v4457_v58 = vshrl.u32 %v4978_v42, 16  ;;  %v4460_v43 = vshll.u32 %v4978_v42, 16  ;;  %v4046_v39 = vmul.f32 %v4005_v16, %v3794_v9  ;;  %v4604_v14 = vld [vmem:[%s6193_s21 + $0x98] sm:$0x3] }
 0x251   : > { %v3756_v34 = vadd.f32 %v7417_v60, %v3713_v57  ;;  %v4453_v35 = vor.u32 %v4452_v17, %v4449_v1  ;;  %v4479_v61 = vrot.slane %v4477_v56, 6  ;;  %v3673_v32 = vadd.f32 %v5497_v55, %v7401_v36 }
 0x252   : > { %v4482_v3 = vrot.slane %v4480_v23, 7  ;;  %v4459_v5 = vrot.slane %v4457_v58, 6  ;;  %v4462_v4 = vrot.slane %v4460_v43, 7  ;;  %v4983_v28 = vpack.c.bf16 %v4046_v39, %v4046_v39 }
 0x253   : > { %v3792_v63 = vmax.f32 %v3756_v34, 0.0  ;;  %v4454_v41 = vsel %vm7087_vm1, %v4445_v44, %v4453_v35  ;;  %v4455_v0 = vrot.slane %v4453_v35, 4  ;;  %v3716_v12 = vmul.f32 %v7423_v40, %v3673_v32 }
 0x254   : > { %v4483_v50 = vor.u32 %v4482_v3, %v4479_v61  ;;  %4596 = vst.msk [vmem:[%s6193_s21 + $0x78] sm:$0xf] %vm4048_vm7, %v4454_v41  ;;  %v4463_v46 = vor.u32 %v4462_v4, %v4459_v5  ;;  %v4507_v22 = vshrl.u32 %v4983_v28, 16  ;;  %v4510_v36 = vshll.u32 %v4983_v28, 16 }
 0x255   : > { %v4044_v11 = vmul.f32 %v3995_v33, %v3792_v63  ;;  %v3759_v31 = vadd.f32 %v7417_v60, %v3716_v12  ;;  %v3671_v18 = vadd.f32 %v3626_v30, %v7408_v52 }
 0x256   : > { %v4484_v29 = vsel %vm7087_vm1, %v4475_v6, %v4483_v50  ;;  %v4464_v47 = vsel %vm7087_vm1, %v4455_v0, %v4463_v46  ;;  %v4465_v24 = vrot.slane %v4463_v46, 4  ;;  %v4509_v45 = vrot.slane %v4507_v22, 6 }
 0x257   : > { %4599 = vst.msk [vmem:[%s6193_s21 + $0x84] sm:$0xf] %vm4048_vm7, %v4484_v29  ;;  %4597 = vst.msk [vmem:[%s6193_s21 + $0x7c] sm:$0xf] %vm4048_vm7, %v4464_v47  ;;  %v4981_v27 = vpack.c.bf16 %v4044_v11, %v4044_v11  ;;  %v3795_v2 = vmax.f32 %v3759_v31, 0.0  ;;  %v3714_v44 = vmul.f32 %v7423_v40, %v3671_v18  ;;  %v4512_v26 = vrot.slane %v4510_v36, 7  ;;  %v4000_v40 = vpop.permute.xlu0 %3999 }
 0x258   : > { %v4474_v33 = vsel %vm7087_vm1, %v4465_v24, %v4473_v53  ;;  %v4485_v19 = vrot.slane %v4483_v50, 4 }
 0x259   : > { %4598 = vst.msk [vmem:[%s6193_s21 + $0x80] sm:$0xf] %vm4048_vm7, %v4474_v33  ;;  %v4487_v52 = vshrl.u32 %v4981_v27, 16  ;;  %v4490_v15 = vshll.u32 %v4981_v27, 16  ;;  %v4047_v25 = vmul.f32 %v7197_v20, %v3795_v2  ;;  %v3757_v59 = vadd.f32 %v7417_v60, %v3714_v44 }
 0x25a   : > { %v4513_v62 = vor.u32 %v4512_v26, %v4509_v45 }
 0x25b   : > { %v4489_v7 = vrot.slane %v4487_v52, 6  ;;  %v4492_v13 = vrot.slane %v4490_v15, 7  ;;  %v4984_v48 = vpack.c.bf16 %v4047_v25, %v4047_v25  ;;  %v3793_v21 = vmax.f32 %v3757_v59, 0.0 }
 0x25c   : > { %v4515_v54 = vrot.slane %v4513_v62, 4 }
 0x25d   : > { %v4493_v38 = vor.u32 %v4492_v13, %v4489_v7  ;;  %v4517_v8 = vshrl.u32 %v4984_v48, 16  ;;  %v4520_v53 = vshll.u32 %v4984_v48, 16  ;;  %v4045_v49 = vmul.f32 %v4000_v40, %v3793_v21 }
 0x25f   : > { %v4494_v37 = vsel %vm7087_vm1, %v4485_v19, %v4493_v38  ;;  %v4519_v20 = vrot.slane %v4517_v8, 6  ;;  %v4522_v10 = vrot.slane %v4520_v53, 7  ;;  %v4982_v60 = vpack.c.bf16 %v4045_v49, %v4045_v49 }
 0x260   : > { %4600 = vst.msk [vmem:[%s6193_s21 + $0x88] sm:$0xf] %vm4048_vm7, %v4494_v37  ;;  %v4495_v23 = vrot.slane %v4493_v38, 4 }
 0x261   : > { %v4523_v9 = vor.u32 %v4522_v10, %v4519_v20  ;;  %v4497_v6 = vshrl.u32 %v4982_v60, 16  ;;  %v4500_v42 = vshll.u32 %v4982_v60, 16 }
 0x263   : > { %v4524_v57 = vsel %vm7087_vm1, %v4515_v54, %v4523_v9  ;;  %v4525_v55 = vrot.slane %v4523_v9, 4  ;;  %v4499_v16 = vrot.slane %v4497_v6, 6  ;;  %v4502_v1 = vrot.slane %v4500_v42, 7 }
 0x264   : > { %4603 = vst.msk [vmem:[%s6193_s21 + $0x94] sm:$0xf] %vm4048_vm7, %v4524_v57 }
 0x265   : > { %v4605_v56 = vsel %vm6852_vm12, %v4525_v55, %v4604_v14  ;;  %v4503_v58 = vor.u32 %v4502_v1, %v4499_v16 }
 0x266   : > { %4606 = vst [vmem:[%s6193_s21 + $0x98] sm:$0x3] %v4605_v56 }
 0x267   : > { %v4504_v43 = vsel %vm7087_vm1, %v4495_v23, %v4503_v58  ;;  %v4505_v39 = vrot.slane %v4503_v58, 4 }
 0x268   : > { %4601 = vst.msk [vmem:[%s6193_s21 + $0x8c] sm:$0xf] %vm4048_vm7, %v4504_v43 }
 0x269   : > { %v4514_v34 = vsel %vm7087_vm1, %v4505_v39, %v4513_v62 }
 0x26a   : > { %4602 = vst.msk [vmem:[%s6193_s21 + $0x90] sm:$0xf] %vm4048_vm7, %v4514_v34 }
 0x26d   : > { %v4607_v35 = vld [vmem:[%s6193_s21 + $0x98] sm:$0xe] }
 0x26e   : > { %v4608_v3 = vsel %vm7077_vm0, 0, %v4607_v35 }
 0x26f   : > { %4609 = vst [vmem:[%s6193_s21 + $0x98] sm:$0xe] %v4608_v3 }
 0x270 PF: > { %s15_s18 = sadd.s32 1, %s5592_s18  }
 0x271   : > { %p12_p4 = scmp.ge.s32.totalorder %s15_s18, 4  }
 0x273   :  { %14 = sbr.rel (!%p12_p4) target bundleno = 1 (0x1), region = 78 }

// kernel: generator_forward.26
= control target key start
LH: loop header
LB: loop body
LE: loop exit
PB: predicated region body
PF: predicated region fallthrough
CT: control target
= control target key end

     0   :  { %v278_v0 = vmov 0   ;;  %vm112_vm0 = vcmask 130048   ;;  %vm210_vm1 = vcmask 257024   ;;  %s361_s1 = inlined_call_operand.vmem [shape: bf16[144,32], index: 1, kind: input, shape index: {}]   ;;  %s362_s0 = inlined_call_operand.vmem [shape: bf16[32,144], index: 0, kind: input, shape index: {}]   ;;  %s363_s2 = inlined_call_operand.vmem [shape: f32[1,32], index: 2, kind: input, shape index: {}]   ;;  %s364_s3 = inlined_call_operand.vmem [shape: f32[1,32], index: 3, kind: input, shape index: {}]   ;;  %s365_s4 = inlined_call_operand.vmem [shape: bf16[32,32], index: 4, kind: output, shape index: {}]  }
   0x1   :  { %119 = vmatprep.subr.bf16.mxu0 %v278_v0  ;;  %244 = vmatprep.subr.bf16.mxu1 %v278_v0  ;;  %v263_v1 = vld [vmem:[%s361_s1 + $0x38] sm:$0xff]   ;;  %v264_v2 = vld [vmem:[%s361_s1 + $0x30] sm:$0xff]   ;;  %v265_v3 = vld [vmem:[%s361_s1 + $0x28] sm:$0xff]  }
   0x2   :  { %120 = vmatpush1.bf16.msra.mxu0 %v263_v1  ;;  %253 = vmatpush1.bf16.msra.mxu1 %v263_v1  ;;  %v266_v4 = vld [vmem:[%s361_s1 + $0x20] sm:$0xff]   ;;  %v277_v6 = vld [vmem:[%s362_s0 + $0x14] ss:$8 sps:$4 sm:$0xff]   ;;  %v269_v9 = vld [vmem:[%s361_s1 + $0x8] sm:$0xff]  }
   0x3   :  { %121 = vmatprep.subr.bf16.mxu0 %v278_v0  ;;  %245 = vmatprep.subr.bf16.mxu1 %v278_v0  ;;  %v274_v5 = vld [vmem:[%s362_s0 + $0x4] ss:$8 sps:$4 sm:$0xff]   ;;  %v267_v7 = vld [vmem:[%s361_s1 + $0x18] sm:$0xff]   ;;  %v268_v8 = vld [vmem:[%s361_s1 + $0x10] sm:$0xff]  }
   0x4   :  { %232 = vmatprep.mubr.msk.bf16.mxu0 %vm112_vm0, %v274_v5  ;;  %233 = vmatprep.mubr.msk.bf16.mxu1 %vm112_vm0, %v277_v6  ;;  %v270_v10 = vld [vmem:[%s361_s1] sm:$0xff]   ;;  %v275_v13 = vld [vmem:[%s362_s0 + $0x10] ss:$8 sps:$4 sm:$0xff]  }
   0x5   :  { %v271_v11 = vld [vmem:[%s361_s1 + $0x40] sm:$0xff]  }
   0x6   :  { %122 = vmatpush1.bf16.msra.mxu0 %v264_v2  ;;  %254 = vmatpush1.bf16.msra.mxu1 %v264_v2  ;;  %v272_v12 = vld [vmem:[%s362_s0] ss:$8 sps:$4 sm:$0xff]  }
   0x7   :  { %123 = vmatprep.subr.bf16.mxu0 %v278_v0  ;;  %246 = vmatprep.subr.bf16.mxu1 %v278_v0  ;;  %v234_v14 = vld [vmem:[%s363_s2] ss:$0 sm:$0xff] }
   0x8   :  { %v235_v16 = vld [vmem:[%s364_s3] ss:$0 sm:$0xff] }
   0xa   :  { %124 = vmatpush1.bf16.msra.mxu0 %v265_v3  ;;  %255 = vmatpush1.bf16.msra.mxu1 %v265_v3 }
   0xb   :  { %125 = vmatprep.subr.bf16.mxu0 %v278_v0  ;;  %247 = vmatprep.subr.bf16.mxu1 %v278_v0 }
   0xe   :  { %126 = vmatpush1.bf16.msra.mxu0 %v266_v4  ;;  %256 = vmatpush1.bf16.msra.mxu1 %v266_v4 }
   0xf   :  { %127 = vmatprep.subr.bf16.mxu0 %v278_v0  ;;  %248 = vmatprep.subr.bf16.mxu1 %v278_v0 }
  0x12   :  { %128 = vmatpush1.bf16.msra.mxu0 %v267_v7  ;;  %257 = vmatpush1.bf16.msra.mxu1 %v267_v7 }
  0x13   :  { %129 = vmatprep.subr.bf16.mxu0 %v278_v0  ;;  %249 = vmatprep.subr.bf16.mxu1 %v278_v0 }
  0x16   :  { %130 = vmatpush1.bf16.msra.mxu0 %v268_v8  ;;  %258 = vmatpush1.bf16.msra.mxu1 %v268_v8 }
  0x17   :  { %131 = vmatprep.subr.bf16.mxu0 %v278_v0  ;;  %250 = vmatprep.subr.bf16.mxu1 %v278_v0 }
  0x1a   :  { %132 = vmatpush1.bf16.msra.mxu0 %v269_v9  ;;  %259 = vmatpush1.bf16.msra.mxu1 %v269_v9 }
  0x1b   :  { %133 = vmatprep.subr.bf16.mxu0 %v278_v0  ;;  %251 = vmatprep.subr.bf16.mxu1 %v278_v0 }
  0x1e   :  { %134 = vmatpush1.bf16.msra.mxu0 %v270_v10  ;;  %260 = vmatpush1.bf16.msra.mxu1 %v270_v10 }
  0x1f   :  { %149 = vmatprep.subr.bf16.mxu0 %v278_v0  ;;  %252 = vmatprep.subr.bf16.mxu1 %v278_v0 }
  0x22   :  { %150 = vmatpush2.bf16.msra.mxu0 %v271_v11  ;;  %261 = vmatpush2.bf16.msra.mxu1 %v271_v11 }
  0x25   :  { %152 = vmatmul.mubr.bf16.vlgmr.msra.gmra.mxu0 %v272_v12  ;;  %160 = vmatmul.mubr.bf16.vlgmr.msra.gmra.mxu1 %v275_v13 }
  0xe5   :  { %v153_v15 = vpop.f32.mrf.mxu0  ;;  %v161_v17 = vpop.f32.mrf.mxu1 }
  0xe6   :  { %v175_v18 = vmul.f32 %v234_v14, %v153_v15  ;;  %v177_v19 = vmul.f32 %v234_v14, %v161_v17 }
  0xe7   :  { %v155_v20 = vpop.f32.mrf.mxu0  ;;  %v163_v21 = vpop.f32.mrf.mxu1 }
  0xe8   :  { %v186_v22 = vadd.f32 %v235_v16, %v175_v18  ;;  %v188_v23 = vadd.f32 %v235_v16, %v177_v19 }
  0xe9   :  { %v156_v24 = vpop.f32.mrf.mxu0  ;;  %v164_v25 = vpop.f32.mrf.mxu1 }
  0xea   :  { %v190_v26 = vmax.f32 %v186_v22, 0.0  ;;  %v192_v27 = vmax.f32 %v188_v23, 0.0  ;;  %v176_v28 = vmul.f32 %v234_v14, %v156_v24  ;;  %v178_v29 = vmul.f32 %v234_v14, %v164_v25 }
  0xeb   :  { %v158_v30 = vpop.f32.mrf.mxu0  ;;  %v166_v31 = vpop.f32.mrf.mxu1 }
  0xec   :  { %v240_v32 = vpack.c.bf16 %v190_v26, %v190_v26  ;;  %v242_v33 = vpack.c.bf16 %v192_v27, %v192_v27  ;;  %v187_v34 = vadd.f32 %v235_v16, %v176_v28  ;;  %v189_v35 = vadd.f32 %v235_v16, %v178_v29 }
  0xee   :  { %211 = vst.msk [vmem:[%s365_s4] sm:$0xf] %vm210_vm1, %v240_v32  ;;  %213 = vst.msk [vmem:[%s365_s4 + $0x8] sm:$0xf] %vm210_vm1, %v242_v33  ;;  %v191_v36 = vmax.f32 %v187_v34, 0.0  ;;  %v193_v37 = vmax.f32 %v189_v35, 0.0 }
  0xf0   :  { %v241_v38 = vpack.c.bf16 %v191_v36, %v191_v36  ;;  %v243_v39 = vpack.c.bf16 %v193_v37, %v193_v37 }
  0xf2   :  { %212 = vst.msk [vmem:[%s365_s4 + $0x4] sm:$0xf] %vm210_vm1, %v241_v38  ;;  %214 = vst.msk [vmem:[%s365_s4 + $0xc] sm:$0xf] %vm210_vm1, %v243_v39 }

// kernel: generator_forward.27
= control target key start
LH: loop header
LB: loop body
LE: loop exit
PB: predicated region body
PF: predicated region fallthrough
CT: control target
= control target key end

     0   :  { %s1463_s18 = smov 0   ;;  %s1675_s0 = inlined_call_operand.vmem [shape: bf16[2,42,32], index: 0, kind: input, shape index: {}]   ;;  %s1676_s1 = inlined_call_operand.vmem [shape: bf16[9,32,32], index: 1, kind: input, shape index: {}]   ;;  %s1677_s2 = inlined_call_operand.vmem [shape: f32[1,32], index: 2, kind: input, shape index: {}]   ;;  %s1678_s3 = inlined_call_operand.vmem [shape: f32[1,32], index: 3, kind: input, shape index: {}]   ;;  %s1679_s4 = inlined_call_operand.vmem [shape: f32[1,24,1], index: 4, kind: input, shape index: {}]   ;;  %s1680_s5 = inlined_call_operand.vmem [shape: bf16[2,42,32], index: 5, kind: output, shape index: {}]  }
   0x1 LB: > { %s1175_s19 = sadd.s32 4294967295, %s1430_s18   ;;  %p1179_p0 = scmp.ge.s32.totalorder %s1430_s18, 1  ;;  %s1430_s18 = sphi %s1463_s18, %s15_s18  }
   0x2   : > { %p187_p1 = scmp.lt.s32.totalorder %s1430_s18, 3 }
   0x4   : > { %p188_p2 = pnand %p1179_p0, %p187_p1 }
   0x5   : > { %p215_p3 = scmp.lt.s32.totalorder (!%p188_p2), %s1175_s19, 1 }
   0x6   : > { %191 = sbr.rel (%p188_p2) target bundleno = 282 (0x11a), region = 40 }
   0xb   : > { %v1393_v0 = vld [vmem:[%s1676_s1 + $0x18] sm:$0xff]   ;;  %v1394_v1 = vld [vmem:[%s1676_s1 + $0x8] sm:$0xff]   ;;  %v1395_v2 = vld [vmem:[%s1676_s1 + $0x10] sm:$0xff]   ;;  %s1686_s19 = smov (!%p215_p3, %s1175_s19), 1  ;;  %vm277_vm0 = vcmask 261120   ;;  %v1432_v20 = vmov 0  }
   0xc   : > { %1309 = vmatprep.subr.bf16.mxu0 %v1393_v0  ;;  %1317 = vmatprep.subr.bf16.mxu1 %v1394_v1  ;;  %v1396_v3 = vld [vmem:[%s1676_s1] sm:$0xff]   ;;  %s1381_s28 = smul.u32 24, %s1686_s19  ;;  %v1489_v4 = vld [vmem:[%s1676_s1 + $0x28] sm:$0xff]   ;;  %v1401_v5 = vld [vmem:[%s1676_s1 + $0x38] sm:$0xff]   ;;  %vm249_vm1 = vsmask.f32 7424 }
   0xd   : > { %1310 = vmatpush3.bf16.msra.mxu0 %v1393_v0  ;;  %1318 = vmatpush3.bf16.msra.mxu1 %v1394_v1  ;;  %v1403_v13 = vld [vmem:[%s1676_s1 + $0x30] sm:$0xff]   ;;  %vm407_vm2 = vcmask 1046528   ;;  %vm493_vm3 = vcmask 1044480   ;;  %v1408_v32 = vld [vmem:[%s1676_s1 + $0x58] sm:$0xff]   ;;  %v1402_v36 = vld [vmem:[%s1676_s1 + $0x20] sm:$0xff]   ;;  %vm1051_vm5 = vcmask 257024  }
   0xe   : > { %1311 = vmatprep.subr.bf16.mxu0 %v1395_v2  ;;  %1319 = vmatprep.subr.bf16.mxu1 %v1396_v3  ;;  %s1496_s8 = scalar_lea.vmem %s1675_s0, %s1381_s28  ;;  %v1410_v40 = vld [vmem:[%s1676_s1 + $0x50] sm:$0xff]   ;;  %v1407_v44 = vld [vmem:[%s1676_s1 + $0x48] sm:$0xff]   ;;  %vm575_vm4 = vsmask.f32 4352  ;;  %v1415_v56 = vld [vmem:[%s1676_s1 + $0x78] sm:$0xff]   ;;  %s1582_s27 = scalar_lea.vmem %s1680_s5, %s1381_s28  ;;  %vm1118_vm6 = vcmask 253952  }
   0xf   : > { %v226_v6 = vld [vmem:[%s1496_s8] sm:$0xf]  ;;  %v1503_v7 = vld [vmem:[%s1496_s8 + $0x4] sm:$0xf]  ;;  %v1506_v8 = vld [vmem:[%s1496_s8 + $0x8] sm:$0xf]  ;;  %1391 = vset.pattern.permute.xlu0 %v1432_v20  ;;  %1392 = vset.pattern.permute.xlu1 %v1432_v20 }
  0x10   : > { %v233_v9 = vld [vmem:[%s1496_s8 + $0xc] sm:$0x1]  ;;  %v1186_v10 = vcombine.low %v226_v6, %v1503_v7  ;;  %v1192_v11 = vcombine.low %v1506_v8, %v1506_v8  ;;  %v398_v14 = vld [vmem:[%s1496_s8] sm:$0xe]  ;;  %v1229_v43 = vcombine.low %v1503_v7, %v1506_v8  ;;  %v738_v52 = vld [vmem:[%s1496_s8 + $0x4] sm:$0xc] }
  0x11   : > { %1312 = vmatpush3.bf16.msra.mxu0 %v1395_v2  ;;  %1320 = vmatpush3.bf16.msra.mxu1 %v1396_v3  ;;  %v1514_v12 = vcombine.low %v1506_v8, %v233_v9  ;;  %v1201_v17 = vcombine.low %v398_v14, %v1503_v7  ;;  %v480_v18 = vld [vmem:[%s1496_s8] sm:$0x8]  ;;  %v481_v19 = vld [vmem:[%s1496_s8 + $0xc] sm:$0x7]  ;;  %v1564_v53 = vld [vmem:[%s1496_s8 + $0x8] sm:$0xf] }
  0x12   : > { %1325 = vmatprep.subr.bf16.mxu0 %v1489_v4  ;;  %1333 = vmatprep.subr.bf16.mxu1 %v1401_v5  ;;  %v251_v15 = vshrl.u32 %v1186_v10, 16  ;;  %v253_v16 = vshll.u32 %v1186_v10, 16  ;;  %v1210_v24 = vcombine.low %v480_v18, %v1503_v7  ;;  %v1211_v27 = vcombine.low %v1506_v8, %v481_v19  ;;  %v1536_v34 = vld [vmem:[%s1496_s8 + $0xc] sm:$0xf]  ;;  %v741_v57 = vld [vmem:[%s1496_s8 + $0x10] sm:$0x3] }
  0x13   : > { %1321 = vmatprep.mubr.msk.bf16.mxu1 %vm277_vm0, %v1186_v10  ;;  %v258_v21 = vshll.u32 %v1514_v12, 16  ;;  %v262_v22 = vshrl.u32 %v1514_v12, 16  ;;  %v409_v23 = vrot.slane %v1514_v12, 1  ;;  %v408_v26 = vrot.slane %v1201_v17, 1  ;;  %v740_v54 = vld [vmem:[%s1496_s8 + $0xc] sm:$0xf] }
  0x14   : > { %1322 = vmatmul.mubr.msk.bf16.vlgmr.msra.gmra.mxu1 %vm277_vm0, %v1192_v11  ;;  %v255_v25 = vrot.slane %v253_v16, 1  ;;  %v494_v29 = vrot.slane %v1210_v24, 3  ;;  %v495_v31 = vrot.slane %v1211_v27, 3  ;;  %v1220_v39 = vcombine.low %v1506_v8, %v1536_v34  ;;  %v830_v59 = vld [vmem:[%s1496_s8 + $0x10] sm:$0x7]  ;;  %v1409_v62 = vld [vmem:[%s1676_s1 + $0x40] sm:$0xff]  }
  0x15   : > { %1334 = vmatpush3.bf16.msra.mxu1 %v1401_v5  ;;  %v260_v28 = vrot.slane %v258_v21, 1  ;;  %v410_v37 = vsel %vm407_vm2, %v408_v26, %v409_v23  ;;  %v577_v41 = vshrl.u32 %v1210_v24, 16  ;;  %v580_v42 = vshll.u32 %v1210_v24, 16  ;;  %1117 = vst.msk [vmem:[%s1582_s27 + $0x10] sm:$0xf] %vm1051_vm5, %v1432_v20  ;;  %v1417_v5 = vld [vmem:[%s1676_s1 + $0x70] sm:$0xff]  }
  0x16   : > { %1335 = vmatprep.subr.bf16.mxu1 %v1403_v13  ;;  %v256_v30 = vor.u32 %v255_v25, %v251_v15  ;;  %v496_v38 = vsel %vm493_vm3, %v494_v29, %v495_v31  ;;  %v585_v45 = vshrl.u32 %v1220_v39, 16  ;;  %v588_v46 = vshll.u32 %v1220_v39, 16  ;;  %v1032_v8 = vld [vmem:[%s1679_s4 + $0x10] sm:$0xff]  ;;  %1119 = vst.msk [vmem:[%s1582_s27 + $0x14] sm:$0x1] %vm1118_vm6, %v1432_v20  ;;  %v1031_v11 = vld [vmem:[%s1679_s4 + $0x8] sm:$0xff] }
  0x17   : > { %v264_v33 = vor.u32 %v262_v22, %v260_v28  ;;  %1337 = vmatprep.mubr.msk.bf16.mxu1 %vm277_vm0, %v496_v38  ;;  %v579_v47 = vrot.slane %v577_v41, 3  ;;  %v582_v48 = vrot.slane %v580_v42, 4  ;;  %v1239_v58 = vcombine.low %v738_v52, %v1564_v53  ;;  %v1413_v12 = vld [vmem:[%s1676_s1 + $0x68] sm:$0xff]   ;;  %v926_v17 = vld [vmem:[%s1496_s8 + $0x4] sm:$0x8]  ;;  %1045 = vperm.xlu0 %1391, %v1032_v8  }
  0x18   : > { %v261_v35 = vsel %vm249_vm1, %v256_v30, %v260_v28  ;;  %v587_v49 = vrot.slane %v585_v45, 3  ;;  %v590_v50 = vrot.slane %v588_v46, 4  ;;  %v1230_v60 = vcombine.low %v1536_v34, %v1536_v34  ;;  %v1030_v18 = vld [vmem:[%s1679_s4] sm:$0xff]  ;;  %1040 = vperm.xlu1 %1392, %v1031_v11  }
  0x19   : > { %1336 = vmatpush3.bf16.msra.mxu1 %v1403_v13  ;;  %1313 = vmatprep.mubr.msk.bf16.mxu0 %vm277_vm0, %v261_v35  ;;  %v583_v51 = vor.u32 %v582_v48, %v579_v47  ;;  %v1575_v61 = vcombine.low %v740_v54, %v830_v59  ;;  %v1240_v0 = vcombine.low %v740_v54, %v741_v57  ;;  %v841_v1 = vshrl.u32 %v1239_v58, 16  ;;  %v1416_v20 = vld [vmem:[%s1676_s1 + $0x60] sm:$0xff]  }
  0x1a   : > { %1314 = vmatmul.mubr.msk.bf16.vlgmr.msra.gmra.mxu0 %vm277_vm0, %v264_v33  ;;  %1349 = vmatprep.subr.bf16.mxu1 %v1408_v32  ;;  %v591_v55 = vor.u32 %v590_v50, %v587_v49  ;;  %v844_v2 = vshll.u32 %v1239_v58, 16  ;;  %v758_v13 = vrot.slane %v1239_v58, 2  ;;  %vm839_vm7 = vsmask.f32 5376  ;;  %v1422_v26 = vld [vmem:[%s1676_s1 + $0x80] sm:$0xff]  }
  0x1b   : > { %1326 = vmatpush3.bf16.msra.mxu0 %v1489_v4  ;;  %1329 = vmatprep.mubr.msk.bf16.mxu0 %vm277_vm0, %v410_v37  ;;  %v849_v3 = vshrl.u32 %v1575_v61, 16  ;;  %v852_v4 = vshll.u32 %v1575_v61, 16  ;;  %v843_v6 = vrot.slane %v841_v1, 2  ;;  %v759_v14 = vrot.slane %v1240_v0, 2  ;;  %v1054_v29 = vld [vmem:[%s1582_s27] sm:$0xf] }
  0x1c   : > { %1327 = vmatprep.subr.bf16.mxu0 %v1402_v36  ;;  %1338 = vmatmul.mubr.msk.bf16.vlgmr.msra.gmra.mxu1 %vm277_vm0, %v495_v31  ;;  %v592_v63 = vsel %vm575_vm4, %v583_v51, %v591_v55  ;;  %v846_v7 = vrot.slane %v844_v2, 3  ;;  %vm757_vm8 = vcmask 1045504   ;;  %v1258_v22 = vcombine.low %v926_v17, %v1564_v53  ;;  %v1263_v17 = vld [vmem:[%s1677_s2] ss:$0 sm:$0xff] }
  0x1d   : > { %1350 = vmatpush3.bf16.msra.mxu1 %v1408_v32  ;;  %1353 = vmatprep.mubr.msk.bf16.mxu1 %vm277_vm0, %v1229_v43  ;;  %v851_v9 = vrot.slane %v849_v3, 2  ;;  %v854_v10 = vrot.slane %v852_v4, 3  ;;  %v760_v21 = vsel %vm757_vm8, %v758_v13, %v759_v14  ;;  %v936_v25 = vrot.slane %v1575_v61, 3 }
  0x1e   : > { %1351 = vmatprep.subr.bf16.mxu1 %v1410_v40  ;;  %v847_v15 = vor.u32 %v846_v7, %v843_v6  ;;  %1035 = vperm.xlu0 %1391, %v1030_v18   ;;  %v935_v24 = vrot.slane %v1258_v22, 3  ;;  %vm1052_vm9 = vsmask.f32 3328  ;;  %v1264_v22 = vld [vmem:[%s1678_s3] ss:$0 sm:$0xff]  ;;  %vm1102_vm11 = vcmask 257027  }
  0x1f   : > { %1328 = vmatpush3.bf16.msra.mxu0 %v1402_v36  ;;  %v855_v16 = vor.u32 %v854_v10, %v851_v9  ;;  %vm1637_vm10 = vmand %vm1051_vm5, %vm1052_vm9  ;;  %vm1103_vm12 = vsmask.f32 7950  ;;  %vm1067_vm14 = vsmask.f32 7440 }
  0x20   : > { %1341 = vmatprep.subr.bf16.mxu0 %v1407_v44  ;;  %v937_v27 = vsel %vm493_vm3, %v935_v24, %v936_v25  ;;  %v1055_v30 = vsel %vm1637_vm10, 0, %v1054_v29  ;;  %vm1651_vm13 = vmand %vm1102_vm11, %vm1103_vm12 }
  0x21   : > { %1352 = vmatpush3.bf16.msra.mxu1 %v1410_v40  ;;  %v856_v19 = vsel %vm839_vm7, %v847_v15, %v855_v16  ;;  %1056 = vst [vmem:[%s1582_s27] sm:$0xf] %v1055_v30  ;;  %vm1068_vm15 = vmor %vm1052_vm9, %vm1067_vm14 }
  0x22   : > { %1330 = vmatmul.mubr.msk.bf16.vlgmr.msra.gmra.mxu0 %vm277_vm0, %v409_v23  ;;  %1365 = vmatprep.subr.bf16.mxu1 %v1415_v56  ;;  %v1421_v23 = vld [vmem:[%s1676_s1 + $0x88] sm:$0xff]  }
  0x23   : > { %1342 = vmatpush3.bf16.msra.mxu0 %v1407_v44  ;;  %1345 = vmatprep.mubr.msk.bf16.mxu0 %vm277_vm0, %v592_v63 }
  0x24   : > { %1343 = vmatprep.subr.bf16.mxu0 %v1409_v62  ;;  %1354 = vmatmul.mubr.msk.bf16.vlgmr.msra.gmra.mxu1 %vm277_vm0, %v1230_v60 }
  0x25   : > { %1366 = vmatpush3.bf16.msra.mxu1 %v1415_v56  ;;  %1369 = vmatprep.mubr.msk.bf16.mxu1 %vm277_vm0, %v856_v19 }
  0x26   : > { %1367 = vmatprep.subr.bf16.mxu1 %v1417_v5 }
  0x27   : > { %1344 = vmatpush3.bf16.msra.mxu0 %v1409_v62 }
  0x28   : > { %1357 = vmatprep.subr.bf16.mxu0 %v1413_v12 }
  0x29   : > { %1368 = vmatpush3.bf16.msra.mxu1 %v1417_v5 }
  0x2a   : > { %1346 = vmatmul.mubr.msk.bf16.vlgmr.msra.gmra.mxu0 %vm277_vm0, %v591_v55 }
  0x2b   : > { %1358 = vmatpush3.bf16.msra.mxu0 %v1413_v12  ;;  %1361 = vmatprep.mubr.msk.bf16.mxu0 %vm277_vm0, %v760_v21 }
  0x2c   : > { %1359 = vmatprep.subr.bf16.mxu0 %v1416_v20  ;;  %1370 = vmatmul.mubr.msk.bf16.vlgmr.msra.gmra.mxu1 %vm277_vm0, %v855_v16 }
  0x2f   : > { %1360 = vmatpush3.bf16.msra.mxu0 %v1416_v20 }
  0x30   : > { %1373 = vmatprep.subr.bf16.mxu0 %v1421_v23 }
  0x32   : > { %1362 = vmatmul.mubr.msk.bf16.vlgmr.msra.gmra.mxu0 %vm277_vm0, %v759_v14 }
  0x33   : > { %1374 = vmatpush3.bf16.msra.mxu0 %v1421_v23  ;;  %1377 = vmatprep.mubr.msk.bf16.mxu0 %vm277_vm0, %v937_v27 }
  0x34   : > { %1375 = vmatprep.subr.bf16.mxu0 %v1422_v26 }
  0x37   : > { %1376 = vmatpush3.bf16.msra.mxu0 %v1422_v26 }
  0x3a   : > { %1378 = vmatmul.mubr.msk.bf16.vlgmr.msra.gmra.mxu0 %vm277_vm0, %v936_v25 }
  0x92   : > { %v1046_v25 = vpop.permute.xlu0 %1045 }
  0xd4   : > { %v1323_v31 = vpop.f32.mrf.mxu1 }
  0xd6   : > { %v384_v32 = vpop.f32.mrf.mxu1 }
  0xd8   : > { %v1324_v33 = vpop.f32.mrf.mxu1 }
  0xda   : > { %v387_v34 = vpop.f32.mrf.mxu1  ;;  %v1315_v35 = vpop.f32.mrf.mxu0 }
  0xdb   : > { %v393_v48 = vadd.f32 %v1323_v31, %v1315_v35 }
  0xdc   : > { %v318_v36 = vpop.f32.mrf.mxu0  ;;  %v1339_v37 = vpop.f32.mrf.mxu1 }
  0xdd   : > { %v385_v51 = vadd.f32 %v384_v32, %v318_v36 }
  0xde   : > { %v1316_v38 = vpop.f32.mrf.mxu0  ;;  %v549_v39 = vpop.f32.mrf.mxu1 }
  0xe0   : > { %v321_v40 = vpop.f32.mrf.mxu0  ;;  %v1340_v41 = vpop.f32.mrf.mxu1 }
  0xe1   : > { %v388_v58 = vadd.f32 %v387_v34, %v321_v40 }
  0xe2   : > { %v1331_v42 = vpop.f32.mrf.mxu0  ;;  %v552_v43 = vpop.f32.mrf.mxu1 }
  0xe3   : > { %v479_v52 = vadd.f32 %v1331_v42, %v393_v48 }
  0xe4   : > { %v463_v44 = vpop.f32.mrf.mxu0  ;;  %v1355_v45 = vpop.f32.mrf.mxu1 }
  0xe5   : > { %v477_v55 = vadd.f32 %v463_v44, %v385_v51  ;;  %v565_v59 = vadd.f32 %v1339_v37, %v479_v52 }
  0xe6   : > { %v1332_v46 = vpop.f32.mrf.mxu0  ;;  %v721_v47 = vpop.f32.mrf.mxu1 }
  0xe7   : > { %v563_v62 = vadd.f32 %v549_v39, %v477_v55  ;;  %v1036_v39 = vpop.permute.xlu0 %1035  ;;  %v1041_v46 = vpop.permute.xlu1 %1040 }
  0xe8   : > { %v466_v49 = vpop.f32.mrf.mxu0  ;;  %v1356_v50 = vpop.f32.mrf.mxu1 }
  0xe9   : > { %v478_v63 = vadd.f32 %v466_v49, %v388_v58  ;;  %v1111_v58 = vld [vmem:[%s1582_s27 + $0xc] sm:$0xf] }
  0xea   : > { %v1347_v53 = vpop.f32.mrf.mxu0  ;;  %v724_v54 = vpop.f32.mrf.mxu1 }
  0xeb   : > { %v661_v0 = vadd.f32 %v1347_v53, %v565_v59  ;;  %v564_v5 = vadd.f32 %v552_v43, %v478_v63  ;;  %v1105_v53 = vld [vmem:[%s1582_s27] sm:$0x8] }
  0xec   : > { %v645_v56 = vpop.f32.mrf.mxu0  ;;  %v1371_v57 = vpop.f32.mrf.mxu1 }
  0xed   : > { %v659_v3 = vadd.f32 %v645_v56, %v563_v62  ;;  %v737_v6 = vadd.f32 %v1355_v45, %v661_v0 }
  0xee   : > { %v1348_v60 = vpop.f32.mrf.mxu0  ;;  %v909_v61 = vpop.f32.mrf.mxu1 }
  0xef   : > { %v735_v8 = vadd.f32 %v721_v47, %v659_v3 }
  0xf0   : > { %v648_v1 = vpop.f32.mrf.mxu0  ;;  %v1372_v2 = vpop.f32.mrf.mxu1 }
  0xf1   : > { %v660_v9 = vadd.f32 %v648_v1, %v564_v5 }
  0xf2   : > { %v1363_v4 = vpop.f32.mrf.mxu0  ;;  %v912_v26 = vpop.f32.mrf.mxu1 }
  0xf3   : > { %v829_v10 = vadd.f32 %v1363_v4, %v737_v6  ;;  %v736_v14 = vadd.f32 %v724_v54, %v660_v9 }
  0xf4   : > { %v813_v7 = vpop.f32.mrf.mxu0 }
  0xf5   : > { %v827_v12 = vadd.f32 %v813_v7, %v735_v8  ;;  %v925_v15 = vadd.f32 %v1371_v57, %v829_v10 }
  0xf6   : > { %v1364_v11 = vpop.f32.mrf.mxu0 }
  0xf7   : > { %v923_v18 = vadd.f32 %v909_v61, %v827_v12 }
  0xf8   : > { %v816_v13 = vpop.f32.mrf.mxu0 }
  0xf9   : > { %v828_v19 = vadd.f32 %v816_v13, %v736_v14 }
  0xfa   : > { %v1379_v16 = vpop.f32.mrf.mxu0 }
  0xfb   : > { %v1006_v20 = vadd.f32 %v1379_v16, %v925_v15  ;;  %v924_v29 = vadd.f32 %v912_v26, %v828_v19 }
  0xfc   : > { %v990_v21 = vpop.f32.mrf.mxu0 }
  0xfd   : > { %v1016_v23 = vmul.f32 %v1263_v17, %v1006_v20  ;;  %v1004_v24 = vadd.f32 %v990_v21, %v923_v18 }
  0xfe   : > { %v1380_v27 = vpop.f32.mrf.mxu0 }
  0xff   : > { %v1014_v30 = vmul.f32 %v1263_v17, %v1004_v24  ;;  %v1026_v31 = vadd.f32 %v1264_v22, %v1016_v23 }
 0x100   : > { %v993_v32 = vpop.f32.mrf.mxu0 }
 0x101   : > { %v1029_v33 = vmax.f32 %v1026_v31, 0.0  ;;  %v1005_v34 = vadd.f32 %v993_v32, %v924_v29  ;;  %v1024_v35 = vadd.f32 %v1264_v22, %v1014_v30 }
 0x103   : > { %v1050_v36 = vmul.f32 %v1046_v25, %v1029_v33  ;;  %v1015_v37 = vmul.f32 %v1263_v17, %v1005_v34  ;;  %v1027_v38 = vmax.f32 %v1024_v35, 0.0 }
 0x105   : > { %v1272_v40 = vpack.c.bf16 %v1050_v36, %v1050_v36  ;;  %v1048_v41 = vmul.f32 %v1036_v39, %v1027_v38  ;;  %v1025_v42 = vadd.f32 %v1264_v22, %v1015_v37 }
 0x107   : > { %v1089_v43 = vshll.u32 %v1272_v40, 16  ;;  %v1093_v44 = vshrl.u32 %v1272_v40, 16  ;;  %v1270_v45 = vpack.c.bf16 %v1048_v41, %v1048_v41  ;;  %v1028_v47 = vmax.f32 %v1025_v42, 0.0 }
 0x109   : > { %v1091_v48 = vrot.slane %v1089_v43, 5  ;;  %v1095_v49 = vrot.slane %v1093_v44, 4  ;;  %v1070_v50 = vshll.u32 %v1270_v45, 16  ;;  %v1073_v51 = vshrl.u32 %v1270_v45, 16 }
 0x10a   : > { %v1049_v54 = vmul.f32 %v1041_v46, %v1028_v47 }
 0x10b   : > { %v1096_v55 = vor.u32 %v1095_v49, %v1091_v48  ;;  %v1072_v56 = vrot.slane %v1070_v50, 5  ;;  %v1075_v57 = vrot.slane %v1073_v51, 4 }
 0x10c   : > { %v1271_v59 = vpack.c.bf16 %v1049_v54, %v1049_v54 }
 0x10d   : > { %v1097_v60 = vrot.slane %v1096_v55, 4  ;;  %v1076_v61 = vor.u32 %v1075_v57, %v1072_v56  ;;  %v1106_v62 = vsel %vm1651_vm13, %v1072_v56, %v1105_v53 }
 0x10e   : > { %1107 = vst [vmem:[%s1582_s27] sm:$0x8] %v1106_v62  ;;  %v1079_v63 = vshll.u32 %v1271_v59, 16  ;;  %v1083_v0 = vshrl.u32 %v1271_v59, 16 }
 0x10f   : > { %v1112_v1 = vsel %vm1637_vm10, %v1097_v60, %v1111_v58  ;;  %v1077_v2 = vrot.slane %v1076_v61, 4 }
 0x110   : > { %1113 = vst [vmem:[%s1582_s27 + $0xc] sm:$0xf] %v1112_v1  ;;  %v1081_v3 = vrot.slane %v1079_v63, 5  ;;  %v1085_v4 = vrot.slane %v1083_v0, 4 }
 0x112   : > { %v1082_v5 = vsel %vm1068_vm15, %v1077_v2, %v1081_v3  ;;  %v1086_v6 = vor.u32 %v1085_v4, %v1081_v3 }
 0x113   : > { %1109 = vst.msk [vmem:[%s1582_s27 + $0x4] sm:$0xf] %vm1051_vm5, %v1082_v5 }
 0x114   : > { %v1087_v7 = vrot.slane %v1086_v6, 4 }
 0x116   : > { %v1092_v8 = vsel %vm1068_vm15, %v1087_v7, %v1091_v48 }
 0x117   : > { %v1114_v9 = vld [vmem:[%s1582_s27 + $0xc] sm:$0x8]  ;;  %1110 = vst.msk [vmem:[%s1582_s27 + $0x8] sm:$0xf] %vm1051_vm5, %v1092_v8 }
 0x118   : > { %v1115_v10 = vsel %vm1651_vm13, 0, %v1114_v9 }
 0x119   : > { %1116 = vst [vmem:[%s1582_s27 + $0xc] sm:$0x8] %v1115_v10 }
 0x11a PF: > { %s15_s18 = sadd.s32 1, %s1430_s18  }
 0x11b   : > { %p12_p4 = scmp.ge.s32.totalorder %s15_s18, 4  }
 0x11d   :  { %14 = sbr.rel (!%p12_p4) target bundleno = 1 (0x1), region = 78 }

// kernel: generator_forward.28
= control target key start
LH: loop header
LB: loop body
LE: loop exit
PB: predicated region body
PF: predicated region fallthrough
CT: control target
= control target key end

     0   :  { %s1559_s21 = smov 0   ;;  %s1775_s0 = inlined_call_operand.vmem [shape: bf16[2,42,32], index: 0, kind: input, shape index: {}]   ;;  %s1776_s1 = inlined_call_operand.vmem [shape: bf16[9,32,32], index: 1, kind: input, shape index: {}]   ;;  %s1777_s2 = inlined_call_operand.vmem [shape: f32[1,32], index: 2, kind: input, shape index: {}]   ;;  %s1778_s3 = inlined_call_operand.vmem [shape: f32[1,32], index: 3, kind: input, shape index: {}]   ;;  %s1779_s4 = inlined_call_operand.vmem [shape: f32[1,24,1], index: 4, kind: input, shape index: {}]   ;;  %s1780_s5 = inlined_call_operand.vmem [shape: bf16[2,42,32], index: 5, kind: input, shape index: {}]   ;;  %s1781_s6 = inlined_call_operand.vmem [shape: bf16[2,42,32], index: 6, kind: output, shape index: {}]  }
   0x1 LB: > { %s1260_s22 = sadd.s32 4294967295, %s1521_s21   ;;  %p1264_p0 = scmp.ge.s32.totalorder %s1521_s21, 1  ;;  %s1521_s21 = sphi %s1559_s21, %s16_s21  }
   0x2   : > { %p222_p1 = scmp.lt.s32.totalorder %s1521_s21, 3 }
   0x4   : > { %p223_p2 = pnand %p1264_p0, %p222_p1 }
   0x5   : > { %p257_p3 = scmp.lt.s32.totalorder (!%p223_p2), %s1260_s22, 1 }
   0x6   : > { %226 = sbr.rel (%p223_p2) target bundleno = 284 (0x11c), region = 44 }
   0xb   : > { %v1484_v0 = vld [vmem:[%s1776_s1 + $0x18] sm:$0xff]   ;;  %v1485_v1 = vld [vmem:[%s1776_s1 + $0x8] sm:$0xff]   ;;  %v1486_v2 = vld [vmem:[%s1776_s1 + $0x10] sm:$0xff]   ;;  %s1787_s22 = smov (!%p257_p3, %s1260_s22), 1  ;;  %vm324_vm0 = vcmask 261120   ;;  %v1523_v20 = vmov 0  }
   0xc   : > { %1400 = vmatprep.subr.bf16.mxu0 %v1484_v0  ;;  %1408 = vmatprep.subr.bf16.mxu1 %v1485_v1  ;;  %v1487_v3 = vld [vmem:[%s1776_s1] sm:$0xff]   ;;  %s1579_s7 = smul.u32 24, %s1787_s22  ;;  %v1584_v4 = vld [vmem:[%s1776_s1 + $0x28] sm:$0xff]   ;;  %v1492_v5 = vld [vmem:[%s1776_s1 + $0x38] sm:$0xff]   ;;  %vm296_vm1 = vsmask.f32 7424 }
   0xd   : > { %1401 = vmatpush3.bf16.msra.mxu0 %v1484_v0  ;;  %1409 = vmatpush3.bf16.msra.mxu1 %v1485_v1  ;;  %v1494_v13 = vld [vmem:[%s1776_s1 + $0x30] sm:$0xff]   ;;  %vm454_vm2 = vcmask 1046528   ;;  %vm540_vm3 = vcmask 1044480   ;;  %v1499_v32 = vld [vmem:[%s1776_s1 + $0x58] sm:$0xff]   ;;  %v1493_v36 = vld [vmem:[%s1776_s1 + $0x20] sm:$0xff]   ;;  %vm1124_vm5 = vcmask 257024  }
   0xe   : > { %1402 = vmatprep.subr.bf16.mxu0 %v1486_v2  ;;  %1410 = vmatprep.subr.bf16.mxu1 %v1487_v3  ;;  %s1590_s12 = scalar_lea.vmem %s1775_s0, %s1579_s7  ;;  %v1501_v40 = vld [vmem:[%s1776_s1 + $0x50] sm:$0xff]   ;;  %v1498_v44 = vld [vmem:[%s1776_s1 + $0x48] sm:$0xff]   ;;  %vm622_vm4 = vsmask.f32 4352  ;;  %v1506_v56 = vld [vmem:[%s1776_s1 + $0x78] sm:$0xff]   ;;  %s1675_s30 = scalar_lea.vmem %s1781_s6, %s1579_s7  ;;  %vm1191_vm6 = vcmask 253952  }
   0xf   : > { %v273_v6 = vld [vmem:[%s1590_s12] sm:$0xf]  ;;  %v1597_v7 = vld [vmem:[%s1590_s12 + $0x4] sm:$0xf]  ;;  %v1600_v8 = vld [vmem:[%s1590_s12 + $0x8] sm:$0xf]  ;;  %1482 = vset.pattern.permute.xlu0 %v1523_v20  ;;  %1483 = vset.pattern.permute.xlu1 %v1523_v20  ;;  %s266_s29 = scalar_lea.vmem %s1780_s5, %s1579_s7 }
  0x10   : > { %v280_v9 = vld [vmem:[%s1590_s12 + $0xc] sm:$0x1]  ;;  %v1272_v10 = vcombine.low %v273_v6, %v1597_v7  ;;  %v1278_v11 = vcombine.low %v1600_v8, %v1600_v8  ;;  %v445_v14 = vld [vmem:[%s1590_s12] sm:$0xe]  ;;  %v1315_v43 = vcombine.low %v1597_v7, %v1600_v8  ;;  %v785_v52 = vld [vmem:[%s1590_s12 + $0x4] sm:$0xc] }
  0x11   : > { %1403 = vmatpush3.bf16.msra.mxu0 %v1486_v2  ;;  %1411 = vmatpush3.bf16.msra.mxu1 %v1487_v3  ;;  %v1608_v12 = vcombine.low %v1600_v8, %v280_v9  ;;  %v1287_v17 = vcombine.low %v445_v14, %v1597_v7  ;;  %v527_v18 = vld [vmem:[%s1590_s12] sm:$0x8]  ;;  %v528_v19 = vld [vmem:[%s1590_s12 + $0xc] sm:$0x7]  ;;  %v1658_v53 = vld [vmem:[%s1590_s12 + $0x8] sm:$0xf] }
  0x12   : > { %1416 = vmatprep.subr.bf16.mxu0 %v1584_v4  ;;  %1424 = vmatprep.subr.bf16.mxu1 %v1492_v5  ;;  %v298_v15 = vshrl.u32 %v1272_v10, 16  ;;  %v300_v16 = vshll.u32 %v1272_v10, 16  ;;  %v1296_v24 = vcombine.low %v527_v18, %v1597_v7  ;;  %v1297_v27 = vcombine.low %v1600_v8, %v528_v19  ;;  %v1630_v34 = vld [vmem:[%s1590_s12 + $0xc] sm:$0xf]  ;;  %v788_v57 = vld [vmem:[%s1590_s12 + $0x10] sm:$0x3] }
  0x13   : > { %1412 = vmatprep.mubr.msk.bf16.mxu1 %vm324_vm0, %v1272_v10  ;;  %v305_v21 = vshll.u32 %v1608_v12, 16  ;;  %v309_v22 = vshrl.u32 %v1608_v12, 16  ;;  %v456_v23 = vrot.slane %v1608_v12, 1  ;;  %v455_v26 = vrot.slane %v1287_v17, 1  ;;  %v787_v54 = vld [vmem:[%s1590_s12 + $0xc] sm:$0xf] }
  0x14   : > { %1413 = vmatmul.mubr.msk.bf16.vlgmr.msra.gmra.mxu1 %vm324_vm0, %v1278_v11  ;;  %v302_v25 = vrot.slane %v300_v16, 1  ;;  %v541_v29 = vrot.slane %v1296_v24, 3  ;;  %v542_v31 = vrot.slane %v1297_v27, 3  ;;  %v1306_v39 = vcombine.low %v1600_v8, %v1630_v34  ;;  %v877_v59 = vld [vmem:[%s1590_s12 + $0x10] sm:$0x7]  ;;  %v1500_v62 = vld [vmem:[%s1776_s1 + $0x40] sm:$0xff]  }
  0x15   : > { %1425 = vmatpush3.bf16.msra.mxu1 %v1492_v5  ;;  %v307_v28 = vrot.slane %v305_v21, 1  ;;  %v457_v37 = vsel %vm454_vm2, %v455_v26, %v456_v23  ;;  %v624_v41 = vshrl.u32 %v1296_v24, 16  ;;  %v627_v42 = vshll.u32 %v1296_v24, 16  ;;  %1190 = vst.msk [vmem:[%s1675_s30 + $0x10] sm:$0xf] %vm1124_vm5, %v1523_v20  ;;  %v1508_v5 = vld [vmem:[%s1776_s1 + $0x70] sm:$0xff]  }
  0x16   : > { %1426 = vmatprep.subr.bf16.mxu1 %v1494_v13  ;;  %v303_v30 = vor.u32 %v302_v25, %v298_v15  ;;  %v543_v38 = vsel %vm540_vm3, %v541_v29, %v542_v31  ;;  %v632_v45 = vshrl.u32 %v1306_v39, 16  ;;  %v635_v46 = vshll.u32 %v1306_v39, 16  ;;  %v1105_v8 = vld [vmem:[%s1779_s4 + $0x10] sm:$0xff]  ;;  %1192 = vst.msk [vmem:[%s1675_s30 + $0x14] sm:$0x1] %vm1191_vm6, %v1523_v20  ;;  %v1104_v11 = vld [vmem:[%s1779_s4 + $0x8] sm:$0xff] }
  0x17   : > { %v311_v33 = vor.u32 %v309_v22, %v307_v28  ;;  %1428 = vmatprep.mubr.msk.bf16.mxu1 %vm324_vm0, %v543_v38  ;;  %v626_v47 = vrot.slane %v624_v41, 3  ;;  %v629_v48 = vrot.slane %v627_v42, 4  ;;  %v1325_v58 = vcombine.low %v785_v52, %v1658_v53  ;;  %v1504_v12 = vld [vmem:[%s1776_s1 + $0x68] sm:$0xff]   ;;  %v973_v17 = vld [vmem:[%s1590_s12 + $0x4] sm:$0x8]  ;;  %1118 = vperm.xlu0 %1482, %v1105_v8  }
  0x18   : > { %v308_v35 = vsel %vm296_vm1, %v303_v30, %v307_v28  ;;  %v634_v49 = vrot.slane %v632_v45, 3  ;;  %v637_v50 = vrot.slane %v635_v46, 4  ;;  %v1316_v60 = vcombine.low %v1630_v34, %v1630_v34  ;;  %v1103_v18 = vld [vmem:[%s1779_s4] sm:$0xff]  ;;  %1113 = vperm.xlu1 %1483, %v1104_v11   ;;  %v1363_v11 = vld [vmem:[%s266_s29 + $0x8] sm:$0xff]  }
  0x19   : > { %1427 = vmatpush3.bf16.msra.mxu1 %v1494_v13  ;;  %1404 = vmatprep.mubr.msk.bf16.mxu0 %vm324_vm0, %v308_v35  ;;  %v630_v51 = vor.u32 %v629_v48, %v626_v47  ;;  %v1669_v61 = vcombine.low %v787_v54, %v877_v59  ;;  %v1326_v0 = vcombine.low %v787_v54, %v788_v57  ;;  %v888_v1 = vshrl.u32 %v1325_v58, 16  ;;  %v1507_v20 = vld [vmem:[%s1776_s1 + $0x60] sm:$0xff]  }
  0x1a   : > { %1405 = vmatmul.mubr.msk.bf16.vlgmr.msra.gmra.mxu0 %vm324_vm0, %v311_v33  ;;  %1440 = vmatprep.subr.bf16.mxu1 %v1499_v32  ;;  %v638_v55 = vor.u32 %v637_v50, %v634_v49  ;;  %v891_v2 = vshll.u32 %v1325_v58, 16  ;;  %v805_v13 = vrot.slane %v1325_v58, 2  ;;  %vm886_vm7 = vsmask.f32 5376  ;;  %v1513_v26 = vld [vmem:[%s1776_s1 + $0x80] sm:$0xff]  }
  0x1b   : > { %1417 = vmatpush3.bf16.msra.mxu0 %v1584_v4  ;;  %1420 = vmatprep.mubr.msk.bf16.mxu0 %vm324_vm0, %v457_v37  ;;  %v896_v3 = vshrl.u32 %v1669_v61, 16  ;;  %v899_v4 = vshll.u32 %v1669_v61, 16  ;;  %v890_v6 = vrot.slane %v888_v1, 2  ;;  %v806_v14 = vrot.slane %v1326_v0, 2  ;;  %v1127_v29 = vld [vmem:[%s1675_s30] sm:$0xf] }
  0x1c   : > { %1418 = vmatprep.subr.bf16.mxu0 %v1493_v36  ;;  %1429 = vmatmul.mubr.msk.bf16.vlgmr.msra.gmra.mxu1 %vm324_vm0, %v542_v31  ;;  %v639_v63 = vsel %vm622_vm4, %v630_v51, %v638_v55  ;;  %v893_v7 = vrot.slane %v891_v2, 3  ;;  %vm804_vm8 = vcmask 1045504   ;;  %v1344_v22 = vcombine.low %v973_v17, %v1658_v53 }
  0x1d   : > { %1441 = vmatpush3.bf16.msra.mxu1 %v1499_v32  ;;  %1444 = vmatprep.mubr.msk.bf16.mxu1 %vm324_vm0, %v1315_v43  ;;  %v898_v9 = vrot.slane %v896_v3, 2  ;;  %v901_v10 = vrot.slane %v899_v4, 3  ;;  %v807_v21 = vsel %vm804_vm8, %v805_v13, %v806_v14  ;;  %v983_v25 = vrot.slane %v1669_v61, 3 }
  0x1e   : > { %1442 = vmatprep.subr.bf16.mxu1 %v1501_v40  ;;  %v894_v15 = vor.u32 %v893_v7, %v890_v6  ;;  %1108 = vperm.xlu0 %1482, %v1103_v18   ;;  %v982_v24 = vrot.slane %v1344_v22, 3  ;;  %vm1125_vm9 = vsmask.f32 3328  ;;  %v1361_v17 = vunpack.c.l.bf16 %v1363_v11  ;;  %v1349_v22 = vld [vmem:[%s1777_s2] ss:$0 sm:$0xff] }
  0x1f   : > { %1419 = vmatpush3.bf16.msra.mxu0 %v1493_v36  ;;  %v902_v16 = vor.u32 %v901_v10, %v898_v9  ;;  %vm1730_vm10 = vmand %vm1124_vm5, %vm1125_vm9  ;;  %v1362_v18 = vunpack.c.h.bf16 %v1363_v11  ;;  %vm1089_vm11 = vcmask 1040384   ;;  %vm1175_vm12 = vcmask 257027   ;;  %v1184_v11 = vld [vmem:[%s1675_s30 + $0xc] sm:$0xf] }
  0x20   : > { %1432 = vmatprep.subr.bf16.mxu0 %v1498_v44  ;;  %v984_v27 = vsel %vm540_vm3, %v982_v24, %v983_v25  ;;  %v1128_v30 = vsel %vm1730_vm10, 0, %v1127_v29  ;;  %v1350_v29 = vld [vmem:[%s1778_s3] ss:$0 sm:$0xff]  ;;  %vm1176_vm13 = vsmask.f32 7950 }
  0x21   : > { %1443 = vmatpush3.bf16.msra.mxu1 %v1501_v40  ;;  %v903_v19 = vsel %vm886_vm7, %v894_v15, %v902_v16  ;;  %1129 = vst [vmem:[%s1675_s30] sm:$0xf] %v1128_v30  ;;  %v1078_v15 = vld [vmem:[%s266_s29 + $0x4] sm:$0xf]  ;;  %vm1751_vm14 = vmand %vm1175_vm12, %vm1176_vm13  ;;  %vm1140_vm15 = vsmask.f32 7440 }
  0x22   : > { %1421 = vmatmul.mubr.msk.bf16.vlgmr.msra.gmra.mxu0 %vm324_vm0, %v456_v23  ;;  %1456 = vmatprep.subr.bf16.mxu1 %v1506_v56  ;;  %v1512_v23 = vld [vmem:[%s1776_s1 + $0x88] sm:$0xff]   ;;  %v1082_v24 = vunpack.c.l.bf16 %v1078_v15 }
  0x23   : > { %1433 = vmatpush3.bf16.msra.mxu0 %v1498_v44  ;;  %1436 = vmatprep.mubr.msk.bf16.mxu0 %vm324_vm0, %v639_v63 }
  0x24   : > { %1434 = vmatprep.subr.bf16.mxu0 %v1500_v62  ;;  %1445 = vmatmul.mubr.msk.bf16.vlgmr.msra.gmra.mxu1 %vm324_vm0, %v1316_v60 }
  0x25   : > { %1457 = vmatpush3.bf16.msra.mxu1 %v1506_v56  ;;  %1460 = vmatprep.mubr.msk.bf16.mxu1 %vm324_vm0, %v903_v19 }
  0x26   : > { %1458 = vmatprep.subr.bf16.mxu1 %v1508_v5 }
  0x27   : > { %1435 = vmatpush3.bf16.msra.mxu0 %v1500_v62 }
  0x28   : > { %1448 = vmatprep.subr.bf16.mxu0 %v1504_v12 }
  0x29   : > { %1459 = vmatpush3.bf16.msra.mxu1 %v1508_v5 }
  0x2a   : > { %1437 = vmatmul.mubr.msk.bf16.vlgmr.msra.gmra.mxu0 %vm324_vm0, %v638_v55 }
  0x2b   : > { %1449 = vmatpush3.bf16.msra.mxu0 %v1504_v12  ;;  %1452 = vmatprep.mubr.msk.bf16.mxu0 %vm324_vm0, %v807_v21 }
  0x2c   : > { %1450 = vmatprep.subr.bf16.mxu0 %v1507_v20  ;;  %1461 = vmatmul.mubr.msk.bf16.vlgmr.msra.gmra.mxu1 %vm324_vm0, %v902_v16 }
  0x2f   : > { %1451 = vmatpush3.bf16.msra.mxu0 %v1507_v20 }
  0x30   : > { %1464 = vmatprep.subr.bf16.mxu0 %v1512_v23 }
  0x32   : > { %1453 = vmatmul.mubr.msk.bf16.vlgmr.msra.gmra.mxu0 %vm324_vm0, %v806_v14  ;;  %v1077_v14 = vld [vmem:[%s266_s29] sm:$0x8] }
  0x33   : > { %1465 = vmatpush3.bf16.msra.mxu0 %v1512_v23  ;;  %1468 = vmatprep.mubr.msk.bf16.mxu0 %vm324_vm0, %v984_v27  ;;  %v1081_v23 = vunpack.c.l.bf16 %v1077_v14 }
  0x34   : > { %1466 = vmatprep.subr.bf16.mxu0 %v1513_v26 }
  0x37   : > { %1467 = vmatpush3.bf16.msra.mxu0 %v1513_v26 }
  0x3a   : > { %1469 = vmatmul.mubr.msk.bf16.vlgmr.msra.gmra.mxu0 %vm324_vm0, %v983_v25  ;;  %vm1141_vm0 = vmor %vm1125_vm9, %vm1140_vm15 }
  0xd4   : > { %v1414_v31 = vpop.f32.mrf.mxu1 }
  0xd6   : > { %v431_v32 = vpop.f32.mrf.mxu1 }
  0xd8   : > { %v1415_v33 = vpop.f32.mrf.mxu1 }
  0xda   : > { %v434_v34 = vpop.f32.mrf.mxu1  ;;  %v1406_v35 = vpop.f32.mrf.mxu0 }
  0xdb   : > { %v440_v48 = vadd.f32 %v1414_v31, %v1406_v35  ;;  %v1093_v31 = vrot.slane %v1361_v17, 7 }
  0xdc   : > { %v365_v36 = vpop.f32.mrf.mxu0  ;;  %v1430_v37 = vpop.f32.mrf.mxu1 }
  0xdd   : > { %v432_v51 = vadd.f32 %v431_v32, %v365_v36  ;;  %v1095_v32 = vrot.slane %v1362_v18, 7 }
  0xde   : > { %v1407_v38 = vpop.f32.mrf.mxu0  ;;  %v596_v39 = vpop.f32.mrf.mxu1 }
  0xdf   : > { %v1091_v38 = vrot.slane %v1082_v24, 7 }
  0xe0   : > { %v368_v40 = vpop.f32.mrf.mxu0  ;;  %v1431_v41 = vpop.f32.mrf.mxu1 }
  0xe1   : > { %v435_v58 = vadd.f32 %v434_v34, %v368_v40 }
  0xe2   : > { %v1422_v42 = vpop.f32.mrf.mxu0  ;;  %v599_v43 = vpop.f32.mrf.mxu1 }
  0xe3   : > { %v526_v52 = vadd.f32 %v1422_v42, %v440_v48  ;;  %v1119_v42 = vpop.permute.xlu0 %1118 }
  0xe4   : > { %v510_v44 = vpop.f32.mrf.mxu0  ;;  %v1446_v45 = vpop.f32.mrf.mxu1 }
  0xe5   : > { %v524_v55 = vadd.f32 %v510_v44, %v432_v51  ;;  %v612_v59 = vadd.f32 %v1430_v37, %v526_v52  ;;  %v1090_v37 = vrot.slane %v1081_v23, 7 }
  0xe6   : > { %v1423_v46 = vpop.f32.mrf.mxu0  ;;  %v768_v47 = vpop.f32.mrf.mxu1 }
  0xe7   : > { %v610_v62 = vadd.f32 %v596_v39, %v524_v55  ;;  %v1092_v48 = vsel %vm1089_vm11, %v1090_v37, %v1091_v38  ;;  %v1109_v55 = vpop.permute.xlu0 %1108 }
  0xe8   : > { %v513_v49 = vpop.f32.mrf.mxu0  ;;  %v1447_v50 = vpop.f32.mrf.mxu1 }
  0xe9   : > { %v525_v63 = vadd.f32 %v513_v49, %v435_v58 }
  0xea   : > { %v1438_v53 = vpop.f32.mrf.mxu0  ;;  %v771_v54 = vpop.f32.mrf.mxu1 }
  0xeb   : > { %v708_v0 = vadd.f32 %v1438_v53, %v612_v59  ;;  %v611_v5 = vadd.f32 %v599_v43, %v525_v63  ;;  %v1096_v43 = vsel %vm1089_vm11, %v1093_v31, %v1095_v32  ;;  %v1114_v63 = vpop.permute.xlu1 %1113 }
  0xec   : > { %v692_v56 = vpop.f32.mrf.mxu0  ;;  %v1462_v57 = vpop.f32.mrf.mxu1 }
  0xed   : > { %v706_v3 = vadd.f32 %v692_v56, %v610_v62  ;;  %v784_v6 = vadd.f32 %v1446_v45, %v708_v0  ;;  %v1094_v56 = vsel %vm1089_vm11, %v1091_v38, %v1093_v31 }
  0xee   : > { %v1439_v60 = vpop.f32.mrf.mxu0  ;;  %v956_v61 = vpop.f32.mrf.mxu1 }
  0xef   : > { %v782_v8 = vadd.f32 %v768_v47, %v706_v3 }
  0xf0   : > { %v695_v1 = vpop.f32.mrf.mxu0  ;;  %v1463_v2 = vpop.f32.mrf.mxu1 }
  0xf1   : > { %v707_v9 = vadd.f32 %v695_v1, %v611_v5 }
  0xf2   : > { %v1454_v4 = vpop.f32.mrf.mxu0  ;;  %v959_v35 = vpop.f32.mrf.mxu1 }
  0xf3   : > { %v876_v10 = vadd.f32 %v1454_v4, %v784_v6  ;;  %v783_v19 = vadd.f32 %v771_v54, %v707_v9  ;;  %v1178_v6 = vld [vmem:[%s1675_s30] sm:$0x8] }
  0xf4   : > { %v860_v7 = vpop.f32.mrf.mxu0 }
  0xf5   : > { %v874_v13 = vadd.f32 %v860_v7, %v782_v8  ;;  %v972_v20 = vadd.f32 %v1462_v57, %v876_v10 }
  0xf6   : > { %v1455_v12 = vpop.f32.mrf.mxu0 }
  0xf7   : > { %v970_v25 = vadd.f32 %v956_v61, %v874_v13 }
  0xf8   : > { %v863_v16 = vpop.f32.mrf.mxu0 }
  0xf9   : > { %v875_v26 = vadd.f32 %v863_v16, %v783_v19 }
  0xfa   : > { %v1470_v21 = vpop.f32.mrf.mxu0 }
  0xfb   : > { %v1053_v27 = vadd.f32 %v1470_v21, %v972_v20  ;;  %v971_v39 = vadd.f32 %v959_v35, %v875_v26 }
  0xfc   : > { %v1037_v30 = vpop.f32.mrf.mxu0 }
  0xfd   : > { %v1063_v33 = vmul.f32 %v1349_v22, %v1053_v27  ;;  %v1051_v34 = vadd.f32 %v1037_v30, %v970_v25 }
  0xfe   : > { %v1471_v36 = vpop.f32.mrf.mxu0 }
  0xff   : > { %v1073_v40 = vadd.f32 %v1350_v29, %v1063_v33  ;;  %v1061_v41 = vmul.f32 %v1349_v22, %v1051_v34 }
 0x100   : > { %v1040_v44 = vpop.f32.mrf.mxu0 }
 0x101   : > { %v1071_v45 = vadd.f32 %v1350_v29, %v1061_v41  ;;  %v1076_v46 = vmax.f32 %v1073_v40, 0.0  ;;  %v1052_v47 = vadd.f32 %v1040_v44, %v971_v39 }
 0x103   : > { %v1102_v49 = vadd.f32 %v1096_v43, %v1076_v46  ;;  %v1062_v50 = vmul.f32 %v1349_v22, %v1052_v47  ;;  %v1074_v51 = vmax.f32 %v1071_v45, 0.0 }
 0x105   : > { %v1123_v52 = vmul.f32 %v1119_v42, %v1102_v49  ;;  %v1072_v53 = vadd.f32 %v1350_v29, %v1062_v50  ;;  %v1100_v54 = vadd.f32 %v1092_v48, %v1074_v51 }
 0x107   : > { %v1358_v57 = vpack.c.bf16 %v1123_v52, %v1123_v52  ;;  %v1121_v58 = vmul.f32 %v1109_v55, %v1100_v54  ;;  %v1075_v59 = vmax.f32 %v1072_v53, 0.0 }
 0x109   : > { %v1162_v60 = vshll.u32 %v1358_v57, 16  ;;  %v1166_v61 = vshrl.u32 %v1358_v57, 16  ;;  %v1356_v62 = vpack.c.bf16 %v1121_v58, %v1121_v58  ;;  %v1101_v0 = vadd.f32 %v1094_v56, %v1075_v59 }
 0x10b   : > { %v1164_v1 = vrot.slane %v1162_v60, 5  ;;  %v1168_v2 = vrot.slane %v1166_v61, 4  ;;  %v1143_v3 = vshll.u32 %v1356_v62, 16  ;;  %v1146_v4 = vshrl.u32 %v1356_v62, 16 }
 0x10c   : > { %v1122_v7 = vmul.f32 %v1114_v63, %v1101_v0 }
 0x10d   : > { %v1169_v8 = vor.u32 %v1168_v2, %v1164_v1  ;;  %v1145_v9 = vrot.slane %v1143_v3, 5  ;;  %v1148_v10 = vrot.slane %v1146_v4, 4 }
 0x10e   : > { %v1357_v12 = vpack.c.bf16 %v1122_v7, %v1122_v7 }
 0x10f   : > { %v1170_v13 = vrot.slane %v1169_v8, 4  ;;  %v1149_v14 = vor.u32 %v1148_v10, %v1145_v9  ;;  %v1179_v15 = vsel %vm1751_vm14, %v1145_v9, %v1178_v6 }
 0x110   : > { %1180 = vst [vmem:[%s1675_s30] sm:$0x8] %v1179_v15  ;;  %v1152_v16 = vshll.u32 %v1357_v12, 16  ;;  %v1156_v17 = vshrl.u32 %v1357_v12, 16 }
 0x111   : > { %v1185_v18 = vsel %vm1730_vm10, %v1170_v13, %v1184_v11  ;;  %v1150_v19 = vrot.slane %v1149_v14, 4 }
 0x112   : > { %1186 = vst [vmem:[%s1675_s30 + $0xc] sm:$0xf] %v1185_v18  ;;  %v1154_v20 = vrot.slane %v1152_v16, 5  ;;  %v1158_v21 = vrot.slane %v1156_v17, 4 }
 0x114   : > { %v1155_v22 = vsel %vm1141_vm0, %v1150_v19, %v1154_v20  ;;  %v1159_v23 = vor.u32 %v1158_v21, %v1154_v20 }
 0x115   : > { %1182 = vst.msk [vmem:[%s1675_s30 + $0x4] sm:$0xf] %vm1124_vm5, %v1155_v22 }
 0x116   : > { %v1160_v24 = vrot.slane %v1159_v23, 4 }
 0x118   : > { %v1165_v25 = vsel %vm1141_vm0, %v1160_v24, %v1164_v1 }
 0x119   : > { %v1187_v26 = vld [vmem:[%s1675_s30 + $0xc] sm:$0x8]  ;;  %1183 = vst.msk [vmem:[%s1675_s30 + $0x8] sm:$0xf] %vm1124_vm5, %v1165_v25 }
 0x11a   : > { %v1188_v27 = vsel %vm1751_vm14, 0, %v1187_v26 }
 0x11b   : > { %1189 = vst [vmem:[%s1675_s30 + $0xc] sm:$0x8] %v1188_v27 }
 0x11c PF: > { %s16_s21 = sadd.s32 1, %s1521_s21  }
 0x11d   : > { %p13_p4 = scmp.ge.s32.totalorder %s16_s21, 4  }
 0x11f   :  { %15 = sbr.rel (!%p13_p4) target bundleno = 1 (0x1), region = 85 }

// kernel: generator_forward.45
= control target key start
LH: loop header
LB: loop body
LE: loop exit
PB: predicated region body
PF: predicated region fallthrough
CT: control target
= control target key end

     0   :  { %s1574_s15 = smov 0   ;;  %s1768_s0 = inlined_call_operand.vmem [shape: bf16[2,42,32], index: 0, kind: input, shape index: {}]   ;;  %s1769_s1 = inlined_call_operand.vmem [shape: bf16[9,32,16], index: 1, kind: input, shape index: {}]   ;;  %s1770_s2 = inlined_call_operand.vmem [shape: f32[1,16], index: 2, kind: input, shape index: {}]   ;;  %s1771_s3 = inlined_call_operand.vmem [shape: f32[1,16], index: 3, kind: input, shape index: {}]   ;;  %s1772_s4 = inlined_call_operand.vmem [shape: bf16[2,4,24,16], index: 4, kind: output, shape index: {}]  }
   0x1 LB: > { %s1253_s16 = sadd.s32 4294967295, %s1547_s15   ;;  %p1257_p0 = scmp.ge.s32.totalorder %s1547_s15, 1  ;;  %s1547_s15 = sphi %s1574_s15, %s14_s15  }
   0x2   : > { %p162_p1 = scmp.lt.s32.totalorder %s1547_s15, 3 }
   0x4   : > { %p163_p2 = pnand %p1257_p0, %p162_p1 }
   0x5   : > { %p188_p3 = scmp.lt.s32.totalorder (!%p163_p2), %s1253_s16, 1 }
   0x6   : > { %166 = sbr.rel (%p163_p2) target bundleno = 267 (0x10b), region = 36 }
   0xb   : > { %v1506_v0 = vld [vmem:[%s1769_s1 + $0x48] sm:$0xff]   ;;  %v1507_v1 = vld [vmem:[%s1769_s1 + $0x58] sm:$0xff]   ;;  %v1508_v2 = vld [vmem:[%s1769_s1 + $0x40] sm:$0xff]   ;;  %s1774_s16 = smov (!%p188_p3, %s1253_s16), 1  ;;  %vm248_vm0 = vcmask 261120   ;;  %vm907_vm3 = vcmask 1044480  }
   0xc   : > { %1424 = vmatprep.subr.bf16.mxu0 %v1506_v0  ;;  %1432 = vmatprep.subr.bf16.mxu1 %v1507_v1  ;;  %v1509_v3 = vld [vmem:[%s1769_s1 + $0x50] sm:$0xff]   ;;  %s1496_s25 = smul.u32 24, %s1774_s16  ;;  %v1515_v4 = vld [vmem:[%s1769_s1 + $0x38] sm:$0xff]   ;;  %vm218_vm1 = vsmask.f32 4352  ;;  %v1523_v54 = vld [vmem:[%s1769_s1 + $0x28] sm:$0xff]  }
   0xd   : > { %1425 = vmatpush3.bf16.msra.mxu0 %v1506_v0  ;;  %1433 = vmatpush3.bf16.msra.mxu1 %v1507_v1  ;;  %v1608_v5 = vld [vmem:[%s1769_s1 + $0x78] sm:$0xff]   ;;  %v1517_v29 = vld [vmem:[%s1769_s1 + $0x30] sm:$0xff]   ;;  %vm673_vm2 = vsmask.f32 5376  ;;  %s1497_s11 = smul.u32 48, %s1774_s16  ;;  %vm339_vm4 = vcmask 125952  }
   0xe   : > { %1426 = vmatprep.subr.bf16.mxu0 %v1508_v2  ;;  %1434 = vmatprep.subr.bf16.mxu1 %v1509_v3  ;;  %s1603_s30 = scalar_lea.vmem %s1768_s0, %s1496_s25  ;;  %v1518_v41 = vld [vmem:[%s1769_s1 + $0x70] sm:$0xff]   ;;  %v1522_v51 = vld [vmem:[%s1769_s1 + $0x18] sm:$0xff]  }
   0xf   : > { %v1510_v6 = vld [vmem:[%s1603_s30] sm:$0xf8]   ;;  %v1511_v7 = vld [vmem:[%s1603_s30 + $0x8] sm:$0xff]   ;;  %v561_v55 = vld [vmem:[%s1603_s30 + $0x10] sm:$0x7]  ;;  %s1719_s14 = scalar_lea.vmem %s1772_s4, %s1497_s11 }
  0x10   : > { %v343_v8 = vld [vmem:[%s1603_s30 + $0x4] sm:$0xf]  ;;  %v344_v9 = vld [vmem:[%s1603_s30 + $0x8] sm:$0xf]  ;;  %v1615_v10 = vld [vmem:[%s1603_s30 + $0xc] sm:$0xf] }
  0x11   : > { %1427 = vmatpush3.bf16.msra.mxu0 %v1508_v2  ;;  %1435 = vmatpush3.bf16.msra.mxu1 %v1509_v3  ;;  %v220_v11 = vshrl.u32 %v1510_v6, 16  ;;  %v223_v12 = vshll.u32 %v1510_v6, 16  ;;  %v228_v13 = vshrl.u32 %v1511_v7, 16  ;;  %v231_v14 = vshll.u32 %v1511_v7, 16  ;;  %v351_v15 = vld [vmem:[%s1603_s30] sm:$0x8] }
  0x12   : > { %1440 = vmatprep.subr.bf16.mxu0 %v1515_v4  ;;  %1448 = vmatprep.subr.bf16.mxu1 %v1608_v5  ;;  %v1283_v16 = vcombine.low %v351_v15, %v343_v8  ;;  %v1284_v17 = vcombine.low %v344_v9, %v1615_v10  ;;  %v559_v26 = vld [vmem:[%s1603_s30 + $0x8] sm:$0xf]  ;;  %v1289_v30 = vcombine.low %v343_v8, %v344_v9  ;;  %v560_v31 = vld [vmem:[%s1603_s30 + $0xc] sm:$0xf]  ;;  %v1520_v36 = vld [vmem:[%s1603_s30] sm:$0xf8]  }
  0x13   : > { %v222_v18 = vrot.slane %v220_v11, 3  ;;  %v225_v19 = vrot.slane %v223_v12, 4  ;;  %v230_v20 = vrot.slane %v228_v13, 3  ;;  %v233_v21 = vrot.slane %v231_v14, 4  ;;  %v558_v52 = vld [vmem:[%s1603_s30 + $0x4] sm:$0xc] }
  0x14   : > { %v368_v22 = vshrl.u32 %v1283_v16, 16  ;;  %v371_v23 = vshll.u32 %v1283_v16, 16  ;;  %v376_v24 = vshrl.u32 %v1284_v17, 16  ;;  %v379_v25 = vshll.u32 %v1284_v17, 16  ;;  %v798_v57 = vld [vmem:[%s1603_s30 + $0x8] sm:$0xf] }
  0x15   : > { %v226_v27 = vor.u32 %v225_v19, %v222_v18  ;;  %v234_v28 = vor.u32 %v233_v21, %v230_v20  ;;  %v1312_v38 = vcombine.low %v559_v26, %v560_v31  ;;  %v585_v42 = vshrl.u32 %v1520_v36, 16  ;;  %v1524_v60 = vld [vmem:[%s1769_s1 + $0x10] sm:$0xff]   ;;  %v805_v62 = vld [vmem:[%s1603_s30 + $0x4] sm:$0xc]  ;;  %v1530_v15 = vld [vmem:[%s1769_s1 + $0x8] sm:$0xff]  }
  0x16   : > { %v370_v32 = vrot.slane %v368_v22, 3  ;;  %v373_v33 = vrot.slane %v371_v23, 4  ;;  %v378_v34 = vrot.slane %v376_v24, 3  ;;  %v381_v35 = vrot.slane %v379_v25, 4  ;;  %v1653_v2 = vld [vmem:[%s1603_s30 + $0xc] sm:$0x7f]  }
  0x17   : > { %v235_v37 = vsel %vm218_vm1, %v226_v27, %v234_v28  ;;  %v588_v43 = vshll.u32 %v1520_v36, 16  ;;  %v593_v44 = vshrl.u32 %v1312_v38, 16  ;;  %v596_v45 = vshll.u32 %v1312_v38, 16  ;;  %v797_v23 = vld [vmem:[%s1603_s30 + $0x4] sm:$0x8] }
  0x18   : > { %1428 = vmatprep.mubr.msk.bf16.mxu0 %vm248_vm0, %v235_v37  ;;  %v374_v39 = vor.u32 %v373_v33, %v370_v32  ;;  %v382_v40 = vor.u32 %v381_v35, %v378_v34  ;;  %v587_v47 = vrot.slane %v585_v42, 3  ;;  %v1317_v56 = vcombine.low %v558_v52, %v559_v26  ;;  %v977_v25 = vld [vmem:[%s1603_s30 + $0x4] sm:$0xf]  ;;  %v1531_v32 = vld [vmem:[%s1769_s1 + $0x68] sm:$0xff]  }
  0x19   : > { %1429 = vmatmul.mubr.msk.bf16.vlgmr.msra.gmra.mxu0 %vm248_vm0, %v234_v28  ;;  %v590_v48 = vrot.slane %v588_v43, 4  ;;  %v595_v49 = vrot.slane %v593_v44, 3  ;;  %v598_v50 = vrot.slane %v596_v45, 4  ;;  %v1290_v58 = vcombine.low %v1615_v10, %v1615_v10  ;;  %v1525_v10 = vld [vmem:[%s1769_s1 + $0x20] sm:$0xff]  }
  0x1a   : > { %v383_v46 = vsel %vm218_vm1, %v374_v39, %v382_v40  ;;  %1441 = vmatpush3.bf16.msra.mxu0 %v1515_v4  ;;  %1444 = vmatprep.mubr.msk.bf16.mxu0 %vm248_vm0, %v1289_v30  ;;  %v1318_v61 = vcombine.low %v560_v31, %v561_v55  ;;  %v675_v63 = vshrl.u32 %v1317_v56, 16  ;;  %v678_v0 = vshll.u32 %v1317_v56, 16  ;;  %v979_v30 = vld [vmem:[%s1603_s30 + $0xc] sm:$0xf]  ;;  %v1062_v31 = vld [vmem:[%s1603_s30] sm:$0x8] }
  0x1b   : > { %1436 = vmatprep.mubr.msk.bf16.mxu1 %vm248_vm0, %v383_v46  ;;  %1442 = vmatprep.subr.bf16.mxu0 %v1517_v29  ;;  %v591_v53 = vor.u32 %v590_v48, %v587_v47  ;;  %v599_v59 = vor.u32 %v598_v50, %v595_v49  ;;  %v1335_v1 = vcombine.low %v805_v62, %v798_v57  ;;  %v830_v13 = vshrl.u32 %v1653_v2, 16  ;;  %v1532_v35 = vld [vmem:[%s1769_s1] sm:$0xff]   ;;  %v1539_v47 = vld [vmem:[%s1769_s1 + $0x88] sm:$0xff]  }
  0x1c   : > { %1437 = vmatmul.mubr.msk.bf16.vlgmr.msra.gmra.mxu1 %vm248_vm0, %v382_v40  ;;  %v683_v4 = vshrl.u32 %v1318_v61, 16  ;;  %v686_v6 = vshll.u32 %v1318_v61, 16  ;;  %v680_v7 = vrot.slane %v678_v0, 3  ;;  %v833_v14 = vshll.u32 %v1653_v2, 16  ;;  %v1533_v44 = vld [vmem:[%s1769_s1 + $0x60] sm:$0xff]  }
  0x1d   : > { %1449 = vmatpush3.bf16.msra.mxu1 %v1608_v5  ;;  %v600_v3 = vsel %vm218_vm1, %v591_v53, %v599_v59  ;;  %v677_v5 = vrot.slane %v675_v63, 2  ;;  %v822_v8 = vshrl.u32 %v1335_v1, 16  ;;  %v825_v9 = vshll.u32 %v1335_v1, 16  ;;  %v1540_v52 = vld [vmem:[%s1769_s1 + $0x80] sm:$0xff]  }
  0x1e   : > { %1443 = vmatpush3.bf16.msra.mxu0 %v1517_v29  ;;  %1450 = vmatprep.subr.bf16.mxu1 %v1518_v41  ;;  %v685_v11 = vrot.slane %v683_v4, 2  ;;  %v688_v12 = vrot.slane %v686_v6, 3  ;;  %v832_v20 = vrot.slane %v830_v13, 2  ;;  %v835_v21 = vrot.slane %v833_v14, 3  ;;  %v978_v29 = vld [vmem:[%s1603_s30 + $0x8] sm:$0xf] }
  0x1f   : > { %1456 = vmatprep.subr.bf16.mxu0 %v1522_v51  ;;  %1452 = vmatprep.mubr.msk.bf16.mxu1 %vm248_vm0, %v600_v3  ;;  %v681_v16 = vor.u32 %v680_v7, %v677_v5  ;;  %v824_v17 = vrot.slane %v822_v8, 2  ;;  %v827_v18 = vrot.slane %v825_v9, 3  ;;  %v909_v24 = vrot.slane %v1653_v2, 3  ;;  %v1704_v55 = vld [vmem:[%s1770_s2] ss:$0 sm:$0xff] }
  0x20   : > { %v689_v19 = vor.u32 %v688_v12, %v685_v11  ;;  %v836_v27 = vor.u32 %v835_v21, %v832_v20  ;;  %v1341_v28 = vcombine.low %v797_v23, %v798_v57  ;;  %v1360_v33 = vcombine.low %v1062_v31, %v977_v25  ;;  %v1709_v57 = vld [vmem:[%s1771_s3] ss:$0 sm:$0xff] }
  0x21   : > { %1451 = vmatpush3.bf16.msra.mxu1 %v1518_v41  ;;  %1445 = vmatmul.mubr.msk.bf16.vlgmr.msra.gmra.mxu0 %vm248_vm0, %v1290_v58  ;;  %v828_v22 = vor.u32 %v827_v18, %v824_v17  ;;  %v1361_v37 = vcombine.low %v978_v29, %v979_v30  ;;  %v1350_v41 = vcombine.low %v977_v25, %v978_v29 }
  0x22   : > { %1457 = vmatpush3.bf16.msra.mxu0 %v1522_v51  ;;  %1464 = vmatprep.subr.bf16.mxu1 %v1523_v54  ;;  %v690_v26 = vsel %vm673_vm2, %v681_v16, %v689_v19  ;;  %v908_v36 = vrot.slane %v1341_v28, 3  ;;  %v1073_v38 = vshrl.u32 %v1360_v33, 16  ;;  %v1076_v39 = vshll.u32 %v1360_v33, 16 }
  0x23   : > { %1458 = vmatprep.subr.bf16.mxu0 %v1524_v60  ;;  %1460 = vmatprep.mubr.msk.bf16.mxu0 %vm248_vm0, %v690_v26  ;;  %v837_v34 = vsel %vm673_vm2, %v828_v22, %v836_v27  ;;  %v1081_v42 = vshrl.u32 %v1361_v37, 16  ;;  %v1084_v43 = vshll.u32 %v1361_v37, 16 }
  0x24   : > { %1453 = vmatmul.mubr.msk.bf16.vlgmr.msra.gmra.mxu1 %vm248_vm0, %v599_v59  ;;  %v910_v40 = vsel %vm907_vm3, %v908_v36, %v909_v24  ;;  %v1075_v45 = vrot.slane %v1073_v38, 3  ;;  %v1078_v46 = vrot.slane %v1076_v39, 4 }
  0x25   : > { %1465 = vmatpush3.bf16.msra.mxu1 %v1523_v54  ;;  %1468 = vmatprep.mubr.msk.bf16.mxu1 %vm248_vm0, %v837_v34  ;;  %v1083_v48 = vrot.slane %v1081_v42, 3  ;;  %v1086_v49 = vrot.slane %v1084_v43, 4  ;;  %v1351_v54 = vcombine.low %v979_v30, %v979_v30 }
  0x26   : > { %1459 = vmatpush3.bf16.msra.mxu0 %v1524_v60  ;;  %1466 = vmatprep.subr.bf16.mxu1 %v1525_v10  ;;  %v1079_v50 = vor.u32 %v1078_v46, %v1075_v45 }
  0x27   : > { %1472 = vmatprep.subr.bf16.mxu0 %v1530_v15  ;;  %v1087_v51 = vor.u32 %v1086_v49, %v1083_v48 }
  0x29   : > { %1467 = vmatpush3.bf16.msra.mxu1 %v1525_v10  ;;  %1461 = vmatmul.mubr.msk.bf16.vlgmr.msra.gmra.mxu0 %vm248_vm0, %v689_v19  ;;  %v1088_v53 = vsel %vm218_vm1, %v1079_v50, %v1087_v51 }
  0x2a   : > { %1473 = vmatpush3.bf16.msra.mxu0 %v1530_v15  ;;  %1480 = vmatprep.subr.bf16.mxu1 %v1531_v32 }
  0x2b   : > { %1474 = vmatprep.subr.bf16.mxu0 %v1532_v35  ;;  %1476 = vmatprep.mubr.msk.bf16.mxu0 %vm248_vm0, %v910_v40 }
  0x2c   : > { %1469 = vmatmul.mubr.msk.bf16.vlgmr.msra.gmra.mxu1 %vm248_vm0, %v836_v27 }
  0x2d   : > { %1481 = vmatpush3.bf16.msra.mxu1 %v1531_v32  ;;  %1484 = vmatprep.mubr.msk.bf16.mxu1 %vm248_vm0, %v1350_v41 }
  0x2e   : > { %1475 = vmatpush3.bf16.msra.mxu0 %v1532_v35  ;;  %1482 = vmatprep.subr.bf16.mxu1 %v1533_v44 }
  0x2f   : > { %1488 = vmatprep.subr.bf16.mxu0 %v1539_v47 }
  0x31   : > { %1483 = vmatpush3.bf16.msra.mxu1 %v1533_v44  ;;  %1477 = vmatmul.mubr.msk.bf16.vlgmr.msra.gmra.mxu0 %vm248_vm0, %v909_v24 }
  0x32   : > { %1489 = vmatpush3.bf16.msra.mxu0 %v1539_v47  ;;  %1492 = vmatprep.mubr.msk.bf16.mxu0 %vm248_vm0, %v1088_v53 }
  0x33   : > { %1490 = vmatprep.subr.bf16.mxu0 %v1540_v52 }
  0x34   : > { %1485 = vmatmul.mubr.msk.bf16.vlgmr.msra.gmra.mxu1 %vm248_vm0, %v1351_v54 }
  0x36   : > { %1491 = vmatpush3.bf16.msra.mxu0 %v1540_v52 }
  0x39   : > { %1493 = vmatmul.mubr.msk.bf16.vlgmr.msra.gmra.mxu0 %vm248_vm0, %v1087_v51 }
  0xd9   : > { %v1430_v56 = vpop.f32.mrf.mxu0 }
  0xda   : > { %v312_v58 = vmul.f32 %v1430_v56, %v1704_v55 }
  0xdb   : > { %v289_v59 = vpop.f32.mrf.mxu0 }
  0xdc   : > { %v322_v60 = vadd.f32 %v1709_v57, %v312_v58  ;;  %v1438_v61 = vpop.f32.mrf.mxu1  ;;  %v310_v62 = vmul.f32 %v1704_v55, %v289_v59 }
  0xdd   : > { %v1431_v63 = vpop.f32.mrf.mxu0 }
  0xde   : > { %v325_v0 = vmax.f32 %v322_v60, 0.0  ;;  %v320_v1 = vadd.f32 %v1709_v57, %v310_v62  ;;  %v436_v2 = vpop.f32.mrf.mxu1 }
  0xdf   : > { %v292_v3 = vpop.f32.mrf.mxu0 }
  0xe0   : > { %v1378_v4 = vpack.c.bf16 %v325_v0, %v325_v0  ;;  %v323_v6 = vmax.f32 %v320_v1, 0.0  ;;  %v1439_v5 = vpop.f32.mrf.mxu1  ;;  %v311_v7 = vmul.f32 %v1704_v55, %v292_v3 }
  0xe1   : > { %v1446_v8 = vpop.f32.mrf.mxu0 }
  0xe2   : > { %342 = vst.msk [vmem:[%s1719_s14 + $0x8] sm:$0xf] %vm339_vm4, %v1378_v4  ;;  %v1376_v9 = vpack.c.bf16 %v323_v6, %v323_v6  ;;  %v321_v10 = vadd.f32 %v1709_v57, %v311_v7  ;;  %v439_v11 = vpop.f32.mrf.mxu1  ;;  %v513_v12 = vadd.f32 %v1446_v8, %v1438_v61 }
  0xe3   : > { %v504_v13 = vpop.f32.mrf.mxu0 }
  0xe4   : > { %340 = vst.msk [vmem:[%s1719_s14] sm:$0xf] %vm339_vm4, %v1376_v9  ;;  %v324_v14 = vmax.f32 %v321_v10, 0.0  ;;  %v527_v15 = vmul.f32 %v1704_v55, %v513_v12  ;;  %v1454_v16 = vpop.f32.mrf.mxu1  ;;  %v505_v17 = vadd.f32 %v504_v13, %v436_v2 }
  0xe5   : > { %v1447_v18 = vpop.f32.mrf.mxu0 }
  0xe6   : > { %v1377_v19 = vpack.c.bf16 %v324_v14, %v324_v14  ;;  %v537_v20 = vadd.f32 %v1709_v57, %v527_v15  ;;  %v525_v21 = vmul.f32 %v1704_v55, %v505_v17  ;;  %v653_v22 = vpop.f32.mrf.mxu1 }
  0xe7   : > { %v507_v23 = vpop.f32.mrf.mxu0 }
  0xe8   : > { %341 = vst.msk [vmem:[%s1719_s14 + $0x4] sm:$0xf] %vm339_vm4, %v1377_v19  ;;  %v540_v24 = vmax.f32 %v537_v20, 0.0  ;;  %v535_v25 = vadd.f32 %v1709_v57, %v525_v21  ;;  %v1455_v26 = vpop.f32.mrf.mxu1  ;;  %v508_v27 = vadd.f32 %v507_v23, %v439_v11 }
  0xe9   : > { %v1462_v28 = vpop.f32.mrf.mxu0 }
  0xea   : > { %v1381_v29 = vpack.c.bf16 %v540_v24, %v540_v24  ;;  %v538_v30 = vmax.f32 %v535_v25, 0.0  ;;  %v526_v31 = vmul.f32 %v1704_v55, %v508_v27  ;;  %v656_v32 = vpop.f32.mrf.mxu1  ;;  %v752_v33 = vadd.f32 %v1462_v28, %v1454_v16 }
  0xeb   : > { %v743_v34 = vpop.f32.mrf.mxu0 }
  0xec   : > { %1302 = vst.msk [vmem:[%s1719_s14 + $0x14] sm:$0xf] %vm339_vm4, %v1381_v29  ;;  %v1379_v35 = vpack.c.bf16 %v538_v30, %v538_v30  ;;  %v536_v36 = vadd.f32 %v1709_v57, %v526_v31  ;;  %v766_v37 = vmul.f32 %v1704_v55, %v752_v33  ;;  %v1470_v38 = vpop.f32.mrf.mxu1  ;;  %v744_v39 = vadd.f32 %v743_v34, %v653_v22 }
  0xed   : > { %v1463_v40 = vpop.f32.mrf.mxu0 }
  0xee   : > { %1300 = vst.msk [vmem:[%s1719_s14 + $0xc] sm:$0xf] %vm339_vm4, %v1379_v35  ;;  %v539_v41 = vmax.f32 %v536_v36, 0.0  ;;  %v776_v42 = vadd.f32 %v1709_v57, %v766_v37  ;;  %v764_v43 = vmul.f32 %v1704_v55, %v744_v39  ;;  %v890_v44 = vpop.f32.mrf.mxu1 }
  0xef   : > { %v746_v45 = vpop.f32.mrf.mxu0 }
  0xf0   : > { %v1380_v46 = vpack.c.bf16 %v539_v41, %v539_v41  ;;  %v779_v47 = vmax.f32 %v776_v42, 0.0  ;;  %v774_v48 = vadd.f32 %v1709_v57, %v764_v43  ;;  %v1471_v49 = vpop.f32.mrf.mxu1  ;;  %v747_v50 = vadd.f32 %v746_v45, %v656_v32 }
  0xf1   : > { %v1478_v51 = vpop.f32.mrf.mxu0 }
  0xf2   : > { %1301 = vst.msk [vmem:[%s1719_s14 + $0x10] sm:$0xf] %vm339_vm4, %v1380_v46  ;;  %v1384_v52 = vpack.c.bf16 %v779_v47, %v779_v47  ;;  %v777_v53 = vmax.f32 %v774_v48, 0.0  ;;  %v765_v54 = vmul.f32 %v1704_v55, %v747_v50  ;;  %v893_v56 = vpop.f32.mrf.mxu1  ;;  %v972_v61 = vadd.f32 %v1478_v51, %v1470_v38 }
  0xf3   : > { %v963_v58 = vpop.f32.mrf.mxu0 }
  0xf4   : > { %1330 = vst.msk [vmem:[%s1719_s14 + $0x20] sm:$0xf] %vm339_vm4, %v1384_v52  ;;  %v1382_v59 = vpack.c.bf16 %v777_v53, %v777_v53  ;;  %v775_v60 = vadd.f32 %v1709_v57, %v765_v54  ;;  %v1486_v62 = vpop.f32.mrf.mxu1  ;;  %v964_v1 = vadd.f32 %v963_v58, %v890_v44 }
  0xf5   : > { %v1479_v63 = vpop.f32.mrf.mxu0  ;;  %v1061_v6 = vadd.f32 %v1486_v62, %v972_v61 }
  0xf6   : > { %1328 = vst.msk [vmem:[%s1719_s14 + $0x18] sm:$0xf] %vm339_vm4, %v1382_v59  ;;  %v778_v0 = vmax.f32 %v775_v60, 0.0  ;;  %v1045_v2 = vpop.f32.mrf.mxu1 }
  0xf7   : > { %v966_v3 = vpop.f32.mrf.mxu0  ;;  %v1059_v8 = vadd.f32 %v1045_v2, %v964_v1 }
  0xf8   : > { %v1383_v4 = vpack.c.bf16 %v778_v0, %v778_v0  ;;  %v1487_v5 = vpop.f32.mrf.mxu1  ;;  %v967_v9 = vadd.f32 %v966_v3, %v893_v56 }
  0xf9   : > { %v1494_v7 = vpop.f32.mrf.mxu0 }
  0xfa   : > { %1329 = vst.msk [vmem:[%s1719_s14 + $0x1c] sm:$0xf] %vm339_vm4, %v1383_v4  ;;  %v1157_v10 = vadd.f32 %v1494_v7, %v1061_v6  ;;  %v1048_v11 = vpop.f32.mrf.mxu1 }
  0xfb   : > { %v1141_v12 = vpop.f32.mrf.mxu0  ;;  %v1060_v16 = vadd.f32 %v1048_v11, %v967_v9 }
  0xfc   : > { %v1167_v13 = vmul.f32 %v1704_v55, %v1157_v10  ;;  %v1155_v14 = vadd.f32 %v1141_v12, %v1059_v8 }
  0xfd   : > { %v1495_v15 = vpop.f32.mrf.mxu0 }
  0xfe   : > { %v1177_v17 = vadd.f32 %v1709_v57, %v1167_v13  ;;  %v1165_v18 = vmul.f32 %v1704_v55, %v1155_v14 }
  0xff   : > { %v1144_v19 = vpop.f32.mrf.mxu0 }
 0x100   : > { %v1180_v20 = vmax.f32 %v1177_v17, 0.0  ;;  %v1175_v21 = vadd.f32 %v1709_v57, %v1165_v18  ;;  %v1156_v22 = vadd.f32 %v1144_v19, %v1060_v16 }
 0x102   : > { %v1387_v23 = vpack.c.bf16 %v1180_v20, %v1180_v20  ;;  %v1178_v24 = vmax.f32 %v1175_v21, 0.0  ;;  %v1166_v25 = vmul.f32 %v1704_v55, %v1156_v22 }
 0x104   : > { %1373 = vst.msk [vmem:[%s1719_s14 + $0x2c] sm:$0xf] %vm339_vm4, %v1387_v23  ;;  %v1385_v26 = vpack.c.bf16 %v1178_v24, %v1178_v24  ;;  %v1176_v27 = vadd.f32 %v1709_v57, %v1166_v25 }
 0x106   : > { %1371 = vst.msk [vmem:[%s1719_s14 + $0x24] sm:$0xf] %vm339_vm4, %v1385_v26  ;;  %v1179_v28 = vmax.f32 %v1176_v27, 0.0 }
 0x108   : > { %v1386_v29 = vpack.c.bf16 %v1179_v28, %v1179_v28 }
 0x10a   : > { %1372 = vst.msk [vmem:[%s1719_s14 + $0x28] sm:$0xf] %vm339_vm4, %v1386_v29 }
 0x10b PF: > { %s14_s15 = sadd.s32 1, %s1547_s15  }
 0x10c   : > { %p11_p4 = scmp.ge.s32.totalorder %s14_s15, 4  }
 0x10e   :  { %13 = sbr.rel (!%p11_p4) target bundleno = 1 (0x1), region = 77 }

// kernel: generator_forward.46
= control target key start
LH: loop header
LB: loop body
LE: loop exit
PB: predicated region body
PF: predicated region fallthrough
CT: control target
= control target key end

     0   :  { %s2689_s15 = smov 0   ;;  %s3318_s0 = inlined_call_operand.vmem [shape: bf16[2,110,16], index: 0, kind: input, shape index: {}]   ;;  %s3319_s1 = inlined_call_operand.vmem [shape: bf16[9,16,8], index: 1, kind: input, shape index: {}]   ;;  %s3320_s2 = inlined_call_operand.vmem [shape: f32[1,8], index: 2, kind: input, shape index: {}]   ;;  %s3321_s3 = inlined_call_operand.vmem [shape: f32[1,8], index: 3, kind: input, shape index: {}]   ;;  %s3322_s4 = inlined_call_operand.vmem [shape: bf16[2,4,80,8], index: 4, kind: output, shape index: {}]  }
   0x1 LB: > { %s2104_s16 = sadd.s32 4294967295, %s2660_s15   ;;  %p2108_p0 = scmp.ge.s32.totalorder %s2660_s15, 1  ;;  %s2660_s15 = sphi %s2689_s15, %s14_s15  }
   0x2   : > { %p162_p1 = scmp.lt.s32.totalorder %s2660_s15, 3 }
   0x4   : > { %p163_p2 = pnand %p2108_p0, %p162_p1 }
   0x5   : > { %p188_p3 = scmp.lt.s32.totalorder (!%p163_p2), %s2104_s16, 1 }
   0x6   : > { %166 = sbr.rel (%p163_p2) target bundleno = 407 (0x197), region = 36 }
   0xb   : > { %v2606_v0 = vld [vmem:[%s3319_s1 + $0x20] sm:$0xff]   ;;  %v2662_v1 = vmov 0.0   ;;  %vm2663_vm0 = vmmov 0   ;;  %s3324_s16 = smov (!%p188_p3, %s2104_s16), 1  ;;  %vm241_vm1 = vsmask.f32 6400 }
   0xc   : > { %2394 = vmatprep.subr.bf16.mxu0 %v2662_v1  ;;  %2592 = vmatprep.subr.bf16.mxu1 %v2662_v1  ;;  %s2594_s19 = smul.u32 56, %s3324_s16  ;;  %vm301_vm2 = vcmask 130048   ;;  %v2611_v21 = vld [vmem:[%s3319_s1 + $0x18] sm:$0xff]   ;;  %v2612_v35 = vld [vmem:[%s3319_s1 + $0x28] sm:$0xff]   ;;  %vm681_vm3 = vcmask 1045504   ;;  %vm1527_vm5 = vcmask 1044480  }
   0xd   : > { %2395 = vmatpush3.bf16.msra.mxu0 %v2606_v0  ;;  %2593 = vmatpush3.bf16.msra.mxu1 %v2606_v0  ;;  %vm1089_vm4 = vsmask.f32 5376  ;;  %vm474_vm6 = vcmask 60416  }
   0xe   : > { %2396 = vmatprep.mubr.msk.bf16.mxu0 %vm2663_vm0, %v2662_v1  ;;  %2408 = vmatprep.mubr.msk.bf16.mxu1 %vm2663_vm0, %v2662_v1  ;;  %s2714_s22 = scalar_lea.vmem %s3318_s0, %s2594_s19  ;;  %s2595_s19 = smul.u32 160, %s3324_s16 }
   0xf   : > { %2438 = vmatprep.subr.bf16.mxu0 %v2662_v1  ;;  %2416 = vmatprep.subr.bf16.mxu1 %v2662_v1  ;;  %v2607_v2 = vld [vmem:[%s2714_s22 + $0x4] sm:$0xfe]   ;;  %v2608_v3 = vld [vmem:[%s2714_s22 + $0xc] sm:$0xff]   ;;  %v2609_v8 = vld [vmem:[%s2714_s22 + $0x1c] sm:$0xff]  }
  0x10   : > { %v243_v4 = vshrl.u32 %v2607_v2, 16  ;;  %v246_v5 = vshll.u32 %v2607_v2, 16  ;;  %v251_v6 = vshrl.u32 %v2608_v3, 16  ;;  %v254_v7 = vshll.u32 %v2608_v3, 16  ;;  %v2610_v9 = vld [vmem:[%s2714_s22 + $0x24] sm:$0xff]   ;;  %v2613_v18 = vld [vmem:[%s2714_s22 + $0x14] sm:$0xff]  }
  0x11   : > { %v269_v14 = vshrl.u32 %v2609_v8, 16  ;;  %v272_v15 = vshll.u32 %v2609_v8, 16  ;;  %v278_v16 = vshrl.u32 %v2610_v9, 16  ;;  %v281_v17 = vshll.u32 %v2610_v9, 16  ;;  %v2726_v27 = vld [vmem:[%s2714_s22 + $0x8] sm:$0xf] }
  0x12   : > { %v245_v10 = vrot.slane %v243_v4, 1  ;;  %v248_v11 = vrot.slane %v246_v5, 2  ;;  %v253_v12 = vrot.slane %v251_v6, 1  ;;  %v256_v13 = vrot.slane %v254_v7, 2  ;;  %v2730_v32 = vld [vmem:[%s2714_s22 + $0xc] sm:$0xff]   ;;  %v2750_v52 = vld [vmem:[%s2714_s22 + $0x14] sm:$0xff]  }
  0x13   : > { %v2614_v22 = vld [vmem:[%s2714_s22 + $0x2c] ss:$0 sps:$4 sm:$0x33]   ;;  %v271_v23 = vrot.slane %v269_v14, 1  ;;  %v274_v24 = vrot.slane %v272_v15, 2  ;;  %v280_v25 = vrot.slane %v278_v16, 1 }
  0x14   : > { %v249_v19 = vor.u32 %v248_v11, %v245_v10  ;;  %v257_v20 = vor.u32 %v256_v13, %v253_v12  ;;  %v283_v26 = vrot.slane %v281_v17, 2  ;;  %v260_v29 = vshrl.u32 %v2613_v18, 16  ;;  %v499_v37 = vld [vmem:[%s2714_s22 + $0x4] sm:$0xe]  ;;  %v2755_v57 = vld [vmem:[%s2714_s22 + $0xc] sm:$0xf] }
  0x15   : > { %v263_v30 = vshll.u32 %v2613_v18, 16  ;;  %v287_v31 = vshrl.u32 %v2614_v22, 16  ;;  %v275_v33 = vor.u32 %v274_v24, %v271_v23  ;;  %v290_v36 = vshll.u32 %v2614_v22, 16  ;;  %v2760_v58 = vld [vmem:[%s2714_s22 + $0x10] sm:$0xf]  ;;  %v2773_v4 = vld [vmem:[%s2714_s22 + $0x1c] sm:$0xff]  }
  0x16   : > { %v258_v28 = vsel %vm241_vm1, %v249_v19, %v257_v20  ;;  %v284_v34 = vor.u32 %v283_v26, %v280_v25  ;;  %v262_v38 = vrot.slane %v260_v29, 1  ;;  %v2141_v41 = vcombine.low %v499_v37, %v2726_v27  ;;  %v485_v59 = vld [vmem:[%s2714_s22 + $0x4] sm:$0xc]  ;;  %v2776_v5 = vld [vmem:[%s2714_s22 + $0x14] sm:$0xf]  ;;  %v2617_v10 = vld [vmem:[%s3319_s1 + $0x38] sm:$0xff]  }
  0x17   : > { %2397 = vmatmul.mubr.msk.bf16.vlgmr.msra.gmra.mxu0 %vm301_vm2, %v258_v28  ;;  %v265_v39 = vrot.slane %v263_v30, 2  ;;  %v289_v40 = vrot.slane %v287_v31, 1  ;;  %v292_v43 = vrot.slane %v290_v36, 2  ;;  %v540_v45 = vshrl.u32 %v2730_v32, 16  ;;  %v2779_v6 = vld [vmem:[%s2714_s22 + $0x18] sm:$0xf] }
  0x18   : > { %2439 = vmatpush3.bf16.msra.mxu0 %v2611_v21  ;;  %2400 = vmatprep.mubr.msk.bf16.mxu0 %vm2663_vm0, %v2662_v1  ;;  %v285_v42 = vsel %vm241_vm1, %v275_v33, %v284_v34  ;;  %v543_v46 = vshll.u32 %v2730_v32, 16  ;;  %v532_v48 = vshrl.u32 %v2141_v41, 16  ;;  %v535_v49 = vshll.u32 %v2141_v41, 16  ;;  %v2793_v17 = vld [vmem:[%s2714_s22 + $0x1c] sm:$0xf]  ;;  %v2620_v30 = vld [vmem:[%s3319_s1 + $0x8] sm:$0xff]  }
  0x19   : > { %2482 = vmatprep.subr.bf16.mxu0 %v2662_v1  ;;  %2409 = vmatmul.mubr.msk.bf16.vlgmr.msra.gmra.mxu1 %vm301_vm2, %v285_v42  ;;  %v266_v44 = vor.u32 %v265_v39, %v262_v38  ;;  %v293_v47 = vor.u32 %v292_v43, %v289_v40  ;;  %v542_v51 = vrot.slane %v540_v45, 1  ;;  %v549_v60 = vshrl.u32 %v2750_v52, 16  ;;  %v2796_v22 = vld [vmem:[%s2714_s22 + $0x20] sm:$0xf]  ;;  %v2800_v23 = vld [vmem:[%s2714_s22 + $0x24] sm:$0xf] }
  0x1a   : > { %2417 = vmatpush3.bf16.msra.mxu1 %v2612_v35  ;;  %2412 = vmatprep.mubr.msk.bf16.mxu1 %vm2663_vm0, %v2662_v1  ;;  %v534_v54 = vrot.slane %v532_v48, 1  ;;  %v537_v55 = vrot.slane %v535_v49, 2  ;;  %v545_v56 = vrot.slane %v543_v46, 2  ;;  %v552_v63 = vshll.u32 %v2750_v52, 16  ;;  %v2803_v24 = vld [vmem:[%s2714_s22 + $0x28] sm:$0xf] }
  0x1b   : > { %v267_v50 = vsel %vm241_vm1, %v257_v20, %v266_v44  ;;  %2460 = vmatprep.subr.bf16.mxu1 %v2662_v1  ;;  %v294_v53 = vsel %vm241_vm1, %v284_v34, %v293_v47  ;;  %v2187_v0 = vcombine.low %v2755_v57, %v2760_v58  ;;  %v276_v2 = vsel %vm241_vm1, %v266_v44, %v275_v33  ;;  %v2813_v31 = vld [vmem:[%s2714_s22 + $0x24] sm:$0xff]   ;;  %v2635_v33 = vld [vmem:[%s2714_s22 + $0x2c] ss:$0 sps:$4 sm:$0x33]  }
  0x1c   : > { %v538_v61 = vor.u32 %v537_v55, %v534_v54  ;;  %v546_v62 = vor.u32 %v545_v56, %v542_v51  ;;  %v2153_v3 = vcombine.low %v485_v59, %v2726_v27  ;;  %v551_v7 = vrot.slane %v549_v60, 1  ;;  %v2833_v45 = vld [vmem:[%s2714_s22 + $0x2c] ss:$0 sps:$4 sm:$0x33]   ;;  %v2624_v60 = vld [vmem:[%s2714_s22 + $0x4] sm:$0xfe]  }
  0x1d   : > { %v939_v8 = vshrl.u32 %v2187_v0, 16  ;;  %v554_v11 = vrot.slane %v552_v63, 2  ;;  %v942_v12 = vshll.u32 %v2187_v0, 16  ;;  %v2188_v13 = vcombine.low %v2776_v5, %v2779_v6 }
  0x1e   : > { %v547_v9 = vsel %vm241_vm1, %v538_v61, %v546_v62  ;;  %v682_v14 = vrot.slane %v2153_v3, 2  ;;  %v683_v15 = vrot.slane %v2730_v32, 2  ;;  %v558_v16 = vshrl.u32 %v2773_v4, 16  ;;  %v882_v3 = vld [vmem:[%s2714_s22 + $0x8] sm:$0xc] }
  0x1f   : > { %2401 = vmatmul.mubr.msk.bf16.gmra.mxu0 %vm301_vm2, %v267_v50  ;;  %v941_v18 = vrot.slane %v939_v8, 1  ;;  %v944_v19 = vrot.slane %v942_v12, 2  ;;  %v948_v20 = vshrl.u32 %v2188_v13, 16  ;;  %v951_v21 = vshll.u32 %v2188_v13, 16 }
  0x20   : > { %2404 = vmatprep.mubr.msk.bf16.mxu0 %vm2663_vm0, %v2662_v1  ;;  %v555_v25 = vor.u32 %v554_v11, %v551_v7  ;;  %v561_v26 = vshll.u32 %v2773_v4, 16  ;;  %v684_v29 = vsel %vm681_vm3, %v682_v14, %v683_v15  ;;  %v2189_v32 = vcombine.low %v2793_v17, %v2796_v22 }
  0x21   : > { %2413 = vmatmul.mubr.msk.bf16.gmra.mxu1 %vm301_vm2, %v294_v53  ;;  %v950_v27 = vrot.slane %v948_v20, 1  ;;  %v953_v28 = vrot.slane %v951_v21, 2  ;;  %v2819_v34 = vor.u32 %v944_v19, %v941_v18  ;;  %v2190_v36 = vcombine.low %v2800_v23, %v2803_v24 }
  0x22   : > { %2418 = vmatprep.mubr.msk.bf16.mxu1 %vm2663_vm0, %v2662_v1  ;;  %v560_v37 = vrot.slane %v558_v16, 1  ;;  %v685_v38 = vrot.slane %v2750_v52, 2  ;;  %v957_v39 = vshrl.u32 %v2189_v32, 16  ;;  %v960_v40 = vshll.u32 %v2189_v32, 16 }
  0x23   : > { %v954_v35 = vor.u32 %v953_v28, %v950_v27  ;;  %v556_v41 = vsel %vm241_vm1, %v546_v62, %v555_v25  ;;  %v563_v42 = vrot.slane %v561_v26, 2  ;;  %v966_v44 = vshrl.u32 %v2190_v36, 16 }
  0x24   : > { %v959_v46 = vrot.slane %v957_v39, 1  ;;  %v962_v47 = vrot.slane %v960_v40, 2  ;;  %v969_v48 = vshll.u32 %v2190_v36, 16  ;;  %v567_v49 = vshrl.u32 %v2813_v31, 16 }
  0x25   : > { %v2828_v43 = vsel %vm241_vm1, %v2819_v34, %v954_v35  ;;  %v570_v50 = vshll.u32 %v2813_v31, 16  ;;  %v968_v51 = vrot.slane %v966_v44, 1  ;;  %v975_v54 = vshrl.u32 %v2635_v33, 16 }
  0x26   : > { %v963_v52 = vor.u32 %v962_v47, %v959_v46  ;;  %v971_v53 = vrot.slane %v969_v48, 2  ;;  %v978_v55 = vshll.u32 %v2635_v33, 16  ;;  %v564_v56 = vor.u32 %v563_v42, %v560_v37  ;;  %v2873_v33 = vld [vmem:[%s2714_s22 + $0x30] ss:$0 sps:$4 sm:$0x77]  }
  0x27   : > { %2405 = vmatmul.mubr.msk.bf16.gmra.mxu0 %vm301_vm2, %v276_v2  ;;  %v686_v59 = vsel %vm681_vm3, %v683_v15, %v685_v38  ;;  %v977_v63 = vrot.slane %v975_v54, 1  ;;  %v569_v2 = vrot.slane %v567_v49, 1  ;;  %v572_v7 = vrot.slane %v570_v50, 2  ;;  %v1634_v42 = vld [vmem:[%s2714_s22 + $0x8] sm:$0xf]  ;;  %v2648_v50 = vld [vmem:[%s2714_s22 + $0xc] sm:$0xff]  }
  0x28   : > { %2440 = vmatprep.mubr.msk.bf16.mxu0 %vm2663_vm0, %v2662_v1  ;;  %v2844_v61 = vsel %vm241_vm1, %v954_v35, %v963_v52  ;;  %v972_v62 = vor.u32 %v971_v53, %v968_v51  ;;  %v980_v0 = vrot.slane %v978_v55, 2  ;;  %v576_v8 = vshrl.u32 %v2833_v45, 16  ;;  %v2650_v51 = vld [vmem:[%s2714_s22 + $0x14] sm:$0xff]  }
  0x29   : > { %2419 = vmatmul.mubr.msk.bf16.vlgmr.msra.gmra.mxu1 %vm301_vm2, %v547_v9  ;;  %v565_v11 = vsel %vm241_vm1, %v555_v25, %v564_v56  ;;  %v579_v12 = vshll.u32 %v2833_v45, 16  ;;  %v931_v13 = vshrl.u32 %v2624_v60, 16  ;;  %v934_v14 = vshll.u32 %v2624_v60, 16 }
  0x2a   : > { %2461 = vmatpush3.bf16.msra.mxu1 %v2617_v10  ;;  %2422 = vmatprep.mubr.msk.bf16.mxu1 %vm2663_vm0, %v2662_v1  ;;  %v2849_v9 = vsel %vm241_vm1, %v963_v52, %v972_v62  ;;  %v981_v10 = vor.u32 %v980_v0, %v977_v63  ;;  %v687_v15 = vrot.slane %v2773_v4, 2  ;;  %v2199_v16 = vcombine.low %v2760_v58, %v2776_v5  ;;  %v2867_v4 = vld [vmem:[%s2714_s22 + $0x28] sm:$0xff]  }
  0x2b   : > { %2504 = vmatprep.subr.bf16.mxu1 %v2662_v1  ;;  %v2198_v18 = vcombine.low %v882_v3, %v2755_v57  ;;  %v578_v20 = vrot.slane %v576_v8, 1  ;;  %v573_v21 = vor.u32 %v572_v7, %v569_v2  ;;  %v581_v25 = vrot.slane %v579_v12, 2 }
  0x2c   : > { %v2861_v19 = vsel %vm241_vm1, %v972_v62, %v981_v10  ;;  %v933_v26 = vrot.slane %v931_v13, 1  ;;  %v936_v27 = vrot.slane %v934_v14, 2  ;;  %v688_v58 = vsel %vm681_vm3, %v685_v38, %v687_v15  ;;  %v2652_v13 = vld [vmem:[%s2714_s22 + $0x24] sm:$0xff]  }
  0x2d   : > { %v1091_v5 = vshrl.u32 %v2198_v18, 16  ;;  %v1099_v57 = vshrl.u32 %v2199_v16, 16  ;;  %v1094_v28 = vshll.u32 %v2198_v18, 16  ;;  %v691_v32 = vrot.slane %v2833_v45, 2 }
  0x2e   : > { %v574_v35 = vsel %vm241_vm1, %v564_v56, %v573_v21  ;;  %v582_v36 = vor.u32 %v581_v25, %v578_v20  ;;  %v1413_v37 = vshrl.u32 %v2867_v4, 16  ;;  %v1416_v38 = vshll.u32 %v2867_v4, 16  ;;  %v1790_v56 = vld [vmem:[%s2714_s22 + $0x4] sm:$0xe] }
  0x2f   : > { %2441 = vmatmul.mubr.msk.bf16.vlgmr.msra.gmra.mxu0 %vm301_vm2, %v684_v29  ;;  %v1102_v29 = vshll.u32 %v2199_v16, 16  ;;  %v937_v39 = vor.u32 %v936_v27, %v933_v26  ;;  %v1101_v40 = vrot.slane %v1099_v57, 2  ;;  %v2885_v44 = vrot.slane %v1094_v28, 3  ;;  %v2653_v25 = vld [vmem:[%s2714_s22 + $0x2c] ss:$0 sps:$4 sm:$0x33]  }
  0x30   : > { %2483 = vmatpush3.bf16.msra.mxu0 %v2620_v30  ;;  %2444 = vmatprep.mubr.msk.bf16.mxu0 %vm2663_vm0, %v2662_v1  ;;  %v689_v30 = vrot.slane %v2813_v31, 2  ;;  %v2881_v31 = vrot.slane %v1091_v5, 2  ;;  %v1415_v46 = vrot.slane %v1413_v37, 2  ;;  %v1418_v47 = vrot.slane %v1416_v38, 3 }
  0x31   : > { %2526 = vmatprep.subr.bf16.mxu0 %v2662_v1  ;;  %2423 = vmatmul.mubr.msk.bf16.gmra.mxu1 %vm301_vm2, %v556_v41  ;;  %v1633_v41 = vld [vmem:[%s2714_s22 + $0x4] sm:$0xc]  ;;  %v1104_v45 = vrot.slane %v1102_v29, 3  ;;  %v1422_v48 = vshrl.u32 %v2873_v33, 16  ;;  %v1425_v49 = vshll.u32 %v2873_v33, 16  ;;  %v583_v52 = vsel %vm241_vm1, %v573_v21, %v582_v36 }
  0x32   : > { %2426 = vmatprep.mubr.msk.bf16.mxu1 %vm2663_vm0, %v2662_v1  ;;  %v690_v53 = vsel %vm681_vm3, %v687_v15, %v689_v30  ;;  %v692_v54 = vsel %vm681_vm3, %v689_v30, %v691_v32  ;;  %v2255_v55 = vcombine.low %v1633_v41, %v1634_v42  ;;  %v2901_v60 = vsel %vm241_vm1, %v937_v39, %v2819_v34 }
  0x33   : > { %v2905_v62 = vcombine.low %v2779_v6, %v2793_v17  ;;  %v1424_v63 = vrot.slane %v1422_v48, 2  ;;  %v1427_v0 = vrot.slane %v1425_v49, 3  ;;  %v1097_v2 = vor.u32 %v2885_v44, %v2881_v31 }
  0x34   : > { %v2909_v3 = vor.u32 %v1104_v45, %v1101_v40  ;;  %v2911_v7 = vor.u32 %v1418_v47, %v1415_v46  ;;  %v1675_v8 = vrot.slane %v2255_v55, 2  ;;  %v2269_v12 = vcombine.low %v1790_v56, %v1634_v42 }
  0x35   : > { %v1428_v10 = vor.u32 %v1427_v0, %v1424_v63  ;;  %v1678_v34 = vrot.slane %v2650_v51, 2  ;;  %v1806_v6 = vshrl.u32 %v2648_v50, 16  ;;  %v1809_v17 = vshll.u32 %v2648_v50, 16 }
  0x36   : > { %v1815_v15 = vshrl.u32 %v2650_v51, 16  ;;  %v1798_v21 = vshrl.u32 %v2269_v12, 16  ;;  %v1801_v26 = vshll.u32 %v2269_v12, 16  ;;  %v1818_v29 = vshll.u32 %v2650_v51, 16 }
  0x37   : > { %2445 = vmatmul.mubr.msk.bf16.gmra.mxu0 %vm301_vm2, %v686_v59  ;;  %v2651_v59 = vld [vmem:[%s2714_s22 + $0x1c] sm:$0xff]   ;;  %v2919_v16 = vsel %vm1089_vm4, %v2911_v7, %v1428_v10  ;;  %v1808_v27 = vrot.slane %v1806_v6, 1  ;;  %v1682_v30 = vrot.slane %v2652_v13, 2  ;;  %v1684_v40 = vrot.slane %v2653_v25, 2 }
  0x38   : > { %2448 = vmatprep.mubr.msk.bf16.mxu0 %vm2663_vm0, %v2662_v1  ;;  %v1680_v14 = vrot.slane %v2651_v59, 2  ;;  %v1800_v57 = vrot.slane %v1798_v21, 1  ;;  %v1817_v28 = vrot.slane %v1815_v15, 1  ;;  %v1803_v32 = vrot.slane %v1801_v26, 2  ;;  %v2630_v6 = vld [vmem:[%s3319_s1] sm:$0xff]  }
  0x39   : > { %2427 = vmatmul.mubr.msk.bf16.gmra.mxu1 %vm301_vm2, %v565_v11  ;;  %v1676_v11 = vrot.slane %v2648_v50, 2  ;;  %v1824_v36 = vshrl.u32 %v2651_v59, 16  ;;  %v1827_v37 = vshll.u32 %v2651_v59, 16  ;;  %v1820_v38 = vrot.slane %v1818_v29, 2  ;;  %v891_v21 = vld [vmem:[%s2714_s22 + $0x2c] sm:$0xf] }
  0x3a   : > { %2430 = vmatprep.mubr.msk.bf16.mxu1 %vm2663_vm0, %v2662_v1  ;;  %v2929_v5 = vsel %vm681_vm3, %v1678_v34, %v1680_v14  ;;  %v2935_v39 = vsel %vm681_vm3, %v1680_v14, %v1682_v30  ;;  %v1833_v41 = vshrl.u32 %v2652_v13, 16  ;;  %v1804_v42 = vor.u32 %v1803_v32, %v1800_v57  ;;  %v1333_v29 = vld [vmem:[%s2714_s22 + $0xc] sm:$0xf] }
  0x3b   : > { %v2922_v18 = vsel %vm681_vm3, %v1675_v8, %v1676_v11  ;;  %v2925_v20 = vsel %vm681_vm3, %v1676_v11, %v1678_v34  ;;  %v1826_v45 = vrot.slane %v1824_v36, 1  ;;  %v1829_v46 = vrot.slane %v1827_v37, 2 }
  0x3c   : > { %v1836_v47 = vshll.u32 %v2652_v13, 16  ;;  %v1821_v48 = vor.u32 %v1820_v38, %v1817_v28  ;;  %v2938_v49 = vsel %vm681_vm3, %v1682_v30, %v1684_v40  ;;  %v1835_v50 = vrot.slane %v1833_v41, 1  ;;  %v1345_v30 = vld [vmem:[%s2714_s22 + $0x8] sm:$0xc] }
  0x3d   : > { %v1842_v51 = vshrl.u32 %v2653_v25, 16  ;;  %v1830_v55 = vor.u32 %v1829_v46, %v1826_v45  ;;  %v1845_v59 = vshll.u32 %v2653_v25, 16  ;;  %v1108_v63 = vshrl.u32 %v2905_v62, 16 }
  0x3e   : > { %v1838_v56 = vrot.slane %v1836_v47, 2  ;;  %v1111_v0 = vshll.u32 %v2905_v62, 16  ;;  %v1106_v13 = vsel %vm1089_vm4, %v1097_v2, %v2909_v3  ;;  %v2201_v14 = vcombine.low %v2796_v22, %v2800_v23 }
  0x3f   : > { %2449 = vmatmul.mubr.msk.bf16.gmra.mxu0 %vm301_vm2, %v688_v58  ;;  %v1811_v58 = vrot.slane %v1809_v17, 2  ;;  %v2955_v10 = vsel %vm241_vm1, %v1821_v48, %v1830_v55  ;;  %v1847_v12 = vrot.slane %v1845_v59, 2  ;;  %v2202_v26 = vcombine.low %v2803_v24, %v891_v21 }
  0x40   : > { %2452 = vmatprep.mubr.msk.bf16.mxu0 %vm2663_vm0, %v2662_v1  ;;  %v1839_v11 = vor.u32 %v1838_v56, %v1835_v50  ;;  %v1113_v17 = vrot.slane %v1111_v0, 3  ;;  %v1117_v44 = vshrl.u32 %v2201_v14, 16  ;;  %v1120_v2 = vshll.u32 %v2201_v14, 16  ;;  %v1332_v56 = vld [vmem:[%s2714_s22 + $0x8] sm:$0x8] }
  0x41   : > { %2431 = vmatmul.mubr.msk.bf16.gmra.mxu1 %vm301_vm2, %v574_v35  ;;  %v1812_v35 = vor.u32 %v1811_v58, %v1808_v27  ;;  %v1129_v58 = vshll.u32 %v2202_v26, 16  ;;  %v2234_v32 = vcombine.low %v1345_v30, %v1333_v29 }
  0x42   : > { %2434 = vmatprep.mubr.msk.bf16.mxu1 %vm2663_vm0, %v2662_v1  ;;  %v2962_v34 = vsel %vm241_vm1, %v1830_v55, %v1839_v11  ;;  %v1119_v23 = vrot.slane %v1117_v44, 2  ;;  %v1122_v25 = vrot.slane %v1120_v2, 3  ;;  %v2641_v55 = vld [vmem:[%s2714_s22 + $0x18] sm:$0xff]  }
  0x43   : > { %v2952_v8 = vsel %vm241_vm1, %v1812_v35, %v1821_v48  ;;  %v1131_v24 = vrot.slane %v1129_v58, 3  ;;  %v1378_v38 = vshrl.u32 %v2234_v32, 16  ;;  %v1381_v40 = vshll.u32 %v2234_v32, 16 }
  0x44   : > { %v1123_v27 = vor.u32 %v1122_v25, %v1119_v23  ;;  %v1395_v0 = vshrl.u32 %v2641_v55, 16 }
  0x45   : > { %v1380_v48 = vrot.slane %v1378_v38, 2  ;;  %v1383_v50 = vrot.slane %v1381_v40, 3 }
  0x47   : > { %2453 = vmatmul.mubr.msk.bf16.gmra.mxu0 %vm301_vm2, %v690_v53  ;;  %v2945_v53 = vsel %vm241_vm1, %v1804_v42, %v1812_v35  ;;  %v2639_v35 = vld [vmem:[%s2714_s22 + $0x10] sm:$0xff]   ;;  %v1384_v59 = vor.u32 %v1383_v50, %v1380_v48 }
  0x48   : > { %2456 = vmatprep.mubr.msk.bf16.mxu0 %vm2663_vm0, %v2662_v1  ;;  %v1386_v41 = vshrl.u32 %v2639_v35, 16  ;;  %v1389_v42 = vshll.u32 %v2639_v35, 16  ;;  %v1529_v14 = vrot.slane %v2639_v35, 3 }
  0x49   : > { %2435 = vmatmul.mubr.msk.bf16.gmra.mxu1 %vm301_vm2, %v583_v52  ;;  %v2626_v52 = vld [vmem:[%s3319_s1 + $0x10] sm:$0xff]  }
  0x4a   : > { %2462 = vmatprep.mubr.msk.bf16.mxu1 %vm2663_vm0, %v2662_v1 }
  0x4f   : > { %2457 = vmatmul.mubr.msk.bf16.gmra.mxu0 %vm301_vm2, %v692_v54  ;;  %v1844_v54 = vrot.slane %v1842_v51, 1  ;;  %v1388_v51 = vrot.slane %v1386_v41, 2 }
  0x50   : > { %2484 = vmatprep.mubr.msk.bf16.mxu0 %vm2663_vm0, %v2662_v1 }
  0x51   : > { %2463 = vmatmul.mubr.msk.bf16.vlgmr.msra.gmra.mxu1 %vm301_vm2, %v2901_v60  ;;  %v1848_v62 = vor.u32 %v1847_v12, %v1844_v54  ;;  %v1110_v60 = vrot.slane %v1108_v63, 2  ;;  %v1398_v54 = vshll.u32 %v2641_v55, 16  ;;  %v2246_v12 = vcombine.low %v1332_v56, %v1333_v29 }
  0x52   : > { %2505 = vmatpush3.bf16.msra.mxu1 %v2626_v52  ;;  %2466 = vmatprep.mubr.msk.bf16.mxu1 %vm2663_vm0, %v2662_v1  ;;  %v1391_v52 = vrot.slane %v1389_v42, 3  ;;  %v1535_v29 = vrot.slane %v2867_v4, 3 }
  0x53   : > { %2548 = vmatprep.subr.bf16.mxu1 %v2662_v1  ;;  %v2976_v15 = vsel %vm241_vm1, %v1839_v11, %v1848_v62  ;;  %v1114_v31 = vor.u32 %v1113_v17, %v1110_v60  ;;  %v2644_v60 = vld [vmem:[%s2714_s22 + $0x20] sm:$0xff]   ;;  %v1528_v17 = vrot.slane %v2246_v12, 3 }
  0x54   : > { %v1392_v63 = vor.u32 %v1391_v52, %v1388_v51  ;;  %v1404_v44 = vshrl.u32 %v2644_v60, 16  ;;  %v1407_v2 = vshll.u32 %v2644_v60, 16 }
  0x55   : > { %v1115_v22 = vsel %vm1089_vm4, %v2909_v3, %v1114_v31  ;;  %v2637_v3 = vld [vmem:[%s2714_s22 + $0x30] ss:$0 sps:$4 sm:$0x77]   ;;  %v1124_v57 = vsel %vm1089_vm4, %v1114_v31, %v1123_v27  ;;  %v1530_v21 = vsel %vm1527_vm5, %v1528_v17, %v1529_v14  ;;  %s3127_s22 = scalar_lea.vmem %s3322_s4, %s2595_s19 }
  0x56   : > { %v1135_v37 = vshrl.u32 %v2637_v3, 16  ;;  %v1393_v62 = vsel %vm1089_vm4, %v1384_v59, %v1392_v63  ;;  %v1406_v25 = vrot.slane %v1404_v44, 2 }
  0x57   : > { %2485 = vmatmul.mubr.msk.bf16.vlgmr.msra.gmra.mxu0 %vm301_vm2, %v1106_v13  ;;  %v2640_v13 = vld [vmem:[%s3319_s1 + $0x30] sm:$0xff]  }
  0x58   : > { %2527 = vmatpush3.bf16.msra.mxu0 %v2630_v6  ;;  %2488 = vmatprep.mubr.msk.bf16.mxu0 %vm2663_vm0, %v2662_v1  ;;  %v1137_v46 = vrot.slane %v1135_v37, 2  ;;  %v1397_v6 = vrot.slane %v1395_v0, 2 }
  0x59   : > { %2570 = vmatprep.subr.bf16.mxu0 %v2662_v1  ;;  %2467 = vmatmul.mubr.msk.bf16.gmra.mxu1 %vm301_vm2, %v2828_v43  ;;  %v1126_v43 = vshrl.u32 %v2202_v26, 16  ;;  %v1409_v26 = vrot.slane %v1407_v2, 3 }
  0x5a   : > { %2470 = vmatprep.mubr.msk.bf16.mxu1 %vm2663_vm0, %v2662_v1 }
  0x5b   : > { %v1128_v28 = vrot.slane %v1126_v43, 2  ;;  %v1410_v43 = vor.u32 %v1409_v26, %v1406_v25 }
  0x5d   : > { %v1132_v36 = vor.u32 %v1131_v24, %v1128_v28  ;;  %v1420_v24 = vsel %vm1089_vm4, %v1410_v43, %v2911_v7  ;;  %v1537_v7 = vrot.slane %v2873_v33, 3  ;;  %v3112_v33 = vld [vmem:[%s3320_s2] ss:$0 sm:$0xff] }
  0x5f   : > { %2489 = vmatmul.mubr.msk.bf16.gmra.mxu0 %vm301_vm2, %v1115_v22  ;;  %v1133_v45 = vsel %vm1089_vm4, %v1123_v27, %v1132_v36  ;;  %v2643_v22 = vld [vmem:[%s3319_s1 + $0x40] sm:$0xff]   ;;  %v1531_v27 = vrot.slane %v2641_v55, 3  ;;  %v1538_v4 = vsel %vm1527_vm5, %v1535_v29, %v1537_v7 }
  0x60   : > { %2492 = vmatprep.mubr.msk.bf16.mxu0 %vm2663_vm0, %v2662_v1 }
  0x61   : > { %2471 = vmatmul.mubr.msk.bf16.gmra.mxu1 %vm301_vm2, %v2844_v61  ;;  %v1138_v61 = vshll.u32 %v2637_v3, 16  ;;  %v1532_v58 = vsel %vm1527_vm5, %v1529_v14, %v1531_v27 }
  0x62   : > { %2474 = vmatprep.mubr.msk.bf16.mxu1 %vm2663_vm0, %v2662_v1 }
  0x63   : > { %v1140_v47 = vrot.slane %v1138_v61, 3 }
  0x67   : > { %2493 = vmatmul.mubr.msk.bf16.gmra.mxu0 %vm301_vm2, %v1124_v57  ;;  %v1533_v57 = vrot.slane %v2644_v60, 3 }
  0x68   : > { %2496 = vmatprep.mubr.msk.bf16.mxu0 %vm2663_vm0, %v2662_v1 }
  0x69   : > { %2475 = vmatmul.mubr.msk.bf16.gmra.mxu1 %vm301_vm2, %v2849_v9  ;;  %v1141_v9 = vor.u32 %v1140_v47, %v1137_v46  ;;  %v1534_v28 = vsel %vm1527_vm5, %v1531_v27, %v1533_v57  ;;  %v1536_v30 = vsel %vm1527_vm5, %v1533_v57, %v1535_v29 }
  0x6a   : > { %2478 = vmatprep.mubr.msk.bf16.mxu1 %vm2663_vm0, %v2662_v1 }
  0x6b   : > { %v1142_v11 = vsel %vm1089_vm4, %v1132_v36, %v1141_v9 }
  0x6f   : > { %2497 = vmatmul.mubr.msk.bf16.gmra.mxu0 %vm301_vm2, %v1133_v45 }
  0x70   : > { %2500 = vmatprep.mubr.msk.bf16.mxu0 %vm2663_vm0, %v2662_v1 }
  0x71   : > { %2479 = vmatmul.mubr.msk.bf16.gmra.mxu1 %vm301_vm2, %v2861_v19  ;;  %v1400_v19 = vrot.slane %v1398_v54, 3 }
  0x72   : > { %2506 = vmatprep.mubr.msk.bf16.mxu1 %vm2663_vm0, %v2662_v1 }
  0x73   : > { %v1401_v31 = vor.u32 %v1400_v19, %v1397_v6 }
  0x75   : > { %v1402_v23 = vsel %vm1089_vm4, %v1392_v63, %v1401_v31  ;;  %v1411_v3 = vsel %vm1089_vm4, %v1401_v31, %v1410_v43 }
  0x77   : > { %2501 = vmatmul.mubr.msk.bf16.gmra.mxu0 %vm301_vm2, %v1142_v11 }
  0x78   : > { %2528 = vmatprep.mubr.msk.bf16.mxu0 %vm2663_vm0, %v2662_v1 }
  0x79   : > { %2507 = vmatmul.mubr.msk.bf16.vlgmr.msra.gmra.mxu1 %vm301_vm2, %v1393_v62 }
  0x7a   : > { %2549 = vmatpush3.bf16.msra.mxu1 %v2640_v13  ;;  %2510 = vmatprep.mubr.msk.bf16.mxu1 %vm2663_vm0, %v2662_v1 }
  0x7f   : > { %2529 = vmatmul.mubr.msk.bf16.vlgmr.msra.gmra.mxu0 %vm301_vm2, %v1530_v21 }
  0x80   : > { %2571 = vmatpush3.bf16.msra.mxu0 %v2643_v22  ;;  %2532 = vmatprep.mubr.msk.bf16.mxu0 %vm2663_vm0, %v2662_v1 }
  0x81   : > { %2511 = vmatmul.mubr.msk.bf16.gmra.mxu1 %vm301_vm2, %v1402_v23 }
  0x82   : > { %2514 = vmatprep.mubr.msk.bf16.mxu1 %vm2663_vm0, %v2662_v1 }
  0x87   : > { %2533 = vmatmul.mubr.msk.bf16.gmra.mxu0 %vm301_vm2, %v1532_v58 }
  0x88   : > { %2536 = vmatprep.mubr.msk.bf16.mxu0 %vm2663_vm0, %v2662_v1 }
  0x89   : > { %2515 = vmatmul.mubr.msk.bf16.gmra.mxu1 %vm301_vm2, %v1411_v3 }
  0x8a   : > { %2518 = vmatprep.mubr.msk.bf16.mxu1 %vm2663_vm0, %v2662_v1 }
  0x8f   : > { %2537 = vmatmul.mubr.msk.bf16.gmra.mxu0 %vm301_vm2, %v1534_v28 }
  0x90   : > { %2540 = vmatprep.mubr.msk.bf16.mxu0 %vm2663_vm0, %v2662_v1 }
  0x91   : > { %2519 = vmatmul.mubr.msk.bf16.gmra.mxu1 %vm301_vm2, %v1420_v24 }
  0x92   : > { %2522 = vmatprep.mubr.msk.bf16.mxu1 %vm2663_vm0, %v2662_v1 }
  0x97   : > { %2541 = vmatmul.mubr.msk.bf16.gmra.mxu0 %vm301_vm2, %v1536_v30 }
  0x98   : > { %2544 = vmatprep.mubr.msk.bf16.mxu0 %vm2663_vm0, %v2662_v1 }
  0x99   : > { %2523 = vmatmul.mubr.msk.bf16.gmra.mxu1 %vm301_vm2, %v2919_v16 }
  0x9a   : > { %2550 = vmatprep.mubr.msk.bf16.mxu1 %vm2663_vm0, %v2662_v1 }
  0x9f   : > { %2545 = vmatmul.mubr.msk.bf16.gmra.mxu0 %vm301_vm2, %v1538_v4 }
  0xa0   : > { %2572 = vmatprep.mubr.msk.bf16.mxu0 %vm2663_vm0, %v2662_v1 }
  0xa1   : > { %2551 = vmatmul.mubr.msk.bf16.vlgmr.msra.gmra.mxu1 %vm301_vm2, %v2922_v18  ;;  %v3117_v18 = vld [vmem:[%s3321_s3] ss:$0 sm:$0xff] }
  0xa2   : > { %2554 = vmatprep.mubr.msk.bf16.mxu1 %vm2663_vm0, %v2662_v1 }
  0xa7   : > { %2573 = vmatmul.mubr.msk.bf16.vlgmr.msra.gmra.mxu0 %vm301_vm2, %v2945_v53 }
  0xa8   : > { %2576 = vmatprep.mubr.msk.bf16.mxu0 %vm2663_vm0, %v2662_v1 }
  0xa9   : > { %2555 = vmatmul.mubr.msk.bf16.gmra.mxu1 %vm301_vm2, %v2925_v20 }
  0xaa   : > { %2558 = vmatprep.mubr.msk.bf16.mxu1 %vm2663_vm0, %v2662_v1 }
  0xaf   : > { %2577 = vmatmul.mubr.msk.bf16.gmra.mxu0 %vm301_vm2, %v2952_v8 }
  0xb0   : > { %2580 = vmatprep.mubr.msk.bf16.mxu0 %vm2663_vm0, %v2662_v1 }
  0xb1   : > { %2559 = vmatmul.mubr.msk.bf16.gmra.mxu1 %vm301_vm2, %v2929_v5 }
  0xb2   : > { %2562 = vmatprep.mubr.msk.bf16.mxu1 %vm2663_vm0, %v2662_v1 }
  0xb7   : > { %2581 = vmatmul.mubr.msk.bf16.gmra.mxu0 %vm301_vm2, %v2955_v10 }
  0xb8   : > { %2584 = vmatprep.mubr.msk.bf16.mxu0 %vm2663_vm0, %v2662_v1 }
  0xb9   : > { %2563 = vmatmul.mubr.msk.bf16.gmra.mxu1 %vm301_vm2, %v2935_v39 }
  0xba   : > { %2566 = vmatprep.mubr.msk.bf16.mxu1 %vm2663_vm0, %v2662_v1 }
  0xbf   : > { %2585 = vmatmul.mubr.msk.bf16.gmra.mxu0 %vm301_vm2, %v2962_v34 }
  0xc0   : > { %2588 = vmatprep.mubr.msk.bf16.mxu0 %vm2663_vm0, %v2662_v1 }
  0xc1   : > { %2567 = vmatmul.mubr.msk.bf16.gmra.mxu1 %vm301_vm2, %v2938_v49 }
  0xc7   : > { %2589 = vmatmul.mubr.msk.bf16.gmra.mxu0 %vm301_vm2, %v2976_v15 }
  0xd7   : > { %v351_v16 = vpop.f32.mrf.mxu0 }
  0xd8   : > { %v397_v20 = vmul.f32 %v3112_v33, %v351_v16 }
  0xd9   : > { %v2398_v1 = vpop.f32.mrf.mxu0  ;;  %v375_v39 = vpop.f32.mrf.mxu1 }
  0xda   : > { %v414_v5 = vadd.f32 %v3117_v18, %v397_v20  ;;  %v403_v49 = vmul.f32 %v3112_v33, %v375_v39 }
  0xdb   : > { %v354_v53 = vpop.f32.mrf.mxu0  ;;  %v2410_v10 = vpop.f32.mrf.mxu1 }
  0xdc   : > { %v424_v8 = vmax.f32 %v414_v5, 0.0  ;;  %v398_v34 = vmul.f32 %v3112_v33, %v354_v53  ;;  %v420_v15 = vadd.f32 %v3117_v18, %v403_v49 }
  0xdd   : > { %v2399_v32 = vpop.f32.mrf.mxu0  ;;  %v378_v37 = vpop.f32.mrf.mxu1 }
  0xde   : > { %v2300_v35 = vpack.c.bf16 %v424_v8, %v424_v8  ;;  %v415_v36 = vadd.f32 %v3117_v18, %v398_v34  ;;  %v430_v61 = vmax.f32 %v420_v15, 0.0  ;;  %v404_v38 = vmul.f32 %v3112_v33, %v378_v37 }
  0xdf   : > { %v359_v40 = vpop.f32.mrf.mxu0  ;;  %v2411_v42 = vpop.f32.mrf.mxu1 }
  0xe0   : > { %475 = vst.msk [vmem:[%s3127_s22] sm:$0xf] %vm474_vm6, %v2300_v35  ;;  %v425_v41 = vmax.f32 %v415_v36, 0.0  ;;  %v399_v45 = vmul.f32 %v3112_v33, %v359_v40  ;;  %v2306_v46 = vpack.c.bf16 %v430_v61, %v430_v61  ;;  %v421_v47 = vadd.f32 %v3117_v18, %v404_v38 }
  0xe1   : > { %v2402_v48 = vpop.f32.mrf.mxu0  ;;  %v383_v52 = vpop.f32.mrf.mxu1 }
  0xe2   : > { %v2301_v50 = vpack.c.bf16 %v425_v41, %v425_v41  ;;  %v416_v51 = vadd.f32 %v3117_v18, %v399_v45  ;;  %481 = vst.msk [vmem:[%s3127_s22 + $0x18] sm:$0xf] %vm474_vm6, %v2306_v46  ;;  %v431_v55 = vmax.f32 %v421_v47, 0.0  ;;  %v405_v9 = vmul.f32 %v3112_v33, %v383_v52 }
  0xe3   : > { %v362_v56 = vpop.f32.mrf.mxu0  ;;  %v2414_v63 = vpop.f32.mrf.mxu1 }
  0xe4   : > { %476 = vst.msk [vmem:[%s3127_s22 + $0x4] sm:$0xf] %vm474_vm6, %v2301_v50  ;;  %v426_v59 = vmax.f32 %v416_v51, 0.0  ;;  %v400_v0 = vmul.f32 %v3112_v33, %v362_v56  ;;  %v2307_v54 = vpack.c.bf16 %v431_v55, %v431_v55  ;;  %v422_v11 = vadd.f32 %v3117_v18, %v405_v9 }
  0xe5   : > { %v2403_v12 = vpop.f32.mrf.mxu0  ;;  %v386_v6 = vpop.f32.mrf.mxu1 }
  0xe6   : > { %v2302_v62 = vpack.c.bf16 %v426_v59, %v426_v59  ;;  %v417_v13 = vadd.f32 %v3117_v18, %v400_v0  ;;  %482 = vst.msk [vmem:[%s3127_s22 + $0x1c] sm:$0xf] %vm474_vm6, %v2307_v54  ;;  %v432_v19 = vmax.f32 %v422_v11, 0.0  ;;  %v406_v60 = vmul.f32 %v3112_v33, %v386_v6 }
  0xe7   : > { %v367_v17 = vpop.f32.mrf.mxu0  ;;  %v2415_v31 = vpop.f32.mrf.mxu1 }
  0xe8   : > { %477 = vst.msk [vmem:[%s3127_s22 + $0x8] sm:$0xf] %vm474_vm6, %v2302_v62  ;;  %v427_v14 = vmax.f32 %v417_v13, 0.0  ;;  %v401_v44 = vmul.f32 %v3112_v33, %v367_v17  ;;  %v2308_v2 = vpack.c.bf16 %v432_v19, %v432_v19  ;;  %v423_v21 = vadd.f32 %v3117_v18, %v406_v60 }
  0xe9   : > { %v2406_v22 = vpop.f32.mrf.mxu0  ;;  %v639_v26 = vpop.f32.mrf.mxu1 }
  0xea   : > { %v2303_v23 = vpack.c.bf16 %v427_v14, %v427_v14  ;;  %v418_v25 = vadd.f32 %v3117_v18, %v401_v44  ;;  %483 = vst.msk [vmem:[%s3127_s22 + $0x20] sm:$0xf] %vm474_vm6, %v2308_v2  ;;  %v433_v27 = vmax.f32 %v423_v21, 0.0 }
  0xeb   : > { %v370_v43 = vpop.f32.mrf.mxu0  ;;  %v2420_v3 = vpop.f32.mrf.mxu1 }
  0xec   : > { %478 = vst.msk [vmem:[%s3127_s22 + $0xc] sm:$0xf] %vm474_vm6, %v2303_v23  ;;  %v428_v58 = vmax.f32 %v418_v25, 0.0  ;;  %v402_v57 = vmul.f32 %v3112_v33, %v370_v43  ;;  %v2309_v28 = vpack.c.bf16 %v433_v27, %v433_v27 }
  0xed   : > { %v2407_v24 = vpop.f32.mrf.mxu0  ;;  %v642_v7 = vpop.f32.mrf.mxu1 }
  0xee   : > { %v2304_v29 = vpack.c.bf16 %v428_v58, %v428_v58  ;;  %v419_v30 = vadd.f32 %v3117_v18, %v402_v57  ;;  %484 = vst.msk [vmem:[%s3127_s22 + $0x24] sm:$0xf] %vm474_vm6, %v2309_v28 }
  0xef   : > { %v748_v4 = vpop.f32.mrf.mxu0  ;;  %v2421_v20 = vpop.f32.mrf.mxu1 }
  0xf0   : > { %479 = vst.msk [vmem:[%s3127_s22 + $0x10] sm:$0xf] %vm474_vm6, %v2304_v29  ;;  %v429_v16 = vmax.f32 %v419_v30, 0.0  ;;  %v749_v1 = vadd.f32 %v748_v4, %v639_v26 }
  0xf1   : > { %v2442_v5 = vpop.f32.mrf.mxu0  ;;  %v647_v49 = vpop.f32.mrf.mxu1 }
  0xf2   : > { %v2305_v39 = vpack.c.bf16 %v429_v16, %v429_v16  ;;  %v794_v53 = vmul.f32 %v3112_v33, %v749_v1 }
  0xf3   : > { %v751_v8 = vpop.f32.mrf.mxu0  ;;  %v2424_v34 = vpop.f32.mrf.mxu1 }
  0xf4   : > { %480 = vst.msk [vmem:[%s3127_s22 + $0x14] sm:$0xf] %vm474_vm6, %v2305_v39  ;;  %v811_v10 = vadd.f32 %v3117_v18, %v794_v53  ;;  %v752_v15 = vadd.f32 %v751_v8, %v642_v7 }
  0xf5   : > { %v2443_v32 = vpop.f32.mrf.mxu0  ;;  %v650_v36 = vpop.f32.mrf.mxu1 }
  0xf6   : > { %v821_v35 = vmax.f32 %v811_v10, 0.0  ;;  %v795_v37 = vmul.f32 %v3112_v33, %v752_v15 }
  0xf7   : > { %v756_v61 = vpop.f32.mrf.mxu0  ;;  %v2425_v41 = vpop.f32.mrf.mxu1 }
  0xf8   : > { %v2310_v38 = vpack.c.bf16 %v821_v35, %v821_v35  ;;  %v812_v40 = vadd.f32 %v3117_v18, %v795_v37  ;;  %v757_v42 = vadd.f32 %v756_v61, %v647_v49 }
  0xf9   : > { %v2446_v45 = vpop.f32.mrf.mxu0  ;;  %v655_v47 = vpop.f32.mrf.mxu1 }
  0xfa   : > { %2172 = vst.msk [vmem:[%s3127_s22 + $0x28] sm:$0xf] %vm474_vm6, %v2310_v38  ;;  %v822_v46 = vmax.f32 %v812_v40, 0.0  ;;  %v796_v48 = vmul.f32 %v3112_v33, %v757_v42 }
  0xfb   : > { %v759_v50 = vpop.f32.mrf.mxu0  ;;  %v2428_v55 = vpop.f32.mrf.mxu1 }
  0xfc   : > { %v2311_v51 = vpack.c.bf16 %v822_v46, %v822_v46  ;;  %v813_v52 = vadd.f32 %v3117_v18, %v796_v48  ;;  %v760_v9 = vadd.f32 %v759_v50, %v650_v36 }
  0xfd   : > { %v2447_v56 = vpop.f32.mrf.mxu0  ;;  %v658_v63 = vpop.f32.mrf.mxu1 }
  0xfe   : > { %2173 = vst.msk [vmem:[%s3127_s22 + $0x2c] sm:$0xf] %vm474_vm6, %v2311_v51  ;;  %v823_v59 = vmax.f32 %v813_v52, 0.0  ;;  %v797_v0 = vmul.f32 %v3112_v33, %v760_v9 }
  0xff   : > { %v764_v54 = vpop.f32.mrf.mxu0  ;;  %v2429_v62 = vpop.f32.mrf.mxu1 }
 0x100   : > { %v2312_v11 = vpack.c.bf16 %v823_v59, %v823_v59  ;;  %v814_v12 = vadd.f32 %v3117_v18, %v797_v0  ;;  %v765_v13 = vadd.f32 %v764_v54, %v655_v47 }
 0x101   : > { %v2450_v6 = vpop.f32.mrf.mxu0  ;;  %v663_v60 = vpop.f32.mrf.mxu1 }
 0x102   : > { %2174 = vst.msk [vmem:[%s3127_s22 + $0x30] sm:$0xf] %vm474_vm6, %v2312_v11  ;;  %v824_v19 = vmax.f32 %v814_v12, 0.0  ;;  %v798_v17 = vmul.f32 %v3112_v33, %v765_v13 }
 0x103   : > { %v767_v14 = vpop.f32.mrf.mxu0  ;;  %v2432_v2 = vpop.f32.mrf.mxu1 }
 0x104   : > { %v2313_v31 = vpack.c.bf16 %v824_v19, %v824_v19  ;;  %v815_v44 = vadd.f32 %v3117_v18, %v798_v17  ;;  %v768_v21 = vadd.f32 %v767_v14, %v658_v63 }
 0x105   : > { %v2451_v22 = vpop.f32.mrf.mxu0  ;;  %v666_v25 = vpop.f32.mrf.mxu1 }
 0x106   : > { %2175 = vst.msk [vmem:[%s3127_s22 + $0x34] sm:$0xf] %vm474_vm6, %v2313_v31  ;;  %v825_v23 = vmax.f32 %v815_v44, 0.0  ;;  %v799_v26 = vmul.f32 %v3112_v33, %v768_v21 }
 0x107   : > { %v772_v27 = vpop.f32.mrf.mxu0  ;;  %v2433_v3 = vpop.f32.mrf.mxu1 }
 0x108   : > { %v2314_v43 = vpack.c.bf16 %v825_v23, %v825_v23  ;;  %v816_v58 = vadd.f32 %v3117_v18, %v799_v26  ;;  %v773_v57 = vadd.f32 %v772_v27, %v663_v60 }
 0x109   : > { %v2454_v28 = vpop.f32.mrf.mxu0  ;;  %v671_v29 = vpop.f32.mrf.mxu1 }
 0x10a   : > { %2176 = vst.msk [vmem:[%s3127_s22 + $0x38] sm:$0xf] %vm474_vm6, %v2314_v43  ;;  %v826_v24 = vmax.f32 %v816_v58, 0.0  ;;  %v800_v30 = vmul.f32 %v3112_v33, %v773_v57 }
 0x10b   : > { %v775_v7 = vpop.f32.mrf.mxu0  ;;  %v2436_v20 = vpop.f32.mrf.mxu1 }
 0x10c   : > { %v2315_v4 = vpack.c.bf16 %v826_v24, %v826_v24  ;;  %v817_v16 = vadd.f32 %v3117_v18, %v800_v30  ;;  %v776_v1 = vadd.f32 %v775_v7, %v666_v25 }
 0x10d   : > { %v2455_v5 = vpop.f32.mrf.mxu0  ;;  %v674_v49 = vpop.f32.mrf.mxu1 }
 0x10e   : > { %2177 = vst.msk [vmem:[%s3127_s22 + $0x3c] sm:$0xf] %vm474_vm6, %v2315_v4  ;;  %v827_v39 = vmax.f32 %v817_v16, 0.0  ;;  %v801_v53 = vmul.f32 %v3112_v33, %v776_v1 }
 0x10f   : > { %v780_v8 = vpop.f32.mrf.mxu0  ;;  %v2437_v15 = vpop.f32.mrf.mxu1 }
 0x110   : > { %v2316_v10 = vpack.c.bf16 %v827_v39, %v827_v39  ;;  %v818_v34 = vadd.f32 %v3117_v18, %v801_v53  ;;  %v781_v32 = vadd.f32 %v780_v8, %v671_v29 }
 0x111   : > { %v2458_v35 = vpop.f32.mrf.mxu0  ;;  %v1038_v61 = vpop.f32.mrf.mxu1 }
 0x112   : > { %2178 = vst.msk [vmem:[%s3127_s22 + $0x40] sm:$0xf] %vm474_vm6, %v2316_v10  ;;  %v828_v36 = vmax.f32 %v818_v34, 0.0  ;;  %v802_v37 = vmul.f32 %v3112_v33, %v781_v32 }
 0x113   : > { %v783_v38 = vpop.f32.mrf.mxu0  ;;  %v2464_v42 = vpop.f32.mrf.mxu1 }
 0x114   : > { %v2317_v40 = vpack.c.bf16 %v828_v36, %v828_v36  ;;  %v819_v41 = vadd.f32 %v3117_v18, %v802_v37  ;;  %v784_v45 = vadd.f32 %v783_v38, %v674_v49 }
 0x115   : > { %v2459_v46 = vpop.f32.mrf.mxu0  ;;  %v1041_v50 = vpop.f32.mrf.mxu1 }
 0x116   : > { %2179 = vst.msk [vmem:[%s3127_s22 + $0x44] sm:$0xf] %vm474_vm6, %v2317_v40  ;;  %v829_v47 = vmax.f32 %v819_v41, 0.0  ;;  %v803_v48 = vmul.f32 %v3112_v33, %v784_v45 }
 0x117   : > { %v1198_v51 = vpop.f32.mrf.mxu0  ;;  %v2465_v9 = vpop.f32.mrf.mxu1 }
 0x118   : > { %v2318_v52 = vpack.c.bf16 %v829_v47, %v829_v47  ;;  %v820_v55 = vadd.f32 %v3117_v18, %v803_v48  ;;  %v1199_v56 = vadd.f32 %v1198_v51, %v1038_v61 }
 0x119   : > { %v2486_v59 = vpop.f32.mrf.mxu0  ;;  %v1046_v0 = vpop.f32.mrf.mxu1 }
 0x11a   : > { %2180 = vst.msk [vmem:[%s3127_s22 + $0x48] sm:$0xf] %vm474_vm6, %v2318_v52  ;;  %v830_v63 = vmax.f32 %v820_v55, 0.0  ;;  %v1244_v54 = vmul.f32 %v3112_v33, %v1199_v56 }
 0x11b   : > { %v1201_v11 = vpop.f32.mrf.mxu0  ;;  %v2468_v13 = vpop.f32.mrf.mxu1 }
 0x11c   : > { %v2319_v12 = vpack.c.bf16 %v830_v63, %v830_v63  ;;  %v1261_v62 = vadd.f32 %v3117_v18, %v1244_v54  ;;  %v1202_v6 = vadd.f32 %v1201_v11, %v1041_v50 }
 0x11d   : > { %v2487_v19 = vpop.f32.mrf.mxu0  ;;  %v1049_v17 = vpop.f32.mrf.mxu1 }
 0x11e   : > { %2181 = vst.msk [vmem:[%s3127_s22 + $0x4c] sm:$0xf] %vm474_vm6, %v2319_v12  ;;  %v1271_v60 = vmax.f32 %v1261_v62, 0.0  ;;  %v1245_v14 = vmul.f32 %v3112_v33, %v1202_v6 }
 0x11f   : > { %v1206_v31 = vpop.f32.mrf.mxu0  ;;  %v2469_v21 = vpop.f32.mrf.mxu1 }
 0x120   : > { %v2320_v44 = vpack.c.bf16 %v1271_v60, %v1271_v60  ;;  %v1262_v2 = vadd.f32 %v3117_v18, %v1245_v14  ;;  %v1207_v22 = vadd.f32 %v1206_v31, %v1046_v0 }
 0x121   : > { %v2490_v23 = vpop.f32.mrf.mxu0  ;;  %v1054_v26 = vpop.f32.mrf.mxu1 }
 0x122   : > { %2222 = vst.msk [vmem:[%s3127_s22 + $0x50] sm:$0xf] %vm474_vm6, %v2320_v44  ;;  %v1272_v25 = vmax.f32 %v1262_v2, 0.0  ;;  %v1246_v27 = vmul.f32 %v3112_v33, %v1207_v22 }
 0x123   : > { %v1209_v43 = vpop.f32.mrf.mxu0  ;;  %v2472_v57 = vpop.f32.mrf.mxu1 }
 0x124   : > { %v2321_v58 = vpack.c.bf16 %v1272_v25, %v1272_v25  ;;  %v1263_v3 = vadd.f32 %v3117_v18, %v1246_v27  ;;  %v1210_v28 = vadd.f32 %v1209_v43, %v1049_v17 }
 0x125   : > { %v2491_v24 = vpop.f32.mrf.mxu0  ;;  %v1057_v30 = vpop.f32.mrf.mxu1 }
 0x126   : > { %2223 = vst.msk [vmem:[%s3127_s22 + $0x54] sm:$0xf] %vm474_vm6, %v2321_v58  ;;  %v1273_v29 = vmax.f32 %v1263_v3, 0.0  ;;  %v1247_v7 = vmul.f32 %v3112_v33, %v1210_v28 }
 0x127   : > { %v1214_v4 = vpop.f32.mrf.mxu0  ;;  %v2473_v1 = vpop.f32.mrf.mxu1 }
 0x128   : > { %v2322_v16 = vpack.c.bf16 %v1273_v29, %v1273_v29  ;;  %v1264_v20 = vadd.f32 %v3117_v18, %v1247_v7  ;;  %v1215_v5 = vadd.f32 %v1214_v4, %v1054_v26 }
 0x129   : > { %v2494_v39 = vpop.f32.mrf.mxu0  ;;  %v1062_v53 = vpop.f32.mrf.mxu1 }
 0x12a   : > { %2224 = vst.msk [vmem:[%s3127_s22 + $0x58] sm:$0xf] %vm474_vm6, %v2322_v16  ;;  %v1274_v49 = vmax.f32 %v1264_v20, 0.0  ;;  %v1248_v8 = vmul.f32 %v3112_v33, %v1215_v5 }
 0x12b   : > { %v1217_v10 = vpop.f32.mrf.mxu0  ;;  %v2476_v32 = vpop.f32.mrf.mxu1 }
 0x12c   : > { %v2323_v34 = vpack.c.bf16 %v1274_v49, %v1274_v49  ;;  %v1265_v15 = vadd.f32 %v3117_v18, %v1248_v8  ;;  %v1218_v35 = vadd.f32 %v1217_v10, %v1057_v30 }
 0x12d   : > { %v2495_v36 = vpop.f32.mrf.mxu0  ;;  %v1065_v61 = vpop.f32.mrf.mxu1 }
 0x12e   : > { %2225 = vst.msk [vmem:[%s3127_s22 + $0x5c] sm:$0xf] %vm474_vm6, %v2323_v34  ;;  %v1275_v37 = vmax.f32 %v1265_v15, 0.0  ;;  %v1249_v38 = vmul.f32 %v3112_v33, %v1218_v35 }
 0x12f   : > { %v1222_v40 = vpop.f32.mrf.mxu0  ;;  %v2477_v45 = vpop.f32.mrf.mxu1 }
 0x130   : > { %v2324_v41 = vpack.c.bf16 %v1275_v37, %v1275_v37  ;;  %v1266_v42 = vadd.f32 %v3117_v18, %v1249_v38  ;;  %v1223_v46 = vadd.f32 %v1222_v40, %v1062_v53 }
 0x131   : > { %v2498_v47 = vpop.f32.mrf.mxu0  ;;  %v1070_v50 = vpop.f32.mrf.mxu1 }
 0x132   : > { %2226 = vst.msk [vmem:[%s3127_s22 + $0x60] sm:$0xf] %vm474_vm6, %v2324_v41  ;;  %v1276_v48 = vmax.f32 %v1266_v42, 0.0  ;;  %v1250_v51 = vmul.f32 %v3112_v33, %v1223_v46 }
 0x133   : > { %v1225_v52 = vpop.f32.mrf.mxu0  ;;  %v2480_v56 = vpop.f32.mrf.mxu1 }
 0x134   : > { %v2325_v55 = vpack.c.bf16 %v1276_v48, %v1276_v48  ;;  %v1267_v9 = vadd.f32 %v3117_v18, %v1250_v51  ;;  %v1226_v59 = vadd.f32 %v1225_v52, %v1065_v61 }
 0x135   : > { %v2499_v63 = vpop.f32.mrf.mxu0  ;;  %v1073_v54 = vpop.f32.mrf.mxu1 }
 0x136   : > { %2227 = vst.msk [vmem:[%s3127_s22 + $0x64] sm:$0xf] %vm474_vm6, %v2325_v55  ;;  %v1277_v0 = vmax.f32 %v1267_v9, 0.0  ;;  %v1251_v11 = vmul.f32 %v3112_v33, %v1226_v59 }
 0x137   : > { %v1230_v12 = vpop.f32.mrf.mxu0  ;;  %v2481_v6 = vpop.f32.mrf.mxu1 }
 0x138   : > { %v2326_v62 = vpack.c.bf16 %v1277_v0, %v1277_v0  ;;  %v1268_v13 = vadd.f32 %v3117_v18, %v1251_v11  ;;  %v1231_v19 = vadd.f32 %v1230_v12, %v1070_v50 }
 0x139   : > { %v2502_v60 = vpop.f32.mrf.mxu0  ;;  %v1485_v31 = vpop.f32.mrf.mxu1 }
 0x13a   : > { %2228 = vst.msk [vmem:[%s3127_s22 + $0x68] sm:$0xf] %vm474_vm6, %v2326_v62  ;;  %v1278_v17 = vmax.f32 %v1268_v13, 0.0  ;;  %v1252_v14 = vmul.f32 %v3112_v33, %v1231_v19 }
 0x13b   : > { %v1233_v44 = vpop.f32.mrf.mxu0  ;;  %v2508_v22 = vpop.f32.mrf.mxu1 }
 0x13c   : > { %v2327_v2 = vpack.c.bf16 %v1278_v17, %v1278_v17  ;;  %v1269_v21 = vadd.f32 %v3117_v18, %v1252_v14  ;;  %v1234_v23 = vadd.f32 %v1233_v44, %v1073_v54 }
 0x13d   : > { %v2503_v25 = vpop.f32.mrf.mxu0  ;;  %v1488_v43 = vpop.f32.mrf.mxu1 }
 0x13e   : > { %2229 = vst.msk [vmem:[%s3127_s22 + $0x6c] sm:$0xf] %vm474_vm6, %v2327_v2  ;;  %v1279_v26 = vmax.f32 %v1269_v21, 0.0  ;;  %v1253_v27 = vmul.f32 %v3112_v33, %v1234_v23 }
 0x13f   : > { %v1594_v58 = vpop.f32.mrf.mxu0  ;;  %v2509_v28 = vpop.f32.mrf.mxu1 }
 0x140   : > { %v2328_v3 = vpack.c.bf16 %v1279_v26, %v1279_v26  ;;  %v1270_v57 = vadd.f32 %v3117_v18, %v1253_v27  ;;  %v1595_v0 = vadd.f32 %v1594_v58, %v1485_v31 }
 0x141   : > { %v2530_v24 = vpop.f32.mrf.mxu0  ;;  %v1493_v30 = vpop.f32.mrf.mxu1 }
 0x142   : > { %2230 = vst.msk [vmem:[%s3127_s22 + $0x70] sm:$0xf] %vm474_vm6, %v2328_v3  ;;  %v1280_v29 = vmax.f32 %v1270_v57, 0.0 }
 0x143   : > { %v1597_v7 = vpop.f32.mrf.mxu0  ;;  %v2512_v16 = vpop.f32.mrf.mxu1 }
 0x144   : > { %v2329_v4 = vpack.c.bf16 %v1280_v29, %v1280_v29  ;;  %v1598_v6 = vadd.f32 %v1597_v7, %v1488_v43 }
 0x145   : > { %v2531_v20 = vpop.f32.mrf.mxu0  ;;  %v1496_v1 = vpop.f32.mrf.mxu1 }
 0x146   : > { %2231 = vst.msk [vmem:[%s3127_s22 + $0x74] sm:$0xf] %vm474_vm6, %v2329_v4 }
 0x147   : > { %v1602_v5 = vpop.f32.mrf.mxu0  ;;  %v2513_v39 = vpop.f32.mrf.mxu1 }
 0x148   : > { %v1603_v22 = vadd.f32 %v1602_v5, %v1493_v30 }
 0x149   : > { %v2534_v49 = vpop.f32.mrf.mxu0  ;;  %v1501_v53 = vpop.f32.mrf.mxu1 }
 0x14b   : > { %v1605_v8 = vpop.f32.mrf.mxu0  ;;  %v2516_v10 = vpop.f32.mrf.mxu1 }
 0x14c   : > { %v1606_v28 = vadd.f32 %v1605_v8, %v1496_v1 }
 0x14d   : > { %v2535_v34 = vpop.f32.mrf.mxu0  ;;  %v3245_v15 = vpop.f32.mrf.mxu1 }
 0x14f   : > { %v1610_v32 = vpop.f32.mrf.mxu0  ;;  %v2517_v35 = vpop.f32.mrf.mxu1 }
 0x150   : > { %v1611_v10 = vadd.f32 %v1610_v32, %v1501_v53 }
 0x151   : > { %v2538_v36 = vpop.f32.mrf.mxu0  ;;  %v3247_v37 = vpop.f32.mrf.mxu1 }
 0x153   : > { %v3249_v61 = vpop.f32.mrf.mxu0  ;;  %v2520_v38 = vpop.f32.mrf.mxu1 }
 0x155   : > { %v2539_v40 = vpop.f32.mrf.mxu0  ;;  %v3251_v41 = vpop.f32.mrf.mxu1 }
 0x157   : > { %v3253_v42 = vpop.f32.mrf.mxu0  ;;  %v2521_v45 = vpop.f32.mrf.mxu1 }
 0x159   : > { %v2542_v46 = vpop.f32.mrf.mxu0  ;;  %v3255_v47 = vpop.f32.mrf.mxu1 }
 0x15b   : > { %v3257_v48 = vpop.f32.mrf.mxu0  ;;  %v2524_v50 = vpop.f32.mrf.mxu1 }
 0x15d   : > { %v2543_v51 = vpop.f32.mrf.mxu0  ;;  %v3259_v52 = vpop.f32.mrf.mxu1 }
 0x15e   : > { %v1614_v51 = vadd.f32 %v3249_v61, %v3245_v15 }
 0x15f   : > { %v3261_v55 = vpop.f32.mrf.mxu0  ;;  %v2525_v9 = vpop.f32.mrf.mxu1 }
 0x161   : > { %v2546_v56 = vpop.f32.mrf.mxu0  ;;  %v1741_v59 = vpop.f32.mrf.mxu1 }
 0x162   : > { %v1780_v12 = vadd.f32 %v1741_v59, %v1595_v0 }
 0x163   : > { %v3263_v63 = vpop.f32.mrf.mxu0  ;;  %v2552_v54 = vpop.f32.mrf.mxu1 }
 0x165   : > { %v2547_v11 = vpop.f32.mrf.mxu0  ;;  %v1744_v62 = vpop.f32.mrf.mxu1 }
 0x166   : > { %v1781_v14 = vadd.f32 %v1744_v62, %v1598_v6 }
 0x167   : > { %v1905_v13 = vpop.f32.mrf.mxu0  ;;  %v2553_v19 = vpop.f32.mrf.mxu1 }
 0x168   : > { %v1944_v60 = vadd.f32 %v1905_v13, %v1780_v12  ;;  %v1619_v13 = vadd.f32 %v3253_v42, %v3247_v37 }
 0x169   : > { %v2574_v17 = vpop.f32.mrf.mxu0  ;;  %v1749_v44 = vpop.f32.mrf.mxu1 }
 0x16a   : > { %v1961_v2 = vmul.f32 %v3112_v33, %v1944_v60  ;;  %v1782_v27 = vadd.f32 %v1749_v44, %v1603_v22  ;;  %v1622_v22 = vadd.f32 %v3257_v48, %v3251_v41 }
 0x16b   : > { %v1908_v21 = vpop.f32.mrf.mxu0  ;;  %v2556_v25 = vpop.f32.mrf.mxu1 }
 0x16c   : > { %v1978_v23 = vadd.f32 %v3117_v18, %v1961_v2  ;;  %v1945_v31 = vadd.f32 %v1908_v21, %v1781_v14 }
 0x16d   : > { %v2575_v26 = vpop.f32.mrf.mxu0  ;;  %v1752_v3 = vpop.f32.mrf.mxu1 }
 0x16e   : > { %v1988_v58 = vmax.f32 %v1978_v23, 0.0  ;;  %v1962_v43 = vmul.f32 %v3112_v33, %v1945_v31  ;;  %v1783_v16 = vadd.f32 %v1752_v3, %v1606_v28 }
 0x16f   : > { %v1913_v57 = vpop.f32.mrf.mxu0  ;;  %v2557_v7 = vpop.f32.mrf.mxu1 }
 0x170   : > { %v2330_v24 = vpack.c.bf16 %v1988_v58, %v1988_v58  ;;  %v1979_v29 = vadd.f32 %v3117_v18, %v1962_v43  ;;  %v1946_v4 = vadd.f32 %v1913_v57, %v1782_v27  ;;  %v1627_v57 = vadd.f32 %v3261_v55, %v3255_v47 }
 0x171   : > { %v2578_v30 = vpop.f32.mrf.mxu0  ;;  %v1757_v5 = vpop.f32.mrf.mxu1 }
 0x172   : > { %2288 = vst.msk [vmem:[%s3127_s22 + $0x78] sm:$0xf] %vm474_vm6, %v2330_v24  ;;  %v1989_v20 = vmax.f32 %v1979_v29, 0.0  ;;  %v1963_v39 = vmul.f32 %v3112_v33, %v1946_v4  ;;  %v1784_v38 = vadd.f32 %v1757_v5, %v1611_v10  ;;  %v1630_v5 = vadd.f32 %v3263_v63, %v3259_v52 }
 0x173   : > { %v1916_v49 = vpop.f32.mrf.mxu0  ;;  %v2560_v1 = vpop.f32.mrf.mxu1 }
 0x174   : > { %v2331_v34 = vpack.c.bf16 %v1989_v20, %v1989_v20  ;;  %v1980_v35 = vadd.f32 %v3117_v18, %v1963_v39  ;;  %v1947_v8 = vadd.f32 %v1916_v49, %v1783_v16 }
 0x175   : > { %v2579_v36 = vpop.f32.mrf.mxu0  ;;  %v1760_v45 = vpop.f32.mrf.mxu1 }
 0x176   : > { %2289 = vst.msk [vmem:[%s3127_s22 + $0x7c] sm:$0xf] %vm474_vm6, %v2331_v34  ;;  %v1990_v40 = vmax.f32 %v1980_v35, 0.0  ;;  %v1964_v46 = vmul.f32 %v3112_v33, %v1947_v8  ;;  %v1785_v0 = vadd.f32 %v1760_v45, %v1614_v51 }
 0x177   : > { %v1921_v50 = vpop.f32.mrf.mxu0  ;;  %v2561_v32 = vpop.f32.mrf.mxu1 }
 0x178   : > { %v2332_v9 = vpack.c.bf16 %v1990_v40, %v1990_v40  ;;  %v1981_v53 = vadd.f32 %v3117_v18, %v1964_v46  ;;  %v1948_v56 = vadd.f32 %v1921_v50, %v1784_v38 }
 0x179   : > { %v2582_v59 = vpop.f32.mrf.mxu0  ;;  %v1765_v11 = vpop.f32.mrf.mxu1 }
 0x17a   : > { %2290 = vst.msk [vmem:[%s3127_s22 + $0x80] sm:$0xf] %vm474_vm6, %v2332_v9  ;;  %v1991_v54 = vmax.f32 %v1981_v53, 0.0  ;;  %v1965_v12 = vmul.f32 %v3112_v33, %v1948_v56  ;;  %v1786_v17 = vadd.f32 %v1765_v11, %v1619_v13 }
 0x17b   : > { %v1924_v62 = vpop.f32.mrf.mxu0  ;;  %v2564_v61 = vpop.f32.mrf.mxu1 }
 0x17c   : > { %v2333_v6 = vpack.c.bf16 %v1991_v54, %v1991_v54  ;;  %v1982_v15 = vadd.f32 %v3117_v18, %v1965_v12  ;;  %v1949_v19 = vadd.f32 %v1924_v62, %v1785_v0 }
 0x17d   : > { %v2583_v60 = vpop.f32.mrf.mxu0  ;;  %v1768_v44 = vpop.f32.mrf.mxu1 }
 0x17e   : > { %2291 = vst.msk [vmem:[%s3127_s22 + $0x84] sm:$0xf] %vm474_vm6, %v2333_v6  ;;  %v1992_v14 = vmax.f32 %v1982_v15, 0.0  ;;  %v1966_v2 = vmul.f32 %v3112_v33, %v1949_v19  ;;  %v1787_v26 = vadd.f32 %v1768_v44, %v1622_v22 }
 0x17f   : > { %v1929_v21 = vpop.f32.mrf.mxu0  ;;  %v2565_v42 = vpop.f32.mrf.mxu1 }
 0x180   : > { %v2334_v23 = vpack.c.bf16 %v1992_v14, %v1992_v14  ;;  %v1983_v37 = vadd.f32 %v3117_v18, %v1966_v2  ;;  %v1950_v25 = vadd.f32 %v1929_v21, %v1786_v17 }
 0x181   : > { %v2586_v31 = vpop.f32.mrf.mxu0  ;;  %v1773_v58 = vpop.f32.mrf.mxu1 }
 0x182   : > { %2292 = vst.msk [vmem:[%s3127_s22 + $0x88] sm:$0xf] %vm474_vm6, %v2334_v23  ;;  %v1993_v27 = vmax.f32 %v1983_v37, 0.0  ;;  %v1967_v3 = vmul.f32 %v3112_v33, %v1950_v25  ;;  %v1788_v7 = vadd.f32 %v1773_v58, %v1627_v57 }
 0x183   : > { %v1932_v43 = vpop.f32.mrf.mxu0  ;;  %v2568_v48 = vpop.f32.mrf.mxu1 }
 0x184   : > { %v2335_v28 = vpack.c.bf16 %v1993_v27, %v1993_v27  ;;  %v1984_v41 = vadd.f32 %v3117_v18, %v1967_v3  ;;  %v1951_v24 = vadd.f32 %v1932_v43, %v1787_v26 }
 0x185   : > { %v2587_v29 = vpop.f32.mrf.mxu0  ;;  %v1776_v30 = vpop.f32.mrf.mxu1 }
 0x186   : > { %2293 = vst.msk [vmem:[%s3127_s22 + $0x8c] sm:$0xf] %vm474_vm6, %v2335_v28  ;;  %v1994_v4 = vmax.f32 %v1984_v41, 0.0  ;;  %v1968_v16 = vmul.f32 %v3112_v33, %v1951_v24  ;;  %v1789_v34 = vadd.f32 %v1776_v30, %v1630_v5 }
 0x187   : > { %v1937_v20 = vpop.f32.mrf.mxu0  ;;  %v2569_v39 = vpop.f32.mrf.mxu1 }
 0x188   : > { %v2336_v47 = vpack.c.bf16 %v1994_v4, %v1994_v4  ;;  %v1985_v55 = vadd.f32 %v3117_v18, %v1968_v16  ;;  %v1952_v49 = vadd.f32 %v1937_v20, %v1788_v7 }
 0x189   : > { %v2590_v10 = vpop.f32.mrf.mxu0 }
 0x18a   : > { %2294 = vst.msk [vmem:[%s3127_s22 + $0x90] sm:$0xf] %vm474_vm6, %v2336_v47  ;;  %v1995_v35 = vmax.f32 %v1985_v55, 0.0  ;;  %v1969_v1 = vmul.f32 %v3112_v33, %v1952_v49 }
 0x18b   : > { %v1940_v8 = vpop.f32.mrf.mxu0 }
 0x18c   : > { %v2337_v36 = vpack.c.bf16 %v1995_v35, %v1995_v35  ;;  %v1986_v38 = vadd.f32 %v3117_v18, %v1969_v1  ;;  %v1953_v40 = vadd.f32 %v1940_v8, %v1789_v34 }
 0x18d   : > { %v2591_v52 = vpop.f32.mrf.mxu0 }
 0x18e   : > { %2295 = vst.msk [vmem:[%s3127_s22 + $0x94] sm:$0xf] %vm474_vm6, %v2337_v36  ;;  %v1996_v63 = vmax.f32 %v1986_v38, 0.0  ;;  %v1970_v45 = vmul.f32 %v3112_v33, %v1953_v40 }
 0x190   : > { %v2338_v46 = vpack.c.bf16 %v1996_v63, %v1996_v63  ;;  %v1987_v50 = vadd.f32 %v3117_v18, %v1970_v45 }
 0x192   : > { %2296 = vst.msk [vmem:[%s3127_s22 + $0x98] sm:$0xf] %vm474_vm6, %v2338_v46  ;;  %v1997_v51 = vmax.f32 %v1987_v50, 0.0 }
 0x194   : > { %v2339_v9 = vpack.c.bf16 %v1997_v51, %v1997_v51 }
 0x196   : > { %2297 = vst.msk [vmem:[%s3127_s22 + $0x9c] sm:$0xf] %vm474_vm6, %v2339_v9 }
 0x197 PF: > { %s14_s15 = sadd.s32 1, %s2660_s15  }
 0x198   : > { %p11_p4 = scmp.ge.s32.totalorder %s14_s15, 4  }
 0x19a   :  { %13 = sbr.rel (!%p11_p4) target bundleno = 1 (0x1), region = 77 }

// kernel: generator_forward.47
= control target key start
LH: loop header
LB: loop body
LE: loop exit
PB: predicated region body
PF: predicated region fallthrough
CT: control target
= control target key end

     0   :  { %s5105_s18 = smov 0   ;;  %s6770_s0 = inlined_call_operand.vmem [shape: bf16[2,342,8], index: 0, kind: input, shape index: {}]   ;;  %s6771_s1 = inlined_call_operand.vmem [shape: bf16[9,8,3], index: 1, kind: input, shape index: {}]   ;;  %s6772_s2 = inlined_call_operand.vmem [shape: f32[1,3], index: 2, kind: input, shape index: {}]   ;;  %s6773_s3 = inlined_call_operand.vmem [shape: f32[1,3], index: 3, kind: input, shape index: {}]   ;;  %s6774_s4 = inlined_call_operand.vmem [shape: f32[1,288,1], index: 4, kind: input, shape index: {}]   ;;  %s6775_s5 = inlined_call_operand.vmem [shape: f32[2,342,3], index: 5, kind: output, shape index: {}]  }
   0x1 LB: > { %s4149_s19 = sadd.s32 4294967295, %s5071_s18   ;;  %p4153_p0 = scmp.ge.s32.totalorder %s5071_s18, 1  ;;  %s5071_s18 = sphi %s5105_s18, %s15_s18  }
   0x2   : > { %p187_p1 = scmp.lt.s32.totalorder %s5071_s18, 3 }
   0x4   : > { %p188_p2 = pnand %p4153_p0, %p187_p1 }
   0x6   : > { %191 = sbr.rel (%p188_p2) target bundleno = 571 (0x23b), region = 40 }
   0xb   : > { %v4156_v0 = vld [vmem:[%s6771_s1 + $0x4] sm:$0xf]  ;;  %vm563_vm0 = vcmask 1043456   ;;  %p215_p3 = scmp.lt.s32.totalorder %s4149_s19, 1  ;;  %v4212_v2 = vld [vmem:[%s6771_s1 + $0x8] sm:$0xf] }
   0xc   : > { %4907 = vmatprep.subr.msk.bf16.mxu0 %vm563_vm0, %v4156_v0  ;;  %4908 = vmatprep.subr.msk.bf16.mxu1 %vm563_vm0, %v4156_v0  ;;  %v565_v1 = vsel %vm563_vm0, %v4156_v0, 0  ;;  %v262_v3 = vld [vmem:[%s6771_s1] sm:$0xf]  ;;  %vm359_vm1 = vsmask.f32 7424  ;;  %vm508_vm2 = vcmask 64512  }
   0xd   : > { %4564 = vmatpush3.bf16.msra.mxu0 %v565_v1  ;;  %4906 = vmatpush3.bf16.msra.mxu1 %v565_v1  ;;  %s6815_s19 = smov (!%p215_p3, %s4149_s19), 1  ;;  %v1059_v8 = vsel %vm563_vm0, %v4212_v2, 0  ;;  %v781_v16 = vsel %vm563_vm0, %v262_v3, 0  ;;  %v5178_v33 = vld [vmem:[%s6771_s1 + $0x10] sm:$0xf]  ;;  %vm966_vm3 = vcmask 1046528  }
   0xe   : > { %4910 = vmatprep.subr.msk.bf16.mxu0 %vm563_vm0, %v4212_v2  ;;  %4909 = vmatprep.subr.msk.bf16.mxu1 %vm563_vm0, %v262_v3  ;;  %s4917_s26 = smul.u32 172, %s6815_s19  ;;  %v5198_v45 = vld [vmem:[%s6771_s1 + $0xc] sm:$0xf]  ;;  %vm2166_vm4 = vcmask 1045504   ;;  %vm1719_vm5 = vsmask.f32 6400 }
   0xf   : > { %vm3366_vm6 = vcmask 1044480   ;;  %vm2919_vm7 = vsmask.f32 5376  ;;  %vm4048_vm8 = vcmask 23552   ;;  %vm4051_vm9 = vcmask 18432  }
  0x10   : > { %s5133_s29 = scalar_lea.vmem %s6770_s0, %s4917_s26 }
  0x11   : > { %v226_v4 = vld [vmem:[%s5133_s29] sm:$0xf]  ;;  %v5137_v5 = vld [vmem:[%s5133_s29 + $0x4] sm:$0xf]  ;;  %v5143_v7 = vld [vmem:[%s5133_s29 + $0x8] sm:$0xff]  }
  0x12   : > { %v5140_v6 = vcombine.low %v226_v4, %v5137_v5  ;;  %v368_v11 = vshll.u32 %v5143_v7, 16  ;;  %v372_v12 = vshrl.u32 %v5143_v7, 16  ;;  %v5151_v13 = vld [vmem:[%s5133_s29 + $0x50] sm:$0xff]   ;;  %v5154_v14 = vld [vmem:[%s5133_s29 + $0x58] sm:$0xff]   ;;  %v5166_v24 = vld [vmem:[%s5133_s29 + $0x60] sm:$0xff]  }
  0x13   : > { %v5157_v15 = vld [vmem:[%s5133_s29 + $0x10] sm:$0xff]   ;;  %v440_v19 = vshll.u32 %v5151_v13, 16  ;;  %v444_v20 = vshrl.u32 %v5151_v13, 16  ;;  %v448_v21 = vshll.u32 %v5154_v14, 16  ;;  %v452_v22 = vshrl.u32 %v5154_v14, 16  ;;  %v5171_v28 = vld [vmem:[%s5133_s29 + $0x18] sm:$0xff]  }
  0x14   : > { %v361_v9 = vshrl.u32 %v5140_v6, 16  ;;  %v363_v10 = vshll.u32 %v5140_v6, 16  ;;  %v370_v18 = vrot.slane %v368_v11, 1  ;;  %v376_v23 = vshll.u32 %v5157_v15, 16  ;;  %v5184_v37 = vld [vmem:[%s5133_s29 + $0x68] sm:$0xff]   ;;  %v5188_v39 = vld [vmem:[%s5133_s29 + $0x20] sm:$0xff]  }
  0x15   : > { %v5168_v27 = vrot.slane %v440_v19, 1  ;;  %v450_v29 = vrot.slane %v448_v21, 1  ;;  %v456_v31 = vshll.u32 %v5166_v24, 16  ;;  %v380_v32 = vshrl.u32 %v5157_v15, 16  ;;  %v5193_v44 = vld [vmem:[%s5133_s29 + $0x70] sm:$0xff]   ;;  %v5205_v50 = vld [vmem:[%s5133_s29 + $0x28] sm:$0xff]  }
  0x16   : > { %v365_v17 = vrot.slane %v363_v10, 1  ;;  %v374_v26 = vor.u32 %v372_v12, %v370_v18  ;;  %v378_v30 = vrot.slane %v376_v23, 1  ;;  %v384_v36 = vshll.u32 %v5171_v28, 16  ;;  %v5220_v62 = vld [vmem:[%s5133_s29 + $0x78] sm:$0xff]   ;;  %v5230_v10 = vld [vmem:[%s5133_s29 + $0x30] sm:$0xff]   ;;  %v5233_v11 = vld [vmem:[%s5133_s29 + $0x80] sm:$0xff]  }
  0x17   : > { %v446_v35 = vor.u32 %v444_v20, %v5168_v27  ;;  %v460_v38 = vshrl.u32 %v5166_v24, 16  ;;  %v454_v40 = vor.u32 %v452_v22, %v450_v29  ;;  %v458_v42 = vrot.slane %v456_v31, 1  ;;  %v5242_v23 = vld [vmem:[%s5133_s29 + $0x38] sm:$0xff]  }
  0x18   : > { %v366_v25 = vor.u32 %v365_v17, %v361_v9  ;;  %v379_v41 = vsel %vm359_vm1, %v374_v26, %v378_v30  ;;  %v382_v43 = vor.u32 %v380_v32, %v378_v30  ;;  %v386_v47 = vrot.slane %v384_v36, 1  ;;  %v5247_v26 = vld [vmem:[%s5133_s29 + $0x88] sm:$0xff]  }
  0x19   : > { %v451_v46 = vsel %vm359_vm1, %v446_v35, %v450_v29  ;;  %v464_v48 = vshll.u32 %v5184_v37, 16  ;;  %v388_v49 = vshrl.u32 %v5171_v28, 16  ;;  %v459_v51 = vsel %vm359_vm1, %v454_v40, %v458_v42  ;;  %v5259_v40 = vld [vmem:[%s5133_s29 + $0x48] sm:$0xff]  }
  0x1a   : > { %v371_v34 = vsel %vm359_vm1, %v366_v25, %v370_v18  ;;  %4585 = vmatprep.mubr.msk.bf16.mxu1 %vm508_vm2, %v451_v46  ;;  %v462_v52 = vor.u32 %v460_v38, %v458_v42  ;;  %v392_v53 = vshll.u32 %v5188_v39, 16  ;;  %v468_v54 = vshrl.u32 %v5184_v37, 16  ;;  %v5256_v38 = vld [vmem:[%s5133_s29 + $0x40] sm:$0xff]  }
  0x1b   : > { %4565 = vmatprep.mubr.msk.bf16.mxu0 %vm508_vm2, %v371_v34  ;;  %4586 = vmatmul.mubr.msk.bf16.vlgmr.msra.gmra.mxu1 %vm508_vm2, %v459_v51  ;;  %v387_v55 = vsel %vm359_vm1, %v382_v43, %v386_v47  ;;  %v466_v56 = vrot.slane %v464_v48, 1  ;;  %v390_v57 = vor.u32 %v388_v49, %v386_v47  ;;  %v472_v58 = vshll.u32 %v5193_v44, 16  ;;  %v4948_v43 = vld [vmem:[%s5133_s29 + $0x90] ss:$0 sps:$4 sm:$0x11]  }
  0x1c   : > { %4566 = vmatmul.mubr.msk.bf16.vlgmr.msra.gmra.mxu0 %vm508_vm2, %v379_v41  ;;  %4602 = vmatpush3.bf16.msra.mxu1 %v781_v16  ;;  %v394_v59 = vrot.slane %v392_v53, 1  ;;  %v396_v60 = vshrl.u32 %v5188_v39, 16  ;;  %v400_v61 = vshll.u32 %v5205_v50, 16  ;;  %v476_v2 = vshrl.u32 %v5193_v44, 16 }
  0x1d   : > { %4640 = vmatpush3.bf16.msra.mxu0 %v1059_v8  ;;  %4569 = vmatprep.mubr.msk.bf16.mxu0 %vm508_vm2, %v387_v55  ;;  %v467_v63 = vsel %vm359_vm1, %v462_v52, %v466_v56  ;;  %v470_v0 = vor.u32 %v468_v54, %v466_v56  ;;  %v474_v1 = vrot.slane %v472_v58, 1  ;;  %v480_v9 = vshll.u32 %v5220_v62, 16 }
  0x1e   : > { %4912 = vmatprep.subr.msk.bf16.mxu0 %vm563_vm0, %v5178_v33  ;;  %4911 = vmatprep.subr.msk.bf16.mxu1 %vm563_vm0, %v5198_v45  ;;  %v395_v3 = vsel %vm359_vm1, %v390_v57, %v394_v59  ;;  %v398_v4 = vor.u32 %v396_v60, %v394_v59  ;;  %v402_v8 = vrot.slane %v400_v61, 1  ;;  %v404_v17 = vshrl.u32 %v5205_v50, 16 }
  0x1f   : > { %4589 = vmatprep.mubr.msk.bf16.mxu1 %vm508_vm2, %v467_v63  ;;  %v475_v12 = vsel %vm359_vm1, %v470_v0, %v474_v1  ;;  %v478_v16 = vor.u32 %v476_v2, %v474_v1  ;;  %v484_v18 = vshrl.u32 %v5220_v62, 16  ;;  %v482_v20 = vrot.slane %v480_v9, 1  ;;  %v960_v63 = vld [vmem:[%s5133_s29] sm:$0xe] }
  0x20   : > { %v403_v19 = vsel %vm359_vm1, %v398_v4, %v402_v8  ;;  %v408_v21 = vshll.u32 %v5230_v10, 16  ;;  %v488_v22 = vshll.u32 %v5233_v11, 16  ;;  %v412_v25 = vshrl.u32 %v5230_v10, 16 }
  0x21   : > { %v483_v29 = vsel %vm359_vm1, %v478_v16, %v482_v20  ;;  %v406_v30 = vor.u32 %v404_v17, %v402_v8  ;;  %v416_v34 = vshll.u32 %v5242_v23, 16  ;;  %v492_v35 = vshrl.u32 %v5233_v11, 16 }
  0x22   : > { %v410_v31 = vrot.slane %v408_v21, 1  ;;  %v490_v32 = vrot.slane %v488_v22, 1  ;;  %v496_v36 = vshll.u32 %v5247_v26, 16  ;;  %v486_v41 = vor.u32 %v484_v18, %v482_v20 }
  0x23   : > { %4590 = vmatmul.mubr.msk.bf16.gmra.mxu1 %vm508_vm2, %v475_v12  ;;  %v418_v46 = vrot.slane %v416_v34, 1  ;;  %v424_v49 = vshll.u32 %v5256_v38, 16  ;;  %v420_v52 = vshrl.u32 %v5242_v23, 16  ;;  %v428_v54 = vshrl.u32 %v5256_v38, 16 }
  0x24   : > { %4570 = vmatmul.mubr.msk.bf16.gmra.mxu0 %vm508_vm2, %v395_v3  ;;  %4593 = vmatprep.mubr.msk.bf16.mxu1 %vm508_vm2, %v483_v29  ;;  %v414_v42 = vor.u32 %v412_v25, %v410_v31  ;;  %v494_v47 = vor.u32 %v492_v35, %v490_v32  ;;  %v498_v48 = vrot.slane %v496_v36, 1  ;;  %v411_v51 = vsel %vm359_vm1, %v406_v30, %v410_v31 }
  0x25   : > { %4573 = vmatprep.mubr.msk.bf16.mxu0 %vm508_vm2, %v403_v19  ;;  %v432_v55 = vshll.u32 %v5259_v40, 16  ;;  %v491_v56 = vsel %vm359_vm1, %v486_v41, %v490_v32  ;;  %v500_v57 = vshrl.u32 %v5247_v26, 16  ;;  %v504_v58 = vshll.u32 %v4948_v43, 16 }
  0x26   : > { %v419_v53 = vsel %vm359_vm1, %v414_v42, %v418_v46  ;;  %v499_v59 = vsel %vm359_vm1, %v494_v47, %v498_v48  ;;  %v426_v60 = vrot.slane %v424_v49, 1  ;;  %v422_v61 = vor.u32 %v420_v52, %v418_v46  ;;  %v5358_v46 = vld [vmem:[%s5133_s29 + $0x10] sm:$0xff]   ;;  %v5363_v49 = vld [vmem:[%s5133_s29 + $0x18] sm:$0xff]  }
  0x27   : > { %v434_v1 = vrot.slane %v432_v55, 1  ;;  %v502_v2 = vor.u32 %v500_v57, %v498_v48  ;;  %v506_v3 = vrot.slane %v504_v58, 1  ;;  %v436_v8 = vshrl.u32 %v5259_v40, 16  ;;  %v5376_v55 = vld [vmem:[%s5133_s29 + $0x30] sm:$0xff]  }
  0x28   : > { %v430_v0 = vor.u32 %v428_v54, %v426_v60  ;;  %v427_v4 = vsel %vm359_vm1, %v422_v61, %v426_v60  ;;  %v4213_v12 = vcombine.low %v960_v63, %v5137_v5  ;;  %v1000_v17 = vrot.slane %v5247_v26, 1  ;;  %v5391_v61 = vld [vmem:[%s5133_s29 + $0x38] sm:$0xff]  }
  0x29   : > { %v507_v16 = vsel %vm359_vm1, %v502_v2, %v506_v3  ;;  %v438_v18 = vor.u32 %v436_v8, %v434_v1  ;;  %v1002_v19 = vrot.slane %v4948_v43, 1  ;;  %v968_v21 = vrot.slane %v5143_v7, 1  ;;  %v2160_v43 = vld [vmem:[%s5133_s29 + $0x8] sm:$0xc]  ;;  %v5401_v2 = vld [vmem:[%s5133_s29 + $0x40] sm:$0xff]  }
  0x2a   : > { %v435_v9 = vsel %vm359_vm1, %v430_v0, %v434_v1  ;;  %v967_v20 = vrot.slane %v4213_v12, 1  ;;  %v1498_v29 = vsel %vm563_vm0, %v5198_v45, 0  ;;  %v970_v30 = vrot.slane %v5157_v15, 1  ;;  %v5409_v8 = vld [vmem:[%s5133_s29 + $0x48] sm:$0xff]  }
  0x2b   : > { %4594 = vmatmul.mubr.msk.bf16.gmra.mxu1 %vm508_vm2, %v491_v56  ;;  %v5292_v5 = vsel %vm966_vm3, %v1000_v17, %v1002_v19  ;;  %v443_v22 = vsel %vm359_vm1, %v438_v18, %v5168_v27  ;;  %v972_v27 = vrot.slane %v5171_v28, 1  ;;  %v1945_v31 = vsel %vm563_vm0, %v5178_v33, 0 }
  0x2c   : > { %4574 = vmatmul.mubr.msk.bf16.gmra.mxu0 %vm508_vm2, %v411_v51  ;;  %4597 = vmatprep.mubr.msk.bf16.mxu1 %vm508_vm2, %v499_v59  ;;  %v969_v25 = vsel %vm966_vm3, %v967_v20, %v968_v21  ;;  %v971_v45 = vsel %vm966_vm3, %v968_v21, %v970_v30  ;;  %v976_v34 = vrot.slane %v5205_v50, 1  ;;  %v980_v36 = vrot.slane %v5242_v23, 1  ;;  %v5367_v51 = vld [vmem:[%s5133_s29 + $0x20] sm:$0xff]  }
  0x2d   : > { %4577 = vmatprep.mubr.msk.bf16.mxu0 %vm508_vm2, %v419_v53  ;;  %v973_v32 = vsel %vm966_vm3, %v970_v30, %v972_v27  ;;  %v982_v42 = vrot.slane %v5256_v38, 1  ;;  %v2168_v53 = vrot.slane %v5358_v46, 2  ;;  %v2170_v54 = vrot.slane %v5363_v49, 2  ;;  %v5439_v30 = vld [vmem:[%s5133_s29 + $0x58] sm:$0xff]  }
  0x2e   : > { %v2172_v57 = vrot.slane %v5367_v51, 2  ;;  %v986_v58 = vrot.slane %v5151_v13, 1  ;;  %v988_v59 = vrot.slane %v5154_v14, 1  ;;  %v2176_v1 = vrot.slane %v5376_v55, 2 }
  0x2f   : > { %v983_v48 = vsel %vm966_vm3, %v980_v36, %v982_v42  ;;  %v5386_v60 = vsel %vm2166_vm4, %v2168_v53, %v2170_v54  ;;  %v2182_v18 = vrot.slane %v5409_v8, 2  ;;  %v990_v20 = vrot.slane %v5166_v24, 1 }
  0x30   : > { %v5394_v63 = vsel %vm2166_vm4, %v2170_v54, %v2172_v57 }
  0x33   : > { %4598 = vmatmul.mubr.msk.bf16.gmra.mxu1 %vm508_vm2, %v507_v16  ;;  %v2180_v16 = vrot.slane %v5401_v2, 2 }
  0x34   : > { %4578 = vmatmul.mubr.msk.bf16.gmra.mxu0 %vm508_vm2, %v427_v4  ;;  %4603 = vmatprep.mubr.msk.bf16.mxu1 %vm508_vm2, %v5140_v6  ;;  %v5305_v6 = vld [vmem:[%s6771_s1 + $0x14] sm:$0xf]  ;;  %v2178_v4 = vrot.slane %v5391_v61, 2 }
  0x35   : > { %4581 = vmatprep.mubr.msk.bf16.mxu0 %vm508_vm2, %v435_v9  ;;  %v5427_v21 = vsel %vm2166_vm4, %v2180_v16, %v2182_v18 }
  0x36   : > { %v5416_v12 = vsel %vm2166_vm4, %v2176_v1, %v2178_v4  ;;  %v5422_v19 = vsel %vm2166_vm4, %v2178_v4, %v2180_v16 }
  0x3b   : > { %4604 = vmatmul.mubr.msk.bf16.vlgmr.msra.gmra.mxu1 %vm508_vm2, %v5143_v7  ;;  %v5321_v7 = vld [vmem:[%s6771_s1 + $0x18] sm:$0xf] }
  0x3c   : > { %4582 = vmatmul.mubr.msk.bf16.gmra.mxu0 %vm508_vm2, %v443_v22  ;;  %4678 = vmatpush3.bf16.msra.mxu1 %v1498_v29  ;;  %v992_v22 = vrot.slane %v5184_v37, 1  ;;  %v991_v29 = vsel %vm966_vm3, %v988_v59, %v990_v20 }
  0x3d   : > { %4641 = vmatprep.mubr.msk.bf16.mxu0 %vm508_vm2, %v969_v25  ;;  %4607 = vmatprep.mubr.msk.bf16.mxu1 %vm508_vm2, %v5157_v15  ;;  %v974_v15 = vrot.slane %v5188_v39, 1  ;;  %v5435_v25 = vld [vmem:[%s5133_s29 + $0x50] sm:$0xff]  }
  0x3e   : > { %4913 = vmatprep.subr.msk.bf16.mxu1 %vm563_vm0, %v5305_v6 }
  0x3f   : > { %v975_v33 = vsel %vm966_vm3, %v972_v27, %v974_v15  ;;  %v977_v35 = vsel %vm966_vm3, %v974_v15, %v976_v34  ;;  %v993_v27 = vsel %vm966_vm3, %v990_v20, %v992_v22  ;;  %v996_v15 = vrot.slane %v5220_v62, 1 }
  0x43   : > { %4608 = vmatmul.mubr.msk.bf16.gmra.mxu1 %vm508_vm2, %v5171_v28  ;;  %v978_v28 = vrot.slane %v5230_v10, 1 }
  0x44   : > { %4642 = vmatmul.mubr.msk.bf16.vlgmr.msra.gmra.mxu0 %vm508_vm2, %v971_v45  ;;  %4611 = vmatprep.mubr.msk.bf16.mxu1 %vm508_vm2, %v5188_v39  ;;  %v2184_v45 = vrot.slane %v5435_v25, 2 }
  0x45   : > { %4716 = vmatpush3.bf16.msra.mxu0 %v1945_v31  ;;  %4645 = vmatprep.mubr.msk.bf16.mxu0 %vm508_vm2, %v973_v32  ;;  %v979_v39 = vsel %vm966_vm3, %v976_v34, %v978_v28  ;;  %v981_v41 = vsel %vm966_vm3, %v978_v28, %v980_v36  ;;  %v1274_v34 = vld [vmem:[%s5133_s29 + $0x8] sm:$0xe] }
  0x46   : > { %4914 = vmatprep.subr.msk.bf16.mxu0 %vm563_vm0, %v5321_v7  ;;  %v5446_v31 = vsel %vm2166_vm4, %v2182_v18, %v2184_v45  ;;  %v5464_v28 = vld [vmem:[%s5133_s29 + $0x68] sm:$0xff]  }
  0x4b   : > { %4612 = vmatmul.mubr.msk.bf16.gmra.mxu1 %vm508_vm2, %v5205_v50  ;;  %v984_v50 = vrot.slane %v5259_v40, 1 }
  0x4c   : > { %4646 = vmatmul.mubr.msk.bf16.gmra.mxu0 %vm508_vm2, %v975_v33  ;;  %4615 = vmatprep.mubr.msk.bf16.mxu1 %vm508_vm2, %v5230_v10  ;;  %v5355_v10 = vld [vmem:[%s5133_s29 + $0xc] sm:$0xf]  ;;  %v5460_v33 = vld [vmem:[%s5133_s29 + $0x60] sm:$0xff]  }
  0x4d   : > { %4649 = vmatprep.mubr.msk.bf16.mxu0 %vm508_vm2, %v977_v35  ;;  %v4291_v47 = vcombine.low %v2160_v43, %v5355_v10 }
  0x4f   : > { %v2167_v52 = vrot.slane %v4291_v47, 2  ;;  %v1729_v47 = vshrl.u32 %v5358_v46, 16 }
  0x51   : > { %v5379_v56 = vsel %vm2166_vm4, %v2167_v52, %v2168_v53  ;;  %v1407_v52 = vrot.slane %v5358_v46, 1  ;;  %v5487_v53 = vld [vmem:[%s5133_s29 + $0x70] sm:$0xff]  }
  0x52   : > { %v2192_v4 = vrot.slane %v5487_v53, 2 }
  0x53   : > { %4616 = vmatmul.mubr.msk.bf16.gmra.mxu1 %vm508_vm2, %v5242_v23  ;;  %v985_v23 = vsel %vm966_vm3, %v982_v42, %v984_v50  ;;  %v998_v42 = vrot.slane %v5233_v11, 1 }
  0x54   : > { %4650 = vmatmul.mubr.msk.bf16.gmra.mxu0 %vm508_vm2, %v979_v39  ;;  %4619 = vmatprep.mubr.msk.bf16.mxu1 %vm508_vm2, %v5256_v38  ;;  %v5371_v38 = vld [vmem:[%s5133_s29 + $0x28] sm:$0xff]   ;;  %v2188_v39 = vrot.slane %v5460_v33, 2 }
  0x55   : > { %4653 = vmatprep.mubr.msk.bf16.mxu0 %vm508_vm2, %v981_v41  ;;  %v2174_v0 = vrot.slane %v5371_v38, 2  ;;  %v4233_v41 = vcombine.low %v1274_v34, %v5355_v10  ;;  %v999_v54 = vsel %vm966_vm3, %v996_v15, %v998_v42  ;;  %v5520_v34 = vld [vmem:[%s5133_s29 + $0x88] sm:$0xff]  }
  0x57   : > { %v5404_v3 = vsel %vm2166_vm4, %v2172_v57, %v2174_v0  ;;  %v5412_v9 = vsel %vm2166_vm4, %v2174_v0, %v2176_v1  ;;  %v1721_v43 = vshrl.u32 %v4233_v41, 16  ;;  %v1724_v10 = vshll.u32 %v4233_v41, 16 }
  0x58   : > { %v1001_v57 = vsel %vm966_vm3, %v998_v42, %v1000_v17  ;;  %v1731_v0 = vrot.slane %v1729_v47, 1  ;;  %v1738_v17 = vshrl.u32 %v5363_v49, 16  ;;  %v1759_v47 = vshll.u32 %v5371_v38, 16 }
  0x5b   : > { %4620 = vmatmul.mubr.msk.bf16.gmra.mxu1 %vm508_vm2, %v5259_v40  ;;  %v987_v40 = vsel %vm966_vm3, %v984_v50, %v986_v58 }
  0x5c   : > { %4654 = vmatmul.mubr.msk.bf16.gmra.mxu0 %vm508_vm2, %v983_v48  ;;  %4623 = vmatprep.mubr.msk.bf16.mxu1 %vm508_vm2, %v5151_v13  ;;  %v989_v13 = vsel %vm966_vm3, %v986_v58, %v988_v59  ;;  %v1732_v48 = vshll.u32 %v5358_v46, 16  ;;  %v5494_v58 = vld [vmem:[%s5133_s29 + $0x78] sm:$0xff]   ;;  %v1726_v59 = vrot.slane %v1724_v10, 2  ;;  %v1756_v10 = vshrl.u32 %v5371_v38, 16 }
  0x5d   : > { %4657 = vmatprep.mubr.msk.bf16.mxu0 %vm508_vm2, %v985_v23  ;;  %v1406_v23 = vrot.slane %v4233_v41, 1 }
  0x5e   : > { %v1734_v1 = vrot.slane %v1732_v48, 2 }
  0x5f   : > { %v1408_v46 = vsel %vm966_vm3, %v1406_v23, %v1407_v52  ;;  %v1765_v23 = vshrl.u32 %v5376_v55, 16 }
  0x60   : > { %v1735_v20 = vor.u32 %v1734_v1, %v1731_v0  ;;  %v2698_v0 = vsel %vm563_vm0, %v5321_v7, 0  ;;  %v1758_v1 = vrot.slane %v1756_v10, 1 }
  0x63   : > { %4624 = vmatmul.mubr.msk.bf16.gmra.mxu1 %vm508_vm2, %v5154_v14  ;;  %v2186_v14 = vrot.slane %v5439_v30, 2 }
  0x64   : > { %4658 = vmatmul.mubr.msk.bf16.gmra.mxu0 %vm508_vm2, %v987_v40  ;;  %4627 = vmatprep.mubr.msk.bf16.mxu1 %vm508_vm2, %v5166_v24  ;;  %v994_v24 = vrot.slane %v5193_v44, 1 }
  0x65   : > { %4661 = vmatprep.mubr.msk.bf16.mxu0 %vm508_vm2, %v989_v13  ;;  %v5451_v32 = vsel %vm2166_vm4, %v2184_v45, %v2186_v14  ;;  %v1741_v13 = vshll.u32 %v5363_v49, 16  ;;  %v1411_v45 = vrot.slane %v5367_v51, 1 }
  0x66   : > { %v995_v35 = vsel %vm966_vm3, %v992_v22, %v994_v24  ;;  %v997_v36 = vsel %vm966_vm3, %v994_v24, %v996_v15  ;;  %v1747_v22 = vshrl.u32 %v5367_v51, 16  ;;  %v1740_v24 = vrot.slane %v1738_v17, 1 }
  0x67   : > { %v1743_v15 = vrot.slane %v1741_v13, 2  ;;  %v1767_v17 = vrot.slane %v1765_v23, 1 }
  0x6b   : > { %4628 = vmatmul.mubr.msk.bf16.gmra.mxu1 %vm508_vm2, %v5184_v37  ;;  %v2190_v37 = vrot.slane %v5464_v28, 2 }
  0x6c   : > { %4662 = vmatmul.mubr.msk.bf16.gmra.mxu0 %vm508_vm2, %v991_v29  ;;  %4631 = vmatprep.mubr.msk.bf16.mxu1 %vm508_vm2, %v5193_v44  ;;  %v5472_v44 = vsel %vm2166_vm4, %v2186_v14, %v2188_v39  ;;  %v1750_v29 = vshll.u32 %v5367_v51, 16  ;;  %v5517_v14 = vld [vmem:[%s5133_s29 + $0x80] sm:$0xff]  }
  0x6d   : > { %4665 = vmatprep.mubr.msk.bf16.mxu0 %vm508_vm2, %v993_v27  ;;  %v5477_v50 = vsel %vm2166_vm4, %v2188_v39, %v2190_v37  ;;  %v5501_v40 = vsel %vm2166_vm4, %v2190_v37, %v2192_v4  ;;  %v1409_v27 = vrot.slane %v5363_v49, 1  ;;  %v2196_v39 = vrot.slane %v5517_v14, 2 }
  0x6e   : > { %v2198_v37 = vrot.slane %v5520_v34, 2  ;;  %v2259_v49 = vsel %vm563_vm0, %v5305_v6, 0 }
  0x6f   : > { %v1410_v41 = vsel %vm966_vm3, %v1407_v52, %v1409_v27  ;;  %v1412_v51 = vsel %vm966_vm3, %v1409_v27, %v1411_v45  ;;  %v1768_v52 = vshll.u32 %v5376_v55, 16  ;;  %v1774_v27 = vshrl.u32 %v5391_v61, 16 }
  0x70   : > { %v5543_v6 = vsel %vm2166_vm4, %v2196_v39, %v2198_v37 }
  0x73   : > { %4632 = vmatmul.mubr.msk.bf16.gmra.mxu1 %vm508_vm2, %v5220_v62  ;;  %v1723_v62 = vrot.slane %v1721_v43, 1  ;;  %v1744_v43 = vor.u32 %v1743_v15, %v1740_v24 }
  0x74   : > { %4666 = vmatmul.mubr.msk.bf16.gmra.mxu0 %vm508_vm2, %v995_v35  ;;  %4635 = vmatprep.mubr.msk.bf16.mxu1 %vm508_vm2, %v5233_v11  ;;  %v2194_v11 = vrot.slane %v5494_v58, 2  ;;  %v1749_v35 = vrot.slane %v1747_v22, 1 }
  0x75   : > { %4669 = vmatprep.mubr.msk.bf16.mxu0 %vm508_vm2, %v997_v36  ;;  %v1727_v18 = vor.u32 %v1726_v59, %v1723_v62  ;;  %v1752_v36 = vrot.slane %v1750_v29, 2  ;;  %v5552_v62 = vld [vmem:[%s5133_s29 + $0x90] sm:$0xff]   ;;  %v1745_v59 = vsel %vm1719_vm5, %v1735_v20, %v1744_v43 }
  0x76   : > { %v5507_v16 = vsel %vm2166_vm4, %v2192_v4, %v2194_v11  ;;  %v5532_v42 = vsel %vm2166_vm4, %v2194_v11, %v2196_v39  ;;  %v1761_v4 = vrot.slane %v1759_v47, 2  ;;  %v5560_v11 = vld [vmem:[%s5133_s29 + $0x98] ss:$0 sps:$4 sm:$0x33]   ;;  %v1419_v39 = vrot.slane %v5401_v2, 1 }
  0x77   : > { %v1753_v48 = vor.u32 %v1752_v36, %v1749_v35  ;;  %v1786_v35 = vshll.u32 %v5401_v2, 16  ;;  %v1417_v36 = vrot.slane %v5391_v61, 1 }
  0x78   : > { %v1762_v29 = vor.u32 %v1761_v4, %v1758_v1  ;;  %v5605_v1 = vld [vmem:[%s5133_s29 + $0x14] sm:$0xf]  ;;  %v3360_v4 = vld [vmem:[%s5133_s29 + $0x10] sm:$0x8] }
  0x79   : > { %v1788_v10 = vrot.slane %v1786_v35, 2  ;;  %v1420_v23 = vsel %vm966_vm3, %v1417_v36, %v1419_v39 }
  0x7b   : > { %4636 = vmatmul.mubr.msk.bf16.gmra.mxu1 %vm508_vm2, %v5247_v26  ;;  %v1736_v26 = vsel %vm1719_vm5, %v1727_v18, %v1735_v20  ;;  %v5568_v18 = vld [vmem:[%s6771_s1 + $0x20] sm:$0xf]  ;;  %v2202_v20 = vrot.slane %v5560_v11, 2 }
  0x7c   : > { %4670 = vmatmul.mubr.msk.bf16.gmra.mxu0 %vm508_vm2, %v999_v54  ;;  %4679 = vmatprep.mubr.msk.bf16.mxu1 %vm508_vm2, %v1408_v46  ;;  %v1413_v54 = vrot.slane %v5371_v38, 1  ;;  %v1754_v46 = vsel %vm1719_vm5, %v1744_v43, %v1753_v48  ;;  %v1770_v38 = vrot.slane %v1768_v52, 2 }
  0x7d   : > { %4673 = vmatprep.mubr.msk.bf16.mxu0 %vm508_vm2, %v1001_v57  ;;  %v1415_v57 = vrot.slane %v5376_v55, 1  ;;  %v2200_v55 = vrot.slane %v5552_v62, 2 }
  0x7e   : > { %v1414_v13 = vsel %vm966_vm3, %v1411_v45, %v1413_v54  ;;  %v1777_v45 = vshll.u32 %v5391_v61, 16  ;;  %v1771_v15 = vor.u32 %v1770_v38, %v1767_v17 }
  0x7f   : > { %v1416_v7 = vsel %vm966_vm3, %v1413_v54, %v1415_v57  ;;  %v5574_v22 = vsel %vm2166_vm4, %v2198_v37, %v2200_v55  ;;  %v5580_v24 = vsel %vm2166_vm4, %v2200_v55, %v2202_v20  ;;  %v1776_v37 = vrot.slane %v1774_v27, 1  ;;  %v5610_v55 = vld [vmem:[%s5133_s29 + $0x18] sm:$0xff]   ;;  %v5615_v27 = vld [vmem:[%s5133_s29 + $0x20] sm:$0xff]  }
  0x80   : > { %v1418_v47 = vsel %vm966_vm3, %v1415_v57, %v1417_v36  ;;  %v1801_v54 = vshrl.u32 %v5435_v25, 16  ;;  %v1804_v57 = vshll.u32 %v5435_v25, 16  ;;  %v1810_v36 = vshrl.u32 %v5439_v30, 16 }
  0x83   : > { %4680 = vmatmul.mubr.msk.bf16.vlgmr.msra.gmra.mxu1 %vm508_vm2, %v1410_v41  ;;  %v1763_v41 = vsel %vm1719_vm5, %v1753_v48, %v1762_v29  ;;  %v1795_v48 = vshll.u32 %v5409_v8, 16 }
  0x84   : > { %4674 = vmatmul.mubr.msk.bf16.gmra.mxu0 %vm508_vm2, %v5292_v5  ;;  %v5540_v5 = vld [vmem:[%s6771_s1 + $0x1c] sm:$0xf]  ;;  %4754 = vmatpush3.bf16.msra.mxu1 %v2259_v49  ;;  %v1779_v49 = vrot.slane %v1777_v45, 2  ;;  %v3368_v45 = vrot.slane %v5610_v55, 3 }
  0x85   : > { %4717 = vmatprep.mubr.msk.bf16.mxu0 %vm508_vm2, %v1736_v26  ;;  %4683 = vmatprep.mubr.msk.bf16.mxu1 %vm508_vm2, %v1412_v51  ;;  %v1783_v26 = vshrl.u32 %v5401_v2, 16  ;;  %v1772_v51 = vsel %vm1719_vm5, %v1762_v29, %v1771_v15  ;;  %v1792_v2 = vshrl.u32 %v5409_v8, 16  ;;  %v1797_v38 = vrot.slane %v1795_v48, 2 }
  0x86   : > { %4915 = vmatprep.subr.msk.bf16.mxu1 %vm563_vm0, %v5540_v5  ;;  %v1780_v61 = vor.u32 %v1779_v49, %v1776_v37  ;;  %v1806_v29 = vrot.slane %v1804_v57, 2  ;;  %v1819_v49 = vshrl.u32 %v5460_v33, 16 }
  0x87   : > { %v1785_v43 = vrot.slane %v1783_v26, 1  ;;  %v1794_v17 = vrot.slane %v1792_v2, 1  ;;  %v6776_v26 = vrot.slane %v5615_v27, 3 }
  0x89   : > { %v1789_v52 = vor.u32 %v1788_v10, %v1785_v43  ;;  %v1798_v35 = vor.u32 %v1797_v38, %v1794_v17  ;;  %v5634_v43 = vsel %vm3366_vm6, %v3368_v45, %v6776_v26  ;;  %v1425_v10 = vrot.slane %v5439_v30, 1 }
  0x8a   : > { %v1837_v17 = vshrl.u32 %v5487_v53, 16  ;;  %v1840_v38 = vshll.u32 %v5487_v53, 16 }
  0x8b   : > { %4684 = vmatmul.mubr.msk.bf16.gmra.mxu1 %vm508_vm2, %v1414_v13  ;;  %v4369_v13 = vcombine.low %v3360_v4, %v5605_v1  ;;  %v1790_v20 = vsel %vm1719_vm5, %v1780_v61, %v1789_v52 }
  0x8c   : > { %4718 = vmatmul.mubr.msk.bf16.vlgmr.msra.gmra.mxu0 %vm508_vm2, %v1745_v59  ;;  %4687 = vmatprep.mubr.msk.bf16.mxu1 %vm508_vm2, %v1416_v7  ;;  %v1421_v59 = vrot.slane %v5409_v8, 1  ;;  %v1803_v7 = vrot.slane %v1801_v54, 1  ;;  %v1821_v54 = vrot.slane %v1819_v49, 1  ;;  %v1858_v49 = vshll.u32 %v5517_v14, 16 }
  0x8d   : > { %4792 = vmatpush3.bf16.msra.mxu0 %v2698_v0  ;;  %4721 = vmatprep.mubr.msk.bf16.mxu0 %vm508_vm2, %v1754_v46  ;;  %v1423_v0 = vrot.slane %v5435_v25, 1  ;;  %v1781_v46 = vsel %vm1719_vm5, %v1771_v15, %v1780_v61  ;;  %v3367_v25 = vrot.slane %v4369_v13, 3  ;;  %v1812_v61 = vrot.slane %v1810_v36, 1 }
  0x8e   : > { %4916 = vmatprep.subr.msk.bf16.mxu0 %vm563_vm0, %v5568_v18  ;;  %v1422_v8 = vsel %vm966_vm3, %v1419_v39, %v1421_v59  ;;  %v1807_v39 = vor.u32 %v1806_v29, %v1803_v7  ;;  %v1431_v13 = vrot.slane %v5487_v53, 1  ;;  %v1849_v53 = vshll.u32 %v5494_v58, 16 }
  0x8f   : > { %v1424_v15 = vsel %vm966_vm3, %v1421_v59, %v1423_v0  ;;  %v5626_v37 = vsel %vm3366_vm6, %v3367_v25, %v3368_v45  ;;  %v1426_v59 = vsel %vm966_vm3, %v1423_v0, %v1425_v10  ;;  %v1429_v0 = vrot.slane %v5464_v28, 1 }
  0x90   : > { %v1808_v48 = vsel %vm1719_vm5, %v1798_v35, %v1807_v39  ;;  %v1839_v25 = vrot.slane %v1837_v17, 1  ;;  %v1842_v45 = vrot.slane %v1840_v38, 2  ;;  %v1873_v17 = vshrl.u32 %v5552_v62, 16 }
  0x91   : > { %v1876_v38 = vshll.u32 %v5552_v62, 16 }
  0x93   : > { %4688 = vmatmul.mubr.msk.bf16.gmra.mxu1 %vm508_vm2, %v1418_v47  ;;  %v1427_v47 = vrot.slane %v5460_v33, 1 }
  0x94   : > { %4722 = vmatmul.mubr.msk.bf16.gmra.mxu0 %vm508_vm2, %v1763_v41  ;;  %4691 = vmatprep.mubr.msk.bf16.mxu1 %vm508_vm2, %v1420_v23  ;;  %v1813_v41 = vshll.u32 %v5439_v30, 16  ;;  %v1799_v23 = vsel %vm1719_vm5, %v1789_v52, %v1798_v35  ;;  %v1828_v30 = vshrl.u32 %v5464_v28, 16  ;;  %v1432_v35 = vsel %vm966_vm3, %v1429_v0, %v1431_v13 }
  0x95   : > { %4725 = vmatprep.mubr.msk.bf16.mxu0 %vm508_vm2, %v1772_v51  ;;  %v1822_v51 = vshll.u32 %v5460_v33, 16  ;;  %v1428_v4 = vsel %vm966_vm3, %v1425_v10, %v1427_v47  ;;  %v1831_v33 = vshll.u32 %v5464_v28, 16  ;;  %v1846_v28 = vshrl.u32 %v5494_v58, 16 }
  0x96   : > { %v1815_v2 = vrot.slane %v1813_v41, 2  ;;  %v1830_v7 = vrot.slane %v1828_v30, 1  ;;  %v1843_v41 = vor.u32 %v1842_v45, %v1839_v25  ;;  %v1435_v10 = vrot.slane %v5517_v14, 1  ;;  %v3798_v30 = vld [vmem:[%s6774_s4 + $0x10] sm:$0xff]  ;;  %v3797_v25 = vld [vmem:[%s6774_s4 + $0x8] sm:$0xff] }
  0x97   : > { %v1824_v57 = vrot.slane %v1822_v51, 2  ;;  %v1833_v29 = vrot.slane %v1831_v33, 2  ;;  %v1433_v51 = vrot.slane %v5494_v58, 1  ;;  %v3796_v33 = vld [vmem:[%s6774_s4] sm:$0xff] }
  0x99   : > { %v1825_v52 = vor.u32 %v1824_v57, %v1821_v54  ;;  %v1834_v36 = vor.u32 %v1833_v29, %v1830_v7  ;;  %v1860_v54 = vrot.slane %v1858_v49, 2  ;;  %v1434_v57 = vsel %vm966_vm3, %v1431_v13, %v1433_v51  ;;  %v3800_v49 = vld [vmem:[%s6774_s4 + $0x20] sm:$0xff] }
  0x9a   : > { %v1439_v13 = vrot.slane %v5552_v62, 1  ;;  %v4969_v62 = vld [vmem:[%s5133_s29 + $0x98] ss:$0 sps:$4 sm:$0x11]  }
  0x9b   : > { %4692 = vmatmul.mubr.msk.bf16.gmra.mxu1 %vm508_vm2, %v1422_v8 }
  0x9c   : > { %4726 = vmatmul.mubr.msk.bf16.gmra.mxu0 %vm508_vm2, %v1781_v46  ;;  %4695 = vmatprep.mubr.msk.bf16.mxu1 %vm508_vm2, %v1424_v15  ;;  %v1816_v46 = vor.u32 %v1815_v2, %v1812_v61  ;;  %v1430_v15 = vsel %vm966_vm3, %v1427_v47, %v1429_v0  ;;  %v1835_v47 = vsel %vm1719_vm5, %v1825_v52, %v1834_v36  ;;  %v1851_v61 = vrot.slane %v1849_v53, 2 }
  0x9d   : > { %4729 = vmatprep.mubr.msk.bf16.mxu0 %vm508_vm2, %v1790_v20  ;;  %v1844_v2 = vsel %vm1719_vm5, %v1834_v36, %v1843_v41  ;;  %v1437_v0 = vrot.slane %v5520_v34, 1  ;;  %v1882_v53 = vshrl.u32 %v5560_v11, 16 }
  0x9e   : > { %v1817_v20 = vsel %vm1719_vm5, %v1807_v39, %v1816_v46  ;;  %v1826_v8 = vsel %vm1719_vm5, %v1816_v46, %v1825_v52  ;;  %v1855_v39 = vshrl.u32 %v5517_v14, 16  ;;  %v1864_v14 = vshrl.u32 %v5520_v34, 16 }
  0x9f   : > { %v1867_v46 = vshll.u32 %v5520_v34, 16  ;;  %v1438_v34 = vsel %vm966_vm3, %v1435_v10, %v1437_v0  ;;  %v1440_v36 = vsel %vm966_vm3, %v1437_v0, %v1439_v13  ;;  %v2609_v0 = vrot.slane %v5615_v27, 2 }
  0xa0   : > { %v1866_v7 = vrot.slane %v1864_v14, 1  ;;  %v3804_v14 = vld [vmem:[%s6774_s4 + $0x40] sm:$0xff] }
  0xa1   : > { %v1869_v29 = vrot.slane %v1867_v46, 2  ;;  %v2607_v46 = vrot.slane %v5610_v55, 2 }
  0xa3   : > { %4696 = vmatmul.mubr.msk.bf16.gmra.mxu1 %vm508_vm2, %v1426_v59  ;;  %v1436_v59 = vsel %vm966_vm3, %v1433_v51, %v1435_v10  ;;  %v1441_v10 = vrot.slane %v4969_v62, 1 }
  0xa4   : > { %4730 = vmatmul.mubr.msk.bf16.gmra.mxu0 %vm508_vm2, %v1799_v23  ;;  %4699 = vmatprep.mubr.msk.bf16.mxu1 %vm508_vm2, %v1428_v4  ;;  %v1848_v23 = vrot.slane %v1846_v28, 1  ;;  %v5073_v4 = vmov 0   ;;  %v1870_v28 = vor.u32 %v1869_v29, %v1866_v7  ;;  %v5765_v29 = vld [vmem:[%s5133_s29 + $0x30] sm:$0xff]  }
  0xa5   : > { %4733 = vmatprep.mubr.msk.bf16.mxu0 %vm508_vm2, %v1808_v48  ;;  %v1857_v48 = vrot.slane %v1855_v39, 1  ;;  %4930 = vset.pattern.permute.xlu1 %v5073_v4  ;;  %v3801_v39 = vld [vmem:[%s6774_s4 + $0x28] sm:$0xff] }
  0xa6   : > { %v1852_v58 = vor.u32 %v1851_v61, %v1848_v23  ;;  %4929 = vset.pattern.permute.xlu0 %v5073_v4  ;;  %3844 = vperm.xlu1 %4930, %v3798_v30  }
  0xa7   : > { %v1861_v52 = vor.u32 %v1860_v54, %v1857_v48  ;;  %3834 = vperm.xlu0 %4929, %v3796_v33   ;;  %v3802_v48 = vld [vmem:[%s6774_s4 + $0x30] sm:$0xff]  ;;  %v3807_v33 = vld [vmem:[%s6774_s4 + $0x58] sm:$0xff] }
  0xa9   : > { %v1862_v45 = vsel %vm1719_vm5, %v1852_v58, %v1861_v52  ;;  %v1871_v23 = vsel %vm1719_vm5, %v1861_v52, %v1870_v28  ;;  %v3806_v52 = vld [vmem:[%s6774_s4 + $0x50] sm:$0xff] }
  0xab   : > { %4700 = vmatmul.mubr.msk.bf16.gmra.mxu1 %vm508_vm2, %v1430_v15  ;;  %v1875_v15 = vrot.slane %v1873_v17, 1  ;;  %3839 = vperm.xlu0 %4929, %v3797_v25   ;;  %v3459_v25 = vsel %vm563_vm0, %v5568_v18, 0  ;;  %v3812_v18 = vld [vmem:[%s6774_s4 + $0x80] sm:$0xff] }
  0xac   : > { %4734 = vmatmul.mubr.msk.bf16.gmra.mxu0 %vm508_vm2, %v1817_v20  ;;  %4703 = vmatprep.mubr.msk.bf16.mxu1 %vm508_vm2, %v1432_v35  ;;  %v1853_v20 = vsel %vm1719_vm5, %v1843_v41, %v1852_v58  ;;  %v1878_v35 = vrot.slane %v1876_v38, 2  ;;  %v1885_v41 = vshll.u32 %v5560_v11, 16  ;;  %v1884_v11 = vrot.slane %v1882_v53, 1  ;;  %v3805_v58 = vld [vmem:[%s6774_s4 + $0x48] sm:$0xff]  ;;  %v3814_v53 = vld [vmem:[%s6774_s4 + $0x90] sm:$0xff] }
  0xad   : > { %4737 = vmatprep.mubr.msk.bf16.mxu0 %vm508_vm2, %v1826_v8  ;;  %v3799_v8 = vld [vmem:[%s6774_s4 + $0x18] sm:$0xff]  ;;  %v5745_v38 = vld [vmem:[%s5133_s29 + $0x28] sm:$0xff]  }
  0xae   : > { %3849 = vperm.xlu1 %4930, %v3799_v8   ;;  %v1879_v51 = vor.u32 %v1878_v35, %v1875_v15  ;;  %v1887_v61 = vrot.slane %v1885_v41, 2  ;;  %v2611_v7 = vrot.slane %v5745_v38, 2  ;;  %v3811_v8 = vld [vmem:[%s6774_s4 + $0x78] sm:$0xff]  ;;  %v2613_v15 = vrot.slane %v5765_v29, 2  ;;  %v3813_v35 = vld [vmem:[%s6774_s4 + $0x88] sm:$0xff] }
  0xaf   : > { %3854 = vperm.xlu0 %4929, %v3800_v49   ;;  %v5805_v41 = vld [vmem:[%s5133_s29 + $0x48] sm:$0xff]  }
  0xb0   : > { %v1880_v54 = vsel %vm1719_vm5, %v1870_v28, %v1879_v51  ;;  %v1888_v4 = vor.u32 %v1887_v61, %v1884_v11  ;;  %v2614_v62 = vsel %vm2166_vm4, %v2611_v7, %v2613_v15  ;;  %v3815_v28 = vld [vmem:[%s6774_s4 + $0x98] sm:$0xff]  ;;  %v3817_v49 = vld [vmem:[%s6774_s4 + $0xa8] sm:$0xff] }
  0xb2   : > { %3859 = vperm.xlu1 %4930, %v3801_v39   ;;  %v1889_v30 = vsel %vm1719_vm5, %v1879_v51, %v1888_v4  ;;  %v3816_v51 = vld [vmem:[%s6774_s4 + $0xa0] sm:$0xff] }
  0xb3   : > { %4704 = vmatmul.mubr.msk.bf16.gmra.mxu1 %vm508_vm2, %v1434_v57  ;;  %3864 = vperm.xlu0 %4929, %v3802_v48   ;;  %v5833_v48 = vld [vmem:[%s5133_s29 + $0x50] sm:$0xff]  }
  0xb4   : > { %4738 = vmatmul.mubr.msk.bf16.gmra.mxu0 %vm508_vm2, %v1835_v47  ;;  %4707 = vmatprep.mubr.msk.bf16.mxu1 %vm508_vm2, %v1436_v59  ;;  %v2474_v47 = vld [vmem:[%s5133_s29 + $0x10] sm:$0xc]  ;;  %v1442_v59 = vsel %vm966_vm3, %v1439_v13, %v1441_v10  ;;  %v3809_v13 = vld [vmem:[%s6774_s4 + $0x68] sm:$0xff] }
  0xb5   : > { %4741 = vmatprep.mubr.msk.bf16.mxu0 %vm508_vm2, %v1844_v2  ;;  %v3803_v2 = vld [vmem:[%s6774_s4 + $0x38] sm:$0xff]  ;;  %v5720_v57 = vcombine.low %v2474_v47, %v5605_v1 }
  0xb6   : > { %3869 = vperm.xlu1 %4930, %v3803_v2  }
  0xb7   : > { %v2606_v1 = vrot.slane %v5720_v57, 2  ;;  %3874 = vperm.xlu0 %4929, %v3804_v14  }
  0xb9   : > { %v2608_v17 = vsel %vm2166_vm4, %v2606_v1, %v2607_v46 }
  0xba   : > { %3879 = vperm.xlu1 %4930, %v3805_v58   ;;  %v5847_v58 = vld [vmem:[%s5133_s29 + $0x58] sm:$0xff]  }
  0xbb   : > { %4708 = vmatmul.mubr.msk.bf16.gmra.mxu1 %vm508_vm2, %v1438_v34  ;;  %3884 = vperm.xlu0 %4929, %v3806_v52  }
  0xbc   : > { %4742 = vmatmul.mubr.msk.bf16.gmra.mxu0 %vm508_vm2, %v1853_v20  ;;  %4711 = vmatprep.mubr.msk.bf16.mxu1 %vm508_vm2, %v1440_v36  ;;  %v3808_v20 = vld [vmem:[%s6774_s4 + $0x60] sm:$0xff] }
  0xbd   : > { %4745 = vmatprep.mubr.msk.bf16.mxu0 %vm508_vm2, %v1862_v45  ;;  %v2612_v45 = vsel %vm2166_vm4, %v2609_v0, %v2611_v7  ;;  %v5795_v36 = vld [vmem:[%s5133_s29 + $0x40] sm:$0xff]  }
  0xbe   : > { %3889 = vperm.xlu1 %4930, %v3807_v33   ;;  %v3820_v33 = vld [vmem:[%s6774_s4 + $0xc0] sm:$0xff] }
  0xbf   : > { %3894 = vperm.xlu0 %4929, %v3808_v20   ;;  %v5877_v7 = vld [vmem:[%s5133_s29 + $0x60] sm:$0xff]  }
  0xc2   : > { %3899 = vperm.xlu1 %4930, %v3809_v13  }
  0xc3   : > { %4712 = vmatmul.mubr.msk.bf16.gmra.mxu1 %vm508_vm2, %v1442_v59 }
  0xc4   : > { %4746 = vmatmul.mubr.msk.bf16.gmra.mxu0 %vm508_vm2, %v1871_v23  ;;  %4755 = vmatprep.mubr.msk.bf16.mxu1 %vm508_vm2, %v5379_v56  ;;  %v3145_v56 = vsel %vm563_vm0, %v5540_v5, 0  ;;  %v2610_v5 = vsel %vm2166_vm4, %v2607_v46, %v2609_v0  ;;  %v2619_v23 = vrot.slane %v5805_v41, 2  ;;  %v2621_v46 = vrot.slane %v5833_v48, 2 }
  0xc5   : > { %4749 = vmatprep.mubr.msk.bf16.mxu0 %vm508_vm2, %v1880_v54  ;;  %v3818_v54 = vld [vmem:[%s6774_s4 + $0xb0] sm:$0xff] }
  0xc6   : > { %3909 = vperm.xlu1 %4930, %v3811_v8   ;;  %v2622_v20 = vsel %vm2166_vm4, %v2619_v23, %v2621_v46 }
  0xca   : > { %3919 = vperm.xlu1 %4930, %v3813_v35   ;;  %v2625_v35 = vrot.slane %v5877_v7, 2 }
  0xcb   : > { %4756 = vmatmul.mubr.msk.bf16.vlgmr.msra.gmra.mxu1 %vm508_vm2, %v5386_v60  ;;  %v3810_v60 = vld [vmem:[%s6774_s4 + $0x70] sm:$0xff] }
  0xcc   : > { %4750 = vmatmul.mubr.msk.bf16.gmra.mxu0 %vm508_vm2, %v1889_v30  ;;  %4830 = vmatpush3.bf16.msra.mxu1 %v3145_v56  ;;  %v3821_v30 = vld [vmem:[%s6774_s4 + $0xc8] sm:$0xff]  ;;  %v2623_v56 = vrot.slane %v5847_v58, 2 }
  0xcd   : > { %4793 = vmatprep.mubr.msk.bf16.mxu0 %vm508_vm2, %v2608_v17  ;;  %4759 = vmatprep.mubr.msk.bf16.mxu1 %vm508_vm2, %v5394_v63  ;;  %v5777_v63 = vld [vmem:[%s5133_s29 + $0x38] sm:$0xff]  }
  0xce   : > { %3904 = vperm.xlu0 %4929, %v3810_v60   ;;  %v2615_v34 = vrot.slane %v5777_v63, 2  ;;  %3929 = vperm.xlu1 %4930, %v3815_v28   ;;  %v2624_v60 = vsel %vm2166_vm4, %v2621_v46, %v2623_v56 }
  0xd2   : > { %3914 = vperm.xlu0 %4929, %v3812_v18   ;;  %3939 = vperm.xlu1 %4930, %v3817_v49   ;;  %v3825_v18 = vld [vmem:[%s6774_s4 + $0xe8] sm:$0xff]  ;;  %v2626_v49 = vsel %vm2166_vm4, %v2623_v56, %v2625_v35  ;;  %v3828_v56 = vld [vmem:[%s6774_s4 + $0x100] sm:$0xff] }
  0xd3   : > { %4760 = vmatmul.mubr.msk.bf16.gmra.mxu1 %vm508_vm2, %v5404_v3  ;;  %v2616_v3 = vsel %vm2166_vm4, %v2613_v15, %v2615_v34 }
  0xd4   : > { %4794 = vmatmul.mubr.msk.bf16.vlgmr.msra.gmra.mxu0 %vm508_vm2, %v2610_v5  ;;  %4763 = vmatprep.mubr.msk.bf16.mxu1 %vm508_vm2, %v5412_v9  ;;  %v2617_v9 = vrot.slane %v5795_v36, 2  ;;  %v3822_v5 = vld [vmem:[%s6774_s4 + $0xd0] sm:$0xff] }
  0xd5   : > { %4868 = vmatpush3.bf16.msra.mxu0 %v3459_v25  ;;  %4797 = vmatprep.mubr.msk.bf16.mxu0 %vm508_vm2, %v2612_v45  ;;  %v5891_v25 = vld [vmem:[%s5133_s29 + $0x68] sm:$0xff]  }
  0xd6   : > { %3924 = vperm.xlu0 %4929, %v3814_v53   ;;  %v2618_v2 = vsel %vm2166_vm4, %v2615_v34, %v2617_v9  ;;  %v2620_v4 = vsel %vm2166_vm4, %v2617_v9, %v2619_v23  ;;  %v3824_v34 = vld [vmem:[%s6774_s4 + $0xe0] sm:$0xff]  ;;  %v2627_v53 = vrot.slane %v5891_v25, 2  ;;  %v3826_v23 = vld [vmem:[%s6774_s4 + $0xf0] sm:$0xff] }
  0xda   : > { %3934 = vperm.xlu0 %4929, %v3816_v51   ;;  %v5921_v51 = vld [vmem:[%s5133_s29 + $0x70] sm:$0xff]  }
  0xdb   : > { %v5818_v10 = vpop.f32.mrf.mxu1  ;;  %4764 = vmatmul.mubr.msk.bf16.gmra.mxu1 %vm508_vm2, %v5416_v12  ;;  %v3819_v12 = vld [vmem:[%s6774_s4 + $0xb8] sm:$0xff] }
  0xdc   : > { %v5807_v39 = vpop.f32.mrf.mxu0  ;;  %4798 = vmatmul.mubr.msk.bf16.gmra.mxu0 %vm508_vm2, %v2614_v62  ;;  %4767 = vmatprep.mubr.msk.bf16.mxu1 %vm508_vm2, %v5422_v19 }
  0xdd   : > { %4801 = vmatprep.mubr.msk.bf16.mxu0 %vm508_vm2, %v2616_v3  ;;  %v5827_v11 = vpop.f32.mrf.mxu1  ;;  %3949 = vperm.xlu1 %4930, %v3819_v12   ;;  %v2628_v12 = vsel %vm2166_vm4, %v2625_v35, %v2627_v53 }
  0xde   : > { %v5822_v47 = vpop.f32.mrf.mxu0  ;;  %3944 = vperm.xlu0 %4929, %v3818_v54   ;;  %v5935_v54 = vld [vmem:[%s5133_s29 + $0x78] sm:$0xff]  }
  0xdf   : > { %v5841_v59 = vpop.f32.mrf.mxu1 }
  0xe0   : > { %v5829_v61 = vpop.f32.mrf.mxu0 }
  0xe1   : > { %v5849_v14 = vpop.f32.mrf.mxu1  ;;  %3959 = vperm.xlu1 %4930, %v3821_v30   ;;  %v2629_v30 = vrot.slane %v5921_v51, 2 }
  0xe2   : > { %v5843_v19 = vpop.f32.mrf.mxu0  ;;  %3954 = vperm.xlu0 %4929, %v3820_v33   ;;  %v3829_v33 = vld [vmem:[%s6774_s4 + $0x108] sm:$0xff] }
  0xe3   : > { %v5862_v52 = vpop.f32.mrf.mxu1  ;;  %4768 = vmatmul.mubr.msk.bf16.gmra.mxu1 %vm508_vm2, %v5427_v21  ;;  %v3823_v21 = vld [vmem:[%s6774_s4 + $0xd8] sm:$0xff] }
  0xe4   : > { %v5851_v1 = vpop.f32.mrf.mxu0  ;;  %4802 = vmatmul.mubr.msk.bf16.gmra.mxu0 %vm508_vm2, %v2618_v2  ;;  %4771 = vmatprep.mubr.msk.bf16.mxu1 %vm508_vm2, %v5446_v31 }
  0xe5   : > { %4805 = vmatprep.mubr.msk.bf16.mxu0 %vm508_vm2, %v2620_v4  ;;  %v5871_v0 = vpop.f32.mrf.mxu1  ;;  %3969 = vperm.xlu1 %4930, %v3823_v21  }
  0xe6   : > { %v5866_v17 = vpop.f32.mrf.mxu0  ;;  %3964 = vperm.xlu0 %4929, %v3822_v5   ;;  %v2631_v5 = vrot.slane %v5935_v54, 2 }
  0xe7   : > { %v5885_v8 = vpop.f32.mrf.mxu1 }
  0xe8   : > { %v5873_v13 = vpop.f32.mrf.mxu0  ;;  %6783 = vst [vmem:[#allocation2_spill] sm:$0xff] %v5885_v8 }
  0xe9   : > { %v5893_v45 = vpop.f32.mrf.mxu1  ;;  %3979 = vperm.xlu1 %4930, %v3825_v18   ;;  %v2630_v18 = vsel %vm2166_vm4, %v2627_v53, %v2629_v30 }
  0xea   : > { %v5887_v31 = vpop.f32.mrf.mxu0  ;;  %6784 = vst [vmem:[#allocation3_spill] sm:$0xff] %v5893_v45  ;;  %3974 = vperm.xlu0 %4929, %v3824_v34   ;;  %v5965_v34 = vld [vmem:[%s5133_s29 + $0x80] sm:$0xff]  }
  0xeb   : > { %v5906_v62 = vpop.f32.mrf.mxu1  ;;  %4772 = vmatmul.mubr.msk.bf16.gmra.mxu1 %vm508_vm2, %v5451_v32  ;;  %v3827_v32 = vld [vmem:[%s6774_s4 + $0xf8] sm:$0xff]  ;;  %6791 = vst [vmem:[#allocation10_spill] sm:$0xff] %v5965_v34 }
  0xec   : > { %v5895_v15 = vpop.f32.mrf.mxu0  ;;  %4806 = vmatmul.mubr.msk.bf16.gmra.mxu0 %vm508_vm2, %v2622_v20  ;;  %6785 = vst [vmem:[#allocation4_spill] sm:$0xff] %v5906_v62  ;;  %4775 = vmatprep.mubr.msk.bf16.mxu1 %vm508_vm2, %v5472_v44 }
  0xed   : > { %4809 = vmatprep.mubr.msk.bf16.mxu0 %vm508_vm2, %v2624_v60  ;;  %v5915_v3 = vpop.f32.mrf.mxu1  ;;  %3989 = vperm.xlu1 %4930, %v3827_v32  }
  0xee   : > { %v5910_v28 = vpop.f32.mrf.mxu0  ;;  %6786 = vst [vmem:[#allocation5_spill] sm:$0xff] %v5915_v3  ;;  %3984 = vperm.xlu0 %4929, %v3826_v23   ;;  %v2632_v23 = vsel %vm2166_vm4, %v2629_v30, %v2631_v5  ;;  %v6011_v3 = vld [vmem:[%s5133_s29 + $0x98] sm:$0xff]  }
  0xef   : > { %v5929_v2 = vpop.f32.mrf.mxu1  ;;  %6795 = vst [vmem:[#allocation14_spill] sm:$0xff] %v6011_v3 }
  0xf0   : > { %v5917_v9 = vpop.f32.mrf.mxu0  ;;  %6787 = vst [vmem:[#allocation6_spill] sm:$0xff] %v5929_v2  ;;  %v6005_v2 = vld [vmem:[%s5133_s29 + $0x90] sm:$0xff]  }
  0xf1   : > { %v5937_v4 = vpop.f32.mrf.mxu1  ;;  %3999 = vperm.xlu1 %4930, %v3829_v33  }
  0xf2   : > { %v5931_v44 = vpop.f32.mrf.mxu0  ;;  %6788 = vst [vmem:[#allocation7_spill] sm:$0xff] %v5937_v4  ;;  %3994 = vperm.xlu0 %4929, %v3828_v56   ;;  %v2633_v56 = vrot.slane %v5965_v34, 2 }
  0xf3   : > { %v5950_v20 = vpop.f32.mrf.mxu1  ;;  %4776 = vmatmul.mubr.msk.bf16.gmra.mxu1 %vm508_vm2, %v5477_v50  ;;  %v3831_v50 = vld [vmem:[%s6774_s4 + $0x118] sm:$0xff] }
  0xf4   : > { %v5939_v46 = vpop.f32.mrf.mxu0  ;;  %4810 = vmatmul.mubr.msk.bf16.gmra.mxu0 %vm508_vm2, %v2626_v49  ;;  %6789 = vst [vmem:[#allocation8_spill] sm:$0xff] %v5950_v20  ;;  %4779 = vmatprep.mubr.msk.bf16.mxu1 %vm508_vm2, %v5501_v40  ;;  %v3830_v49 = vld [vmem:[%s6774_s4 + $0x110] sm:$0xff]  ;;  %v2634_v4 = vsel %vm2166_vm4, %v2631_v5, %v2633_v56 }
  0xf5   : > { %4813 = vmatprep.mubr.msk.bf16.mxu0 %vm508_vm2, %v2628_v12  ;;  %v5959_v60 = vpop.f32.mrf.mxu1  ;;  %v5979_v12 = vld [vmem:[%s5133_s29 + $0x88] sm:$0xff]   ;;  %4009 = vperm.xlu1 %4930, %v3831_v50  }
  0xf6   : > { %v5954_v21 = vpop.f32.mrf.mxu0  ;;  %6790 = vst [vmem:[#allocation9_spill] sm:$0xff] %v5959_v60  ;;  %6793 = vst [vmem:[#allocation12_spill] sm:$0xff] %v5979_v12  ;;  %4004 = vperm.xlu0 %4929, %v3830_v49   ;;  %v2635_v50 = vrot.slane %v5979_v12, 2  ;;  %v2929_v60 = vshrl.u32 %v5610_v55, 16 }
  0xf7   : > { %v5973_v32 = vpop.f32.mrf.mxu1 }
  0xf8   : > { %v5961_v35 = vpop.f32.mrf.mxu0  ;;  %6792 = vst [vmem:[#allocation11_spill] sm:$0xff] %v5973_v32  ;;  %v2924_v32 = vshll.u32 %v5720_v57, 16 }
  0xf9   : > { %v5981_v53 = vpop.f32.mrf.mxu1 }
  0xfa   : > { %v5975_v40 = vpop.f32.mrf.mxu0  ;;  %6794 = vst [vmem:[#allocation13_spill] sm:$0xff] %v5981_v53  ;;  %v2926_v12 = vrot.slane %v2924_v32, 3 }
  0xfb   : > { %v4605_v26 = vpop.f32.mrf.mxu1  ;;  %4780 = vmatmul.mubr.msk.bf16.gmra.mxu1 %vm508_vm2, %v5507_v16  ;;  %v2932_v16 = vshll.u32 %v5610_v55, 16 }
  0xfc   : > { %v5983_v33 = vpop.f32.mrf.mxu0  ;;  %4814 = vmatmul.mubr.msk.bf16.gmra.mxu0 %vm508_vm2, %v2630_v18  ;;  %v826_v53 = vadd.f32 %v4605_v26, %v5807_v39  ;;  %4783 = vmatprep.mubr.msk.bf16.mxu1 %vm508_vm2, %v5532_v42  ;;  %v2636_v42 = vsel %vm2166_vm4, %v2633_v56, %v2635_v50  ;;  %v2637_v56 = vrot.slane %v6005_v2, 2 }
  0xfd   : > { %4817 = vmatprep.mubr.msk.bf16.mxu0 %vm508_vm2, %v2632_v23  ;;  %v817_v18 = vpop.f32.mrf.mxu1  ;;  %v2921_v23 = vshrl.u32 %v5720_v57, 16 }
  0xfe   : > { %v5990_v30 = vpop.f32.mrf.mxu0  ;;  %v818_v20 = vadd.f32 %v817_v18, %v5822_v47  ;;  %v2931_v47 = vrot.slane %v2929_v60, 2  ;;  %v2934_v18 = vrot.slane %v2932_v16, 3 }
  0xff   : > { %v4606_v26 = vpop.f32.mrf.mxu1  ;;  %v2923_v55 = vrot.slane %v2921_v23, 2 }
 0x100   : > { %v5996_v49 = vpop.f32.mrf.mxu0  ;;  %v829_v62 = vadd.f32 %v4606_v26, %v5829_v61  ;;  %v2639_v26 = vrot.slane %v6011_v3, 2  ;;  %v2935_v16 = vor.u32 %v2934_v18, %v2931_v47 }
 0x101   : > { %v820_v57 = vpop.f32.mrf.mxu1  ;;  %v2927_v23 = vor.u32 %v2926_v12, %v2923_v55 }
 0x102   : > { %v6007_v39 = vpop.f32.mrf.mxu0  ;;  %v821_v5 = vadd.f32 %v820_v57, %v5843_v19  ;;  %v2938_v19 = vshrl.u32 %v5615_v27, 16 }
 0x103   : > { %v4609_v8 = vpop.f32.mrf.mxu1  ;;  %4784 = vmatmul.mubr.msk.bf16.gmra.mxu1 %vm508_vm2, %v5543_v6  ;;  %v2947_v6 = vshrl.u32 %v5745_v38, 16 }
 0x104   : > { %v4643_v45 = vpop.f32.mrf.mxu0  ;;  %4818 = vmatmul.mubr.msk.bf16.gmra.mxu0 %vm508_vm2, %v2634_v4  ;;  %v842_v4 = vadd.f32 %v4609_v8, %v5851_v1  ;;  %4787 = vmatprep.mubr.msk.bf16.mxu1 %vm508_vm2, %v5574_v22  ;;  %v2638_v8 = vsel %vm2166_vm4, %v2635_v50, %v2637_v56  ;;  %v4990_v22 = vld [vmem:[%s5133_s29 + $0xa0] ss:$0 sps:$4 sm:$0x33]   ;;  %v2940_v55 = vrot.slane %v2938_v19, 2  ;;  %v2956_v19 = vshrl.u32 %v5765_v29, 16 }
 0x105   : > { %v6016_v34 = vadd.f32 %v4643_v45, %v826_v53  ;;  %4821 = vmatprep.mubr.msk.bf16.mxu0 %vm508_vm2, %v2636_v42  ;;  %v2941_v45 = vshll.u32 %v5615_v27, 16  ;;  %v833_v32 = vpop.f32.mrf.mxu1  ;;  %v2950_v42 = vshll.u32 %v5745_v38, 16 }
 0x106   : > { %v1095_v61 = vpop.f32.mrf.mxu0  ;;  %v834_v57 = vadd.f32 %v833_v32, %v5866_v17  ;;  %v2936_v17 = vsel %vm2919_vm7, %v2927_v23, %v2935_v16 }
 0x107   : > { %6796 = vst [vmem:[#allocation15_spill] sm:$0xff] %v6016_v34  ;;  %v6024_v60 = vadd.f32 %v1095_v61, %v818_v20  ;;  %v4610_v20 = vpop.f32.mrf.mxu1  ;;  %v2943_v47 = vrot.slane %v2941_v45, 3  ;;  %v2952_v50 = vrot.slane %v2950_v42, 3  ;;  %v2959_v45 = vshll.u32 %v5765_v29, 16 }
 0x108   : > { %v4644_v53 = vpop.f32.mrf.mxu0  ;;  %v845_v34 = vadd.f32 %v4610_v20, %v5873_v13  ;;  %v2965_v42 = vshrl.u32 %v5777_v63, 16 }
 0x109   : > { %6797 = vst [vmem:[#allocation16_spill] sm:$0xff] %v6024_v60  ;;  %v6033_v1 = vadd.f32 %v4644_v53, %v829_v62  ;;  %v2640_v60 = vsel %vm2166_vm4, %v2637_v56, %v2639_v26  ;;  %v836_v18 = vpop.f32.mrf.mxu1  ;;  %v2949_v62 = vrot.slane %v2947_v6, 2  ;;  %v2641_v56 = vrot.slane %v4990_v22, 2 }
 0x10a   : > { %v1098_v61 = vpop.f32.mrf.mxu0  ;;  %v837_v32 = vadd.f32 %v836_v18, %v5887_v31  ;;  %v2944_v31 = vor.u32 %v2943_v47, %v2940_v55  ;;  %v2961_v18 = vrot.slane %v2959_v45, 3 }
 0x10b   : > { %v6039_v12 = vadd.f32 %v1098_v61, %v821_v5  ;;  %v4613_v13 = vpop.f32.mrf.mxu1  ;;  %4788 = vmatmul.mubr.msk.bf16.gmra.mxu1 %vm508_vm2, %v5580_v24  ;;  %v2642_v20 = vsel %vm2166_vm4, %v2639_v26, %v2641_v56 }
 0x10c   : > { %v4647_v3 = vpop.f32.mrf.mxu0  ;;  %4822 = vmatmul.mubr.msk.bf16.gmra.mxu0 %vm508_vm2, %v2638_v8  ;;  %v858_v23 = vadd.f32 %v4613_v13, %v5895_v15  ;;  %4831 = vmatprep.mubr.msk.bf16.mxu1 %vm508_vm2, %v2936_v17  ;;  %v2968_v8 = vshll.u32 %v5777_v63, 16  ;;  %v2945_v47 = vsel %vm2919_vm7, %v2935_v16, %v2944_v31 }
 0x10d   : > { %v6044_v53 = vadd.f32 %v4647_v3, %v842_v4  ;;  %4825 = vmatprep.mubr.msk.bf16.mxu0 %vm508_vm2, %v2640_v60  ;;  %v849_v3 = vpop.f32.mrf.mxu1  ;;  %v2953_v60 = vor.u32 %v2952_v50, %v2949_v62 }
 0x10e   : > { %v1111_v5 = vpop.f32.mrf.mxu0  ;;  %v850_v24 = vadd.f32 %v849_v3, %v5910_v28  ;;  %v2970_v13 = vrot.slane %v2968_v8, 3 }
 0x10f   : > { %v6052_v6 = vadd.f32 %v1111_v5, %v834_v57  ;;  %v4614_v61 = vpop.f32.mrf.mxu1  ;;  %v2958_v57 = vrot.slane %v2956_v19, 2  ;;  %v2954_v28 = vsel %vm2919_vm7, %v2944_v31, %v2953_v60  ;;  %v3372_v5 = vrot.slane %v5745_v38, 3 }
 0x110   : > { %v4648_v4 = vpop.f32.mrf.mxu0  ;;  %v861_v17 = vadd.f32 %v4614_v61, %v5917_v9  ;;  %v6798_v61 = vrot.slane %v5615_v27, 3 }
 0x111   : > { %v6058_v22 = vadd.f32 %v4648_v4, %v845_v34  ;;  %v852_v62 = vpop.f32.mrf.mxu1  ;;  %v2967_v34 = vrot.slane %v2965_v42, 2  ;;  %v2962_v16 = vor.u32 %v2961_v18, %v2958_v57  ;;  %v2983_v4 = vshrl.u32 %v5805_v41, 16 }
 0x112   : > { %v1114_v15 = vpop.f32.mrf.mxu0  ;;  %v853_v26 = vadd.f32 %v852_v62, %v5931_v44  ;;  %v2974_v44 = vshrl.u32 %v5795_v36, 16  ;;  %v2986_v42 = vshll.u32 %v5805_v41, 16 }
 0x113   : > { %v6062_v55 = vadd.f32 %v1114_v15, %v837_v32  ;;  %v4617_v9 = vpop.f32.mrf.mxu1  ;;  %4832 = vmatmul.mubr.msk.bf16.vlgmr.msra.gmra.mxu1 %vm508_vm2, %v2945_v47  ;;  %v3373_v15 = vsel %vm3366_vm6, %v6798_v61, %v3372_v5 }
 0x114   : > { %v4651_v50 = vpop.f32.mrf.mxu0  ;;  %4826 = vmatmul.mubr.msk.bf16.gmra.mxu0 %vm508_vm2, %v2642_v20  ;;  %v874_v19 = vadd.f32 %v4617_v9, %v5939_v46  ;;  %4835 = vmatprep.mubr.msk.bf16.mxu1 %vm508_vm2, %v2954_v28  ;;  %v2963_v20 = vsel %vm2919_vm7, %v2953_v60, %v2962_v16  ;;  %v2976_v47 = vrot.slane %v2974_v44, 2  ;;  %v3376_v9 = vrot.slane %v5777_v63, 3 }
 0x115   : > { %v6068_v56 = vadd.f32 %v4651_v50, %v858_v23  ;;  %4869 = vmatprep.mubr.msk.bf16.mxu0 %vm508_vm2, %v5626_v37  ;;  %v2977_v23 = vshll.u32 %v5795_v36, 16  ;;  %v865_v31 = vpop.f32.mrf.mxu1  ;;  %v2971_v37 = vor.u32 %v2970_v13, %v2967_v34  ;;  %v2988_v34 = vrot.slane %v2986_v42, 3 }
 0x116   : > { %v1127_v32 = vpop.f32.mrf.mxu0  ;;  %v866_v8 = vadd.f32 %v865_v31, %v5954_v21  ;;  %v3001_v31 = vshrl.u32 %v5847_v58, 16 }
 0x117   : > { %v6075_v45 = vadd.f32 %v1127_v32, %v850_v24  ;;  %v4618_v46 = vpop.f32.mrf.mxu1  ;;  %v2979_v62 = vrot.slane %v2977_v23, 3  ;;  %v2972_v21 = vsel %vm2919_vm7, %v2962_v16, %v2971_v37  ;;  %v2995_v32 = vshll.u32 %v5833_v48, 16 }
 0x118   : > { %v4652_v3 = vpop.f32.mrf.mxu0  ;;  %v877_v57 = vadd.f32 %v4618_v46, %v5961_v35  ;;  %v3374_v35 = vrot.slane %v5765_v29, 3 }
 0x119   : > { %v6083_v38 = vadd.f32 %v4652_v3, %v861_v17  ;;  %v868_v50 = vpop.f32.mrf.mxu1  ;;  %v2985_v17 = vrot.slane %v2983_v4, 2  ;;  %v3004_v3 = vshll.u32 %v5847_v58, 16 }
 0x11a   : > { %v1130_v24 = vpop.f32.mrf.mxu0  ;;  %v869_v60 = vadd.f32 %v868_v50, %v5975_v40  ;;  %v2980_v40 = vor.u32 %v2979_v62, %v2976_v47  ;;  %v3375_v42 = vsel %vm3366_vm6, %v3372_v5, %v3374_v35 }
 0x11b   : > { %v6090_v18 = vadd.f32 %v1130_v24, %v853_v26  ;;  %v4621_v13 = vpop.f32.mrf.mxu1  ;;  %4836 = vmatmul.mubr.msk.bf16.gmra.mxu1 %vm508_vm2, %v2963_v20  ;;  %v2989_v29 = vor.u32 %v2988_v34, %v2985_v17  ;;  %v2997_v20 = vrot.slane %v2995_v32, 3  ;;  %v3006_v5 = vrot.slane %v3004_v3, 3 }
 0x11c   : > { %v4655_v28 = vpop.f32.mrf.mxu0  ;;  %4870 = vmatmul.mubr.msk.bf16.vlgmr.msra.gmra.mxu0 %vm508_vm2, %v5634_v43  ;;  %v2992_v43 = vshrl.u32 %v5833_v48, 16  ;;  %v890_v16 = vadd.f32 %v4621_v13, %v5983_v33  ;;  %4839 = vmatprep.mubr.msk.bf16.mxu1 %vm508_vm2, %v2972_v21  ;;  %v2981_v47 = vsel %vm2919_vm7, %v2971_v37, %v2980_v40  ;;  %v3010_v13 = vshrl.u32 %v5877_v7, 16 }
 0x11d   : > { %v6096_v27 = vadd.f32 %v4655_v28, %v874_v19  ;;  %4873 = vmatprep.mubr.msk.bf16.mxu0 %vm508_vm2, %v3373_v15  ;;  %v881_v19 = vpop.f32.mrf.mxu1 }
 0x11e   : > { %v1143_v26 = vpop.f32.mrf.mxu0  ;;  %v882_v63 = vadd.f32 %v881_v19, %v5990_v30  ;;  %v2994_v24 = vrot.slane %v2992_v43, 2  ;;  %v2990_v30 = vsel %vm2919_vm7, %v2980_v40, %v2989_v29 }
 0x11f   : > { %v6105_v44 = vadd.f32 %v1143_v26, %v866_v8  ;;  %v4622_v46 = vpop.f32.mrf.mxu1  ;;  %v3377_v8 = vsel %vm3366_vm6, %v3374_v35, %v3376_v9 }
 0x120   : > { %v4656_v23 = vpop.f32.mrf.mxu0  ;;  %v893_v61 = vadd.f32 %v4622_v46, %v5996_v49  ;;  %v3378_v49 = vrot.slane %v5795_v36, 3  ;;  %v2998_v34 = vor.u32 %v2997_v20, %v2994_v24  ;;  %v3019_v36 = vshrl.u32 %v5891_v25, 16 }
 0x121   : > { %v6111_v4 = vadd.f32 %v4656_v23, %v877_v57  ;;  %v884_v62 = vpop.f32.mrf.mxu1  ;;  %v3003_v57 = vrot.slane %v3001_v31, 2  ;;  %v3012_v46 = vrot.slane %v3010_v13, 2  ;;  %v3040_v13 = vshll.u32 %v5935_v54, 16 }
 0x122   : > { %v1146_v33 = vpop.f32.mrf.mxu0  ;;  %v885_v28 = vadd.f32 %v884_v62, %v6007_v39  ;;  %v3013_v39 = vshll.u32 %v5877_v7, 16  ;;  %v3379_v19 = vsel %vm3366_vm6, %v3376_v9, %v3378_v49  ;;  %v2999_v31 = vsel %vm2919_vm7, %v2989_v29, %v2998_v34 }
 0x123   : > { %v6116_v15 = vadd.f32 %v1146_v33, %v869_v60  ;;  %v4625_v17 = vpop.f32.mrf.mxu1  ;;  %4840 = vmatmul.mubr.msk.bf16.gmra.mxu1 %vm508_vm2, %v2981_v47  ;;  %v3380_v60 = vrot.slane %v5805_v41, 3  ;;  %v3007_v32 = vor.u32 %v3006_v5, %v3003_v57  ;;  %v3028_v57 = vshrl.u32 %v5921_v51, 16 }
 0x124   : > { %v4659_v50 = vpop.f32.mrf.mxu0  ;;  %4874 = vmatmul.mubr.msk.bf16.gmra.mxu0 %vm508_vm2, %v3375_v42  ;;  %4843 = vmatprep.mubr.msk.bf16.mxu1 %vm508_vm2, %v2990_v30  ;;  %v3015_v33 = vrot.slane %v3013_v39, 3  ;;  %v3384_v30 = vrot.slane %v5847_v58, 3  ;;  %v3031_v5 = vshll.u32 %v5921_v51, 16 }
 0x125   : > { %v6122_v21 = vadd.f32 %v4659_v50, %v890_v16  ;;  %4877 = vmatprep.mubr.msk.bf16.mxu0 %vm508_vm2, %v3377_v8  ;;  %v897_v26 = vpop.f32.mrf.mxu1  ;;  %v3022_v16 = vshll.u32 %v5891_v25, 16  ;;  %v3381_v3 = vsel %vm3366_vm6, %v3378_v49, %v3380_v60  ;;  %v3008_v20 = vsel %vm2919_vm7, %v2998_v34, %v3007_v32 }
 0x126   : > { %v1159_v37 = vpop.f32.mrf.mxu0  ;;  %v898_v47 = vadd.f32 %v897_v26, %v5827_v11  ;;  %v3016_v11 = vor.u32 %v3015_v33, %v3012_v46  ;;  %v3037_v34 = vshrl.u32 %v5935_v54, 16 }
 0x127   : > { %v6128_v35 = vadd.f32 %v1159_v37, %v882_v63  ;;  %v4626_v41 = vpop.f32.mrf.mxu1  ;;  %v906_v63 = vadd.f32 %v4625_v17, %v5818_v10  ;;  %v3024_v9 = vrot.slane %v3022_v16, 3  ;;  %v3382_v10 = vrot.slane %v5833_v48, 3 }
 0x128   : > { %v4660_v43 = vpop.f32.mrf.mxu0  ;;  %v3030_v16 = vrot.slane %v3028_v57, 2  ;;  %v3039_v46 = vrot.slane %v3037_v34, 2 }
 0x129   : > { %v6135_v40 = vadd.f32 %v4660_v43, %v893_v61  ;;  %v900_v8 = vpop.f32.mrf.mxu1  ;;  %v3021_v61 = vrot.slane %v3019_v36, 2  ;;  %v3383_v26 = vsel %vm3366_vm6, %v3380_v60, %v3382_v10  ;;  %v3385_v36 = vsel %vm3366_vm6, %v3382_v10, %v3384_v30 }
 0x12a   : > { %v1162_v23 = vpop.f32.mrf.mxu0  ;;  %v901_v58 = vadd.f32 %v900_v8, %v5849_v14  ;;  %v3042_v60 = vrot.slane %v3040_v13, 3 }
 0x12b   : > { %v6141_v42 = vadd.f32 %v1162_v23, %v885_v28  ;;  %v4629_v29 = vpop.f32.mrf.mxu1  ;;  %4844 = vmatmul.mubr.msk.bf16.gmra.mxu1 %vm508_vm2, %v2999_v31  ;;  %v909_v28 = vadd.f32 %v4626_v41, %v5841_v59  ;;  %v3025_v48 = vor.u32 %v3024_v9, %v3021_v61  ;;  %v3017_v31 = vsel %vm2919_vm7, %v3007_v32, %v3016_v11  ;;  %v6799_v9 = vld [vmem:[#allocation2_spill] sm:$0xff] }
 0x12c   : > { %v4663_v24 = vpop.f32.mrf.mxu0  ;;  %4878 = vmatmul.mubr.msk.bf16.gmra.mxu0 %vm508_vm2, %v3379_v19  ;;  %4847 = vmatprep.mubr.msk.bf16.mxu1 %vm508_vm2, %v3008_v20  ;;  %v3033_v19 = vrot.slane %v3031_v5, 3  ;;  %v922_v41 = vadd.f32 %v4629_v29, %v5862_v52  ;;  %v3386_v52 = vrot.slane %v5877_v7, 3  ;;  %v3388_v61 = vrot.slane %v5891_v25, 3 }
 0x12d   : > { %v6146_v62 = vadd.f32 %v4663_v24, %v906_v63  ;;  %4881 = vmatprep.mubr.msk.bf16.mxu0 %vm508_vm2, %v3381_v3  ;;  %v913_v17 = vpop.f32.mrf.mxu1  ;;  %v3026_v14 = vsel %vm2919_vm7, %v3016_v11, %v3025_v48  ;;  %v3043_v7 = vor.u32 %v3042_v60, %v3039_v46  ;;  %v6804_v60 = vld [vmem:[#allocation5_spill] sm:$0xff] }
 0x12e   : > { %v1175_v50 = vpop.f32.mrf.mxu0  ;;  %v914_v33 = vadd.f32 %v913_v17, %v5871_v0  ;;  %v3034_v20 = vor.u32 %v3033_v19, %v3030_v16  ;;  %v6800_v0 = vld [vmem:[#allocation10_spill] sm:$0xff]  ;;  %v3387_v13 = vsel %vm3366_vm6, %v3384_v30, %v3386_v52 }
 0x12f   : > { %v6155_v49 = vadd.f32 %v1175_v50, %v898_v47  ;;  %v4630_v43 = vpop.f32.mrf.mxu1  ;;  %v3046_v29 = vshrl.u32 %v6800_v0, 16  ;;  %v3049_v50 = vshll.u32 %v6800_v0, 16 }
 0x130   : > { %v4664_v37 = vpop.f32.mrf.mxu0  ;;  %v925_v47 = vadd.f32 %v4630_v43, %v6799_v9  ;;  %v3035_v43 = vsel %vm2919_vm7, %v3025_v48, %v3034_v20  ;;  %v3390_v48 = vrot.slane %v5921_v51, 3  ;;  %v3392_v9 = vrot.slane %v5935_v54, 3  ;;  %v6807_v54 = vld [vmem:[#allocation7_spill] sm:$0xff] }
 0x131   : > { %v6161_v39 = vadd.f32 %v4664_v37, %v909_v28  ;;  %v916_v3 = vpop.f32.mrf.mxu1  ;;  %v6801_v28 = vld [vmem:[#allocation12_spill] sm:$0xff]  ;;  %v6802_v37 = vld [vmem:[#allocation3_spill] sm:$0xff] }
 0x132   : > { %v1178_v59 = vpop.f32.mrf.mxu0  ;;  %v3055_v11 = vshrl.u32 %v6801_v28, 16  ;;  %v3058_v17 = vshll.u32 %v6801_v28, 16  ;;  %v917_v34 = vadd.f32 %v916_v3, %v6802_v37  ;;  %v3044_v3 = vsel %vm2919_vm7, %v3034_v20, %v3043_v7  ;;  %v6806_v37 = vld [vmem:[#allocation14_spill] sm:$0xff] }
 0x133   : > { %v6166_v23 = vadd.f32 %v1178_v59, %v901_v58  ;;  %v4633_v24 = vpop.f32.mrf.mxu1  ;;  %4848 = vmatmul.mubr.msk.bf16.gmra.mxu1 %vm508_vm2, %v3017_v31  ;;  %v3389_v59 = vsel %vm3366_vm6, %v3386_v52, %v3388_v61  ;;  %v3051_v31 = vrot.slane %v3049_v50, 3  ;;  %v3067_v20 = vshll.u32 %v6005_v2, 16 }
 0x134   : > { %v4667_v63 = vpop.f32.mrf.mxu0  ;;  %4882 = vmatmul.mubr.msk.bf16.gmra.mxu0 %vm508_vm2, %v3383_v26  ;;  %4851 = vmatprep.mubr.msk.bf16.mxu1 %vm508_vm2, %v3026_v14  ;;  %v3057_v46 = vrot.slane %v3055_v11, 2  ;;  %v3060_v30 = vrot.slane %v3058_v17, 3 }
 0x135   : > { %v6172_v8 = vadd.f32 %v4667_v63, %v922_v41  ;;  %4885 = vmatprep.mubr.msk.bf16.mxu0 %vm508_vm2, %v3385_v36  ;;  %v929_v57 = vpop.f32.mrf.mxu1  ;;  %v6803_v36 = vld [vmem:[#allocation4_spill] sm:$0xff]  ;;  %v3048_v41 = vrot.slane %v3046_v29, 2  ;;  %v6805_v29 = vld [vmem:[#allocation6_spill] sm:$0xff] }
 0x136   : > { %v1191_v32 = vpop.f32.mrf.mxu0  ;;  %v938_v16 = vadd.f32 %v4633_v24, %v6803_v36  ;;  %v3061_v17 = vor.u32 %v3060_v30, %v3057_v46 }
 0x137   : > { %v6179_v10 = vadd.f32 %v1191_v32, %v914_v33  ;;  %v4634_v58 = vpop.f32.mrf.mxu1  ;;  %v930_v33 = vadd.f32 %v929_v57, %v6804_v60  ;;  %v3052_v57 = vor.u32 %v3051_v31, %v3048_v41  ;;  %v6218_v41 = vld [vmem:[%s5133_s29 + $0xa0] ss:$0 sps:$4 sm:$0x77]   ;;  %v6808_v31 = vld [vmem:[#allocation8_spill] sm:$0xff]  ;;  %s4918_s29 = smul.u32 344, %s6815_s19 }
 0x138   : > { %v4668_v5 = vpop.f32.mrf.mxu0  ;;  %v941_v50 = vadd.f32 %v4634_v58, %v6805_v29 }
 0x139   : > { %v6187_v25 = vadd.f32 %v4668_v5, %v925_v47  ;;  %v932_v63 = vpop.f32.mrf.mxu1  ;;  %v3064_v47 = vshrl.u32 %v6005_v2, 16  ;;  %v3053_v60 = vsel %vm2919_vm7, %v3043_v7, %v3052_v57  ;;  %s6435_s27 = scalar_lea.vmem %s6775_s5, %s4918_s29 }
 0x13a   : > { %v1194_v26 = vpop.f32.mrf.mxu0 }
 0x13b   : > { %v6193_v19 = vadd.f32 %v1194_v26, %v917_v34  ;;  %v4637_v52 = vpop.f32.mrf.mxu1  ;;  %4852 = vmatmul.mubr.msk.bf16.gmra.mxu1 %vm508_vm2, %v3035_v43  ;;  %v3073_v34 = vshrl.u32 %v6806_v37, 16  ;;  %v933_v26 = vadd.f32 %v932_v63, %v6807_v54  ;;  %v3396_v54 = vrot.slane %v6801_v28, 3 }
 0x13c   : > { %v4671_v14 = vpop.f32.mrf.mxu0  ;;  %4886 = vmatmul.mubr.msk.bf16.gmra.mxu0 %vm508_vm2, %v3387_v13  ;;  %4855 = vmatprep.mubr.msk.bf16.mxu1 %vm508_vm2, %v3044_v3  ;;  %v3076_v13 = vshll.u32 %v6806_v37, 16  ;;  %v3069_v3 = vrot.slane %v3067_v20, 3  ;;  %v954_v46 = vadd.f32 %v4637_v52, %v6808_v31  ;;  %v3394_v52 = vrot.slane %v6800_v0, 3 }
 0x13d   : > { %v6198_v32 = vadd.f32 %v4671_v14, %v938_v16  ;;  %4889 = vmatprep.mubr.msk.bf16.mxu0 %vm508_vm2, %v3389_v59  ;;  %v945_v11 = vpop.f32.mrf.mxu1  ;;  %v3391_v59 = vsel %vm3366_vm6, %v3388_v61, %v3390_v48  ;;  %v3393_v16 = vsel %vm3366_vm6, %v3390_v48, %v3392_v9  ;;  %v3066_v14 = vrot.slane %v3064_v47, 2 }
 0x13e   : > { %v1207_v24 = vpop.f32.mrf.mxu0  ;;  %v3062_v61 = vsel %vm2919_vm7, %v3052_v57, %v3061_v17  ;;  %v3078_v29 = vrot.slane %v3076_v13, 3  ;;  %v6810_v57 = vld [vmem:[#allocation11_spill] sm:$0xff] }
 0x13f   : > { %v6207_v5 = vadd.f32 %v1207_v24, %v930_v33  ;;  %v4638_v58 = vpop.f32.mrf.mxu1  ;;  %v3075_v24 = vrot.slane %v3073_v34, 2  ;;  %v6811_v13 = vld [vmem:[#allocation15_spill] sm:$0xff] }
 0x140   : > { %v4672_v51 = vpop.f32.mrf.mxu0  ;;  %v957_v34 = vadd.f32 %v4638_v58, %v6810_v57 }
 0x141   : > { %v6213_v43 = vadd.f32 %v4672_v51, %v941_v50  ;;  %v948_v33 = vpop.f32.mrf.mxu1  ;;  %v6809_v50 = vld [vmem:[#allocation9_spill] sm:$0xff]  ;;  %v3070_v51 = vor.u32 %v3069_v3, %v3066_v14  ;;  %v3079_v31 = vor.u32 %v3078_v29, %v3075_v24  ;;  %v6813_v14 = vld [vmem:[#allocation16_spill] sm:$0xff] }
 0x142   : > { %v1210_v36 = vpop.f32.mrf.mxu0  ;;  %v946_v48 = vadd.f32 %v945_v11, %v6809_v50 }
 0x143   : > { %v6221_v30 = vadd.f32 %v1210_v36, %v933_v26  ;;  %v4681_v20 = vpop.f32.mrf.mxu1  ;;  %4856 = vmatmul.mubr.msk.bf16.gmra.mxu1 %vm508_vm2, %v3053_v60  ;;  %v3082_v26 = vshrl.u32 %v6218_v41, 16  ;;  %v3085_v36 = vshll.u32 %v6218_v41, 16 }
 0x144   : > { %v4675_v63 = vpop.f32.mrf.mxu0  ;;  %4890 = vmatmul.mubr.msk.bf16.gmra.mxu0 %vm508_vm2, %v3391_v59  ;;  %v1679_v59 = vadd.f32 %v4681_v20, %v6811_v13  ;;  %4859 = vmatprep.mubr.msk.bf16.mxu1 %vm508_vm2, %v3062_v61  ;;  %v3397_v20 = vsel %vm3366_vm6, %v3394_v52, %v3396_v54 }
 0x145   : > { %v6227_v47 = vadd.f32 %v4675_v63, %v954_v46  ;;  %4893 = vmatprep.mubr.msk.bf16.mxu0 %vm508_vm2, %v3393_v16  ;;  %v1534_v0 = vpop.f32.mrf.mxu1  ;;  %v6812_v46 = vld [vmem:[#allocation13_spill] sm:$0xff]  ;;  %v3395_v63 = vsel %vm3366_vm6, %v3392_v9, %v3394_v52  ;;  %v3084_v57 = vrot.slane %v3082_v26, 2  ;;  %v3087_v24 = vrot.slane %v3085_v36, 3 }
 0x146   : > { %v1223_v7 = vpop.f32.mrf.mxu0  ;;  %v949_v60 = vadd.f32 %v948_v33, %v6812_v46  ;;  %v1677_v3 = vadd.f32 %v1534_v0, %v6813_v14  ;;  %v3400_v26 = vrot.slane %v6806_v37, 3 }
 0x147   : > { %v6236_v11 = vadd.f32 %v1223_v7, %v946_v48  ;;  %v4682_v58 = vpop.f32.mrf.mxu1  ;;  %v3071_v48 = vsel %vm2919_vm7, %v3061_v17, %v3070_v51  ;;  %v3398_v17 = vrot.slane %v6005_v2, 3 }
 0x148   : > { %v4676_v16 = vpop.f32.mrf.mxu0  ;;  %v1680_v61 = vadd.f32 %v4682_v58, %v6033_v1 }
 0x149   : > { %v6242_v28 = vadd.f32 %v4676_v16, %v957_v34  ;;  %v1537_v29 = vpop.f32.mrf.mxu1  ;;  %v3080_v34 = vsel %vm2919_vm7, %v3070_v51, %v3079_v31  ;;  %v3088_v51 = vor.u32 %v3087_v24, %v3084_v57  ;;  %v3399_v2 = vsel %vm3366_vm6, %v3396_v54, %v3398_v17 }
 0x14a   : > { %v1226_v50 = vpop.f32.mrf.mxu0  ;;  %v1678_v9 = vadd.f32 %v1537_v29, %v6039_v12  ;;  %v3402_v54 = vrot.slane %v6218_v41, 3 }
 0x14b   : > { %v6248_v7 = vadd.f32 %v1226_v50, %v949_v60  ;;  %v4685_v52 = vpop.f32.mrf.mxu1  ;;  %4860 = vmatmul.mubr.msk.bf16.gmra.mxu1 %vm508_vm2, %v3071_v48 }
 0x14c   : > { %v4719_v33 = vpop.f32.mrf.mxu0  ;;  %4894 = vmatmul.mubr.msk.bf16.gmra.mxu0 %vm508_vm2, %v3395_v63  ;;  %v1683_v36 = vadd.f32 %v4685_v52, %v6044_v53  ;;  %4863 = vmatprep.mubr.msk.bf16.mxu1 %vm508_vm2, %v3080_v34  ;;  %v3401_v63 = vsel %vm3366_vm6, %v3398_v17, %v3400_v26 }
 0x14d   : > { %v6253_v13 = vadd.f32 %v4719_v33, %v1679_v59  ;;  %4897 = vmatprep.mubr.msk.bf16.mxu0 %vm508_vm2, %v3397_v20  ;;  %v1550_v12 = vpop.f32.mrf.mxu1 }
 0x14e   : > { %v1981_v1 = vpop.f32.mrf.mxu0  ;;  %v1681_v16 = vadd.f32 %v1550_v12, %v6052_v6 }
 0x14f   : > { %v6260_v0 = vadd.f32 %v1981_v1, %v1677_v3  ;;  %v4686_v60 = vpop.f32.mrf.mxu1  ;;  %v3089_v3 = vsel %vm2919_vm7, %v3079_v31, %v3088_v51 }
 0x150   : > { %v4720_v59 = vpop.f32.mrf.mxu0  ;;  %v1684_v37 = vadd.f32 %v4686_v60, %v6058_v22 }
 0x151   : > { %v6264_v46 = vadd.f32 %v4720_v59, %v1680_v61  ;;  %v1553_v58 = vpop.f32.mrf.mxu1 }
 0x152   : > { %v1984_v14 = vpop.f32.mrf.mxu0  ;;  %v1682_v6 = vadd.f32 %v1553_v58, %v6062_v55  ;;  %v3403_v55 = vsel %vm3366_vm6, %v3400_v26, %v3402_v54 }
 0x153   : > { %v6269_v53 = vadd.f32 %v1984_v14, %v1678_v9  ;;  %v4689_v20 = vpop.f32.mrf.mxu1  ;;  %4864 = vmatmul.mubr.msk.bf16.gmra.mxu1 %vm508_vm2, %v3089_v3 }
 0x154   : > { %v4723_v50 = vpop.f32.mrf.mxu0  ;;  %4898 = vmatmul.mubr.msk.bf16.gmra.mxu0 %vm508_vm2, %v3399_v2  ;;  %v1687_v61 = vadd.f32 %v4689_v20, %v6068_v56 }
 0x155   : > { %v6274_v48 = vadd.f32 %v4723_v50, %v1683_v36  ;;  %4901 = vmatprep.mubr.msk.bf16.mxu0 %vm508_vm2, %v3401_v63  ;;  %v1566_v31 = vpop.f32.mrf.mxu1 }
 0x156   : > { %v1997_v22 = vpop.f32.mrf.mxu0  ;;  %v1685_v29 = vadd.f32 %v1566_v31, %v6075_v45 }
 0x157   : > { %v6280_v57 = vadd.f32 %v1997_v22, %v1681_v16  ;;  %v4690_v34 = vpop.f32.mrf.mxu1 }
 0x158   : > { %v4724_v24 = vpop.f32.mrf.mxu0  ;;  %v1688_v41 = vadd.f32 %v4690_v34, %v6083_v38 }
 0x159   : > { %v6283_v33 = vadd.f32 %v4724_v24, %v1684_v37  ;;  %v1569_v52 = vpop.f32.mrf.mxu1 }
 0x15a   : > { %v2000_v9 = vpop.f32.mrf.mxu0  ;;  %v1686_v56 = vadd.f32 %v1569_v52, %v6090_v18 }
 0x15b   : > { %v6287_v17 = vadd.f32 %v2000_v9, %v1682_v6  ;;  %v4693_v51 = vpop.f32.mrf.mxu1 }
 0x15c   : > { %v4727_v1 = vpop.f32.mrf.mxu0  ;;  %4902 = vmatmul.mubr.msk.bf16.gmra.mxu0 %vm508_vm2, %v3403_v55  ;;  %v1691_v12 = vadd.f32 %v4693_v51, %v6096_v27 }
 0x15d   : > { %v6291_v36 = vadd.f32 %v4727_v1, %v1687_v61  ;;  %v1582_v26 = vpop.f32.mrf.mxu1 }
 0x15e   : > { %v2013_v45 = vpop.f32.mrf.mxu0  ;;  %v1689_v38 = vadd.f32 %v1582_v26, %v6105_v44 }
 0x15f   : > { %v6294_v59 = vadd.f32 %v2013_v45, %v1685_v29  ;;  %v4694_v60 = vpop.f32.mrf.mxu1 }
 0x160   : > { %v4728_v16 = vpop.f32.mrf.mxu0  ;;  %v1692_v63 = vadd.f32 %v4694_v60, %v6111_v4 }
 0x161   : > { %v6297_v2 = vadd.f32 %v4728_v16, %v1688_v41  ;;  %v1585_v18 = vpop.f32.mrf.mxu1 }
 0x162   : > { %v2016_v14 = vpop.f32.mrf.mxu0  ;;  %v1690_v58 = vadd.f32 %v1585_v18, %v6116_v15 }
 0x163   : > { %v6300_v37 = vadd.f32 %v2016_v14, %v1686_v56  ;;  %v4697_v27 = vpop.f32.mrf.mxu1 }
 0x164   : > { %v4731_v3 = vpop.f32.mrf.mxu0  ;;  %v1695_v54 = vadd.f32 %v4697_v27, %v6122_v21 }
 0x165   : > { %v6303_v50 = vadd.f32 %v4731_v3, %v1691_v12  ;;  %v1598_v44 = vpop.f32.mrf.mxu1 }
 0x166   : > { %v2029_v6 = vpop.f32.mrf.mxu0  ;;  %v1693_v61 = vadd.f32 %v1598_v44, %v6128_v35 }
 0x167   : > { %v6306_v20 = vadd.f32 %v2029_v6, %v1689_v38  ;;  %v4698_v4 = vpop.f32.mrf.mxu1 }
 0x168   : > { %v4732_v22 = vpop.f32.mrf.mxu0  ;;  %v1696_v29 = vadd.f32 %v4698_v4, %v6135_v40 }
 0x169   : > { %v6309_v31 = vadd.f32 %v4732_v22, %v1692_v63  ;;  %v1601_v15 = vpop.f32.mrf.mxu1 }
 0x16a   : > { %v2032_v24 = vpop.f32.mrf.mxu0  ;;  %v1694_v9 = vadd.f32 %v1601_v15, %v6141_v42 }
 0x16b   : > { %v6312_v55 = vadd.f32 %v2032_v24, %v1690_v58  ;;  %v4701_v21 = vpop.f32.mrf.mxu1 }
 0x16c   : > { %v4735_v34 = vpop.f32.mrf.mxu0  ;;  %v1699_v1 = vadd.f32 %v4701_v21, %v6146_v62 }
 0x16d   : > { %v6315_v41 = vadd.f32 %v4735_v34, %v1695_v54  ;;  %v1614_v35 = vpop.f32.mrf.mxu1 }
 0x16e   : > { %v2045_v52 = vpop.f32.mrf.mxu0  ;;  %v1697_v45 = vadd.f32 %v1614_v35, %v6155_v49 }
 0x16f   : > { %v6318_v56 = vadd.f32 %v2045_v52, %v1693_v61  ;;  %v4702_v40 = vpop.f32.mrf.mxu1 }
 0x170   : > { %v4736_v51 = vpop.f32.mrf.mxu0  ;;  %v1700_v16 = vadd.f32 %v4702_v40, %v6161_v39 }
 0x171   : > { %v6321_v12 = vadd.f32 %v4736_v51, %v1696_v29  ;;  %v1617_v42 = vpop.f32.mrf.mxu1 }
 0x172   : > { %v2048_v26 = vpop.f32.mrf.mxu0  ;;  %v1698_v14 = vadd.f32 %v1617_v42, %v6166_v23 }
 0x173   : > { %v6324_v38 = vadd.f32 %v2048_v26, %v1694_v9  ;;  %v4705_v62 = vpop.f32.mrf.mxu1 }
 0x174   : > { %v4739_v60 = vpop.f32.mrf.mxu0  ;;  %v1703_v3 = vadd.f32 %v4705_v62, %v6172_v8 }
 0x175   : > { %v6327_v63 = vadd.f32 %v4739_v60, %v1699_v1  ;;  %v1630_v49 = vpop.f32.mrf.mxu1 }
 0x176   : > { %v2061_v18 = vpop.f32.mrf.mxu0  ;;  %v1701_v6 = vadd.f32 %v1630_v49, %v6179_v10 }
 0x177   : > { %v6330_v58 = vadd.f32 %v2061_v18, %v1697_v45  ;;  %v4706_v39 = vpop.f32.mrf.mxu1 }
 0x178   : > { %v4740_v27 = vpop.f32.mrf.mxu0  ;;  %v1704_v22 = vadd.f32 %v4706_v39, %v6187_v25 }
 0x179   : > { %v6333_v54 = vadd.f32 %v4740_v27, %v1700_v16  ;;  %v1633_v23 = vpop.f32.mrf.mxu1 }
 0x17a   : > { %v2064_v44 = vpop.f32.mrf.mxu0  ;;  %v1702_v24 = vadd.f32 %v1633_v23, %v6193_v19 }
 0x17b   : > { %v6336_v61 = vadd.f32 %v2064_v44, %v1698_v14  ;;  %v4709_v8 = vpop.f32.mrf.mxu1 }
 0x17c   : > { %v4743_v4 = vpop.f32.mrf.mxu0  ;;  %v1707_v34 = vadd.f32 %v4709_v8, %v6198_v32 }
 0x17d   : > { %v6339_v29 = vadd.f32 %v4743_v4, %v1703_v3  ;;  %v1646_v10 = vpop.f32.mrf.mxu1 }
 0x17e   : > { %v2077_v15 = vpop.f32.mrf.mxu0  ;;  %v1705_v52 = vadd.f32 %v1646_v10, %v6207_v5 }
 0x17f   : > { %v6342_v9 = vadd.f32 %v2077_v15, %v1701_v6  ;;  %v4710_v25 = vpop.f32.mrf.mxu1 }
 0x180   : > { %v4744_v21 = vpop.f32.mrf.mxu0  ;;  %v1708_v51 = vadd.f32 %v4710_v25, %v6213_v43 }
 0x181   : > { %v6345_v1 = vadd.f32 %v4744_v21, %v1704_v22  ;;  %v1649_v19 = vpop.f32.mrf.mxu1 }
 0x182   : > { %v2080_v35 = vpop.f32.mrf.mxu0  ;;  %v1706_v26 = vadd.f32 %v1649_v19, %v6221_v30 }
 0x183   : > { %v6348_v45 = vadd.f32 %v2080_v35, %v1702_v24  ;;  %v4713_v32 = vpop.f32.mrf.mxu1 }
 0x184   : > { %v4747_v40 = vpop.f32.mrf.mxu0  ;;  %v1711_v60 = vadd.f32 %v4713_v32, %v6227_v47 }
 0x185   : > { %v6351_v16 = vadd.f32 %v4747_v40, %v1707_v34  ;;  %v1662_v5 = vpop.f32.mrf.mxu1 }
 0x186   : > { %v2093_v42 = vpop.f32.mrf.mxu0  ;;  %v1709_v18 = vadd.f32 %v1662_v5, %v6236_v11 }
 0x187   : > { %v6354_v14 = vadd.f32 %v2093_v42, %v1705_v52  ;;  %v4714_v43 = vpop.f32.mrf.mxu1 }
 0x188   : > { %v4748_v62 = vpop.f32.mrf.mxu0  ;;  %v1712_v27 = vadd.f32 %v4714_v43, %v6242_v28 }
 0x189   : > { %v6357_v3 = vadd.f32 %v4748_v62, %v1708_v51  ;;  %v1665_v30 = vpop.f32.mrf.mxu1 }
 0x18a   : > { %v2096_v49 = vpop.f32.mrf.mxu0  ;;  %v1710_v44 = vadd.f32 %v1665_v30, %v6248_v7 }
 0x18b   : > { %v6360_v6 = vadd.f32 %v2096_v49, %v1706_v26  ;;  %v4757_v47 = vpop.f32.mrf.mxu1 }
 0x18c   : > { %v4751_v39 = vpop.f32.mrf.mxu0  ;;  %v2440_v4 = vadd.f32 %v4757_v47, %v6253_v13 }
 0x18d   : > { %v6363_v22 = vadd.f32 %v4751_v39, %v1711_v60  ;;  %v2295_v11 = vpop.f32.mrf.mxu1 }
 0x18e   : > { %v2109_v23 = vpop.f32.mrf.mxu0  ;;  %v2438_v15 = vadd.f32 %v2295_v11, %v6260_v0 }
 0x18f   : > { %v6366_v24 = vadd.f32 %v2109_v23, %v1709_v18  ;;  %v4758_v28 = vpop.f32.mrf.mxu1 }
 0x190   : > { %v4752_v8 = vpop.f32.mrf.mxu0  ;;  %v2441_v21 = vadd.f32 %v4758_v28, %v6264_v46 }
 0x191   : > { %v6369_v34 = vadd.f32 %v4752_v8, %v1712_v27  ;;  %v2298_v7 = vpop.f32.mrf.mxu1 }
 0x192   : > { %v2112_v10 = vpop.f32.mrf.mxu0  ;;  %v2439_v35 = vadd.f32 %v2298_v7, %v6269_v53 }
 0x193   : > { %v6372_v52 = vadd.f32 %v2112_v10, %v1710_v44  ;;  %v4761_v13 = vpop.f32.mrf.mxu1 }
 0x194   : > { %v4795_v25 = vpop.f32.mrf.mxu0  ;;  %v2444_v40 = vadd.f32 %v4761_v13, %v6274_v48 }
 0x195   : > { %v6375_v51 = vadd.f32 %v4795_v25, %v2440_v4  ;;  %v2311_v0 = vpop.f32.mrf.mxu1 }
 0x196   : > { %v2734_v19 = vpop.f32.mrf.mxu0  ;;  %v2442_v42 = vadd.f32 %v2311_v0, %v6280_v57 }
 0x197   : > { %v6378_v26 = vadd.f32 %v2734_v19, %v2438_v15  ;;  %v4762_v46 = vpop.f32.mrf.mxu1 }
 0x198   : > { %v4796_v32 = vpop.f32.mrf.mxu0  ;;  %v2445_v62 = vadd.f32 %v4762_v46, %v6283_v33 }
 0x199   : > { %v6381_v60 = vadd.f32 %v4796_v32, %v2441_v21  ;;  %v2314_v53 = vpop.f32.mrf.mxu1 }
 0x19a   : > { %v2737_v5 = vpop.f32.mrf.mxu0  ;;  %v2443_v49 = vadd.f32 %v2314_v53, %v6287_v17 }
 0x19b   : > { %v6384_v18 = vadd.f32 %v2737_v5, %v2439_v35  ;;  %v4765_v48 = vpop.f32.mrf.mxu1 }
 0x19c   : > { %v4799_v43 = vpop.f32.mrf.mxu0  ;;  %v2448_v39 = vadd.f32 %v4765_v48, %v6291_v36 }
 0x19d   : > { %v6387_v27 = vadd.f32 %v4799_v43, %v2444_v40  ;;  %v2327_v57 = vpop.f32.mrf.mxu1 }
 0x19e   : > { %v2750_v30 = vpop.f32.mrf.mxu0  ;;  %v2446_v23 = vadd.f32 %v2327_v57, %v6294_v59 }
 0x19f   : > { %v6390_v44 = vadd.f32 %v2750_v30, %v2442_v42  ;;  %v4766_v33 = vpop.f32.mrf.mxu1 }
 0x1a0   : > { %v4800_v47 = vpop.f32.mrf.mxu0  ;;  %v2449_v8 = vadd.f32 %v4766_v33, %v6297_v2 }
 0x1a1   : > { %v6393_v4 = vadd.f32 %v4800_v47, %v2445_v62  ;;  %v2330_v17 = vpop.f32.mrf.mxu1 }
 0x1a2   : > { %v2753_v11 = vpop.f32.mrf.mxu0  ;;  %v2447_v10 = vadd.f32 %v2330_v17, %v6300_v37 }
 0x1a3   : > { %v6396_v15 = vadd.f32 %v2753_v11, %v2443_v49  ;;  %v4769_v36 = vpop.f32.mrf.mxu1 }
 0x1a4   : > { %v4803_v28 = vpop.f32.mrf.mxu0  ;;  %v2452_v25 = vadd.f32 %v4769_v36, %v6303_v50 }
 0x1a5   : > { %v6399_v21 = vadd.f32 %v4803_v28, %v2448_v39  ;;  %v2343_v59 = vpop.f32.mrf.mxu1 }
 0x1a6   : > { %v2766_v7 = vpop.f32.mrf.mxu0  ;;  %v2450_v19 = vadd.f32 %v2343_v59, %v6306_v20 }
 0x1a7   : > { %v6402_v35 = vadd.f32 %v2766_v7, %v2446_v23  ;;  %v4770_v2 = vpop.f32.mrf.mxu1 }
 0x1a8   : > { %v4804_v13 = vpop.f32.mrf.mxu0  ;;  %v2453_v32 = vadd.f32 %v4770_v2, %v6309_v31 }
 0x1a9   : > { %v6405_v40 = vadd.f32 %v4804_v13, %v2449_v8  ;;  %v2346_v37 = vpop.f32.mrf.mxu1 }
 0x1aa   : > { %v2769_v0 = vpop.f32.mrf.mxu0  ;;  %v2451_v5 = vadd.f32 %v2346_v37, %v6312_v55 }
 0x1ab   : > { %v6408_v42 = vadd.f32 %v2769_v0, %v2447_v10  ;;  %v4773_v50 = vpop.f32.mrf.mxu1 }
 0x1ac   : > { %v4807_v46 = vpop.f32.mrf.mxu0  ;;  %v2456_v43 = vadd.f32 %v4773_v50, %v6315_v41 }
 0x1ad   : > { %v6411_v62 = vadd.f32 %v4807_v46, %v2452_v25  ;;  %v2359_v49 = vpop.f32.mrf.mxu1 }
 0x1ae   : > { %v2782_v53 = vpop.f32.mrf.mxu0  ;;  %v2454_v30 = vadd.f32 %v2359_v49, %v6318_v56 }
 0x1af   : > { %v6414_v20 = vadd.f32 %v2782_v53, %v2450_v19  ;;  %v4774_v39 = vpop.f32.mrf.mxu1 }
 0x1b0   : > { %v4808_v48 = vpop.f32.mrf.mxu0  ;;  %v2457_v47 = vadd.f32 %v4774_v39, %v6321_v12 }
 0x1b1   : > { %v6417_v31 = vadd.f32 %v4808_v48, %v2453_v32  ;;  %v2362_v23 = vpop.f32.mrf.mxu1 }
 0x1b2   : > { %v2785_v57 = vpop.f32.mrf.mxu0  ;;  %v2455_v11 = vadd.f32 %v2362_v23, %v6324_v38 }
 0x1b3   : > { %v6420_v55 = vadd.f32 %v2785_v57, %v2451_v5  ;;  %v4777_v8 = vpop.f32.mrf.mxu1 }
 0x1b4   : > { %v4811_v33 = vpop.f32.mrf.mxu0  ;;  %v2460_v28 = vadd.f32 %v4777_v8, %v6327_v63 }
 0x1b5   : > { %v6423_v41 = vadd.f32 %v4811_v33, %v2456_v43  ;;  %v2375_v10 = vpop.f32.mrf.mxu1 }
 0x1b6   : > { %v2798_v17 = vpop.f32.mrf.mxu0  ;;  %v2458_v7 = vadd.f32 %v2375_v10, %v6330_v58  ;;  %v5074_v58 = vmov 0.0  }
 0x1b7   : > { %v6427_v56 = vadd.f32 %v2798_v17, %v2454_v30  ;;  %v4778_v25 = vpop.f32.mrf.mxu1  ;;  %4049 = vst.msk [vmem:[%s6435_s27] sm:$0xff] %vm4048_vm8, %v5074_v58  ;;  %4050 = vst.msk [vmem:[%s6435_s27 + $0x8] sm:$0xff] %vm4048_vm8, %v5074_v58 }
 0x1b8   : > { %v4812_v36 = vpop.f32.mrf.mxu0  ;;  %v2461_v38 = vadd.f32 %v4778_v25, %v6333_v54  ;;  %4052 = vst.msk [vmem:[%s6435_s27 + $0x10] sm:$0x7] %vm4051_vm9, %v5074_v58  ;;  %4093 = vst.msk [vmem:[%s6435_s27 + $0x153] sm:$0x7] %vm4051_vm9, %v5074_v58 }
 0x1b9   : > { %v6430_v12 = vadd.f32 %v4812_v36, %v2457_v47  ;;  %4089 = vst.msk [vmem:[%s6435_s27 + $0x133] sm:$0xff] %vm4048_vm8, %v5074_v58  ;;  %4090 = vst.msk [vmem:[%s6435_s27 + $0x13b] sm:$0xff] %vm4048_vm8, %v5074_v58  ;;  %v2378_v13 = vpop.f32.mrf.mxu1 }
 0x1ba   : > { %v2801_v59 = vpop.f32.mrf.mxu0  ;;  %4091 = vst.msk [vmem:[%s6435_s27 + $0x143] sm:$0xff] %vm4048_vm8, %v5074_v58  ;;  %4092 = vst.msk [vmem:[%s6435_s27 + $0x14b] sm:$0xff] %vm4048_vm8, %v5074_v58  ;;  %v2459_v54 = vadd.f32 %v2378_v13, %v6336_v61  ;;  %v6480_v58 = vpop.permute.xlu1 %3844 }
 0x1bb   : > { %v6438_v63 = vadd.f32 %v2801_v59, %v2455_v11  ;;  %v4781_v0 = vpop.f32.mrf.mxu1 }
 0x1bc   : > { %v4815_v19 = vpop.f32.mrf.mxu0  ;;  %v2464_v37 = vadd.f32 %v4781_v0, %v6339_v29 }
 0x1bd   : > { %v6455_v2 = vadd.f32 %v4815_v19, %v2460_v28  ;;  %v2391_v5 = vpop.f32.mrf.mxu1  ;;  %v6472_v28 = vpop.permute.xlu0 %3834 }
 0x1be   : > { %v2814_v32 = vpop.f32.mrf.mxu0  ;;  %v2462_v53 = vadd.f32 %v2391_v5, %v6342_v9 }
 0x1bf   : > { %v6458_v46 = vadd.f32 %v2814_v32, %v2458_v7  ;;  %v4782_v49 = vpop.f32.mrf.mxu1 }
 0x1c0   : > { %v4816_v50 = vpop.f32.mrf.mxu0  ;;  %v2465_v30 = vadd.f32 %v4782_v49, %v6345_v1 }
 0x1c1   : > { %v6461_v43 = vadd.f32 %v4816_v50, %v2461_v38  ;;  %v2394_v61 = vpop.f32.mrf.mxu1  ;;  %v6485_v0 = vpop.permute.xlu0 %3839 }
 0x1c2   : > { %v2817_v48 = vpop.f32.mrf.mxu0  ;;  %v2463_v47 = vadd.f32 %v2394_v61, %v6348_v45 }
 0x1c3   : > { %v6464_v39 = vadd.f32 %v2817_v48, %v2459_v54  ;;  %v4785_v29 = vpop.f32.mrf.mxu1  ;;  %v6493_v48 = vpop.permute.xlu1 %3849 }
 0x1c4   : > { %v4819_v57 = vpop.f32.mrf.mxu0  ;;  %v2468_v11 = vadd.f32 %v4785_v29, %v6351_v16 }
 0x1c5   : > { %v6467_v23 = vadd.f32 %v4819_v57, %v2464_v37  ;;  %v2407_v9 = vpop.f32.mrf.mxu1 }
 0x1c6   : > { %v2830_v33 = vpop.f32.mrf.mxu0  ;;  %v2466_v1 = vadd.f32 %v2407_v9, %v6354_v14 }
 0x1c7   : > { %v6470_v8 = vadd.f32 %v2830_v33, %v2462_v53  ;;  %v4786_v36 = vpop.f32.mrf.mxu1 }
 0x1c8   : > { %v4820_v17 = vpop.f32.mrf.mxu0  ;;  %v2469_v45 = vadd.f32 %v4786_v36, %v6357_v3 }
 0x1c9   : > { %v6475_v10 = vadd.f32 %v4820_v17, %v2465_v30  ;;  %v2410_v59 = vpop.f32.mrf.mxu1 }
 0x1ca   : > { %v2833_v7 = vpop.f32.mrf.mxu0  ;;  %v2467_v16 = vadd.f32 %v2410_v59, %v6360_v6 }
 0x1cb   : > { %v6478_v25 = vadd.f32 %v2833_v7, %v2463_v47  ;;  %v4789_v19 = vpop.f32.mrf.mxu1  ;;  %v6498_v47 = vpop.permute.xlu0 %3854 }
 0x1cc   : > { %v4823_v38 = vpop.f32.mrf.mxu0  ;;  %v2472_v14 = vadd.f32 %v4789_v19, %v6363_v22  ;;  %v6517_v19 = vld [vmem:[%s6772_s2] ss:$0 sm:$0xff] }
 0x1cd   : > { %v6483_v13 = vadd.f32 %v4823_v38, %v2468_v11  ;;  %v2423_v37 = vpop.f32.mrf.mxu1 }
 0x1ce   : > { %v2846_v54 = vpop.f32.mrf.mxu0  ;;  %v2470_v5 = vadd.f32 %v2423_v37, %v6366_v24 }
 0x1cf   : > { %v6488_v32 = vadd.f32 %v2846_v54, %v2466_v1  ;;  %v4790_v53 = vpop.f32.mrf.mxu1  ;;  %v6505_v1 = vpop.permute.xlu1 %3859 }
 0x1d0   : > { %v4824_v3 = vpop.f32.mrf.mxu0  ;;  %v2473_v6 = vadd.f32 %v4790_v53, %v6369_v34 }
 0x1d1   : > { %v6491_v50 = vadd.f32 %v4824_v3, %v2469_v45  ;;  %v2426_v61 = vpop.f32.mrf.mxu1  ;;  %v6509_v45 = vpop.permute.xlu0 %3864  ;;  %v6523_v3 = vld [vmem:[%s6773_s3] ss:$0 sm:$0xff] }
 0x1d2   : > { %v2849_v49 = vpop.f32.mrf.mxu0  ;;  %v2471_v22 = vadd.f32 %v2426_v61, %v6372_v52 }
 0x1d3   : > { %v6496_v30 = vadd.f32 %v2849_v49, %v2467_v16  ;;  %v4833_v33 = vpop.f32.mrf.mxu1 }
 0x1d4   : > { %v4827_v57 = vpop.f32.mrf.mxu0  ;;  %v3326_v59 = vadd.f32 %v4833_v33, %v6375_v51  ;;  %v6525_v51 = vpop.permute.xlu1 %3869 }
 0x1d5   : > { %v6501_v29 = vadd.f32 %v4827_v57, %v2472_v14  ;;  %v3181_v9 = vpop.f32.mrf.mxu1 }
 0x1d6   : > { %v2862_v24 = vpop.f32.mrf.mxu0  ;;  %v3324_v54 = vadd.f32 %v3181_v9, %v6378_v26 }
 0x1d7   : > { %v6503_v11 = vadd.f32 %v2862_v24, %v2470_v5  ;;  %v4834_v34 = vpop.f32.mrf.mxu1 }
 0x1d8   : > { %v4828_v17 = vpop.f32.mrf.mxu0  ;;  %v3327_v53 = vadd.f32 %v4834_v34, %v6381_v60 }
 0x1d9   : > { %v6507_v36 = vadd.f32 %v4828_v17, %v2473_v6  ;;  %v3184_v52 = vpop.f32.mrf.mxu1 }
 0x1da   : > { %v2865_v7 = vpop.f32.mrf.mxu0  ;;  %v3325_v9 = vadd.f32 %v3184_v52, %v6384_v18 }
 0x1db   : > { %v6512_v38 = vadd.f32 %v2865_v7, %v2471_v22  ;;  %v4837_v37 = vpop.f32.mrf.mxu1  ;;  %v6529_v22 = vpop.permute.xlu0 %3874 }
 0x1dc   : > { %v4871_v16 = vpop.f32.mrf.mxu0 }
 0x1dd   : > { %v3640_v14 = vadd.f32 %v4871_v16, %v3326_v59  ;;  %v3197_v61 = vpop.f32.mrf.mxu1  ;;  %v3330_v59 = vadd.f32 %v4837_v37, %v6387_v27 }
 0x1de   : > { %v3495_v5 = vpop.f32.mrf.mxu0 }
 0x1df   : > { %v3683_v49 = vmul.f32 %v6517_v19, %v3640_v14  ;;  %v3638_v6 = vadd.f32 %v3495_v5, %v3324_v54  ;;  %v4838_v17 = vpop.f32.mrf.mxu1  ;;  %v6537_v5 = vpop.permute.xlu1 %3879 }
 0x1e0   : > { %v4872_v57 = vpop.f32.mrf.mxu0  ;;  %v6542_v37 = vpop.permute.xlu0 %3884 }
 0x1e1   : > { %v3726_v26 = vadd.f32 %v6523_v3, %v3683_v49  ;;  %v3681_v33 = vmul.f32 %v6517_v19, %v3638_v6  ;;  %v3641_v24 = vadd.f32 %v4872_v57, %v3327_v53  ;;  %v3200_v16 = vpop.f32.mrf.mxu1  ;;  %v3328_v49 = vadd.f32 %v3197_v61, %v6390_v44 }
 0x1e2   : > { %v3498_v7 = vpop.f32.mrf.mxu0  ;;  %v3331_v57 = vadd.f32 %v4838_v17, %v6393_v4 }
 0x1e3   : > { %4993 = vtanh.f32 %v3726_v26  ;;  %v3724_v60 = vadd.f32 %v6523_v3, %v3681_v33  ;;  %v3684_v34 = vmul.f32 %v6517_v19, %v3641_v24  ;;  %v3639_v54 = vadd.f32 %v3498_v7, %v3325_v9  ;;  %v4841_v6 = vpop.f32.mrf.mxu1 }
 0x1e4   : > { %v4875_v14 = vpop.f32.mrf.mxu0  ;;  %v3334_v4 = vadd.f32 %v4841_v6, %v6399_v21 }
 0x1e5   : > { %4995 = vtanh.f32 %v3724_v60  ;;  %v3727_v53 = vadd.f32 %v6523_v3, %v3684_v34  ;;  %v3644_v18 = vadd.f32 %v4875_v14, %v3330_v59  ;;  %v3682_v52 = vmul.f32 %v6517_v19, %v3639_v54  ;;  %v3213_v9 = vpop.f32.mrf.mxu1  ;;  %v6550_v14 = vpop.permute.xlu1 %3889 }
 0x1e6   : > { %v3511_v27 = vpop.f32.mrf.mxu0  ;;  %v3329_v60 = vadd.f32 %v3200_v16, %v6396_v15 }
 0x1e7   : > { %4997 = vtanh.f32 %v3727_v53  ;;  %v3687_v26 = vmul.f32 %v6517_v19, %v3644_v18  ;;  %v3642_v33 = vadd.f32 %v3511_v27, %v3328_v49  ;;  %v3725_v24 = vadd.f32 %v6523_v3, %v3682_v52  ;;  %v4842_v34 = vpop.f32.mrf.mxu1  ;;  %v6555_v27 = vpop.permute.xlu0 %3894 }
 0x1e8   : > { %v4876_v44 = vpop.f32.mrf.mxu0 }
 0x1e9   : > { %v3730_v61 = vadd.f32 %v6523_v3, %v3687_v26  ;;  %v3685_v7 = vmul.f32 %v6517_v19, %v3642_v33  ;;  %v3645_v59 = vadd.f32 %v4876_v44, %v3331_v57  ;;  %4999 = vtanh.f32 %v3725_v24  ;;  %v3216_v53 = vpop.f32.mrf.mxu1 }
 0x1ea   : > { %v3514_v54 = vpop.f32.mrf.mxu0  ;;  %v3332_v57 = vadd.f32 %v3213_v9, %v6402_v35  ;;  %v6563_v9 = vpop.permute.xlu1 %3899 }
 0x1eb   : > { %5001 = vtanh.f32 %v3730_v61  ;;  %v3728_v17 = vadd.f32 %v6523_v3, %v3685_v7  ;;  %v3688_v49 = vmul.f32 %v6517_v19, %v3645_v59  ;;  %v3643_v18 = vadd.f32 %v3514_v54, %v3329_v60  ;;  %v4845_v33 = vpop.f32.mrf.mxu1 }
 0x1ec   : > { %v4879_v52 = vpop.f32.mrf.mxu0  ;;  %v3335_v61 = vadd.f32 %v4842_v34, %v6405_v40  ;;  %v6569_v34 = vpop.permute.xlu0 %3904 }
 0x1ed   : > { %5003 = vtanh.f32 %v3728_v17  ;;  %v3731_v15 = vadd.f32 %v6523_v3, %v3688_v49  ;;  %v3648_v16 = vadd.f32 %v4879_v52, %v3334_v4  ;;  %v3686_v26 = vmul.f32 %v6517_v19, %v3643_v18  ;;  %v3229_v59 = vpop.f32.mrf.mxu1 }
 0x1ee   : > { %v3527_v21 = vpop.f32.mrf.mxu0  ;;  %v3333_v49 = vadd.f32 %v3216_v53, %v6408_v42 }
 0x1ef   : > { %5005 = vtanh.f32 %v3731_v15  ;;  %v3691_v6 = vmul.f32 %v6517_v19, %v3648_v16  ;;  %v3646_v24 = vadd.f32 %v3527_v21, %v3332_v57  ;;  %v3729_v7 = vadd.f32 %v6523_v3, %v3686_v26  ;;  %v4846_v18 = vpop.f32.mrf.mxu1 }
 0x1f0   : > { %v4994_v44 = vpop.eup %4993  ;;  %v4880_v35 = vpop.f32.mrf.mxu0 }
 0x1f1   : > { %v4014_v60 = vmul.f32 %v4994_v44, %v6480_v58  ;;  %v3734_v54 = vadd.f32 %v6523_v3, %v3691_v6  ;;  %v3689_v4 = vmul.f32 %v6517_v19, %v3646_v24  ;;  %5007 = vtanh.f32 %v3729_v7  ;;  %v3232_v53 = vpop.f32.mrf.mxu1 }
 0x1f2   : > { %v4996_v17 = vpop.eup %4995  ;;  %v3649_v52 = vadd.f32 %v4880_v35, %v3335_v61  ;;  %v3530_v40 = vpop.f32.mrf.mxu0  ;;  %v3338_v58 = vadd.f32 %v4845_v33, %v6411_v62  ;;  %v3336_v24 = vadd.f32 %v3229_v59, %v6414_v20  ;;  %v3339_v59 = vadd.f32 %v4846_v18, %v6417_v31 }
 0x1f3   : > { %4055 = vst.msk [vmem:[%s6435_s27 + $0x23] sm:$0xff] %vm4048_vm8, %v4014_v60  ;;  %v4012_v57 = vmul.f32 %v4996_v17, %v6472_v28  ;;  %5009 = vtanh.f32 %v3734_v54  ;;  %v3732_v15 = vadd.f32 %v6523_v3, %v3689_v4  ;;  %v3647_v26 = vadd.f32 %v3530_v40, %v3333_v49  ;;  %v4849_v44 = vpop.f32.mrf.mxu1  ;;  %v6583_v35 = vpop.permute.xlu1 %3909 }
 0x1f4   : > { %v4998_v16 = vpop.eup %4997  ;;  %v3692_v42 = vmul.f32 %v6517_v19, %v3649_v52  ;;  %v4883_v21 = vpop.f32.mrf.mxu0 }
 0x1f5   : > { %4053 = vst.msk [vmem:[%s6435_s27 + $0x13] sm:$0xff] %vm4048_vm8, %v4012_v57  ;;  %v4015_v6 = vmul.f32 %v4998_v16, %v6493_v48  ;;  %5011 = vtanh.f32 %v3732_v15  ;;  %v3652_v28 = vadd.f32 %v4883_v21, %v3338_v58  ;;  %v3690_v33 = vmul.f32 %v6517_v19, %v3647_v26  ;;  %v3245_v17 = vpop.f32.mrf.mxu1  ;;  %v6591_v52 = vpop.permute.xlu0 %3914 }
 0x1f6   : > { %v3735_v62 = vadd.f32 %v6523_v3, %v3692_v42  ;;  %v3543_v61 = vpop.f32.mrf.mxu0  ;;  %v5000_v7 = vpop.eup %4999 }
 0x1f7   : > { %4056 = vst.msk [vmem:[%s6435_s27 + $0x2b] sm:$0xff] %vm4048_vm8, %v4015_v6  ;;  %v3695_v60 = vmul.f32 %v6517_v19, %v3652_v28  ;;  %v3650_v54 = vadd.f32 %v3543_v61, %v3336_v24  ;;  %v4013_v20 = vmul.f32 %v5000_v7, %v6485_v0  ;;  %v3733_v4 = vadd.f32 %v6523_v3, %v3690_v33  ;;  %v4850_v31 = vpop.f32.mrf.mxu1  ;;  %v6605_v28 = vpop.permute.xlu1 %3919 }
 0x1f8   : > { %v5002_v48 = vpop.eup %5001  ;;  %5013 = vtanh.f32 %v3735_v62  ;;  %v4884_v49 = vpop.f32.mrf.mxu0  ;;  %v3337_v0 = vadd.f32 %v3232_v53, %v6420_v55 }
 0x1f9   : > { %v4018_v40 = vmul.f32 %v5002_v48, %v6509_v45  ;;  %v3738_v57 = vadd.f32 %v6523_v3, %v3695_v60  ;;  %v3693_v58 = vmul.f32 %v6517_v19, %v3650_v54  ;;  %4054 = vst.msk [vmem:[%s6435_s27 + $0x1b] sm:$0xff] %vm4048_vm8, %v4013_v20  ;;  %5015 = vtanh.f32 %v3733_v4  ;;  %v3248_v24 = vpop.f32.mrf.mxu1  ;;  %v6613_v54 = vpop.permute.xlu0 %3924 }
 0x1fa   : > { %v5004_v15 = vpop.eup %5003  ;;  %v3653_v18 = vadd.f32 %v4884_v49, %v3339_v59  ;;  %v3546_v16 = vpop.f32.mrf.mxu0  ;;  %v3342_v45 = vadd.f32 %v4849_v44, %v6423_v41  ;;  %v3343_v59 = vadd.f32 %v4850_v31, %v6430_v12 }
 0x1fb   : > { %4059 = vst.msk [vmem:[%s6435_s27 + $0x43] sm:$0xff] %vm4048_vm8, %v4018_v40  ;;  %v4016_v42 = vmul.f32 %v5004_v15, %v6498_v47  ;;  %5017 = vtanh.f32 %v3738_v57  ;;  %v3736_v26 = vadd.f32 %v6523_v3, %v3693_v58  ;;  %v3651_v55 = vadd.f32 %v3546_v16, %v3337_v0  ;;  %v4853_v61 = vpop.f32.mrf.mxu1 }
 0x1fc   : > { %v5006_v21 = vpop.eup %5005  ;;  %v3696_v6 = vmul.f32 %v6517_v19, %v3653_v18  ;;  %v4887_v53 = vpop.f32.mrf.mxu0  ;;  %v3340_v47 = vadd.f32 %v3245_v17, %v6427_v56  ;;  %v3341_v0 = vadd.f32 %v3248_v24, %v6438_v63  ;;  %v3346_v16 = vadd.f32 %v4853_v61, %v6455_v2 }
 0x1fd   : > { %4057 = vst.msk [vmem:[%s6435_s27 + $0x33] sm:$0xff] %vm4048_vm8, %v4016_v42  ;;  %v4019_v62 = vmul.f32 %v5006_v21, %v6525_v51  ;;  %5019 = vtanh.f32 %v3736_v26  ;;  %v3656_v41 = vadd.f32 %v4887_v53, %v3342_v45  ;;  %v3694_v44 = vmul.f32 %v6517_v19, %v3651_v55  ;;  %v3261_v17 = vpop.f32.mrf.mxu1  ;;  %v6627_v18 = vpop.permute.xlu1 %3929 }
 0x1fe   : > { %v3739_v33 = vadd.f32 %v6523_v3, %v3696_v6  ;;  %v3559_v7 = vpop.f32.mrf.mxu0  ;;  %v5008_v60 = vpop.eup %5007  ;;  %v3344_v55 = vadd.f32 %v3261_v17, %v6458_v46 }
 0x1ff   : > { %4060 = vst.msk [vmem:[%s6435_s27 + $0x4b] sm:$0xff] %vm4048_vm8, %v4019_v62  ;;  %v3699_v48 = vmul.f32 %v6517_v19, %v3656_v41  ;;  %v3654_v20 = vadd.f32 %v3559_v7, %v3340_v47  ;;  %v4017_v56 = vmul.f32 %v5008_v60, %v6505_v1  ;;  %v3737_v4 = vadd.f32 %v6523_v3, %v3694_v44  ;;  %v4854_v12 = vpop.f32.mrf.mxu1  ;;  %v6635_v24 = vpop.permute.xlu0 %3934 }
 0x200   : > { %v5010_v51 = vpop.eup %5009  ;;  %5021 = vtanh.f32 %v3739_v33  ;;  %v4888_v49 = vpop.f32.mrf.mxu0  ;;  %v3347_v60 = vadd.f32 %v4854_v12, %v6461_v43 }
 0x201   : > { %v4022_v40 = vmul.f32 %v5010_v51, %v6542_v37  ;;  %v3742_v57 = vadd.f32 %v6523_v3, %v3699_v48  ;;  %v3697_v58 = vmul.f32 %v6517_v19, %v3654_v20  ;;  %4058 = vst.msk [vmem:[%s6435_s27 + $0x3b] sm:$0xff] %vm4048_vm8, %v4017_v56  ;;  %5023 = vtanh.f32 %v3737_v4  ;;  %v3264_v26 = vpop.f32.mrf.mxu1  ;;  %v6649_v51 = vpop.permute.xlu1 %3939 }
 0x202   : > { %v5012_v15 = vpop.eup %5011  ;;  %v3657_v1 = vadd.f32 %v4888_v49, %v3343_v59  ;;  %v3562_v31 = vpop.f32.mrf.mxu0 }
 0x203   : > { %4063 = vst.msk [vmem:[%s6435_s27 + $0x63] sm:$0xff] %vm4048_vm8, %v4022_v40  ;;  %v4020_v37 = vmul.f32 %v5012_v15, %v6529_v22  ;;  %5025 = vtanh.f32 %v3742_v57  ;;  %v3740_v42 = vadd.f32 %v6523_v3, %v3697_v58  ;;  %v3655_v63 = vadd.f32 %v3562_v31, %v3341_v0  ;;  %v4857_v47 = vpop.f32.mrf.mxu1  ;;  %v6657_v57 = vpop.permute.xlu0 %3944 }
 0x204   : > { %v3700_v45 = vmul.f32 %v6517_v19, %v3657_v1  ;;  %v4891_v21 = vpop.f32.mrf.mxu0  ;;  %v3350_v58 = vadd.f32 %v4857_v47, %v6467_v23 }
 0x205   : > { %v5014_v6 = vpop.eup %5013  ;;  %4061 = vst.msk [vmem:[%s6435_s27 + $0x53] sm:$0xff] %vm4048_vm8, %v4020_v37  ;;  %5027 = vtanh.f32 %v3740_v42  ;;  %v3660_v22 = vadd.f32 %v4891_v21, %v3346_v16  ;;  %v3698_v62 = vmul.f32 %v6517_v19, %v3655_v63  ;;  %v3277_v48 = vpop.f32.mrf.mxu1 }
 0x206   : > { %v4023_v2 = vmul.f32 %v5014_v6, %v6550_v14  ;;  %v3743_v53 = vadd.f32 %v6523_v3, %v3700_v45  ;;  %v3575_v41 = vpop.f32.mrf.mxu0  ;;  %v5016_v33 = vpop.eup %5015  ;;  %v3348_v37 = vadd.f32 %v3277_v48, %v6470_v8 }
 0x207   : > { %v3703_v44 = vmul.f32 %v6517_v19, %v3660_v22  ;;  %v3658_v61 = vadd.f32 %v3575_v41, %v3344_v55  ;;  %v4021_v46 = vmul.f32 %v5016_v33, %v6537_v5  ;;  %v3741_v14 = vadd.f32 %v6523_v3, %v3698_v62  ;;  %v4858_v43 = vpop.f32.mrf.mxu1  ;;  %v6671_v21 = vpop.permute.xlu1 %3949 }
 0x208   : > { %v5018_v7 = vpop.eup %5017  ;;  %4064 = vst.msk [vmem:[%s6435_s27 + $0x6b] sm:$0xff] %vm4048_vm8, %v4023_v2  ;;  %5029 = vtanh.f32 %v3743_v53  ;;  %v4892_v20 = vpop.f32.mrf.mxu0  ;;  %v3345_v5 = vadd.f32 %v3264_v26, %v6464_v39 }
 0x209   : > { %v4026_v56 = vmul.f32 %v5018_v7, %v6569_v34  ;;  %v3746_v59 = vadd.f32 %v6523_v3, %v3703_v44  ;;  %v3701_v4 = vmul.f32 %v6517_v19, %v3658_v61  ;;  %4062 = vst.msk [vmem:[%s6435_s27 + $0x5b] sm:$0xff] %vm4048_vm8, %v4021_v46  ;;  %5031 = vtanh.f32 %v3741_v14  ;;  %v3280_v12 = vpop.f32.mrf.mxu1  ;;  %v6679_v47 = vpop.permute.xlu0 %3954 }
 0x20a   : > { %v5020_v17 = vpop.eup %5019  ;;  %v3661_v49 = vadd.f32 %v4892_v20, %v3347_v60  ;;  %v3578_v40 = vpop.f32.mrf.mxu0 }
 0x20b   : > { %4067 = vst.msk [vmem:[%s6435_s27 + $0x83] sm:$0xff] %vm4048_vm8, %v4026_v56  ;;  %v4024_v34 = vmul.f32 %v5020_v17, %v6555_v27  ;;  %5033 = vtanh.f32 %v3746_v59  ;;  %v3744_v15 = vadd.f32 %v6523_v3, %v3701_v4  ;;  %v3659_v39 = vadd.f32 %v3578_v40, %v3345_v5  ;;  %v4861_v45 = vpop.f32.mrf.mxu1  ;;  %v6693_v4 = vpop.permute.xlu1 %3959 }
 0x20c   : > { %v3704_v0 = vmul.f32 %v6517_v19, %v3661_v49  ;;  %v4895_v1 = vpop.f32.mrf.mxu0 }
 0x20d   : > { %v5022_v31 = vpop.eup %5021  ;;  %4065 = vst.msk [vmem:[%s6435_s27 + $0x73] sm:$0xff] %vm4048_vm8, %v4024_v34  ;;  %5035 = vtanh.f32 %v3744_v15  ;;  %v3664_v16 = vadd.f32 %v4895_v1, %v3350_v58  ;;  %v3702_v42 = vmul.f32 %v6517_v19, %v3659_v39  ;;  %v3293_v53 = vpop.f32.mrf.mxu1 }
 0x20e   : > { %v4027_v27 = vmul.f32 %v5022_v31, %v6583_v35  ;;  %v3747_v23 = vadd.f32 %v6523_v3, %v3704_v0  ;;  %v3591_v26 = vpop.f32.mrf.mxu0  ;;  %v5024_v63 = vpop.eup %5023  ;;  %v3351_v35 = vadd.f32 %v4858_v43, %v6475_v10  ;;  %v3352_v17 = vadd.f32 %v3293_v53, %v6488_v32 }
 0x20f   : > { %v3707_v6 = vmul.f32 %v6517_v19, %v3664_v16  ;;  %v3662_v55 = vadd.f32 %v3591_v26, %v3348_v37  ;;  %v4025_v8 = vmul.f32 %v5024_v63, %v6563_v9  ;;  %v3745_v2 = vadd.f32 %v6523_v3, %v3702_v42  ;;  %v4862_v10 = vpop.f32.mrf.mxu1  ;;  %v3965_v58 = vpop.permute.xlu0 %3964 }
 0x210   : > { %v5026_v22 = vpop.eup %5025  ;;  %4068 = vst.msk [vmem:[%s6435_s27 + $0x8b] sm:$0xff] %vm4048_vm8, %v4027_v27  ;;  %5037 = vtanh.f32 %v3747_v23  ;;  %v4896_v62 = vpop.f32.mrf.mxu0  ;;  %v3349_v9 = vadd.f32 %v3280_v12, %v6478_v25 }
 0x211   : > { %v4030_v41 = vmul.f32 %v5026_v22, %v6613_v54  ;;  %v3750_v33 = vadd.f32 %v6523_v3, %v3707_v6  ;;  %v3705_v44 = vmul.f32 %v6517_v19, %v3662_v55  ;;  %4066 = vst.msk [vmem:[%s6435_s27 + $0x7b] sm:$0xff] %vm4048_vm8, %v4025_v8  ;;  %5039 = vtanh.f32 %v3745_v2  ;;  %v3296_v20 = vpop.f32.mrf.mxu1  ;;  %v3970_v6 = vpop.permute.xlu1 %3969 }
 0x212   : > { %v5028_v61 = vpop.eup %5027  ;;  %v3665_v7 = vadd.f32 %v4896_v62, %v3351_v35  ;;  %v3594_v46 = vpop.f32.mrf.mxu0  ;;  %v3354_v54 = vadd.f32 %v4861_v45, %v6483_v13  ;;  %v3353_v42 = vadd.f32 %v3296_v20, %v6496_v30 }
 0x213   : > { %4071 = vst.msk [vmem:[%s6435_s27 + $0xa3] sm:$0xff] %vm4048_vm8, %v4030_v41  ;;  %v4028_v60 = vmul.f32 %v5028_v61, %v6591_v52  ;;  %5041 = vtanh.f32 %v3750_v33  ;;  %v3748_v14 = vadd.f32 %v6523_v3, %v3705_v44  ;;  %v3663_v56 = vadd.f32 %v3594_v46, %v3349_v9  ;;  %v4865_v49 = vpop.f32.mrf.mxu1 }
 0x214   : > { %v3708_v48 = vmul.f32 %v6517_v19, %v3665_v7  ;;  %v4899_v59 = vpop.f32.mrf.mxu0  ;;  %v3358_v26 = vadd.f32 %v4865_v49, %v6501_v29 }
 0x215   : > { %v5030_v25 = vpop.eup %5029  ;;  %4069 = vst.msk [vmem:[%s6435_s27 + $0x93] sm:$0xff] %vm4048_vm8, %v4028_v60  ;;  %5043 = vtanh.f32 %v3748_v14  ;;  %v3668_v52 = vadd.f32 %v4899_v59, %v3354_v54  ;;  %v3706_v43 = vmul.f32 %v6517_v19, %v3663_v56  ;;  %v3309_v1 = vpop.f32.mrf.mxu1 }
 0x216   : > { %v4031_v13 = vmul.f32 %v5030_v25, %v6627_v18  ;;  %v3751_v5 = vadd.f32 %v6523_v3, %v3708_v48  ;;  %v3607_v40 = vpop.f32.mrf.mxu0  ;;  %v5032_v34 = vpop.eup %5031  ;;  %v3355_v18 = vadd.f32 %v4862_v10, %v6491_v50  ;;  %v3356_v30 = vadd.f32 %v3309_v1, %v6503_v11 }
 0x217   : > { %v3711_v15 = vmul.f32 %v6517_v19, %v3668_v52  ;;  %v3666_v0 = vadd.f32 %v3607_v40, %v3352_v17  ;;  %v4029_v32 = vmul.f32 %v5032_v34, %v6605_v28  ;;  %v3749_v39 = vadd.f32 %v6523_v3, %v3706_v43  ;;  %v4866_v63 = vpop.f32.mrf.mxu1  ;;  %v3980_v20 = vpop.permute.xlu1 %3979 }
 0x218   : > { %v5034_v12 = vpop.eup %5033  ;;  %4072 = vst.msk [vmem:[%s6435_s27 + $0xab] sm:$0xff] %vm4048_vm8, %v4031_v13  ;;  %5045 = vtanh.f32 %v3751_v5  ;;  %v4900_v31 = vpop.f32.mrf.mxu0  ;;  %v3359_v44 = vadd.f32 %v4866_v63, %v6507_v36 }
 0x219   : > { %v4034_v37 = vmul.f32 %v5034_v12, %v6657_v57  ;;  %v3754_v16 = vadd.f32 %v6523_v3, %v3711_v15  ;;  %v3709_v27 = vmul.f32 %v6517_v19, %v3666_v0  ;;  %4070 = vst.msk [vmem:[%s6435_s27 + $0x9b] sm:$0xff] %vm4048_vm8, %v4029_v32  ;;  %5047 = vtanh.f32 %v3749_v39  ;;  %v3312_v61 = vpop.f32.mrf.mxu1 }
 0x21a   : > { %v5036_v23 = vpop.eup %5035  ;;  %v3669_v28 = vadd.f32 %v4900_v31, %v3355_v18  ;;  %v3610_v50 = vpop.f32.mrf.mxu0  ;;  %v3357_v56 = vadd.f32 %v3312_v61, %v6512_v38 }
 0x21b   : > { %4075 = vst.msk [vmem:[%s6435_s27 + $0xc3] sm:$0xff] %vm4048_vm8, %v4034_v37  ;;  %v4032_v45 = vmul.f32 %v5036_v23, %v6635_v24  ;;  %5049 = vtanh.f32 %v3754_v16  ;;  %v3752_v57 = vadd.f32 %v6523_v3, %v3709_v27  ;;  %v3667_v22 = vadd.f32 %v3610_v50, %v3353_v42  ;;  %v3975_v24 = vpop.permute.xlu0 %3974  ;;  %v3990_v34 = vpop.permute.xlu1 %3989 }
 0x21c   : > { %v3712_v55 = vmul.f32 %v6517_v19, %v3669_v28  ;;  %v4903_v8 = vpop.f32.mrf.mxu0 }
 0x21d   : > { %v5038_v35 = vpop.eup %5037  ;;  %4073 = vst.msk [vmem:[%s6435_s27 + $0xb3] sm:$0xff] %vm4048_vm8, %v4032_v45  ;;  %5051 = vtanh.f32 %v3752_v57  ;;  %v3672_v2 = vadd.f32 %v4903_v8, %v3358_v26  ;;  %v3710_v62 = vmul.f32 %v6517_v19, %v3667_v22 }
 0x21e   : > { %v4035_v29 = vmul.f32 %v5038_v35, %v6671_v21  ;;  %v3755_v53 = vadd.f32 %v6523_v3, %v3712_v55  ;;  %v3623_v41 = vpop.f32.mrf.mxu0  ;;  %v5040_v33 = vpop.eup %5039 }
 0x21f   : > { %v3715_v9 = vmul.f32 %v6517_v19, %v3672_v2  ;;  %v3670_v10 = vadd.f32 %v3623_v41, %v3356_v30  ;;  %v4033_v11 = vmul.f32 %v5040_v33, %v6649_v51  ;;  %v3753_v21 = vadd.f32 %v6523_v3, %v3710_v62  ;;  %v3985_v52 = vpop.permute.xlu0 %3984  ;;  %v4000_v39 = vpop.permute.xlu1 %3999 }
 0x220   : > { %v5042_v7 = vpop.eup %5041  ;;  %4076 = vst.msk [vmem:[%s6435_s27 + $0xcb] sm:$0xff] %vm4048_vm8, %v4035_v29  ;;  %5053 = vtanh.f32 %v3755_v53  ;;  %v4904_v46 = vpop.f32.mrf.mxu0 }
 0x221   : > { %v4038_v60 = vmul.f32 %v5042_v7, %v3965_v58  ;;  %v3758_v54 = vadd.f32 %v6523_v3, %v3715_v9  ;;  %v3713_v36 = vmul.f32 %v6517_v19, %v3670_v10  ;;  %v3673_v14 = vadd.f32 %v4904_v46, %v3359_v44  ;;  %4074 = vst.msk [vmem:[%s6435_s27 + $0xbb] sm:$0xff] %vm4048_vm8, %v4033_v11 }
 0x222   : > { %v5044_v48 = vpop.eup %5043  ;;  %5055 = vtanh.f32 %v3753_v21  ;;  %v3626_v59 = vpop.f32.mrf.mxu0 }
 0x223   : > { %4079 = vst.msk [vmem:[%s6435_s27 + $0xe3] sm:$0xff] %vm4048_vm8, %v4038_v60  ;;  %v4036_v51 = vmul.f32 %v5044_v48, %v6679_v47  ;;  %5057 = vtanh.f32 %v3758_v54  ;;  %v3756_v25 = vadd.f32 %v6523_v3, %v3713_v36  ;;  %v3716_v17 = vmul.f32 %v6517_v19, %v3673_v14  ;;  %v3995_v32 = vpop.permute.xlu0 %3994  ;;  %v4010_v28 = vpop.permute.xlu1 %4009 }
 0x224   : > { %v3671_v13 = vadd.f32 %v3626_v59, %v3357_v56 }
 0x225   : > { %v5046_v5 = vpop.eup %5045  ;;  %4077 = vst.msk [vmem:[%s6435_s27 + $0xd3] sm:$0xff] %vm4048_vm8, %v4036_v51  ;;  %5059 = vtanh.f32 %v3756_v25  ;;  %v3759_v38 = vadd.f32 %v6523_v3, %v3716_v17 }
 0x226   : > { %v4039_v43 = vmul.f32 %v5046_v5, %v3970_v6  ;;  %v3714_v49 = vmul.f32 %v6517_v19, %v3671_v13  ;;  %v5048_v47 = vpop.eup %5047 }
 0x227   : > { %5061 = vtanh.f32 %v3759_v38  ;;  %v4037_v58 = vmul.f32 %v5048_v47, %v6693_v4  ;;  %v4005_v31 = vpop.permute.xlu0 %4004 }
 0x228   : > { %v5050_v40 = vpop.eup %5049  ;;  %4080 = vst.msk [vmem:[%s6435_s27 + $0xeb] sm:$0xff] %vm4048_vm8, %v4039_v43  ;;  %v3757_v15 = vadd.f32 %v6523_v3, %v3714_v49 }
 0x229   : > { %v4042_v0 = vmul.f32 %v5050_v40, %v3985_v52  ;;  %4078 = vst.msk [vmem:[%s6435_s27 + $0xdb] sm:$0xff] %vm4048_vm8, %v4037_v58 }
 0x22a   : > { %v5052_v12 = vpop.eup %5051  ;;  %5063 = vtanh.f32 %v3757_v15 }
 0x22b   : > { %4083 = vst.msk [vmem:[%s6435_s27 + $0x103] sm:$0xff] %vm4048_vm8, %v4042_v0  ;;  %v4040_v19 = vmul.f32 %v5052_v12, %v3975_v24 }
 0x22d   : > { %v5054_v18 = vpop.eup %5053  ;;  %4081 = vst.msk [vmem:[%s6435_s27 + $0xf3] sm:$0xff] %vm4048_vm8, %v4040_v19 }
 0x22e   : > { %v4043_v4 = vmul.f32 %v5054_v18, %v3990_v34 }
 0x22f   : > { %v5056_v1 = vpop.eup %5055 }
 0x230   : > { %v5058_v3 = vpop.eup %5057  ;;  %4084 = vst.msk [vmem:[%s6435_s27 + $0x10b] sm:$0xff] %vm4048_vm8, %v4043_v4  ;;  %v4041_v37 = vmul.f32 %v5056_v1, %v3980_v20 }
 0x231   : > { %v4046_v16 = vmul.f32 %v5058_v3, %v4005_v31 }
 0x232   : > { %v5060_v27 = vpop.eup %5059  ;;  %4082 = vst.msk [vmem:[%s6435_s27 + $0xfb] sm:$0xff] %vm4048_vm8, %v4041_v37 }
 0x233   : > { %4087 = vst.msk [vmem:[%s6435_s27 + $0x123] sm:$0xff] %vm4048_vm8, %v4046_v16  ;;  %v4044_v23 = vmul.f32 %v5060_v27, %v3995_v32 }
 0x234   : > { %v5062_v42 = vpop.eup %5061 }
 0x235   : > { %4085 = vst.msk [vmem:[%s6435_s27 + $0x113] sm:$0xff] %vm4048_vm8, %v4044_v23  ;;  %v4047_v50 = vmul.f32 %v5062_v42, %v4010_v28 }
 0x237   : > { %v5064_v45 = vpop.eup %5063  ;;  %4088 = vst.msk [vmem:[%s6435_s27 + $0x12b] sm:$0xff] %vm4048_vm8, %v4047_v50 }
 0x238   : > { %v4045_v26 = vmul.f32 %v5064_v45, %v4000_v39 }
 0x23a   : > { %4086 = vst.msk [vmem:[%s6435_s27 + $0x11b] sm:$0xff] %vm4048_vm8, %v4045_v26 }
 0x23b PF: > { %s15_s18 = sadd.s32 1, %s5071_s18  }
 0x23c   : > { %p12_p4 = scmp.ge.s32.totalorder %s15_s18, 4  }
 0x23e   :  { %14 = sbr.rel (!%p12_p4) target bundleno = 1 (0x1), region = 78 }

</bundles_post_ra>
